<compile_context>
chip_gen: v5e
topology: v5e:2x2
jax: 0.10.0
libtpu: 0.0.40
codegen_flags: <defaults>
</compile_context>

<pallas_src>
import functools

import jax
import jax.numpy as jnp
from jax.experimental import pallas as pl
from jax.experimental.pallas import tpu as pltpu

EPS = 1e-5
F32 = jnp.float32
BF16 = jnp.bfloat16
NB = 8  # batch rows per grid program (= f32 sublane tile -> all in-kernel reshapes are layout-free)


# ------------------------------ in-kernel helpers ---------------------------------

def _mm(lhs_f32_2d, w_bf16):
    """MXU matmul: bf16 operands, f32 accumulation."""
    return jnp.dot(lhs_f32_2d.astype(BF16), w_bf16, preferred_element_type=F32)


def _pad_rows(y3):
    """Zero-pad one row at each end of the leading (length) dim: (l, nb, c) -> (l+2, nb, c)."""
    z = jnp.zeros((1,) + y3.shape[1:], y3.dtype)
    return jnp.concatenate([z, y3, z], axis=0)


def _conv3(a_pad, w3, b, stride):
    """Conv1d(k=3, p=1, stride in {1,2}) + folded BN bias.

    a_pad: (l_in+2, nb, cin) f32, zero rows at both ends (length leading, batch on sublanes).
    w3:    (3, cin, cout) bf16 (BN folded).   b: (1, cout) f32.
    Returns (l_out*nb, cout) f32.
    """
    lp, nb, cin = a_pad.shape
    l_in = lp - 2
    l_out = l_in // stride
    if stride == 1:
        taps = (a_pad[0:l_out], a_pad[1:l_out + 1], a_pad[2:l_out + 2])
    else:  # stride 2: rows 2l, 2l+1, 2l+2 via a leading-dim even/odd split (no strided reads)
        r = a_pad.reshape(l_out + 1, 2, nb, cin)
        even, odd = r[:, 0], r[:, 1]
        taps = (even[0:l_out], odd[0:l_out], even[1:l_out + 1])
    acc = _mm(taps[0].reshape(l_out * nb, cin), w3[0])
    acc = acc + _mm(taps[1].reshape(l_out * nb, cin), w3[1])
    acc = acc + _mm(taps[2].reshape(l_out * nb, cin), w3[2])
    return acc + b


def _basic_block(a_pad, w1, b1, w2, b2, wd, bd, stride):
    """conv3-BN-ReLU-conv3-BN (+ optional 1x1 downsample-BN) + residual + ReLU."""
    lp, nb, cin = a_pad.shape
    l_in = lp - 2
    l_out = l_in // stride
    cout = w1.shape[-1]
    h = jnp.maximum(_conv3(a_pad, w1, b1, stride), 0.0)              # conv1 + bn1 + relu
    y = _conv3(_pad_rows(h.reshape(l_out, nb, cout)), w2, b2, 1)     # conv2 + bn2
    if wd is None:                                                   # identity (stride 1, cin == cout)
        ident = a_pad[1:1 + l_in].reshape(l_in * nb, cin)
    else:                                                            # 1x1 downsample + bn
        if stride == 2:
            r = a_pad.reshape(l_out + 1, 2, nb, cin)
            xi = r[0:l_out, 1]                                       # unpadded x[2l]
        else:
            xi = a_pad[1:1 + l_in]
        ident = _mm(xi.reshape(l_out * nb, cin), wd) + bd
    out = jnp.maximum(y + ident, 0.0)
    return _pad_rows(out.reshape(l_out, nb, cout))


# ------------------------------ fused network kernel ------------------------------

def _ftnet_kernel(*refs, block_meta):
    refs = list(refs)
    o_ref = refs.pop()                       # output ref is last
    it = iter(refs)
    xt_ref = next(it)
    w_stem = next(it)[...]
    b_stem = next(it)[...]
    L, nb, _ = xt_ref.shape

    # --- stem: conv1(1->64, k3, p1) + BN + ReLU (im2col taps built host-side, K=3 matmul) ---
    xt = xt_ref[...].reshape(L * nb, 3)
    h0 = jnp.maximum(_mm(xt, w_stem) + b_stem, 0.0)                  # (L*nb, 64)

    # --- MaxPool1d(k3, s2, p1): zero padding is exact because post-ReLU h0 >= 0 ---
    h0p = _pad_rows(h0.reshape(L, nb, 64))                           # (L+2, nb, 64)
    r = h0p.reshape(L // 2 + 1, 2, nb, 64)
    even, odd = r[:, 0], r[:, 1]
    a = jnp.maximum(jnp.maximum(even[0:L // 2], odd[0:L // 2]), even[1:L // 2 + 1])
    a_pad = _pad_rows(a)                                             # (L//2+2, nb, 64)

    # --- layer1/2/3: six BasicBlocks, fully unrolled, weights VMEM-resident ---
    for stride, has_down in block_meta:
        w1 = next(it)[...]; b1 = next(it)[...]
        w2 = next(it)[...]; b2 = next(it)[...]
        wd = bd = None
        if has_down:
            wd = next(it)[...]; bd = next(it)[...]
        a_pad = _basic_block(a_pad, w1, b1, w2, b2, wd, bd, stride)

    # --- head: AdaptiveAvgPool1d(1) + Linear(256,128)+BN + Linear(128, classes padded to 128) ---
    w_fc = next(it)[...]; b_fc = next(it)[...]
    w_cls = next(it)[...]; b_cls = next(it)[...]
    l3 = a_pad.shape[0] - 2
    feat = jnp.mean(a_pad[1:1 + l3], axis=0)                         # (nb, 256)
    h = _mm(feat, w_fc) + b_fc                                       # (nb, 128)
    o_ref[...] = _mm(h, w_cls) + b_cls                               # (nb, 128) lane-dense


# ---------------------------------- wrapper ----------------------------------------

def _const_index_map(ndim):
    return lambda i: (0,) * ndim


def ft_net_forward(x_ncl, params):
    """x_ncl: (B, 1, L) PyTorch-style Conv1d input. Returns (B, class_num) logits."""
    B, cin, L = x_ncl.shape
    assert cin == 1 and L % 8 == 0 and L >= 8, (cin, L)
    x = x_ncl[:, 0, :].astype(F32)                                   # (B, L)

    # pad batch to a multiple of NB=8 so the batch dim fills the f32 sublane tile
    Bp = ((B + NB - 1) // NB) * NB
    if Bp != B:
        x = jnp.concatenate([x, jnp.zeros((Bp - B, L), F32)], axis=0)

    # host-side im2col for the Cin=1 stem conv: taps [x[l-1], x[l], x[l+1]]
    xp = jnp.pad(x, ((0, 0), (1, 1)))
    xt = jnp.stack([xp[:, 0:L], xp[:, 1:L + 1], xp[:, 2:L + 2]], axis=-1)   # (Bp, L, 3)
    xt = jnp.transpose(xt, (1, 0, 2))                                       # (L, Bp, 3)

    args = [xt, params['stem_w'], params['stem_b']]
    block_meta = []
    for name in ('layer1', 'layer2', 'layer3'):
        for bp in params[name]:
            args += [bp['w1'], bp['b1'], bp['w2'], bp['b2']]
            has_down = 'wd' in bp
            if has_down:
                args += [bp['wd'], bp['bd']]
            block_meta.append((bp['stride'], has_down))
    args += [params['fc_w'], params['fc_b'], params['cls_w'], params['cls_b']]

    in_specs = [pl.BlockSpec((L, NB, 3), lambda i: (0, i, 0))]               # batch-chunked input
    in_specs += [pl.BlockSpec(a.shape, _const_index_map(a.ndim)) for a in args[1:]]  # resident weights

    out = pl.pallas_call(
        functools.partial(_ftnet_kernel, block_meta=tuple(block_meta)),
        grid=(Bp // NB,),
        out_shape=jax.ShapeDtypeStruct((Bp, 128), F32),
        in_specs=in_specs,
        out_specs=pl.BlockSpec((NB, 128), lambda i: (i, 0)),
        compiler_params=pltpu.CompilerParams(dimension_semantics=("parallel",)),
    )(*args)
    return out[:B, :params['class_num']]


# ------------------------------- parameter init ------------------------------------

def init_params(key, class_num):
    assert class_num <= 128
    keys = iter(jax.random.split(key, 32))

    def fold(w, gamma, beta, mean, var):        # fold eval-mode BN into the preceding weight
        scale = gamma / jnp.sqrt(var + EPS)
        return (w * scale).astype(BF16), (beta - mean * scale).reshape(1, -1).astype(F32)

    def conv3_w(cin, cout):                     # kaiming_normal, mode='fan_out', relu
        std = (2.0 / (cout * 3)) ** 0.5
        return jax.random.normal(next(keys), (3, cin, cout), F32) * std

    def conv1_w(cin, cout):
        std = (2.0 / (cout * 1)) ** 0.5
        return jax.random.normal(next(keys), (cin, cout), F32) * std

    ones = lambda c: jnp.ones((c,), F32)
    zeros = lambda c: jnp.zeros((c,), F32)

    def block(cin, cout, stride):
        w1, b1 = fold(conv3_w(cin, cout), ones(cout), zeros(cout), zeros(cout), ones(cout))
        w2, b2 = fold(conv3_w(cout, cout), ones(cout), zeros(cout), zeros(cout), ones(cout))
        p = {'stride': stride, 'w1': w1, 'b1': b1, 'w2': w2, 'b2': b2}
        if stride != 1 or cin != cout:
            p['wd'], p['bd'] = fold(conv1_w(cin, cout), ones(cout), zeros(cout), zeros(cout), ones(cout))
        return p

    stem_w, stem_b = fold(conv3_w(1, 64).reshape(3, 64),
                          ones(64), zeros(64), zeros(64), ones(64))

    params = {
        'class_num': class_num,
        'stem_w': stem_w, 'stem_b': stem_b,
        'layer1': [block(64, 64, 1), block(64, 64, 1)],
        'layer2': [block(64, 128, 2), block(128, 128, 1)],
        'layer3': [block(128, 256, 2), block(256, 256, 1)],
    }
    # ClassBlock: Linear(256,128) (kaiming fan_out, bias=0) + BatchNorm1d(128) folded in.
    w_fc = jax.random.normal(next(keys), (256, 128), F32) * (2.0 / 128) ** 0.5
    gamma_fc = 1.0 + 0.02 * jax.random.normal(next(keys), (128,), F32)
    params['fc_w'], params['fc_b'] = fold(w_fc, gamma_fc, zeros(128), zeros(128), ones(128))
    # classifier Linear(128, class_num): weight ~ N(0, 0.001), bias = 0; padded to 128 lanes.
    w_cls = jax.random.normal(next(keys), (128, class_num), F32) * 0.001
    params['cls_w'] = jnp.zeros((128, 128), F32).at[:, :class_num].set(w_cls).astype(BF16)
    params['cls_b'] = jnp.zeros((1, 128), F32)
    return params


if __name__ == "__main__":
    key = jax.random.PRNGKey(0)
    k_param, k_x = jax.random.split(key)
    class_num = 16
    params = init_params(k_param, class_num)
    x = jax.random.normal(k_x, (16, 1, 64), jnp.float32)   # PyTorch NCL input: (B, C=1, L)
    fwd = jax.jit(functools.partial(ft_net_forward, params=params))
    out = fwd(x)
    jax.block_until_ready(out)
    assert out.shape == (16, class_num), out.shape
    assert bool(jnp.all(jnp.isfinite(out)))
    print("KERNEL_OK")
</pallas_src>

<mosaic_0001>
module attributes {stable_mosaic.version = 11 : i64} {
  func.func @_ftnet_kernel(%arg0: i32, %arg1: memref<64x8x3xf32, #tpu.memory_space<vmem>>, %arg2: memref<3x64xbf16, #tpu.memory_space<vmem>>, %arg3: memref<1x64xf32, #tpu.memory_space<vmem>>, %arg4: memref<3x64x64xbf16, #tpu.memory_space<vmem>>, %arg5: memref<1x64xf32, #tpu.memory_space<vmem>>, %arg6: memref<3x64x64xbf16, #tpu.memory_space<vmem>>, %arg7: memref<1x64xf32, #tpu.memory_space<vmem>>, %arg8: memref<3x64x64xbf16, #tpu.memory_space<vmem>>, %arg9: memref<1x64xf32, #tpu.memory_space<vmem>>, %arg10: memref<3x64x64xbf16, #tpu.memory_space<vmem>>, %arg11: memref<1x64xf32, #tpu.memory_space<vmem>>, %arg12: memref<3x64x128xbf16, #tpu.memory_space<vmem>>, %arg13: memref<1x128xf32, #tpu.memory_space<vmem>>, %arg14: memref<3x128x128xbf16, #tpu.memory_space<vmem>>, %arg15: memref<1x128xf32, #tpu.memory_space<vmem>>, %arg16: memref<64x128xbf16, #tpu.memory_space<vmem>>, %arg17: memref<1x128xf32, #tpu.memory_space<vmem>>, %arg18: memref<3x128x128xbf16, #tpu.memory_space<vmem>>, %arg19: memref<1x128xf32, #tpu.memory_space<vmem>>, %arg20: memref<3x128x128xbf16, #tpu.memory_space<vmem>>, %arg21: memref<1x128xf32, #tpu.memory_space<vmem>>, %arg22: memref<3x128x256xbf16, #tpu.memory_space<vmem>>, %arg23: memref<1x256xf32, #tpu.memory_space<vmem>>, %arg24: memref<3x256x256xbf16, #tpu.memory_space<vmem>>, %arg25: memref<1x256xf32, #tpu.memory_space<vmem>>, %arg26: memref<128x256xbf16, #tpu.memory_space<vmem>>, %arg27: memref<1x256xf32, #tpu.memory_space<vmem>>, %arg28: memref<3x256x256xbf16, #tpu.memory_space<vmem>>, %arg29: memref<1x256xf32, #tpu.memory_space<vmem>>, %arg30: memref<3x256x256xbf16, #tpu.memory_space<vmem>>, %arg31: memref<1x256xf32, #tpu.memory_space<vmem>>, %arg32: memref<256x128xbf16, #tpu.memory_space<vmem>>, %arg33: memref<1x128xf32, #tpu.memory_space<vmem>>, %arg34: memref<128x128xbf16, #tpu.memory_space<vmem>>, %arg35: memref<1x128xf32, #tpu.memory_space<vmem>>, %arg36: memref<8x128xf32, #tpu.memory_space<vmem>>) attributes {dimension_semantics = [#tpu.dimension_semantics<parallel>], iteration_bounds = array<i64: 2>, scalar_prefetch = 0 : i64, scratch_operands = 0 : i64, tpu.core_type = #tpu.core_type<tc>, window_params = [{transform_indices = @transform_0, window_bounds = array<i64: 64, 8, 3>}, {pipeline_mode = #tpu.pipeline_mode<synchronous>, transform_indices = @transform_1, window_bounds = array<i64: 3, 64>}, {pipeline_mode = #tpu.pipeline_mode<synchronous>, transform_indices = @transform_2, window_bounds = array<i64: 1, 64>}, {pipeline_mode = #tpu.pipeline_mode<synchronous>, transform_indices = @transform_3, window_bounds = array<i64: 3, 64, 64>}, {pipeline_mode = #tpu.pipeline_mode<synchronous>, transform_indices = @transform_4, window_bounds = array<i64: 1, 64>}, {pipeline_mode = #tpu.pipeline_mode<synchronous>, transform_indices = @transform_5, window_bounds = array<i64: 3, 64, 64>}, {pipeline_mode = #tpu.pipeline_mode<synchronous>, transform_indices = @transform_6, window_bounds = array<i64: 1, 64>}, {pipeline_mode = #tpu.pipeline_mode<synchronous>, transform_indices = @transform_7, window_bounds = array<i64: 3, 64, 64>}, {pipeline_mode = #tpu.pipeline_mode<synchronous>, transform_indices = @transform_8, window_bounds = array<i64: 1, 64>}, {pipeline_mode = #tpu.pipeline_mode<synchronous>, transform_indices = @transform_9, window_bounds = array<i64: 3, 64, 64>}, {pipeline_mode = #tpu.pipeline_mode<synchronous>, transform_indices = @transform_10, window_bounds = array<i64: 1, 64>}, {pipeline_mode = #tpu.pipeline_mode<synchronous>, transform_indices = @transform_11, window_bounds = array<i64: 3, 64, 128>}, {pipeline_mode = #tpu.pipeline_mode<synchronous>, transform_indices = @transform_12, window_bounds = array<i64: 1, 128>}, {pipeline_mode = #tpu.pipeline_mode<synchronous>, transform_indices = @transform_13, window_bounds = array<i64: 3, 128, 128>}, {pipeline_mode = #tpu.pipeline_mode<synchronous>, transform_indices = @transform_14, window_bounds = array<i64: 1, 128>}, {pipeline_mode = #tpu.pipeline_mode<synchronous>, transform_indices = @transform_15, window_bounds = array<i64: 64, 128>}, {pipeline_mode = #tpu.pipeline_mode<synchronous>, transform_indices = @transform_16, window_bounds = array<i64: 1, 128>}, {pipeline_mode = #tpu.pipeline_mode<synchronous>, transform_indices = @transform_17, window_bounds = array<i64: 3, 128, 128>}, {pipeline_mode = #tpu.pipeline_mode<synchronous>, transform_indices = @transform_18, window_bounds = array<i64: 1, 128>}, {pipeline_mode = #tpu.pipeline_mode<synchronous>, transform_indices = @transform_19, window_bounds = array<i64: 3, 128, 128>}, {pipeline_mode = #tpu.pipeline_mode<synchronous>, transform_indices = @transform_20, window_bounds = array<i64: 1, 128>}, {pipeline_mode = #tpu.pipeline_mode<synchronous>, transform_indices = @transform_21, window_bounds = array<i64: 3, 128, 256>}, {pipeline_mode = #tpu.pipeline_mode<synchronous>, transform_indices = @transform_22, window_bounds = array<i64: 1, 256>}, {pipeline_mode = #tpu.pipeline_mode<synchronous>, transform_indices = @transform_23, window_bounds = array<i64: 3, 256, 256>}, {pipeline_mode = #tpu.pipeline_mode<synchronous>, transform_indices = @transform_24, window_bounds = array<i64: 1, 256>}, {pipeline_mode = #tpu.pipeline_mode<synchronous>, transform_indices = @transform_25, window_bounds = array<i64: 128, 256>}, {pipeline_mode = #tpu.pipeline_mode<synchronous>, transform_indices = @transform_26, window_bounds = array<i64: 1, 256>}, {pipeline_mode = #tpu.pipeline_mode<synchronous>, transform_indices = @transform_27, window_bounds = array<i64: 3, 256, 256>}, {pipeline_mode = #tpu.pipeline_mode<synchronous>, transform_indices = @transform_28, window_bounds = array<i64: 1, 256>}, {pipeline_mode = #tpu.pipeline_mode<synchronous>, transform_indices = @transform_29, window_bounds = array<i64: 3, 256, 256>}, {pipeline_mode = #tpu.pipeline_mode<synchronous>, transform_indices = @transform_30, window_bounds = array<i64: 1, 256>}, {pipeline_mode = #tpu.pipeline_mode<synchronous>, transform_indices = @transform_31, window_bounds = array<i64: 256, 128>}, {pipeline_mode = #tpu.pipeline_mode<synchronous>, transform_indices = @transform_32, window_bounds = array<i64: 1, 128>}, {pipeline_mode = #tpu.pipeline_mode<synchronous>, transform_indices = @transform_33, window_bounds = array<i64: 128, 128>}, {pipeline_mode = #tpu.pipeline_mode<synchronous>, transform_indices = @transform_34, window_bounds = array<i64: 1, 128>}, {transform_indices = @transform_35, window_bounds = array<i64: 8, 128>}]} {
    %c0 = arith.constant 0 : index
    %c0_0 = arith.constant 0 : index
    %0 = vector.load %arg2[%c0, %c0_0] : memref<3x64xbf16, #tpu.memory_space<vmem>>, vector<3x64xbf16>
    %c0_1 = arith.constant 0 : index
    %c0_2 = arith.constant 0 : index
    %1 = vector.load %arg3[%c0_1, %c0_2] : memref<1x64xf32, #tpu.memory_space<vmem>>, vector<1x64xf32>
    %c0_3 = arith.constant 0 : index
    %c0_4 = arith.constant 0 : index
    %c0_5 = arith.constant 0 : index
    %2 = vector.load %arg1[%c0_3, %c0_4, %c0_5] : memref<64x8x3xf32, #tpu.memory_space<vmem>>, vector<64x8x3xf32>
    %3 = vector.shape_cast %2 : vector<64x8x3xf32> to vector<512x3xf32>
    %4 = arith.truncf %3 : vector<512x3xf32> to vector<512x3xbf16>
    %cst = arith.constant dense<0.000000e+00> : vector<512x64xf32>
    %5 = tpu.matmul %4, %0, %cst {dimension_numbers = #tpu.dot_dimension_numbers<[1], [0], [0], [1], [0, 0, 1, 1], [], []>} : vector<512x3xbf16>, vector<3x64xbf16>, vector<512x64xf32> -> vector<512x64xf32>
    %6 = vector.broadcast %1 : vector<1x64xf32> to vector<512x64xf32>
    %7 = arith.addf %5, %6 : vector<512x64xf32>
    %cst_6 = arith.constant 0.000000e+00 : f32
    %8 = vector.broadcast %cst_6 : f32 to vector<512x64xf32>
    %9 = arith.maximumf %7, %8 : vector<512x64xf32>
    %10 = vector.shape_cast %9 : vector<512x64xf32> to vector<64x8x64xf32>
    %cst_7 = arith.constant 0.000000e+00 : f32
    %11 = vector.broadcast %cst_7 : f32 to vector<1x8x64xf32>
    %12 = tpu.concatenate %11, %10, %11 in 0 : vector<1x8x64xf32>, vector<64x8x64xf32>, vector<1x8x64xf32> -> vector<66x8x64xf32>
    %13 = vector.shape_cast %12 : vector<66x8x64xf32> to vector<33x2x8x64xf32>
    %14 = vector.extract_strided_slice %13 {offsets = [0, 0, 0, 0], sizes = [33, 1, 8, 64], strides = [1, 1, 1, 1]} : vector<33x2x8x64xf32> to vector<33x1x8x64xf32>
    %15 = vector.shape_cast %14 : vector<33x1x8x64xf32> to vector<33x8x64xf32>
    %16 = vector.extract_strided_slice %13 {offsets = [0, 1, 0, 0], sizes = [33, 1, 8, 64], strides = [1, 1, 1, 1]} : vector<33x2x8x64xf32> to vector<33x1x8x64xf32>
    %17 = vector.shape_cast %16 : vector<33x1x8x64xf32> to vector<33x8x64xf32>
    %18 = vector.extract_strided_slice %15 {offsets = [0, 0, 0], sizes = [32, 8, 64], strides = [1, 1, 1]} : vector<33x8x64xf32> to vector<32x8x64xf32>
    %19 = vector.extract_strided_slice %17 {offsets = [0, 0, 0], sizes = [32, 8, 64], strides = [1, 1, 1]} : vector<33x8x64xf32> to vector<32x8x64xf32>
    %20 = arith.maximumf %18, %19 : vector<32x8x64xf32>
    %21 = vector.extract_strided_slice %15 {offsets = [1, 0, 0], sizes = [32, 8, 64], strides = [1, 1, 1]} : vector<33x8x64xf32> to vector<32x8x64xf32>
    %22 = arith.maximumf %20, %21 : vector<32x8x64xf32>
    %cst_8 = arith.constant 0.000000e+00 : f32
    %23 = vector.broadcast %cst_8 : f32 to vector<1x8x64xf32>
    %24 = tpu.concatenate %23, %22, %23 in 0 : vector<1x8x64xf32>, vector<32x8x64xf32>, vector<1x8x64xf32> -> vector<34x8x64xf32>
    %c0_9 = arith.constant 0 : index
    %c0_10 = arith.constant 0 : index
    %c0_11 = arith.constant 0 : index
    %25 = vector.load %arg4[%c0_9, %c0_10, %c0_11] : memref<3x64x64xbf16, #tpu.memory_space<vmem>>, vector<3x64x64xbf16>
    %c0_12 = arith.constant 0 : index
    %c0_13 = arith.constant 0 : index
    %26 = vector.load %arg5[%c0_12, %c0_13] : memref<1x64xf32, #tpu.memory_space<vmem>>, vector<1x64xf32>
    %c0_14 = arith.constant 0 : index
    %c0_15 = arith.constant 0 : index
    %c0_16 = arith.constant 0 : index
    %27 = vector.load %arg6[%c0_14, %c0_15, %c0_16] : memref<3x64x64xbf16, #tpu.memory_space<vmem>>, vector<3x64x64xbf16>
    %c0_17 = arith.constant 0 : index
    %c0_18 = arith.constant 0 : index
    %28 = vector.load %arg7[%c0_17, %c0_18] : memref<1x64xf32, #tpu.memory_space<vmem>>, vector<1x64xf32>
    %29 = vector.extract_strided_slice %24 {offsets = [0, 0, 0], sizes = [32, 8, 64], strides = [1, 1, 1]} : vector<34x8x64xf32> to vector<32x8x64xf32>
    %30 = vector.extract_strided_slice %24 {offsets = [1, 0, 0], sizes = [32, 8, 64], strides = [1, 1, 1]} : vector<34x8x64xf32> to vector<32x8x64xf32>
    %31 = vector.extract_strided_slice %24 {offsets = [2, 0, 0], sizes = [32, 8, 64], strides = [1, 1, 1]} : vector<34x8x64xf32> to vector<32x8x64xf32>
    %32 = vector.shape_cast %29 : vector<32x8x64xf32> to vector<256x64xf32>
    %33 = vector.extract_strided_slice %25 {offsets = [0, 0, 0], sizes = [1, 64, 64], strides = [1, 1, 1]} : vector<3x64x64xbf16> to vector<1x64x64xbf16>
    %34 = vector.shape_cast %33 : vector<1x64x64xbf16> to vector<64x64xbf16>
    %35 = arith.truncf %32 : vector<256x64xf32> to vector<256x64xbf16>
    %cst_19 = arith.constant dense<0.000000e+00> : vector<256x64xf32>
    %36 = tpu.matmul %35, %34, %cst_19 {dimension_numbers = #tpu.dot_dimension_numbers<[1], [0], [0], [1], [0, 0, 1, 1], [], []>} : vector<256x64xbf16>, vector<64x64xbf16>, vector<256x64xf32> -> vector<256x64xf32>
    %37 = vector.shape_cast %30 : vector<32x8x64xf32> to vector<256x64xf32>
    %38 = vector.extract_strided_slice %25 {offsets = [1, 0, 0], sizes = [1, 64, 64], strides = [1, 1, 1]} : vector<3x64x64xbf16> to vector<1x64x64xbf16>
    %39 = vector.shape_cast %38 : vector<1x64x64xbf16> to vector<64x64xbf16>
    %40 = arith.truncf %37 : vector<256x64xf32> to vector<256x64xbf16>
    %cst_20 = arith.constant dense<0.000000e+00> : vector<256x64xf32>
    %41 = tpu.matmul %40, %39, %cst_20 {dimension_numbers = #tpu.dot_dimension_numbers<[1], [0], [0], [1], [0, 0, 1, 1], [], []>} : vector<256x64xbf16>, vector<64x64xbf16>, vector<256x64xf32> -> vector<256x64xf32>
    %42 = arith.addf %36, %41 : vector<256x64xf32>
    %43 = vector.shape_cast %31 : vector<32x8x64xf32> to vector<256x64xf32>
    %44 = vector.extract_strided_slice %25 {offsets = [2, 0, 0], sizes = [1, 64, 64], strides = [1, 1, 1]} : vector<3x64x64xbf16> to vector<1x64x64xbf16>
    %45 = vector.shape_cast %44 : vector<1x64x64xbf16> to vector<64x64xbf16>
    %46 = arith.truncf %43 : vector<256x64xf32> to vector<256x64xbf16>
    %cst_21 = arith.constant dense<0.000000e+00> : vector<256x64xf32>
    %47 = tpu.matmul %46, %45, %cst_21 {dimension_numbers = #tpu.dot_dimension_numbers<[1], [0], [0], [1], [0, 0, 1, 1], [], []>} : vector<256x64xbf16>, vector<64x64xbf16>, vector<256x64xf32> -> vector<256x64xf32>
    %48 = arith.addf %42, %47 : vector<256x64xf32>
    %49 = vector.broadcast %26 : vector<1x64xf32> to vector<256x64xf32>
    %50 = arith.addf %48, %49 : vector<256x64xf32>
    %cst_22 = arith.constant 0.000000e+00 : f32
    %51 = vector.broadcast %cst_22 : f32 to vector<256x64xf32>
    %52 = arith.maximumf %50, %51 : vector<256x64xf32>
    %53 = vector.shape_cast %52 : vector<256x64xf32> to vector<32x8x64xf32>
    %cst_23 = arith.constant 0.000000e+00 : f32
    %54 = vector.broadcast %cst_23 : f32 to vector<1x8x64xf32>
    %55 = tpu.concatenate %54, %53, %54 in 0 : vector<1x8x64xf32>, vector<32x8x64xf32>, vector<1x8x64xf32> -> vector<34x8x64xf32>
    %56 = vector.extract_strided_slice %55 {offsets = [0, 0, 0], sizes = [32, 8, 64], strides = [1, 1, 1]} : vector<34x8x64xf32> to vector<32x8x64xf32>
    %57 = vector.extract_strided_slice %55 {offsets = [1, 0, 0], sizes = [32, 8, 64], strides = [1, 1, 1]} : vector<34x8x64xf32> to vector<32x8x64xf32>
    %58 = vector.extract_strided_slice %55 {offsets = [2, 0, 0], sizes = [32, 8, 64], strides = [1, 1, 1]} : vector<34x8x64xf32> to vector<32x8x64xf32>
    %59 = vector.shape_cast %56 : vector<32x8x64xf32> to vector<256x64xf32>
    %60 = vector.extract_strided_slice %27 {offsets = [0, 0, 0], sizes = [1, 64, 64], strides = [1, 1, 1]} : vector<3x64x64xbf16> to vector<1x64x64xbf16>
    %61 = vector.shape_cast %60 : vector<1x64x64xbf16> to vector<64x64xbf16>
    %62 = arith.truncf %59 : vector<256x64xf32> to vector<256x64xbf16>
    %cst_24 = arith.constant dense<0.000000e+00> : vector<256x64xf32>
    %63 = tpu.matmul %62, %61, %cst_24 {dimension_numbers = #tpu.dot_dimension_numbers<[1], [0], [0], [1], [0, 0, 1, 1], [], []>} : vector<256x64xbf16>, vector<64x64xbf16>, vector<256x64xf32> -> vector<256x64xf32>
    %64 = vector.shape_cast %57 : vector<32x8x64xf32> to vector<256x64xf32>
    %65 = vector.extract_strided_slice %27 {offsets = [1, 0, 0], sizes = [1, 64, 64], strides = [1, 1, 1]} : vector<3x64x64xbf16> to vector<1x64x64xbf16>
    %66 = vector.shape_cast %65 : vector<1x64x64xbf16> to vector<64x64xbf16>
    %67 = arith.truncf %64 : vector<256x64xf32> to vector<256x64xbf16>
    %cst_25 = arith.constant dense<0.000000e+00> : vector<256x64xf32>
    %68 = tpu.matmul %67, %66, %cst_25 {dimension_numbers = #tpu.dot_dimension_numbers<[1], [0], [0], [1], [0, 0, 1, 1], [], []>} : vector<256x64xbf16>, vector<64x64xbf16>, vector<256x64xf32> -> vector<256x64xf32>
    %69 = arith.addf %63, %68 : vector<256x64xf32>
    %70 = vector.shape_cast %58 : vector<32x8x64xf32> to vector<256x64xf32>
    %71 = vector.extract_strided_slice %27 {offsets = [2, 0, 0], sizes = [1, 64, 64], strides = [1, 1, 1]} : vector<3x64x64xbf16> to vector<1x64x64xbf16>
    %72 = vector.shape_cast %71 : vector<1x64x64xbf16> to vector<64x64xbf16>
    %73 = arith.truncf %70 : vector<256x64xf32> to vector<256x64xbf16>
    %cst_26 = arith.constant dense<0.000000e+00> : vector<256x64xf32>
    %74 = tpu.matmul %73, %72, %cst_26 {dimension_numbers = #tpu.dot_dimension_numbers<[1], [0], [0], [1], [0, 0, 1, 1], [], []>} : vector<256x64xbf16>, vector<64x64xbf16>, vector<256x64xf32> -> vector<256x64xf32>
    %75 = arith.addf %69, %74 : vector<256x64xf32>
    %76 = vector.broadcast %28 : vector<1x64xf32> to vector<256x64xf32>
    %77 = arith.addf %75, %76 : vector<256x64xf32>
    %78 = vector.extract_strided_slice %24 {offsets = [1, 0, 0], sizes = [32, 8, 64], strides = [1, 1, 1]} : vector<34x8x64xf32> to vector<32x8x64xf32>
    %79 = vector.shape_cast %78 : vector<32x8x64xf32> to vector<256x64xf32>
    %80 = arith.addf %77, %79 : vector<256x64xf32>
    %cst_27 = arith.constant 0.000000e+00 : f32
    %81 = vector.broadcast %cst_27 : f32 to vector<256x64xf32>
    %82 = arith.maximumf %80, %81 : vector<256x64xf32>
    %83 = vector.shape_cast %82 : vector<256x64xf32> to vector<32x8x64xf32>
    %cst_28 = arith.constant 0.000000e+00 : f32
    %84 = vector.broadcast %cst_28 : f32 to vector<1x8x64xf32>
    %85 = tpu.concatenate %84, %83, %84 in 0 : vector<1x8x64xf32>, vector<32x8x64xf32>, vector<1x8x64xf32> -> vector<34x8x64xf32>
    %c0_29 = arith.constant 0 : index
    %c0_30 = arith.constant 0 : index
    %c0_31 = arith.constant 0 : index
    %86 = vector.load %arg8[%c0_29, %c0_30, %c0_31] : memref<3x64x64xbf16, #tpu.memory_space<vmem>>, vector<3x64x64xbf16>
    %c0_32 = arith.constant 0 : index
    %c0_33 = arith.constant 0 : index
    %87 = vector.load %arg9[%c0_32, %c0_33] : memref<1x64xf32, #tpu.memory_space<vmem>>, vector<1x64xf32>
    %c0_34 = arith.constant 0 : index
    %c0_35 = arith.constant 0 : index
    %c0_36 = arith.constant 0 : index
    %88 = vector.load %arg10[%c0_34, %c0_35, %c0_36] : memref<3x64x64xbf16, #tpu.memory_space<vmem>>, vector<3x64x64xbf16>
    %c0_37 = arith.constant 0 : index
    %c0_38 = arith.constant 0 : index
    %89 = vector.load %arg11[%c0_37, %c0_38] : memref<1x64xf32, #tpu.memory_space<vmem>>, vector<1x64xf32>
    %90 = vector.extract_strided_slice %85 {offsets = [0, 0, 0], sizes = [32, 8, 64], strides = [1, 1, 1]} : vector<34x8x64xf32> to vector<32x8x64xf32>
    %91 = vector.extract_strided_slice %85 {offsets = [1, 0, 0], sizes = [32, 8, 64], strides = [1, 1, 1]} : vector<34x8x64xf32> to vector<32x8x64xf32>
    %92 = vector.extract_strided_slice %85 {offsets = [2, 0, 0], sizes = [32, 8, 64], strides = [1, 1, 1]} : vector<34x8x64xf32> to vector<32x8x64xf32>
    %93 = vector.shape_cast %90 : vector<32x8x64xf32> to vector<256x64xf32>
    %94 = vector.extract_strided_slice %86 {offsets = [0, 0, 0], sizes = [1, 64, 64], strides = [1, 1, 1]} : vector<3x64x64xbf16> to vector<1x64x64xbf16>
    %95 = vector.shape_cast %94 : vector<1x64x64xbf16> to vector<64x64xbf16>
    %96 = arith.truncf %93 : vector<256x64xf32> to vector<256x64xbf16>
    %cst_39 = arith.constant dense<0.000000e+00> : vector<256x64xf32>
    %97 = tpu.matmul %96, %95, %cst_39 {dimension_numbers = #tpu.dot_dimension_numbers<[1], [0], [0], [1], [0, 0, 1, 1], [], []>} : vector<256x64xbf16>, vector<64x64xbf16>, vector<256x64xf32> -> vector<256x64xf32>
    %98 = vector.shape_cast %91 : vector<32x8x64xf32> to vector<256x64xf32>
    %99 = vector.extract_strided_slice %86 {offsets = [1, 0, 0], sizes = [1, 64, 64], strides = [1, 1, 1]} : vector<3x64x64xbf16> to vector<1x64x64xbf16>
    %100 = vector.shape_cast %99 : vector<1x64x64xbf16> to vector<64x64xbf16>
    %101 = arith.truncf %98 : vector<256x64xf32> to vector<256x64xbf16>
    %cst_40 = arith.constant dense<0.000000e+00> : vector<256x64xf32>
    %102 = tpu.matmul %101, %100, %cst_40 {dimension_numbers = #tpu.dot_dimension_numbers<[1], [0], [0], [1], [0, 0, 1, 1], [], []>} : vector<256x64xbf16>, vector<64x64xbf16>, vector<256x64xf32> -> vector<256x64xf32>
    %103 = arith.addf %97, %102 : vector<256x64xf32>
    %104 = vector.shape_cast %92 : vector<32x8x64xf32> to vector<256x64xf32>
    %105 = vector.extract_strided_slice %86 {offsets = [2, 0, 0], sizes = [1, 64, 64], strides = [1, 1, 1]} : vector<3x64x64xbf16> to vector<1x64x64xbf16>
    %106 = vector.shape_cast %105 : vector<1x64x64xbf16> to vector<64x64xbf16>
    %107 = arith.truncf %104 : vector<256x64xf32> to vector<256x64xbf16>
    %cst_41 = arith.constant dense<0.000000e+00> : vector<256x64xf32>
    %108 = tpu.matmul %107, %106, %cst_41 {dimension_numbers = #tpu.dot_dimension_numbers<[1], [0], [0], [1], [0, 0, 1, 1], [], []>} : vector<256x64xbf16>, vector<64x64xbf16>, vector<256x64xf32> -> vector<256x64xf32>
    %109 = arith.addf %103, %108 : vector<256x64xf32>
    %110 = vector.broadcast %87 : vector<1x64xf32> to vector<256x64xf32>
    %111 = arith.addf %109, %110 : vector<256x64xf32>
    %cst_42 = arith.constant 0.000000e+00 : f32
    %112 = vector.broadcast %cst_42 : f32 to vector<256x64xf32>
    %113 = arith.maximumf %111, %112 : vector<256x64xf32>
    %114 = vector.shape_cast %113 : vector<256x64xf32> to vector<32x8x64xf32>
    %cst_43 = arith.constant 0.000000e+00 : f32
    %115 = vector.broadcast %cst_43 : f32 to vector<1x8x64xf32>
    %116 = tpu.concatenate %115, %114, %115 in 0 : vector<1x8x64xf32>, vector<32x8x64xf32>, vector<1x8x64xf32> -> vector<34x8x64xf32>
    %117 = vector.extract_strided_slice %116 {offsets = [0, 0, 0], sizes = [32, 8, 64], strides = [1, 1, 1]} : vector<34x8x64xf32> to vector<32x8x64xf32>
    %118 = vector.extract_strided_slice %116 {offsets = [1, 0, 0], sizes = [32, 8, 64], strides = [1, 1, 1]} : vector<34x8x64xf32> to vector<32x8x64xf32>
    %119 = vector.extract_strided_slice %116 {offsets = [2, 0, 0], sizes = [32, 8, 64], strides = [1, 1, 1]} : vector<34x8x64xf32> to vector<32x8x64xf32>
    %120 = vector.shape_cast %117 : vector<32x8x64xf32> to vector<256x64xf32>
    %121 = vector.extract_strided_slice %88 {offsets = [0, 0, 0], sizes = [1, 64, 64], strides = [1, 1, 1]} : vector<3x64x64xbf16> to vector<1x64x64xbf16>
    %122 = vector.shape_cast %121 : vector<1x64x64xbf16> to vector<64x64xbf16>
    %123 = arith.truncf %120 : vector<256x64xf32> to vector<256x64xbf16>
    %cst_44 = arith.constant dense<0.000000e+00> : vector<256x64xf32>
    %124 = tpu.matmul %123, %122, %cst_44 {dimension_numbers = #tpu.dot_dimension_numbers<[1], [0], [0], [1], [0, 0, 1, 1], [], []>} : vector<256x64xbf16>, vector<64x64xbf16>, vector<256x64xf32> -> vector<256x64xf32>
    %125 = vector.shape_cast %118 : vector<32x8x64xf32> to vector<256x64xf32>
    %126 = vector.extract_strided_slice %88 {offsets = [1, 0, 0], sizes = [1, 64, 64], strides = [1, 1, 1]} : vector<3x64x64xbf16> to vector<1x64x64xbf16>
    %127 = vector.shape_cast %126 : vector<1x64x64xbf16> to vector<64x64xbf16>
    %128 = arith.truncf %125 : vector<256x64xf32> to vector<256x64xbf16>
    %cst_45 = arith.constant dense<0.000000e+00> : vector<256x64xf32>
    %129 = tpu.matmul %128, %127, %cst_45 {dimension_numbers = #tpu.dot_dimension_numbers<[1], [0], [0], [1], [0, 0, 1, 1], [], []>} : vector<256x64xbf16>, vector<64x64xbf16>, vector<256x64xf32> -> vector<256x64xf32>
    %130 = arith.addf %124, %129 : vector<256x64xf32>
    %131 = vector.shape_cast %119 : vector<32x8x64xf32> to vector<256x64xf32>
    %132 = vector.extract_strided_slice %88 {offsets = [2, 0, 0], sizes = [1, 64, 64], strides = [1, 1, 1]} : vector<3x64x64xbf16> to vector<1x64x64xbf16>
    %133 = vector.shape_cast %132 : vector<1x64x64xbf16> to vector<64x64xbf16>
    %134 = arith.truncf %131 : vector<256x64xf32> to vector<256x64xbf16>
    %cst_46 = arith.constant dense<0.000000e+00> : vector<256x64xf32>
    %135 = tpu.matmul %134, %133, %cst_46 {dimension_numbers = #tpu.dot_dimension_numbers<[1], [0], [0], [1], [0, 0, 1, 1], [], []>} : vector<256x64xbf16>, vector<64x64xbf16>, vector<256x64xf32> -> vector<256x64xf32>
    %136 = arith.addf %130, %135 : vector<256x64xf32>
    %137 = vector.broadcast %89 : vector<1x64xf32> to vector<256x64xf32>
    %138 = arith.addf %136, %137 : vector<256x64xf32>
    %139 = vector.extract_strided_slice %85 {offsets = [1, 0, 0], sizes = [32, 8, 64], strides = [1, 1, 1]} : vector<34x8x64xf32> to vector<32x8x64xf32>
    %140 = vector.shape_cast %139 : vector<32x8x64xf32> to vector<256x64xf32>
    %141 = arith.addf %138, %140 : vector<256x64xf32>
    %cst_47 = arith.constant 0.000000e+00 : f32
    %142 = vector.broadcast %cst_47 : f32 to vector<256x64xf32>
    %143 = arith.maximumf %141, %142 : vector<256x64xf32>
    %144 = vector.shape_cast %143 : vector<256x64xf32> to vector<32x8x64xf32>
    %cst_48 = arith.constant 0.000000e+00 : f32
    %145 = vector.broadcast %cst_48 : f32 to vector<1x8x64xf32>
    %146 = tpu.concatenate %145, %144, %145 in 0 : vector<1x8x64xf32>, vector<32x8x64xf32>, vector<1x8x64xf32> -> vector<34x8x64xf32>
    %c0_49 = arith.constant 0 : index
    %c0_50 = arith.constant 0 : index
    %c0_51 = arith.constant 0 : index
    %147 = vector.load %arg12[%c0_49, %c0_50, %c0_51] : memref<3x64x128xbf16, #tpu.memory_space<vmem>>, vector<3x64x128xbf16>
    %c0_52 = arith.constant 0 : index
    %c0_53 = arith.constant 0 : index
    %148 = vector.load %arg13[%c0_52, %c0_53] : memref<1x128xf32, #tpu.memory_space<vmem>>, vector<1x128xf32>
    %c0_54 = arith.constant 0 : index
    %c0_55 = arith.constant 0 : index
    %c0_56 = arith.constant 0 : index
    %149 = vector.load %arg14[%c0_54, %c0_55, %c0_56] : memref<3x128x128xbf16, #tpu.memory_space<vmem>>, vector<3x128x128xbf16>
    %c0_57 = arith.constant 0 : index
    %c0_58 = arith.constant 0 : index
    %150 = vector.load %arg15[%c0_57, %c0_58] : memref<1x128xf32, #tpu.memory_space<vmem>>, vector<1x128xf32>
    %c0_59 = arith.constant 0 : index
    %c0_60 = arith.constant 0 : index
    %151 = vector.load %arg16[%c0_59, %c0_60] : memref<64x128xbf16, #tpu.memory_space<vmem>>, vector<64x128xbf16>
    %c0_61 = arith.constant 0 : index
    %c0_62 = arith.constant 0 : index
    %152 = vector.load %arg17[%c0_61, %c0_62] : memref<1x128xf32, #tpu.memory_space<vmem>>, vector<1x128xf32>
    %153 = vector.shape_cast %146 : vector<34x8x64xf32> to vector<17x2x8x64xf32>
    %154 = vector.extract_strided_slice %153 {offsets = [0, 0, 0, 0], sizes = [17, 1, 8, 64], strides = [1, 1, 1, 1]} : vector<17x2x8x64xf32> to vector<17x1x8x64xf32>
    %155 = vector.shape_cast %154 : vector<17x1x8x64xf32> to vector<17x8x64xf32>
    %156 = vector.extract_strided_slice %153 {offsets = [0, 1, 0, 0], sizes = [17, 1, 8, 64], strides = [1, 1, 1, 1]} : vector<17x2x8x64xf32> to vector<17x1x8x64xf32>
    %157 = vector.shape_cast %156 : vector<17x1x8x64xf32> to vector<17x8x64xf32>
    %158 = vector.extract_strided_slice %155 {offsets = [0, 0, 0], sizes = [16, 8, 64], strides = [1, 1, 1]} : vector<17x8x64xf32> to vector<16x8x64xf32>
    %159 = vector.extract_strided_slice %157 {offsets = [0, 0, 0], sizes = [16, 8, 64], strides = [1, 1, 1]} : vector<17x8x64xf32> to vector<16x8x64xf32>
    %160 = vector.extract_strided_slice %155 {offsets = [1, 0, 0], sizes = [16, 8, 64], strides = [1, 1, 1]} : vector<17x8x64xf32> to vector<16x8x64xf32>
    %161 = vector.shape_cast %158 : vector<16x8x64xf32> to vector<128x64xf32>
    %162 = vector.extract_strided_slice %147 {offsets = [0, 0, 0], sizes = [1, 64, 128], strides = [1, 1, 1]} : vector<3x64x128xbf16> to vector<1x64x128xbf16>
    %163 = vector.shape_cast %162 : vector<1x64x128xbf16> to vector<64x128xbf16>
    %164 = arith.truncf %161 : vector<128x64xf32> to vector<128x64xbf16>
    %cst_63 = arith.constant dense<0.000000e+00> : vector<128x128xf32>
    %165 = tpu.matmul %164, %163, %cst_63 {dimension_numbers = #tpu.dot_dimension_numbers<[1], [0], [0], [1], [0, 0, 1, 1], [], []>} : vector<128x64xbf16>, vector<64x128xbf16>, vector<128x128xf32> -> vector<128x128xf32>
    %166 = vector.shape_cast %159 : vector<16x8x64xf32> to vector<128x64xf32>
    %167 = vector.extract_strided_slice %147 {offsets = [1, 0, 0], sizes = [1, 64, 128], strides = [1, 1, 1]} : vector<3x64x128xbf16> to vector<1x64x128xbf16>
    %168 = vector.shape_cast %167 : vector<1x64x128xbf16> to vector<64x128xbf16>
    %169 = arith.truncf %166 : vector<128x64xf32> to vector<128x64xbf16>
    %cst_64 = arith.constant dense<0.000000e+00> : vector<128x128xf32>
    %170 = tpu.matmul %169, %168, %cst_64 {dimension_numbers = #tpu.dot_dimension_numbers<[1], [0], [0], [1], [0, 0, 1, 1], [], []>} : vector<128x64xbf16>, vector<64x128xbf16>, vector<128x128xf32> -> vector<128x128xf32>
    %171 = arith.addf %165, %170 : vector<128x128xf32>
    %172 = vector.shape_cast %160 : vector<16x8x64xf32> to vector<128x64xf32>
    %173 = vector.extract_strided_slice %147 {offsets = [2, 0, 0], sizes = [1, 64, 128], strides = [1, 1, 1]} : vector<3x64x128xbf16> to vector<1x64x128xbf16>
    %174 = vector.shape_cast %173 : vector<1x64x128xbf16> to vector<64x128xbf16>
    %175 = arith.truncf %172 : vector<128x64xf32> to vector<128x64xbf16>
    %cst_65 = arith.constant dense<0.000000e+00> : vector<128x128xf32>
    %176 = tpu.matmul %175, %174, %cst_65 {dimension_numbers = #tpu.dot_dimension_numbers<[1], [0], [0], [1], [0, 0, 1, 1], [], []>} : vector<128x64xbf16>, vector<64x128xbf16>, vector<128x128xf32> -> vector<128x128xf32>
    %177 = arith.addf %171, %176 : vector<128x128xf32>
    %178 = vector.broadcast %148 : vector<1x128xf32> to vector<128x128xf32>
    %179 = arith.addf %177, %178 : vector<128x128xf32>
    %cst_66 = arith.constant 0.000000e+00 : f32
    %180 = vector.broadcast %cst_66 : f32 to vector<128x128xf32>
    %181 = arith.maximumf %179, %180 : vector<128x128xf32>
    %182 = vector.shape_cast %181 : vector<128x128xf32> to vector<16x8x128xf32>
    %cst_67 = arith.constant 0.000000e+00 : f32
    %183 = vector.broadcast %cst_67 : f32 to vector<1x8x128xf32>
    %184 = tpu.concatenate %183, %182, %183 in 0 : vector<1x8x128xf32>, vector<16x8x128xf32>, vector<1x8x128xf32> -> vector<18x8x128xf32>
    %185 = vector.extract_strided_slice %184 {offsets = [0, 0, 0], sizes = [16, 8, 128], strides = [1, 1, 1]} : vector<18x8x128xf32> to vector<16x8x128xf32>
    %186 = vector.extract_strided_slice %184 {offsets = [1, 0, 0], sizes = [16, 8, 128], strides = [1, 1, 1]} : vector<18x8x128xf32> to vector<16x8x128xf32>
    %187 = vector.extract_strided_slice %184 {offsets = [2, 0, 0], sizes = [16, 8, 128], strides = [1, 1, 1]} : vector<18x8x128xf32> to vector<16x8x128xf32>
    %188 = vector.shape_cast %185 : vector<16x8x128xf32> to vector<128x128xf32>
    %189 = vector.extract_strided_slice %149 {offsets = [0, 0, 0], sizes = [1, 128, 128], strides = [1, 1, 1]} : vector<3x128x128xbf16> to vector<1x128x128xbf16>
    %190 = vector.shape_cast %189 : vector<1x128x128xbf16> to vector<128x128xbf16>
    %191 = arith.truncf %188 : vector<128x128xf32> to vector<128x128xbf16>
    %cst_68 = arith.constant dense<0.000000e+00> : vector<128x128xf32>
    %192 = tpu.matmul %191, %190, %cst_68 {dimension_numbers = #tpu.dot_dimension_numbers<[1], [0], [0], [1], [0, 0, 1, 1], [], []>} : vector<128x128xbf16>, vector<128x128xbf16>, vector<128x128xf32> -> vector<128x128xf32>
    %193 = vector.shape_cast %186 : vector<16x8x128xf32> to vector<128x128xf32>
    %194 = vector.extract_strided_slice %149 {offsets = [1, 0, 0], sizes = [1, 128, 128], strides = [1, 1, 1]} : vector<3x128x128xbf16> to vector<1x128x128xbf16>
    %195 = vector.shape_cast %194 : vector<1x128x128xbf16> to vector<128x128xbf16>
    %196 = arith.truncf %193 : vector<128x128xf32> to vector<128x128xbf16>
    %cst_69 = arith.constant dense<0.000000e+00> : vector<128x128xf32>
    %197 = tpu.matmul %196, %195, %cst_69 {dimension_numbers = #tpu.dot_dimension_numbers<[1], [0], [0], [1], [0, 0, 1, 1], [], []>} : vector<128x128xbf16>, vector<128x128xbf16>, vector<128x128xf32> -> vector<128x128xf32>
    %198 = arith.addf %192, %197 : vector<128x128xf32>
    %199 = vector.shape_cast %187 : vector<16x8x128xf32> to vector<128x128xf32>
    %200 = vector.extract_strided_slice %149 {offsets = [2, 0, 0], sizes = [1, 128, 128], strides = [1, 1, 1]} : vector<3x128x128xbf16> to vector<1x128x128xbf16>
    %201 = vector.shape_cast %200 : vector<1x128x128xbf16> to vector<128x128xbf16>
    %202 = arith.truncf %199 : vector<128x128xf32> to vector<128x128xbf16>
    %cst_70 = arith.constant dense<0.000000e+00> : vector<128x128xf32>
    %203 = tpu.matmul %202, %201, %cst_70 {dimension_numbers = #tpu.dot_dimension_numbers<[1], [0], [0], [1], [0, 0, 1, 1], [], []>} : vector<128x128xbf16>, vector<128x128xbf16>, vector<128x128xf32> -> vector<128x128xf32>
    %204 = arith.addf %198, %203 : vector<128x128xf32>
    %205 = vector.broadcast %150 : vector<1x128xf32> to vector<128x128xf32>
    %206 = arith.addf %204, %205 : vector<128x128xf32>
    %207 = vector.shape_cast %146 : vector<34x8x64xf32> to vector<17x2x8x64xf32>
    %208 = vector.extract_strided_slice %207 {offsets = [0, 1, 0, 0], sizes = [16, 1, 8, 64], strides = [1, 1, 1, 1]} : vector<17x2x8x64xf32> to vector<16x1x8x64xf32>
    %209 = vector.shape_cast %208 : vector<16x1x8x64xf32> to vector<16x8x64xf32>
    %210 = vector.shape_cast %209 : vector<16x8x64xf32> to vector<128x64xf32>
    %211 = arith.truncf %210 : vector<128x64xf32> to vector<128x64xbf16>
    %cst_71 = arith.constant dense<0.000000e+00> : vector<128x128xf32>
    %212 = tpu.matmul %211, %151, %cst_71 {dimension_numbers = #tpu.dot_dimension_numbers<[1], [0], [0], [1], [0, 0, 1, 1], [], []>} : vector<128x64xbf16>, vector<64x128xbf16>, vector<128x128xf32> -> vector<128x128xf32>
    %213 = vector.broadcast %152 : vector<1x128xf32> to vector<128x128xf32>
    %214 = arith.addf %212, %213 : vector<128x128xf32>
    %215 = arith.addf %206, %214 : vector<128x128xf32>
    %cst_72 = arith.constant 0.000000e+00 : f32
    %216 = vector.broadcast %cst_72 : f32 to vector<128x128xf32>
    %217 = arith.maximumf %215, %216 : vector<128x128xf32>
    %218 = vector.shape_cast %217 : vector<128x128xf32> to vector<16x8x128xf32>
    %cst_73 = arith.constant 0.000000e+00 : f32
    %219 = vector.broadcast %cst_73 : f32 to vector<1x8x128xf32>
    %220 = tpu.concatenate %219, %218, %219 in 0 : vector<1x8x128xf32>, vector<16x8x128xf32>, vector<1x8x128xf32> -> vector<18x8x128xf32>
    %c0_74 = arith.constant 0 : index
    %c0_75 = arith.constant 0 : index
    %c0_76 = arith.constant 0 : index
    %221 = vector.load %arg18[%c0_74, %c0_75, %c0_76] : memref<3x128x128xbf16, #tpu.memory_space<vmem>>, vector<3x128x128xbf16>
    %c0_77 = arith.constant 0 : index
    %c0_78 = arith.constant 0 : index
    %222 = vector.load %arg19[%c0_77, %c0_78] : memref<1x128xf32, #tpu.memory_space<vmem>>, vector<1x128xf32>
    %c0_79 = arith.constant 0 : index
    %c0_80 = arith.constant 0 : index
    %c0_81 = arith.constant 0 : index
    %223 = vector.load %arg20[%c0_79, %c0_80, %c0_81] : memref<3x128x128xbf16, #tpu.memory_space<vmem>>, vector<3x128x128xbf16>
    %c0_82 = arith.constant 0 : index
    %c0_83 = arith.constant 0 : index
    %224 = vector.load %arg21[%c0_82, %c0_83] : memref<1x128xf32, #tpu.memory_space<vmem>>, vector<1x128xf32>
    %225 = vector.extract_strided_slice %220 {offsets = [0, 0, 0], sizes = [16, 8, 128], strides = [1, 1, 1]} : vector<18x8x128xf32> to vector<16x8x128xf32>
    %226 = vector.extract_strided_slice %220 {offsets = [1, 0, 0], sizes = [16, 8, 128], strides = [1, 1, 1]} : vector<18x8x128xf32> to vector<16x8x128xf32>
    %227 = vector.extract_strided_slice %220 {offsets = [2, 0, 0], sizes = [16, 8, 128], strides = [1, 1, 1]} : vector<18x8x128xf32> to vector<16x8x128xf32>
    %228 = vector.shape_cast %225 : vector<16x8x128xf32> to vector<128x128xf32>
    %229 = vector.extract_strided_slice %221 {offsets = [0, 0, 0], sizes = [1, 128, 128], strides = [1, 1, 1]} : vector<3x128x128xbf16> to vector<1x128x128xbf16>
    %230 = vector.shape_cast %229 : vector<1x128x128xbf16> to vector<128x128xbf16>
    %231 = arith.truncf %228 : vector<128x128xf32> to vector<128x128xbf16>
    %cst_84 = arith.constant dense<0.000000e+00> : vector<128x128xf32>
    %232 = tpu.matmul %231, %230, %cst_84 {dimension_numbers = #tpu.dot_dimension_numbers<[1], [0], [0], [1], [0, 0, 1, 1], [], []>} : vector<128x128xbf16>, vector<128x128xbf16>, vector<128x128xf32> -> vector<128x128xf32>
    %233 = vector.shape_cast %226 : vector<16x8x128xf32> to vector<128x128xf32>
    %234 = vector.extract_strided_slice %221 {offsets = [1, 0, 0], sizes = [1, 128, 128], strides = [1, 1, 1]} : vector<3x128x128xbf16> to vector<1x128x128xbf16>
    %235 = vector.shape_cast %234 : vector<1x128x128xbf16> to vector<128x128xbf16>
    %236 = arith.truncf %233 : vector<128x128xf32> to vector<128x128xbf16>
    %cst_85 = arith.constant dense<0.000000e+00> : vector<128x128xf32>
    %237 = tpu.matmul %236, %235, %cst_85 {dimension_numbers = #tpu.dot_dimension_numbers<[1], [0], [0], [1], [0, 0, 1, 1], [], []>} : vector<128x128xbf16>, vector<128x128xbf16>, vector<128x128xf32> -> vector<128x128xf32>
    %238 = arith.addf %232, %237 : vector<128x128xf32>
    %239 = vector.shape_cast %227 : vector<16x8x128xf32> to vector<128x128xf32>
    %240 = vector.extract_strided_slice %221 {offsets = [2, 0, 0], sizes = [1, 128, 128], strides = [1, 1, 1]} : vector<3x128x128xbf16> to vector<1x128x128xbf16>
    %241 = vector.shape_cast %240 : vector<1x128x128xbf16> to vector<128x128xbf16>
    %242 = arith.truncf %239 : vector<128x128xf32> to vector<128x128xbf16>
    %cst_86 = arith.constant dense<0.000000e+00> : vector<128x128xf32>
    %243 = tpu.matmul %242, %241, %cst_86 {dimension_numbers = #tpu.dot_dimension_numbers<[1], [0], [0], [1], [0, 0, 1, 1], [], []>} : vector<128x128xbf16>, vector<128x128xbf16>, vector<128x128xf32> -> vector<128x128xf32>
    %244 = arith.addf %238, %243 : vector<128x128xf32>
    %245 = vector.broadcast %222 : vector<1x128xf32> to vector<128x128xf32>
    %246 = arith.addf %244, %245 : vector<128x128xf32>
    %cst_87 = arith.constant 0.000000e+00 : f32
    %247 = vector.broadcast %cst_87 : f32 to vector<128x128xf32>
    %248 = arith.maximumf %246, %247 : vector<128x128xf32>
    %249 = vector.shape_cast %248 : vector<128x128xf32> to vector<16x8x128xf32>
    %cst_88 = arith.constant 0.000000e+00 : f32
    %250 = vector.broadcast %cst_88 : f32 to vector<1x8x128xf32>
    %251 = tpu.concatenate %250, %249, %250 in 0 : vector<1x8x128xf32>, vector<16x8x128xf32>, vector<1x8x128xf32> -> vector<18x8x128xf32>
    %252 = vector.extract_strided_slice %251 {offsets = [0, 0, 0], sizes = [16, 8, 128], strides = [1, 1, 1]} : vector<18x8x128xf32> to vector<16x8x128xf32>
    %253 = vector.extract_strided_slice %251 {offsets = [1, 0, 0], sizes = [16, 8, 128], strides = [1, 1, 1]} : vector<18x8x128xf32> to vector<16x8x128xf32>
    %254 = vector.extract_strided_slice %251 {offsets = [2, 0, 0], sizes = [16, 8, 128], strides = [1, 1, 1]} : vector<18x8x128xf32> to vector<16x8x128xf32>
    %255 = vector.shape_cast %252 : vector<16x8x128xf32> to vector<128x128xf32>
    %256 = vector.extract_strided_slice %223 {offsets = [0, 0, 0], sizes = [1, 128, 128], strides = [1, 1, 1]} : vector<3x128x128xbf16> to vector<1x128x128xbf16>
    %257 = vector.shape_cast %256 : vector<1x128x128xbf16> to vector<128x128xbf16>
    %258 = arith.truncf %255 : vector<128x128xf32> to vector<128x128xbf16>
    %cst_89 = arith.constant dense<0.000000e+00> : vector<128x128xf32>
    %259 = tpu.matmul %258, %257, %cst_89 {dimension_numbers = #tpu.dot_dimension_numbers<[1], [0], [0], [1], [0, 0, 1, 1], [], []>} : vector<128x128xbf16>, vector<128x128xbf16>, vector<128x128xf32> -> vector<128x128xf32>
    %260 = vector.shape_cast %253 : vector<16x8x128xf32> to vector<128x128xf32>
    %261 = vector.extract_strided_slice %223 {offsets = [1, 0, 0], sizes = [1, 128, 128], strides = [1, 1, 1]} : vector<3x128x128xbf16> to vector<1x128x128xbf16>
    %262 = vector.shape_cast %261 : vector<1x128x128xbf16> to vector<128x128xbf16>
    %263 = arith.truncf %260 : vector<128x128xf32> to vector<128x128xbf16>
    %cst_90 = arith.constant dense<0.000000e+00> : vector<128x128xf32>
    %264 = tpu.matmul %263, %262, %cst_90 {dimension_numbers = #tpu.dot_dimension_numbers<[1], [0], [0], [1], [0, 0, 1, 1], [], []>} : vector<128x128xbf16>, vector<128x128xbf16>, vector<128x128xf32> -> vector<128x128xf32>
    %265 = arith.addf %259, %264 : vector<128x128xf32>
    %266 = vector.shape_cast %254 : vector<16x8x128xf32> to vector<128x128xf32>
    %267 = vector.extract_strided_slice %223 {offsets = [2, 0, 0], sizes = [1, 128, 128], strides = [1, 1, 1]} : vector<3x128x128xbf16> to vector<1x128x128xbf16>
    %268 = vector.shape_cast %267 : vector<1x128x128xbf16> to vector<128x128xbf16>
    %269 = arith.truncf %266 : vector<128x128xf32> to vector<128x128xbf16>
    %cst_91 = arith.constant dense<0.000000e+00> : vector<128x128xf32>
    %270 = tpu.matmul %269, %268, %cst_91 {dimension_numbers = #tpu.dot_dimension_numbers<[1], [0], [0], [1], [0, 0, 1, 1], [], []>} : vector<128x128xbf16>, vector<128x128xbf16>, vector<128x128xf32> -> vector<128x128xf32>
    %271 = arith.addf %265, %270 : vector<128x128xf32>
    %272 = vector.broadcast %224 : vector<1x128xf32> to vector<128x128xf32>
    %273 = arith.addf %271, %272 : vector<128x128xf32>
    %274 = vector.extract_strided_slice %220 {offsets = [1, 0, 0], sizes = [16, 8, 128], strides = [1, 1, 1]} : vector<18x8x128xf32> to vector<16x8x128xf32>
    %275 = vector.shape_cast %274 : vector<16x8x128xf32> to vector<128x128xf32>
    %276 = arith.addf %273, %275 : vector<128x128xf32>
    %cst_92 = arith.constant 0.000000e+00 : f32
    %277 = vector.broadcast %cst_92 : f32 to vector<128x128xf32>
    %278 = arith.maximumf %276, %277 : vector<128x128xf32>
    %279 = vector.shape_cast %278 : vector<128x128xf32> to vector<16x8x128xf32>
    %cst_93 = arith.constant 0.000000e+00 : f32
    %280 = vector.broadcast %cst_93 : f32 to vector<1x8x128xf32>
    %281 = tpu.concatenate %280, %279, %280 in 0 : vector<1x8x128xf32>, vector<16x8x128xf32>, vector<1x8x128xf32> -> vector<18x8x128xf32>
    %c0_94 = arith.constant 0 : index
    %c0_95 = arith.constant 0 : index
    %c0_96 = arith.constant 0 : index
    %282 = vector.load %arg22[%c0_94, %c0_95, %c0_96] : memref<3x128x256xbf16, #tpu.memory_space<vmem>>, vector<3x128x256xbf16>
    %c0_97 = arith.constant 0 : index
    %c0_98 = arith.constant 0 : index
    %283 = vector.load %arg23[%c0_97, %c0_98] : memref<1x256xf32, #tpu.memory_space<vmem>>, vector<1x256xf32>
    %c0_99 = arith.constant 0 : index
    %c0_100 = arith.constant 0 : index
    %c0_101 = arith.constant 0 : index
    %284 = vector.load %arg24[%c0_99, %c0_100, %c0_101] : memref<3x256x256xbf16, #tpu.memory_space<vmem>>, vector<3x256x256xbf16>
    %c0_102 = arith.constant 0 : index
    %c0_103 = arith.constant 0 : index
    %285 = vector.load %arg25[%c0_102, %c0_103] : memref<1x256xf32, #tpu.memory_space<vmem>>, vector<1x256xf32>
    %c0_104 = arith.constant 0 : index
    %c0_105 = arith.constant 0 : index
    %286 = vector.load %arg26[%c0_104, %c0_105] : memref<128x256xbf16, #tpu.memory_space<vmem>>, vector<128x256xbf16>
    %c0_106 = arith.constant 0 : index
    %c0_107 = arith.constant 0 : index
    %287 = vector.load %arg27[%c0_106, %c0_107] : memref<1x256xf32, #tpu.memory_space<vmem>>, vector<1x256xf32>
    %288 = vector.shape_cast %281 : vector<18x8x128xf32> to vector<9x2x8x128xf32>
    %289 = vector.extract_strided_slice %288 {offsets = [0, 0, 0, 0], sizes = [9, 1, 8, 128], strides = [1, 1, 1, 1]} : vector<9x2x8x128xf32> to vector<9x1x8x128xf32>
    %290 = vector.shape_cast %289 : vector<9x1x8x128xf32> to vector<9x8x128xf32>
    %291 = vector.extract_strided_slice %288 {offsets = [0, 1, 0, 0], sizes = [9, 1, 8, 128], strides = [1, 1, 1, 1]} : vector<9x2x8x128xf32> to vector<9x1x8x128xf32>
    %292 = vector.shape_cast %291 : vector<9x1x8x128xf32> to vector<9x8x128xf32>
    %293 = vector.extract_strided_slice %290 {offsets = [0, 0, 0], sizes = [8, 8, 128], strides = [1, 1, 1]} : vector<9x8x128xf32> to vector<8x8x128xf32>
    %294 = vector.extract_strided_slice %292 {offsets = [0, 0, 0], sizes = [8, 8, 128], strides = [1, 1, 1]} : vector<9x8x128xf32> to vector<8x8x128xf32>
    %295 = vector.extract_strided_slice %290 {offsets = [1, 0, 0], sizes = [8, 8, 128], strides = [1, 1, 1]} : vector<9x8x128xf32> to vector<8x8x128xf32>
    %296 = vector.shape_cast %293 : vector<8x8x128xf32> to vector<64x128xf32>
    %297 = vector.extract_strided_slice %282 {offsets = [0, 0, 0], sizes = [1, 128, 256], strides = [1, 1, 1]} : vector<3x128x256xbf16> to vector<1x128x256xbf16>
    %298 = vector.shape_cast %297 : vector<1x128x256xbf16> to vector<128x256xbf16>
    %299 = arith.truncf %296 : vector<64x128xf32> to vector<64x128xbf16>
    %cst_108 = arith.constant dense<0.000000e+00> : vector<64x256xf32>
    %300 = tpu.matmul %299, %298, %cst_108 {dimension_numbers = #tpu.dot_dimension_numbers<[1], [0], [0], [1], [0, 0, 1, 1], [], []>} : vector<64x128xbf16>, vector<128x256xbf16>, vector<64x256xf32> -> vector<64x256xf32>
    %301 = vector.shape_cast %294 : vector<8x8x128xf32> to vector<64x128xf32>
    %302 = vector.extract_strided_slice %282 {offsets = [1, 0, 0], sizes = [1, 128, 256], strides = [1, 1, 1]} : vector<3x128x256xbf16> to vector<1x128x256xbf16>
    %303 = vector.shape_cast %302 : vector<1x128x256xbf16> to vector<128x256xbf16>
    %304 = arith.truncf %301 : vector<64x128xf32> to vector<64x128xbf16>
    %cst_109 = arith.constant dense<0.000000e+00> : vector<64x256xf32>
    %305 = tpu.matmul %304, %303, %cst_109 {dimension_numbers = #tpu.dot_dimension_numbers<[1], [0], [0], [1], [0, 0, 1, 1], [], []>} : vector<64x128xbf16>, vector<128x256xbf16>, vector<64x256xf32> -> vector<64x256xf32>
    %306 = arith.addf %300, %305 : vector<64x256xf32>
    %307 = vector.shape_cast %295 : vector<8x8x128xf32> to vector<64x128xf32>
    %308 = vector.extract_strided_slice %282 {offsets = [2, 0, 0], sizes = [1, 128, 256], strides = [1, 1, 1]} : vector<3x128x256xbf16> to vector<1x128x256xbf16>
    %309 = vector.shape_cast %308 : vector<1x128x256xbf16> to vector<128x256xbf16>
    %310 = arith.truncf %307 : vector<64x128xf32> to vector<64x128xbf16>
    %cst_110 = arith.constant dense<0.000000e+00> : vector<64x256xf32>
    %311 = tpu.matmul %310, %309, %cst_110 {dimension_numbers = #tpu.dot_dimension_numbers<[1], [0], [0], [1], [0, 0, 1, 1], [], []>} : vector<64x128xbf16>, vector<128x256xbf16>, vector<64x256xf32> -> vector<64x256xf32>
    %312 = arith.addf %306, %311 : vector<64x256xf32>
    %313 = vector.broadcast %283 : vector<1x256xf32> to vector<64x256xf32>
    %314 = arith.addf %312, %313 : vector<64x256xf32>
    %cst_111 = arith.constant 0.000000e+00 : f32
    %315 = vector.broadcast %cst_111 : f32 to vector<64x256xf32>
    %316 = arith.maximumf %314, %315 : vector<64x256xf32>
    %317 = vector.shape_cast %316 : vector<64x256xf32> to vector<8x8x256xf32>
    %cst_112 = arith.constant 0.000000e+00 : f32
    %318 = vector.broadcast %cst_112 : f32 to vector<1x8x256xf32>
    %319 = tpu.concatenate %318, %317, %318 in 0 : vector<1x8x256xf32>, vector<8x8x256xf32>, vector<1x8x256xf32> -> vector<10x8x256xf32>
    %320 = vector.extract_strided_slice %319 {offsets = [0, 0, 0], sizes = [8, 8, 256], strides = [1, 1, 1]} : vector<10x8x256xf32> to vector<8x8x256xf32>
    %321 = vector.extract_strided_slice %319 {offsets = [1, 0, 0], sizes = [8, 8, 256], strides = [1, 1, 1]} : vector<10x8x256xf32> to vector<8x8x256xf32>
    %322 = vector.extract_strided_slice %319 {offsets = [2, 0, 0], sizes = [8, 8, 256], strides = [1, 1, 1]} : vector<10x8x256xf32> to vector<8x8x256xf32>
    %323 = vector.shape_cast %320 : vector<8x8x256xf32> to vector<64x256xf32>
    %324 = vector.extract_strided_slice %284 {offsets = [0, 0, 0], sizes = [1, 256, 256], strides = [1, 1, 1]} : vector<3x256x256xbf16> to vector<1x256x256xbf16>
    %325 = vector.shape_cast %324 : vector<1x256x256xbf16> to vector<256x256xbf16>
    %326 = arith.truncf %323 : vector<64x256xf32> to vector<64x256xbf16>
    %cst_113 = arith.constant dense<0.000000e+00> : vector<64x256xf32>
    %327 = tpu.matmul %326, %325, %cst_113 {dimension_numbers = #tpu.dot_dimension_numbers<[1], [0], [0], [1], [0, 0, 1, 1], [], []>} : vector<64x256xbf16>, vector<256x256xbf16>, vector<64x256xf32> -> vector<64x256xf32>
    %328 = vector.shape_cast %321 : vector<8x8x256xf32> to vector<64x256xf32>
    %329 = vector.extract_strided_slice %284 {offsets = [1, 0, 0], sizes = [1, 256, 256], strides = [1, 1, 1]} : vector<3x256x256xbf16> to vector<1x256x256xbf16>
    %330 = vector.shape_cast %329 : vector<1x256x256xbf16> to vector<256x256xbf16>
    %331 = arith.truncf %328 : vector<64x256xf32> to vector<64x256xbf16>
    %cst_114 = arith.constant dense<0.000000e+00> : vector<64x256xf32>
    %332 = tpu.matmul %331, %330, %cst_114 {dimension_numbers = #tpu.dot_dimension_numbers<[1], [0], [0], [1], [0, 0, 1, 1], [], []>} : vector<64x256xbf16>, vector<256x256xbf16>, vector<64x256xf32> -> vector<64x256xf32>
    %333 = arith.addf %327, %332 : vector<64x256xf32>
    %334 = vector.shape_cast %322 : vector<8x8x256xf32> to vector<64x256xf32>
    %335 = vector.extract_strided_slice %284 {offsets = [2, 0, 0], sizes = [1, 256, 256], strides = [1, 1, 1]} : vector<3x256x256xbf16> to vector<1x256x256xbf16>
    %336 = vector.shape_cast %335 : vector<1x256x256xbf16> to vector<256x256xbf16>
    %337 = arith.truncf %334 : vector<64x256xf32> to vector<64x256xbf16>
    %cst_115 = arith.constant dense<0.000000e+00> : vector<64x256xf32>
    %338 = tpu.matmul %337, %336, %cst_115 {dimension_numbers = #tpu.dot_dimension_numbers<[1], [0], [0], [1], [0, 0, 1, 1], [], []>} : vector<64x256xbf16>, vector<256x256xbf16>, vector<64x256xf32> -> vector<64x256xf32>
    %339 = arith.addf %333, %338 : vector<64x256xf32>
    %340 = vector.broadcast %285 : vector<1x256xf32> to vector<64x256xf32>
    %341 = arith.addf %339, %340 : vector<64x256xf32>
    %342 = vector.shape_cast %281 : vector<18x8x128xf32> to vector<9x2x8x128xf32>
    %343 = vector.extract_strided_slice %342 {offsets = [0, 1, 0, 0], sizes = [8, 1, 8, 128], strides = [1, 1, 1, 1]} : vector<9x2x8x128xf32> to vector<8x1x8x128xf32>
    %344 = vector.shape_cast %343 : vector<8x1x8x128xf32> to vector<8x8x128xf32>
    %345 = vector.shape_cast %344 : vector<8x8x128xf32> to vector<64x128xf32>
    %346 = arith.truncf %345 : vector<64x128xf32> to vector<64x128xbf16>
    %cst_116 = arith.constant dense<0.000000e+00> : vector<64x256xf32>
    %347 = tpu.matmul %346, %286, %cst_116 {dimension_numbers = #tpu.dot_dimension_numbers<[1], [0], [0], [1], [0, 0, 1, 1], [], []>} : vector<64x128xbf16>, vector<128x256xbf16>, vector<64x256xf32> -> vector<64x256xf32>
    %348 = vector.broadcast %287 : vector<1x256xf32> to vector<64x256xf32>
    %349 = arith.addf %347, %348 : vector<64x256xf32>
    %350 = arith.addf %341, %349 : vector<64x256xf32>
    %cst_117 = arith.constant 0.000000e+00 : f32
    %351 = vector.broadcast %cst_117 : f32 to vector<64x256xf32>
    %352 = arith.maximumf %350, %351 : vector<64x256xf32>
    %353 = vector.shape_cast %352 : vector<64x256xf32> to vector<8x8x256xf32>
    %cst_118 = arith.constant 0.000000e+00 : f32
    %354 = vector.broadcast %cst_118 : f32 to vector<1x8x256xf32>
    %355 = tpu.concatenate %354, %353, %354 in 0 : vector<1x8x256xf32>, vector<8x8x256xf32>, vector<1x8x256xf32> -> vector<10x8x256xf32>
    %c0_119 = arith.constant 0 : index
    %c0_120 = arith.constant 0 : index
    %c0_121 = arith.constant 0 : index
    %356 = vector.load %arg28[%c0_119, %c0_120, %c0_121] : memref<3x256x256xbf16, #tpu.memory_space<vmem>>, vector<3x256x256xbf16>
    %c0_122 = arith.constant 0 : index
    %c0_123 = arith.constant 0 : index
    %357 = vector.load %arg29[%c0_122, %c0_123] : memref<1x256xf32, #tpu.memory_space<vmem>>, vector<1x256xf32>
    %c0_124 = arith.constant 0 : index
    %c0_125 = arith.constant 0 : index
    %c0_126 = arith.constant 0 : index
    %358 = vector.load %arg30[%c0_124, %c0_125, %c0_126] : memref<3x256x256xbf16, #tpu.memory_space<vmem>>, vector<3x256x256xbf16>
    %c0_127 = arith.constant 0 : index
    %c0_128 = arith.constant 0 : index
    %359 = vector.load %arg31[%c0_127, %c0_128] : memref<1x256xf32, #tpu.memory_space<vmem>>, vector<1x256xf32>
    %360 = vector.extract_strided_slice %355 {offsets = [0, 0, 0], sizes = [8, 8, 256], strides = [1, 1, 1]} : vector<10x8x256xf32> to vector<8x8x256xf32>
    %361 = vector.extract_strided_slice %355 {offsets = [1, 0, 0], sizes = [8, 8, 256], strides = [1, 1, 1]} : vector<10x8x256xf32> to vector<8x8x256xf32>
    %362 = vector.extract_strided_slice %355 {offsets = [2, 0, 0], sizes = [8, 8, 256], strides = [1, 1, 1]} : vector<10x8x256xf32> to vector<8x8x256xf32>
    %363 = vector.shape_cast %360 : vector<8x8x256xf32> to vector<64x256xf32>
    %364 = vector.extract_strided_slice %356 {offsets = [0, 0, 0], sizes = [1, 256, 256], strides = [1, 1, 1]} : vector<3x256x256xbf16> to vector<1x256x256xbf16>
    %365 = vector.shape_cast %364 : vector<1x256x256xbf16> to vector<256x256xbf16>
    %366 = arith.truncf %363 : vector<64x256xf32> to vector<64x256xbf16>
    %cst_129 = arith.constant dense<0.000000e+00> : vector<64x256xf32>
    %367 = tpu.matmul %366, %365, %cst_129 {dimension_numbers = #tpu.dot_dimension_numbers<[1], [0], [0], [1], [0, 0, 1, 1], [], []>} : vector<64x256xbf16>, vector<256x256xbf16>, vector<64x256xf32> -> vector<64x256xf32>
    %368 = vector.shape_cast %361 : vector<8x8x256xf32> to vector<64x256xf32>
    %369 = vector.extract_strided_slice %356 {offsets = [1, 0, 0], sizes = [1, 256, 256], strides = [1, 1, 1]} : vector<3x256x256xbf16> to vector<1x256x256xbf16>
    %370 = vector.shape_cast %369 : vector<1x256x256xbf16> to vector<256x256xbf16>
    %371 = arith.truncf %368 : vector<64x256xf32> to vector<64x256xbf16>
    %cst_130 = arith.constant dense<0.000000e+00> : vector<64x256xf32>
    %372 = tpu.matmul %371, %370, %cst_130 {dimension_numbers = #tpu.dot_dimension_numbers<[1], [0], [0], [1], [0, 0, 1, 1], [], []>} : vector<64x256xbf16>, vector<256x256xbf16>, vector<64x256xf32> -> vector<64x256xf32>
    %373 = arith.addf %367, %372 : vector<64x256xf32>
    %374 = vector.shape_cast %362 : vector<8x8x256xf32> to vector<64x256xf32>
    %375 = vector.extract_strided_slice %356 {offsets = [2, 0, 0], sizes = [1, 256, 256], strides = [1, 1, 1]} : vector<3x256x256xbf16> to vector<1x256x256xbf16>
    %376 = vector.shape_cast %375 : vector<1x256x256xbf16> to vector<256x256xbf16>
    %377 = arith.truncf %374 : vector<64x256xf32> to vector<64x256xbf16>
    %cst_131 = arith.constant dense<0.000000e+00> : vector<64x256xf32>
    %378 = tpu.matmul %377, %376, %cst_131 {dimension_numbers = #tpu.dot_dimension_numbers<[1], [0], [0], [1], [0, 0, 1, 1], [], []>} : vector<64x256xbf16>, vector<256x256xbf16>, vector<64x256xf32> -> vector<64x256xf32>
    %379 = arith.addf %373, %378 : vector<64x256xf32>
    %380 = vector.broadcast %357 : vector<1x256xf32> to vector<64x256xf32>
    %381 = arith.addf %379, %380 : vector<64x256xf32>
    %cst_132 = arith.constant 0.000000e+00 : f32
    %382 = vector.broadcast %cst_132 : f32 to vector<64x256xf32>
    %383 = arith.maximumf %381, %382 : vector<64x256xf32>
    %384 = vector.shape_cast %383 : vector<64x256xf32> to vector<8x8x256xf32>
    %cst_133 = arith.constant 0.000000e+00 : f32
    %385 = vector.broadcast %cst_133 : f32 to vector<1x8x256xf32>
    %386 = tpu.concatenate %385, %384, %385 in 0 : vector<1x8x256xf32>, vector<8x8x256xf32>, vector<1x8x256xf32> -> vector<10x8x256xf32>
    %387 = vector.extract_strided_slice %386 {offsets = [0, 0, 0], sizes = [8, 8, 256], strides = [1, 1, 1]} : vector<10x8x256xf32> to vector<8x8x256xf32>
    %388 = vector.extract_strided_slice %386 {offsets = [1, 0, 0], sizes = [8, 8, 256], strides = [1, 1, 1]} : vector<10x8x256xf32> to vector<8x8x256xf32>
    %389 = vector.extract_strided_slice %386 {offsets = [2, 0, 0], sizes = [8, 8, 256], strides = [1, 1, 1]} : vector<10x8x256xf32> to vector<8x8x256xf32>
    %390 = vector.shape_cast %387 : vector<8x8x256xf32> to vector<64x256xf32>
    %391 = vector.extract_strided_slice %358 {offsets = [0, 0, 0], sizes = [1, 256, 256], strides = [1, 1, 1]} : vector<3x256x256xbf16> to vector<1x256x256xbf16>
    %392 = vector.shape_cast %391 : vector<1x256x256xbf16> to vector<256x256xbf16>
    %393 = arith.truncf %390 : vector<64x256xf32> to vector<64x256xbf16>
    %cst_134 = arith.constant dense<0.000000e+00> : vector<64x256xf32>
    %394 = tpu.matmul %393, %392, %cst_134 {dimension_numbers = #tpu.dot_dimension_numbers<[1], [0], [0], [1], [0, 0, 1, 1], [], []>} : vector<64x256xbf16>, vector<256x256xbf16>, vector<64x256xf32> -> vector<64x256xf32>
    %395 = vector.shape_cast %388 : vector<8x8x256xf32> to vector<64x256xf32>
    %396 = vector.extract_strided_slice %358 {offsets = [1, 0, 0], sizes = [1, 256, 256], strides = [1, 1, 1]} : vector<3x256x256xbf16> to vector<1x256x256xbf16>
    %397 = vector.shape_cast %396 : vector<1x256x256xbf16> to vector<256x256xbf16>
    %398 = arith.truncf %395 : vector<64x256xf32> to vector<64x256xbf16>
    %cst_135 = arith.constant dense<0.000000e+00> : vector<64x256xf32>
    %399 = tpu.matmul %398, %397, %cst_135 {dimension_numbers = #tpu.dot_dimension_numbers<[1], [0], [0], [1], [0, 0, 1, 1], [], []>} : vector<64x256xbf16>, vector<256x256xbf16>, vector<64x256xf32> -> vector<64x256xf32>
    %400 = arith.addf %394, %399 : vector<64x256xf32>
    %401 = vector.shape_cast %389 : vector<8x8x256xf32> to vector<64x256xf32>
    %402 = vector.extract_strided_slice %358 {offsets = [2, 0, 0], sizes = [1, 256, 256], strides = [1, 1, 1]} : vector<3x256x256xbf16> to vector<1x256x256xbf16>
    %403 = vector.shape_cast %402 : vector<1x256x256xbf16> to vector<256x256xbf16>
    %404 = arith.truncf %401 : vector<64x256xf32> to vector<64x256xbf16>
    %cst_136 = arith.constant dense<0.000000e+00> : vector<64x256xf32>
    %405 = tpu.matmul %404, %403, %cst_136 {dimension_numbers = #tpu.dot_dimension_numbers<[1], [0], [0], [1], [0, 0, 1, 1], [], []>} : vector<64x256xbf16>, vector<256x256xbf16>, vector<64x256xf32> -> vector<64x256xf32>
    %406 = arith.addf %400, %405 : vector<64x256xf32>
    %407 = vector.broadcast %359 : vector<1x256xf32> to vector<64x256xf32>
    %408 = arith.addf %406, %407 : vector<64x256xf32>
    %409 = vector.extract_strided_slice %355 {offsets = [1, 0, 0], sizes = [8, 8, 256], strides = [1, 1, 1]} : vector<10x8x256xf32> to vector<8x8x256xf32>
    %410 = vector.shape_cast %409 : vector<8x8x256xf32> to vector<64x256xf32>
    %411 = arith.addf %408, %410 : vector<64x256xf32>
    %cst_137 = arith.constant 0.000000e+00 : f32
    %412 = vector.broadcast %cst_137 : f32 to vector<64x256xf32>
    %413 = arith.maximumf %411, %412 : vector<64x256xf32>
    %414 = vector.shape_cast %413 : vector<64x256xf32> to vector<8x8x256xf32>
    %cst_138 = arith.constant 0.000000e+00 : f32
    %415 = vector.broadcast %cst_138 : f32 to vector<1x8x256xf32>
    %416 = tpu.concatenate %415, %414, %415 in 0 : vector<1x8x256xf32>, vector<8x8x256xf32>, vector<1x8x256xf32> -> vector<10x8x256xf32>
    %c0_139 = arith.constant 0 : index
    %c0_140 = arith.constant 0 : index
    %417 = vector.load %arg32[%c0_139, %c0_140] : memref<256x128xbf16, #tpu.memory_space<vmem>>, vector<256x128xbf16>
    %c0_141 = arith.constant 0 : index
    %c0_142 = arith.constant 0 : index
    %418 = vector.load %arg33[%c0_141, %c0_142] : memref<1x128xf32, #tpu.memory_space<vmem>>, vector<1x128xf32>
    %c0_143 = arith.constant 0 : index
    %c0_144 = arith.constant 0 : index
    %419 = vector.load %arg34[%c0_143, %c0_144] : memref<128x128xbf16, #tpu.memory_space<vmem>>, vector<128x128xbf16>
    %c0_145 = arith.constant 0 : index
    %c0_146 = arith.constant 0 : index
    %420 = vector.load %arg35[%c0_145, %c0_146] : memref<1x128xf32, #tpu.memory_space<vmem>>, vector<1x128xf32>
    %421 = vector.extract_strided_slice %416 {offsets = [1, 0, 0], sizes = [8, 8, 256], strides = [1, 1, 1]} : vector<10x8x256xf32> to vector<8x8x256xf32>
    %cst_147 = arith.constant dense<0.000000e+00> : vector<8x256xf32>
    %422 = vector.multi_reduction <add>, %421, %cst_147 [0] : vector<8x8x256xf32> to vector<8x256xf32>
    %cst_148 = arith.constant 8.000000e+00 : f32
    %423 = vector.broadcast %cst_148 : f32 to vector<8x256xf32>
    %424 = arith.divf %422, %423 : vector<8x256xf32>
    %425 = arith.truncf %424 : vector<8x256xf32> to vector<8x256xbf16>
    %cst_149 = arith.constant dense<0.000000e+00> : vector<8x128xf32>
    %426 = tpu.matmul %425, %417, %cst_149 {dimension_numbers = #tpu.dot_dimension_numbers<[1], [0], [0], [1], [0, 0, 1, 1], [], []>} : vector<8x256xbf16>, vector<256x128xbf16>, vector<8x128xf32> -> vector<8x128xf32>
    %427 = vector.broadcast %418 : vector<1x128xf32> to vector<8x128xf32>
    %428 = arith.addf %426, %427 : vector<8x128xf32>
    %429 = arith.truncf %428 : vector<8x128xf32> to vector<8x128xbf16>
    %cst_150 = arith.constant dense<0.000000e+00> : vector<8x128xf32>
    %430 = tpu.matmul %429, %419, %cst_150 {dimension_numbers = #tpu.dot_dimension_numbers<[1], [0], [0], [1], [0, 0, 1, 1], [], []>} : vector<8x128xbf16>, vector<128x128xbf16>, vector<8x128xf32> -> vector<8x128xf32>
    %431 = vector.broadcast %420 : vector<1x128xf32> to vector<8x128xf32>
    %432 = arith.addf %430, %431 : vector<8x128xf32>
    %c0_151 = arith.constant 0 : index
    %c0_152 = arith.constant 0 : index
    %433 = vector.load %arg36[%c0_151, %c0_152] : memref<8x128xf32, #tpu.memory_space<vmem>>, vector<8x128xf32>
    tpu.vector_store %arg36[%c0_151, %c0_152], %432 {strides = array<i32>} : memref<8x128xf32, #tpu.memory_space<vmem>>, vector<8x128xf32>,
    return
  }
  func.func @transform_0(%arg0: i32) -> (i32, i32, i32) {
    %c0_i32 = arith.constant 0 : i32
    %c0_i32_0 = arith.constant 0 : i32
    %c0_i32_1 = arith.constant 0 : i32
    return %c0_i32, %arg0, %c0_i32_0 : i32, i32, i32
  }
  func.func @transform_1(%arg0: i32) -> (i32, i32) {
    %c0_i32 = arith.constant 0 : i32
    %c0_i32_0 = arith.constant 0 : i32
    %c0_i32_1 = arith.constant 0 : i32
    return %c0_i32, %c0_i32_0 : i32, i32
  }
  func.func @transform_2(%arg0: i32) -> (i32, i32) {
    %c0_i32 = arith.constant 0 : i32
    %c0_i32_0 = arith.constant 0 : i32
    %c0_i32_1 = arith.constant 0 : i32
    return %c0_i32, %c0_i32_0 : i32, i32
  }
  func.func @transform_3(%arg0: i32) -> (i32, i32, i32) {
    %c0_i32 = arith.constant 0 : i32
    %c0_i32_0 = arith.constant 0 : i32
    %c0_i32_1 = arith.constant 0 : i32
    %c0_i32_2 = arith.constant 0 : i32
    return %c0_i32, %c0_i32_0, %c0_i32_1 : i32, i32, i32
  }
  func.func @transform_4(%arg0: i32) -> (i32, i32) {
    %c0_i32 = arith.constant 0 : i32
    %c0_i32_0 = arith.constant 0 : i32
    %c0_i32_1 = arith.constant 0 : i32
    return %c0_i32, %c0_i32_0 : i32, i32
  }
  func.func @transform_5(%arg0: i32) -> (i32, i32, i32) {
    %c0_i32 = arith.constant 0 : i32
    %c0_i32_0 = arith.constant 0 : i32
    %c0_i32_1 = arith.constant 0 : i32
    %c0_i32_2 = arith.constant 0 : i32
    return %c0_i32, %c0_i32_0, %c0_i32_1 : i32, i32, i32
  }
  func.func @transform_6(%arg0: i32) -> (i32, i32) {
    %c0_i32 = arith.constant 0 : i32
    %c0_i32_0 = arith.constant 0 : i32
    %c0_i32_1 = arith.constant 0 : i32
    return %c0_i32, %c0_i32_0 : i32, i32
  }
  func.func @transform_7(%arg0: i32) -> (i32, i32, i32) {
    %c0_i32 = arith.constant 0 : i32
    %c0_i32_0 = arith.constant 0 : i32
    %c0_i32_1 = arith.constant 0 : i32
    %c0_i32_2 = arith.constant 0 : i32
    return %c0_i32, %c0_i32_0, %c0_i32_1 : i32, i32, i32
  }
  func.func @transform_8(%arg0: i32) -> (i32, i32) {
    %c0_i32 = arith.constant 0 : i32
    %c0_i32_0 = arith.constant 0 : i32
    %c0_i32_1 = arith.constant 0 : i32
    return %c0_i32, %c0_i32_0 : i32, i32
  }
  func.func @transform_9(%arg0: i32) -> (i32, i32, i32) {
    %c0_i32 = arith.constant 0 : i32
    %c0_i32_0 = arith.constant 0 : i32
    %c0_i32_1 = arith.constant 0 : i32
    %c0_i32_2 = arith.constant 0 : i32
    return %c0_i32, %c0_i32_0, %c0_i32_1 : i32, i32, i32
  }
  func.func @transform_10(%arg0: i32) -> (i32, i32) {
    %c0_i32 = arith.constant 0 : i32
    %c0_i32_0 = arith.constant 0 : i32
    %c0_i32_1 = arith.constant 0 : i32
    return %c0_i32, %c0_i32_0 : i32, i32
  }
  func.func @transform_11(%arg0: i32) -> (i32, i32, i32) {
    %c0_i32 = arith.constant 0 : i32
    %c0_i32_0 = arith.constant 0 : i32
    %c0_i32_1 = arith.constant 0 : i32
    %c0_i32_2 = arith.constant 0 : i32
    return %c0_i32, %c0_i32_0, %c0_i32_1 : i32, i32, i32
  }
  func.func @transform_12(%arg0: i32) -> (i32, i32) {
    %c0_i32 = arith.constant 0 : i32
    %c0_i32_0 = arith.constant 0 : i32
    %c0_i32_1 = arith.constant 0 : i32
    return %c0_i32, %c0_i32_0 : i32, i32
  }
  func.func @transform_13(%arg0: i32) -> (i32, i32, i32) {
    %c0_i32 = arith.constant 0 : i32
    %c0_i32_0 = arith.constant 0 : i32
    %c0_i32_1 = arith.constant 0 : i32
    %c0_i32_2 = arith.constant 0 : i32
    return %c0_i32, %c0_i32_0, %c0_i32_1 : i32, i32, i32
  }
  func.func @transform_14(%arg0: i32) -> (i32, i32) {
    %c0_i32 = arith.constant 0 : i32
    %c0_i32_0 = arith.constant 0 : i32
    %c0_i32_1 = arith.constant 0 : i32
    return %c0_i32, %c0_i32_0 : i32, i32
  }
  func.func @transform_15(%arg0: i32) -> (i32, i32) {
    %c0_i32 = arith.constant 0 : i32
    %c0_i32_0 = arith.constant 0 : i32
    %c0_i32_1 = arith.constant 0 : i32
    return %c0_i32, %c0_i32_0 : i32, i32
  }
  func.func @transform_16(%arg0: i32) -> (i32, i32) {
    %c0_i32 = arith.constant 0 : i32
    %c0_i32_0 = arith.constant 0 : i32
    %c0_i32_1 = arith.constant 0 : i32
    return %c0_i32, %c0_i32_0 : i32, i32
  }
  func.func @transform_17(%arg0: i32) -> (i32, i32, i32) {
    %c0_i32 = arith.constant 0 : i32
    %c0_i32_0 = arith.constant 0 : i32
    %c0_i32_1 = arith.constant 0 : i32
    %c0_i32_2 = arith.constant 0 : i32
    return %c0_i32, %c0_i32_0, %c0_i32_1 : i32, i32, i32
  }
  func.func @transform_18(%arg0: i32) -> (i32, i32) {
    %c0_i32 = arith.constant 0 : i32
    %c0_i32_0 = arith.constant 0 : i32
    %c0_i32_1 = arith.constant 0 : i32
    return %c0_i32, %c0_i32_0 : i32, i32
  }
  func.func @transform_19(%arg0: i32) -> (i32, i32, i32) {
    %c0_i32 = arith.constant 0 : i32
    %c0_i32_0 = arith.constant 0 : i32
    %c0_i32_1 = arith.constant 0 : i32
    %c0_i32_2 = arith.constant 0 : i32
    return %c0_i32, %c0_i32_0, %c0_i32_1 : i32, i32, i32
  }
  func.func @transform_20(%arg0: i32) -> (i32, i32) {
    %c0_i32 = arith.constant 0 : i32
    %c0_i32_0 = arith.constant 0 : i32
    %c0_i32_1 = arith.constant 0 : i32
    return %c0_i32, %c0_i32_0 : i32, i32
  }
  func.func @transform_21(%arg0: i32) -> (i32, i32, i32) {
    %c0_i32 = arith.constant 0 : i32
    %c0_i32_0 = arith.constant 0 : i32
    %c0_i32_1 = arith.constant 0 : i32
    %c0_i32_2 = arith.constant 0 : i32
    return %c0_i32, %c0_i32_0, %c0_i32_1 : i32, i32, i32
  }
  func.func @transform_22(%arg0: i32) -> (i32, i32) {
    %c0_i32 = arith.constant 0 : i32
    %c0_i32_0 = arith.constant 0 : i32
    %c0_i32_1 = arith.constant 0 : i32
    return %c0_i32, %c0_i32_0 : i32, i32
  }
  func.func @transform_23(%arg0: i32) -> (i32, i32, i32) {
    %c0_i32 = arith.constant 0 : i32
    %c0_i32_0 = arith.constant 0 : i32
    %c0_i32_1 = arith.constant 0 : i32
    %c0_i32_2 = arith.constant 0 : i32
    return %c0_i32, %c0_i32_0, %c0_i32_1 : i32, i32, i32
  }
  func.func @transform_24(%arg0: i32) -> (i32, i32) {
    %c0_i32 = arith.constant 0 : i32
    %c0_i32_0 = arith.constant 0 : i32
    %c0_i32_1 = arith.constant 0 : i32
    return %c0_i32, %c0_i32_0 : i32, i32
  }
  func.func @transform_25(%arg0: i32) -> (i32, i32) {
    %c0_i32 = arith.constant 0 : i32
    %c0_i32_0 = arith.constant 0 : i32
    %c0_i32_1 = arith.constant 0 : i32
    return %c0_i32, %c0_i32_0 : i32, i32
  }
  func.func @transform_26(%arg0: i32) -> (i32, i32) {
    %c0_i32 = arith.constant 0 : i32
    %c0_i32_0 = arith.constant 0 : i32
    %c0_i32_1 = arith.constant 0 : i32
    return %c0_i32, %c0_i32_0 : i32, i32
  }
  func.func @transform_27(%arg0: i32) -> (i32, i32, i32) {
    %c0_i32 = arith.constant 0 : i32
    %c0_i32_0 = arith.constant 0 : i32
    %c0_i32_1 = arith.constant 0 : i32
    %c0_i32_2 = arith.constant 0 : i32
    return %c0_i32, %c0_i32_0, %c0_i32_1 : i32, i32, i32
  }
  func.func @transform_28(%arg0: i32) -> (i32, i32) {
    %c0_i32 = arith.constant 0 : i32
    %c0_i32_0 = arith.constant 0 : i32
    %c0_i32_1 = arith.constant 0 : i32
    return %c0_i32, %c0_i32_0 : i32, i32
  }
  func.func @transform_29(%arg0: i32) -> (i32, i32, i32) {
    %c0_i32 = arith.constant 0 : i32
    %c0_i32_0 = arith.constant 0 : i32
    %c0_i32_1 = arith.constant 0 : i32
    %c0_i32_2 = arith.constant 0 : i32
    return %c0_i32, %c0_i32_0, %c0_i32_1 : i32, i32, i32
  }
  func.func @transform_30(%arg0: i32) -> (i32, i32) {
    %c0_i32 = arith.constant 0 : i32
    %c0_i32_0 = arith.constant 0 : i32
    %c0_i32_1 = arith.constant 0 : i32
    return %c0_i32, %c0_i32_0 : i32, i32
  }
  func.func @transform_31(%arg0: i32) -> (i32, i32) {
    %c0_i32 = arith.constant 0 : i32
    %c0_i32_0 = arith.constant 0 : i32
    %c0_i32_1 = arith.constant 0 : i32
    return %c0_i32, %c0_i32_0 : i32, i32
  }
  func.func @transform_32(%arg0: i32) -> (i32, i32) {
    %c0_i32 = arith.constant 0 : i32
    %c0_i32_0 = arith.constant 0 : i32
    %c0_i32_1 = arith.constant 0 : i32
    return %c0_i32, %c0_i32_0 : i32, i32
  }
  func.func @transform_33(%arg0: i32) -> (i32, i32) {
    %c0_i32 = arith.constant 0 : i32
    %c0_i32_0 = arith.constant 0 : i32
    %c0_i32_1 = arith.constant 0 : i32
    return %c0_i32, %c0_i32_0 : i32, i32
  }
  func.func @transform_34(%arg0: i32) -> (i32, i32) {
    %c0_i32 = arith.constant 0 : i32
    %c0_i32_0 = arith.constant 0 : i32
    %c0_i32_1 = arith.constant 0 : i32
    return %c0_i32, %c0_i32_0 : i32, i32
  }
  func.func @transform_35(%arg0: i32) -> (i32, i32) {
    %c0_i32 = arith.constant 0 : i32
    %c0_i32_0 = arith.constant 0 : i32
    return %arg0, %c0_i32 : i32, i32
  }
}

</mosaic_0001>

<bundles_post_ra>
// kernel: ft_net_forward.1
= control target key start
LH: loop header
LB: loop body
LE: loop exit
PB: predicated region body
PF: predicated region fallthrough
CT: control target
= control target key end

     0   :  { %s14033_s6 = smov 1   ;;  %s14034_s10 = smov 2   ;;  %s17516_s0 = inlined_call_operand.smem [shape: u32[36], index: -1, kind: input, shape index: {}] }
   0x1   :  { %s14096_s5 = sld [smem:[%s17516_s0]]   ;;  %s14035_s14 = smov 3  }
   0x2   :  { %s14101_s9 = sld [smem:[%s17516_s0 + %s14033_s6]]   ;;  %s14036_s18 = smov 4  }
   0x3   :  { %s14106_s13 = sld [smem:[%s17516_s0 + %s14034_s10]]   ;;  %s14037_s22 = smov 5  }
   0x4   :  { %s14111_s17 = sld [smem:[%s17516_s0 + %s14035_s14]]   ;;  %s14038_s26 = smov 6  }
   0x5   :  { %s14116_s21 = sld [smem:[%s17516_s0 + %s14036_s18]]   ;;  %s14039_s30 = smov 7  }
   0x6   :  { %s14121_s25 = sld [smem:[%s17516_s0 + %s14037_s22]]   ;;  %s14040_s4 = smov 8  }
   0x7   :  { %s14126_s29 = sld [smem:[%s17516_s0 + %s14038_s26]]   ;;  %s14041_s10 = smov 9  }
   0x8   :  { %17593 = sst [smem:[#allocation33_spill]] %s14101_s9  ;;  %s14042_s15 = smov 10  }
   0x9   :  { %17594 = sst [smem:[#allocation34_spill]] %s14106_s13  ;;  %s14043_s20 = smov 11  }
   0xa   :  { %s14131_s3 = sld [smem:[%s17516_s0 + %s14039_s30]]   ;;  %s14044_s26 = smov 12  }
   0xb   :  { %17595 = sst [smem:[#allocation35_spill]] %s14116_s21  ;;  %s14045_s1 = smov 13  }
   0xc   :  { %17596 = sst [smem:[#allocation36_spill]] %s14121_s25  ;;  %s14046_s7 = smov 14  }
   0xd   :  { %17597 = sst [smem:[#allocation37_spill]] %s14126_s29  ;;  %s14048_s22 = smov 16  }
   0xe   :  { %s14136_s8 = sld [smem:[%s17516_s0 + %s14040_s4]]   ;;  %s14049_s28 = smov 17  }
   0xf   :  { %s14141_s14 = sld [smem:[%s17516_s0 + %s14041_s10]]  }
  0x10   :  { %17598 = sst [smem:[#allocation38_spill]] %s14131_s3 }
  0x11   :  { %s14146_s19 = sld [smem:[%s17516_s0 + %s14042_s15]]   ;;  %s14047_s15 = smov 15  }
  0x12   :  { %s14151_s24 = sld [smem:[%s17516_s0 + %s14043_s20]]  }
  0x13   :  { %s14156_s30 = sld [smem:[%s17516_s0 + %s14044_s26]]  }
  0x14   :  { %17599 = sst [smem:[#allocation39_spill]] %s14136_s8 }
  0x15   :  { %s14161_s6 = sld [smem:[%s17516_s0 + %s14045_s1]]  }
  0x16   :  { %s14166_s12 = sld [smem:[%s17516_s0 + %s14046_s7]]   ;;  %s14050_s7 = smov 18  }
  0x17   :  { %17600 = sst [smem:[#allocation40_spill]] %s14146_s19 }
  0x18   :  { %s14171_s20 = sld [smem:[%s17516_s0 + %s14047_s15]]   ;;  %s14051_s15 = smov 19  }
  0x19   :  { %17601 = sst [smem:[#allocation41_spill]] %s14156_s30 }
  0x1a   :  { %s14176_s27 = sld [smem:[%s17516_s0 + %s14048_s22]]   ;;  %s14052_s22 = smov 20  }
  0x1b   :  { %s14181_s4 = sld [smem:[%s17516_s0 + %s14049_s28]]   ;;  %s14053_s28 = smov 21  }
  0x1c   :  { %17602 = sst [smem:[#allocation42_spill]] %s14166_s12 }
  0x1d   :  { %s14186_s12 = sld [smem:[%s17516_s0 + %s14050_s7]]   ;;  %s14054_s7 = smov 22  }
  0x1e   :  { %17603 = sst [smem:[#allocation43_spill]] %s14171_s20 }
  0x1f   :  { %s14191_s30 = sld [smem:[%s17516_s0 + %s14051_s15]]   ;;  %s14055_s15 = smov 23  }
  0x20   :  { %17604 = sst [smem:[#allocation44_spill]] %s14176_s27 }
  0x21   :  { %17605 = sst [smem:[#allocation45_spill]] %s14181_s4 }
  0x22   :  { %s14196_s27 = sld [smem:[%s17516_s0 + %s14052_s22]]   ;;  %s14056_s22 = smov 24  }
  0x23   :  { %17606 = sst [smem:[#allocation46_spill]] %s14186_s12 }
  0x24   :  { %s14201_s20 = sld [smem:[%s17516_s0 + %s14053_s28]]   ;;  %s14057_s28 = smov 25  }
  0x25   :  { %s14206_s12 = sld [smem:[%s17516_s0 + %s14054_s7]]   ;;  %s14058_s7 = smov 26  }
  0x26   :  { %s14211_s19 = sld [smem:[%s17516_s0 + %s14055_s15]]   ;;  %s14059_s15 = smov 27  }
  0x28   :  { %17607 = sst [smem:[#allocation47_spill]] %s14196_s27 }
  0x29   :  { %s14216_s27 = sld [smem:[%s17516_s0 + %s14056_s22]]   ;;  %s14060_s22 = smov 28  }
  0x2a   :  { %17608 = sst [smem:[#allocation48_spill]] %s14201_s20 }
  0x2b   :  { %17609 = sst [smem:[#allocation49_spill]] %s14206_s12 }
  0x2c   :  { %17610 = sst [smem:[#allocation50_spill]] %s14211_s19 }
  0x2d   :  { %s14221_s20 = sld [smem:[%s17516_s0 + %s14057_s28]]   ;;  %s14061_s28 = smov 29  }
  0x2e   :  { %s14226_s12 = sld [smem:[%s17516_s0 + %s14058_s7]]   ;;  %s14062_s7 = smov 30  }
  0x2f   :  { %17611 = sst [smem:[#allocation51_spill]] %s14216_s27 }
  0x30   :  { %s14231_s19 = sld [smem:[%s17516_s0 + %s14059_s15]]   ;;  %s14063_s15 = smov 31  }
  0x31   :  { %s14236_s27 = sld [smem:[%s17516_s0 + %s14060_s22]]   ;;  %s14064_s22 = smov 32  }
  0x32   :  { %s14241_s8 = sld [smem:[%s17516_s0 + %s14061_s28]]   ;;  %s14065_s28 = smov 33  }
  0x33   :  { %s14251_s29 = sld [smem:[%s17516_s0 + %s14063_s15]]   ;;  %s14067_s15 = smov 35  }
  0x34   :  { %17612 = sst [smem:[#allocation52_spill]] %s14226_s12 }
  0x35   :  { %s14246_s12 = sld [smem:[%s17516_s0 + %s14062_s7]]   ;;  %s14066_s7 = smov 34  }
  0x36   :  { %s14261_s21 = sld [smem:[%s17516_s0 + %s14065_s28]]  }
  0x37   :  { %17613 = sst [smem:[#allocation53_spill]] %s14236_s27 }
  0x38   :  { %s14256_s27 = sld [smem:[%s17516_s0 + %s14064_s22]]  }
  0x39   :  { %s14271_s13 = sld [smem:[%s17516_s0 + %s14067_s15]]  }
  0x3b   :  { %17614 = sst [smem:[#allocation54_spill]] %s14246_s12 }
  0x3c   :  { %s14266_s12 = sld [smem:[%s17516_s0 + %s14066_s7]]  }
  0x3e   :  { %17615 = sst [smem:[#allocation55_spill]] %s14256_s27 }
  0x3f   :  { %17617 = sst [smem:[#allocation57_spill]] %s14271_s13 }
  0x42   :  { %17616 = sst [smem:[#allocation56_spill]] %s14266_s12 }
  0x43   :  { %76 = vsyncpa [#allocation4], 0 }
  0x44   :  { %77 = vsyncpa [#allocation7], 0 }
  0x45   :  { %78 = vsyncpa [#allocation10], 0 }
  0x46   :  { %79 = vsyncpa [#allocation13], 0 }
  0x47   :  { %80 = vsyncpa [#allocation16], 0 }
  0x48   :  { %81 = vsyncpa [#allocation19], 0 }
  0x49   :  { %82 = vsyncpa [#allocation22], 0 }
  0x4a   :  { %83 = vsyncpa [#allocation5], 0 }
  0x4b   :  { %85 = vsyncpa [#allocation5 + $0x1], 0  ;;  %s14273_s22 = smov 0   ;;  %s14275_s23 = smov 0  }
  0x4c   :  { %s14277_s26 = smov 0   ;;  %s14279_s28 = smov 0  }
  0x4d LB: > { %s17618_s4 = sld [smem:[#allocation45_spill]]  ;;  %s14294_s0 = sadd.s32 4294967295, %s14031_s28   ;;  %s14027_s26 = sphi %s14277_s26, %s17789_s26   ;;  %s14023_s23 = sphi %s14275_s23, %s17788_s23   ;;  %s14019_s22 = sphi %s14273_s22, %s17787_s22   ;;  %s14031_s28 = sphi %s14279_s28, %s17785_s28  }
  0x4e   : > { %s17619_s3 = sld [smem:[#allocation38_spill]]  ;;  %s10467_s1 = sadd.s32 4294967294, %s14031_s28  }
  0x4f   : > { %s17620_s25 = sld [smem:[#allocation36_spill]]  ;;  %s14298_s2 = sadd.s32 1, %s14031_s28  }
  0x50   : > { %17621 = sst [smem:[#allocation58_spill]] %s14019_s22  ;;  %s98_s7 = sadd.s32 1, %s14027_s26 }
  0x51   : > { %17622 = sst [smem:[#allocation59_spill]] %s14294_s0  ;;  %s95_s10 = ssub.s32 %s14031_s28, %s14298_s2 }
  0x52   : > { %17623 = sst [smem:[#allocation60_spill]] %s14298_s2  ;;  %p105_p0 = scmp.ne.s32.totalorder %s14027_s26, %s14023_s23 }
  0x53   : > { %p96_p1 = scmp.eq.s32.totalorder %s95_s10, 0  ;;  %p106_p2 = scmp.eq.s32.totalorder %s14031_s28, 0 }
  0x54   : > { %p849_p3 = scmp.eq.s32.totalorder %s14294_s0, 1  ;;  %p854_p4 = scmp.ne.s32.totalorder %s14023_s23, %s14019_s22 }
  0x55   : > { %s14310_s11 = scalar_select %p96_p1, %s14027_s26, %s98_s7  }
  0x56   : > { %p14312_p5 = por %p106_p2, %p105_p0  ;;  %p14316_p6 = por %p849_p3, %p105_p0 }
  0x57   : > { %17624 = sst [smem:[#allocation61_spill]] %s14310_s11  ;;  %p855_p7 = scmp.eq.s32.totalorder %s10467_s1, 1 }
  0x58   : > { %s17626_s16 = scalar_select %p14316_p6, 1, 0 }
  0x59   : > { %p10468_p8 = scmp.ge.s32.totalorder %s14031_s28, 1  ;;  %p862_p9 = scmp.lt.s32.totalorder %s14031_s28, 3 }
  0x5a   : > { %17627 = sst [smem:[#allocation62_spill]] %s17626_s16  ;;  %p14322_p10 = por %p855_p7, %p854_p4 }
  0x5b   : > { %p17540_p11 = scmp.eq.s32.totalorder %s14294_s0, 0  ;;  %p14327_p12 = pnand %p10468_p8, %p862_p9 }
  0x5c   : > { %s17628_s18 = scalar_select %p14322_p10, 1, 0 }
  0x5d   : > { %s896_s7 = sshll.u32 %s17620_s25, 4  ;;  %p13379_p13 = pneg %p14327_p12  ;;  %s897_s7 = int_to_ptr.hbm [resolvable:$true] %s896_s7 }
  0x5e   : > { %17629 = sst [smem:[#allocation63_spill]] %s17628_s18  ;;  %s930_s11 = sshll.u32 %s14141_s14, 4  ;;  %s14341_s11 = int_to_ptr.hbm [resolvable:$true] %s930_s11 }
  0x5f   : > { %p14337_p0 = pnand %p17540_p11, %p13379_p13  ;;  %s14068_s2 = smov [#allocation6]  }
  0x60   : > { %s898_s18 = sshll.u32 %s14068_s2, 4  ;;  %s13551_s22 = sshra.s32 %s897_s7, 4  ;;  %s899_s18 = int_to_ptr.vmem [resolvable:$true] %s898_s18  ;;  %s13552_s22 = int_to_ptr.hbm [resolvable:$true] %s13551_s22 }
  0x61   : > { %s13553_s16 = scalar_lea.hbm %s13552_s22, 96  ;;  %p14345_p2 = pneg %p14337_p0 }
  0x62   : > { %p13554_p1 = scmp.ne.s32.totalorder %s13552_s22, %s13553_s16  ;;  %s13558_s13 = scalar_lea.hbm %s17620_s25, 96 }
  0x63   : > { %p13559_p7 = scmp.lt.s32.totalorder %s13552_s22, %s17620_s25  ;;  %p13560_p8 = scmp.lt.s32.totalorder %s13558_s13, %s13553_s16 }
  0x64   : > { %p13556_p3 = pnand %p14345_p2, %p13554_p1 }
  0x65   : > { %p13561_p9 = por %p13560_p8, %p13559_p7 }
  0x66   : > { %p13557_p4 = pneg %p13556_p3 }
  0x68   : > { %p13562_p13 = pnand %p13561_p9, %p13557_p4 }
  0x6a   : > { %13565 = shalt.err (!%p13562_p13)
}
  0x6b   : > { %s17530_s2 = smov 64   ;;  %s17532_s27 = smov 4  }
  0x6c   : > { %13385 = dma.hbm_to_vmem [thread:$0]  (!%p14337_p0), %s897_s7, 1536, %s899_s18, [#allocation7], %s17530_s2, %s17530_s2, %s17532_s27  }
  0x6d   : > { %s14071_s9 = smov [#allocation9]   ;;  %s964_s22 = sshll.u32 %s14161_s6, 4  ;;  %s14359_s22 = int_to_ptr.hbm [resolvable:$true] %s964_s22 }
  0x6e   : > { %s932_s0 = sshll.u32 %s14071_s9, 4  ;;  %s13581_s13 = sshra.s32 %s14341_s11, 4  ;;  %s933_s0 = int_to_ptr.vmem [resolvable:$true] %s932_s0  ;;  %s13582_s13 = int_to_ptr.hbm [resolvable:$true] %s13581_s13 }
  0x6f   : > { %s13583_s16 = scalar_lea.hbm %s13582_s13, 96  ;;  %s13588_s25 = scalar_lea.hbm %s14141_s14, 96 }
  0x70   : > { %p13584_p1 = scmp.ne.s32.totalorder %s13582_s13, %s13583_s16  ;;  %p13589_p7 = scmp.lt.s32.totalorder %s13582_s13, %s14141_s14 }
  0x71   : > { %p13590_p8 = scmp.lt.s32.totalorder %s13588_s25, %s13583_s16 }
  0x72   : > { %p13586_p3 = pnand %p13584_p1, %p14345_p2 }
  0x73   : > { %p13591_p9 = por %p13590_p8, %p13589_p7 }
  0x74   : > { %p13587_p4 = pneg %p13586_p3 }
  0x76   : > { %p13592_p13 = pnand %p13591_p9, %p13587_p4 }
  0x78   : > { %13595 = shalt.err (!%p13592_p13)
}
  0x79   : > { %13391 = dma.hbm_to_vmem [thread:$0]  (!%p14337_p0), %s14341_s11, 1536, %s933_s0, [#allocation10], %s17530_s2, %s17530_s2, %s17532_s27  }
  0x7a   : > { %s1004_s9 = sshll.u32 %s14191_s30, 4  ;;  %s14072_s18 = smov [#allocation12]   ;;  %s14373_s9 = int_to_ptr.hbm [resolvable:$true] %s1004_s9 }
  0x7b   : > { %s966_s7 = sshll.u32 %s14072_s18, 4  ;;  %s13611_s25 = sshra.s32 %s14359_s22, 4  ;;  %s967_s7 = int_to_ptr.vmem [resolvable:$true] %s966_s7  ;;  %s13612_s25 = int_to_ptr.hbm [resolvable:$true] %s13611_s25 }
  0x7c   : > { %s13613_s13 = scalar_lea.hbm %s13612_s25, 192  ;;  %s13618_s16 = scalar_lea.hbm %s14161_s6, 192 }
  0x7d   : > { %p13614_p1 = scmp.ne.s32.totalorder %s13612_s25, %s13613_s13  ;;  %p13619_p7 = scmp.lt.s32.totalorder %s13612_s25, %s14161_s6 }
  0x7e   : > { %p13620_p8 = scmp.lt.s32.totalorder %s13618_s16, %s13613_s13 }
  0x7f   : > { %p13616_p3 = pnand %p13614_p1, %p14345_p2 }
  0x80   : > { %p13621_p9 = por %p13620_p8, %p13619_p7 }
  0x81   : > { %p13617_p4 = pneg %p13616_p3 }
  0x83   : > { %p13622_p13 = pnand %p13621_p9, %p13617_p4 }
  0x85   : > { %13625 = shalt.err (!%p13622_p13)
}
  0x86   : > { %13397 = dma.hbm_to_vmem [thread:$0]  (!%p14337_p0), %s14359_s22, 3072, %s967_s7, [#allocation13], %s17530_s2, %s17530_s2, %s17532_s27  }
  0x87   : > { %s14073_s0 = smov [#allocation15]   ;;  %s13641_s18 = sshra.s32 %s14373_s9, 4  ;;  %s13642_s18 = int_to_ptr.hbm [resolvable:$true] %s13641_s18 }
  0x88   : > { %s1006_s11 = sshll.u32 %s14073_s0, 4  ;;  %s13643_s25 = scalar_lea.hbm %s13642_s18, 192  ;;  %s1007_s11 = int_to_ptr.vmem [resolvable:$true] %s1006_s11 }
  0x89   : > { %p13644_p1 = scmp.ne.s32.totalorder %s13642_s18, %s13643_s25  ;;  %s13648_s13 = scalar_lea.hbm %s14191_s30, 192 }
  0x8a   : > { %p13649_p7 = scmp.lt.s32.totalorder %s13642_s18, %s14191_s30  ;;  %p13650_p8 = scmp.lt.s32.totalorder %s13648_s13, %s13643_s25 }
  0x8b   : > { %p13646_p3 = pnand %p13644_p1, %p14345_p2 }
  0x8c   : > { %p13651_p9 = por %p13650_p8, %p13649_p7 }
  0x8d   : > { %p13647_p4 = pneg %p13646_p3 }
  0x8f   : > { %p13652_p13 = pnand %p13651_p9, %p13647_p4 }
  0x91   : > { %13655 = shalt.err (!%p13652_p13)
}
  0x92   : > { %13403 = dma.hbm_to_vmem [thread:$0]  (!%p14337_p0), %s14373_s9, 3072, %s1007_s11, [#allocation16], %s17530_s2, %s17530_s2, %s17532_s27  }
  0x93   : > { %s1050_s22 = sshll.u32 %s14231_s19, 4  ;;  %s14074_s7 = smov [#allocation18]   ;;  %s1051_s22 = int_to_ptr.hbm [resolvable:$true] %s1050_s22 }
  0x94   : > { %s1052_s16 = sshll.u32 %s14074_s7, 4  ;;  %s1084_s0 = sshll.u32 %s14251_s29, 4  ;;  %s1053_s16 = int_to_ptr.vmem [resolvable:$true] %s1052_s16  ;;  %s1085_s0 = int_to_ptr.hbm [resolvable:$true] %s1084_s0 }
  0x95   : > { %s13671_s18 = sshra.s32 %s1051_s22, 4  ;;  %s13678_s13 = scalar_lea.hbm %s14231_s19, 768  ;;  %s13672_s18 = int_to_ptr.hbm [resolvable:$true] %s13671_s18 }
  0x96   : > { %s13673_s25 = scalar_lea.hbm %s13672_s18, 768  ;;  %p13679_p7 = scmp.lt.s32.totalorder %s13672_s18, %s14231_s19 }
  0x97   : > { %p13674_p1 = scmp.ne.s32.totalorder %s13672_s18, %s13673_s25  ;;  %p13680_p8 = scmp.lt.s32.totalorder %s13678_s13, %s13673_s25 }
  0x99   : > { %p13676_p3 = pnand %p13674_p1, %p14345_p2  ;;  %p13681_p9 = por %p13680_p8, %p13679_p7 }
  0x9b   : > { %p13677_p4 = pneg %p13676_p3 }
  0x9d   : > { %p13682_p13 = pnand %p13681_p9, %p13677_p4 }
  0x9f   : > { %13685 = shalt.err (!%p13682_p13)
}
  0xa0   : > { %s17534_s9 = smov 128   ;;  %s17536_s11 = smov 8  }
  0xa1   : > { %13409 = dma.hbm_to_vmem [thread:$0]  (!%p14337_p0), %s1051_s22, 12288, %s1053_s16, [#allocation19], %s17534_s9, %s17534_s9, %s17536_s11  }
  0xa2   : > { %s14077_s7 = smov [#allocation21]   ;;  %s879_s18 = sshll.u32 %s14111_s17, 4  ;;  %s14409_s18 = int_to_ptr.hbm [resolvable:$true] %s879_s18 }
  0xa3   : > { %s1086_s2 = sshll.u32 %s14077_s7, 4  ;;  %s13701_s25 = sshra.s32 %s1085_s0, 4  ;;  %s1087_s2 = int_to_ptr.vmem [resolvable:$true] %s1086_s2  ;;  %s13702_s25 = int_to_ptr.hbm [resolvable:$true] %s13701_s25 }
  0xa4   : > { %s13703_s13 = scalar_lea.hbm %s13702_s25, 128  ;;  %s13708_s27 = scalar_lea.hbm %s14251_s29, 128 }
  0xa5   : > { %p13704_p1 = scmp.ne.s32.totalorder %s13702_s25, %s13703_s13  ;;  %p13709_p7 = scmp.lt.s32.totalorder %s13702_s25, %s14251_s29 }
  0xa6   : > { %p13710_p8 = scmp.lt.s32.totalorder %s13708_s27, %s13703_s13 }
  0xa7   : > { %p13706_p3 = pnand %p13704_p1, %p14345_p2 }
  0xa8   : > { %p13711_p9 = por %p13710_p8, %p13709_p7 }
  0xa9   : > { %p13707_p4 = pneg %p13706_p3 }
  0xab   : > { %p13712_p13 = pnand %p13711_p9, %p13707_p4 }
  0xad   : > { %13715 = shalt.err (!%p13712_p13)
}
  0xae   : > { %s17633_s22 = smov 4   ;;  %s17634_s16 = smov 64  }
  0xaf   : > { %13415 = dma.hbm_to_vmem [thread:$0]  (!%p14337_p0), %s1085_s0, 2048, %s1087_s2, [#allocation22], %s17634_s16, %s17634_s16, %s17633_s22  }
  0xb0   : > { %s913_s7 = sshll.u32 %s17619_s3, 4  ;;  %s14078_s9 = smov [#allocation3]   ;;  %s14421_s7 = int_to_ptr.hbm [resolvable:$true] %s913_s7 }
  0xb1   : > { %s881_s11 = sshll.u32 %s14078_s9, 4  ;;  %s13731_s27 = sshra.s32 %s14409_s18, 4  ;;  %s882_s11 = int_to_ptr.vmem [resolvable:$true] %s881_s11  ;;  %s13732_s27 = int_to_ptr.hbm [resolvable:$true] %s13731_s27 }
  0xb2   : > { %s13733_s25 = scalar_lea.hbm %s13732_s27, 96  ;;  %s13738_s13 = scalar_lea.hbm %s14111_s17, 96 }
  0xb3   : > { %p13734_p1 = scmp.ne.s32.totalorder %s13732_s27, %s13733_s25  ;;  %p13739_p7 = scmp.lt.s32.totalorder %s13732_s27, %s14111_s17 }
  0xb4   : > { %p13740_p8 = scmp.lt.s32.totalorder %s13738_s13, %s13733_s25 }
  0xb5   : > { %p13736_p3 = pnand %p13734_p1, %p14345_p2 }
  0xb6   : > { %p13741_p9 = por %p13740_p8, %p13739_p7 }
  0xb7   : > { %p13737_p4 = pneg %p13736_p3 }
  0xb9   : > { %p13742_p13 = pnand %p13741_p9, %p13737_p4 }
  0xbb   : > { %13745 = shalt.err (!%p13742_p13)
}
  0xbc   : > { %13382 = dma.hbm_to_vmem [thread:$0]  (!%p14337_p0), %s14409_s18, 1536, %s882_s11, [#allocation4], %s17634_s16, %s17634_s16, %s17633_s22  }
  0xbd   : > { %s14079_s2 = smov [#allocation8]   ;;  %s947_s9 = sshll.u32 %s14151_s24, 4  ;;  %s14435_s9 = int_to_ptr.hbm [resolvable:$true] %s947_s9 }
  0xbe   : > { %s915_s0 = sshll.u32 %s14079_s2, 4  ;;  %s13761_s27 = sshra.s32 %s14421_s7, 4  ;;  %s916_s0 = int_to_ptr.vmem [resolvable:$true] %s915_s0  ;;  %s13762_s27 = int_to_ptr.hbm [resolvable:$true] %s13761_s27 }
  0xbf   : > { %s13763_s25 = scalar_lea.hbm %s13762_s27, 96  ;;  %s13768_s13 = scalar_lea.hbm %s17619_s3, 96 }
  0xc0   : > { %p13764_p1 = scmp.ne.s32.totalorder %s13762_s27, %s13763_s25  ;;  %p13769_p7 = scmp.lt.s32.totalorder %s13762_s27, %s17619_s3 }
  0xc1   : > { %p13770_p8 = scmp.lt.s32.totalorder %s13768_s13, %s13763_s25 }
  0xc2   : > { %p13766_p3 = pnand %p13764_p1, %p14345_p2 }
  0xc3   : > { %p13771_p9 = por %p13770_p8, %p13769_p7 }
  0xc4   : > { %p13767_p4 = pneg %p13766_p3 }
  0xc6   : > { %p13772_p13 = pnand %p13771_p9, %p13767_p4 }
  0xc8   : > { %13775 = shalt.err (!%p13772_p13)
}
  0xc9   : > { %13388 = dma.hbm_to_vmem [thread:$0]  (!%p14337_p0), %s14421_s7, 1536, %s916_s0, [#allocation7], %s17634_s16, %s17634_s16, %s17633_s22  }
  0xca   : > { %s987_s11 = sshll.u32 %s17618_s4, 4  ;;  %s14080_s18 = smov [#allocation11]   ;;  %s14449_s11 = int_to_ptr.hbm [resolvable:$true] %s987_s11 }
  0xcb   : > { %s949_s2 = sshll.u32 %s14080_s18, 4  ;;  %s13791_s27 = sshra.s32 %s14435_s9, 4  ;;  %s950_s2 = int_to_ptr.vmem [resolvable:$true] %s949_s2  ;;  %s13792_s27 = int_to_ptr.hbm [resolvable:$true] %s13791_s27 }
  0xcc   : > { %s13793_s25 = scalar_lea.hbm %s13792_s27, 96  ;;  %s13798_s13 = scalar_lea.hbm %s14151_s24, 96 }
  0xcd   : > { %p13794_p1 = scmp.ne.s32.totalorder %s13792_s27, %s13793_s25  ;;  %p13799_p7 = scmp.lt.s32.totalorder %s13792_s27, %s14151_s24 }
  0xce   : > { %p13800_p8 = scmp.lt.s32.totalorder %s13798_s13, %s13793_s25 }
  0xcf   : > { %p13796_p3 = pnand %p13794_p1, %p14345_p2 }
  0xd0   : > { %p13801_p9 = por %p13800_p8, %p13799_p7 }
  0xd1   : > { %p13797_p4 = pneg %p13796_p3 }
  0xd3   : > { %p13802_p13 = pnand %p13801_p9, %p13797_p4 }
  0xd5   : > { %13805 = shalt.err (!%p13802_p13)
}
  0xd6   : > { %13394 = dma.hbm_to_vmem [thread:$0]  (!%p14337_p0), %s14435_s9, 1536, %s950_s2, [#allocation10], %s17634_s16, %s17634_s16, %s17633_s22  }
  0xd7   : > { %s14081_s7 = smov [#allocation14]   ;;  %s1033_s18 = sshll.u32 %s14221_s20, 4  ;;  %s14463_s18 = int_to_ptr.hbm [resolvable:$true] %s1033_s18 }
  0xd8   : > { %s989_s0 = sshll.u32 %s14081_s7, 4  ;;  %s13821_s27 = sshra.s32 %s14449_s11, 4  ;;  %s990_s0 = int_to_ptr.vmem [resolvable:$true] %s989_s0  ;;  %s13822_s27 = int_to_ptr.hbm [resolvable:$true] %s13821_s27 }
  0xd9   : > { %s13823_s25 = scalar_lea.hbm %s13822_s27, 192  ;;  %s13828_s13 = scalar_lea.hbm %s17618_s4, 192 }
  0xda   : > { %p13824_p1 = scmp.ne.s32.totalorder %s13822_s27, %s13823_s25  ;;  %p13829_p7 = scmp.lt.s32.totalorder %s13822_s27, %s17618_s4 }
  0xdb   : > { %p13830_p8 = scmp.lt.s32.totalorder %s13828_s13, %s13823_s25 }
  0xdc   : > { %p13826_p3 = pnand %p13824_p1, %p14345_p2 }
  0xdd   : > { %p13831_p9 = por %p13830_p8, %p13829_p7 }
  0xde   : > { %p13827_p4 = pneg %p13826_p3 }
  0xe0   : > { %p13832_p13 = pnand %p13831_p9, %p13827_p4 }
  0xe2   : > { %13835 = shalt.err (!%p13832_p13)
}
  0xe3   : > { %13400 = dma.hbm_to_vmem [thread:$0]  (!%p14337_p0), %s14449_s11, 3072, %s990_s0, [#allocation13], %s17634_s16, %s17634_s16, %s17633_s22  }
  0xe4   : > { %s1067_s9 = sshll.u32 %s14241_s8, 4  ;;  %s14082_s2 = smov [#allocation17]   ;;  %s14477_s9 = int_to_ptr.hbm [resolvable:$true] %s1067_s9 }
  0xe5   : > { %s1035_s7 = sshll.u32 %s14082_s2, 4  ;;  %s13851_s27 = sshra.s32 %s14463_s18, 4  ;;  %s1036_s7 = int_to_ptr.vmem [resolvable:$true] %s1035_s7  ;;  %s13852_s27 = int_to_ptr.hbm [resolvable:$true] %s13851_s27 }
  0xe6   : > { %s13853_s25 = scalar_lea.hbm %s13852_s27, 128  ;;  %s13858_s13 = scalar_lea.hbm %s14221_s20, 128 }
  0xe7   : > { %p13854_p1 = scmp.ne.s32.totalorder %s13852_s27, %s13853_s25  ;;  %p13859_p7 = scmp.lt.s32.totalorder %s13852_s27, %s14221_s20 }
  0xe8   : > { %p13860_p8 = scmp.lt.s32.totalorder %s13858_s13, %s13853_s25 }
  0xe9   : > { %p13856_p3 = pnand %p13854_p1, %p14345_p2 }
  0xea   : > { %p13861_p9 = por %p13860_p8, %p13859_p7 }
  0xeb   : > { %p13857_p4 = pneg %p13856_p3 }
  0xed   : > { %p13862_p13 = pnand %p13861_p9, %p13857_p4 }
  0xef   : > { %13865 = shalt.err (!%p13862_p13)
}
  0xf0   : > { %s17635_s11 = smov 8   ;;  %s17636_s0 = smov 128  }
  0xf1   : > { %13406 = dma.hbm_to_vmem [thread:$0]  (!%p14337_p0), %s14463_s18, 2048, %s1036_s7, [#allocation16], %s17636_s0, %s17636_s0, %s17635_s11  }
  0xf2   : > { %s14083_s2 = smov [#allocation20]   ;;  %s1101_s4 = sshll.u32 %s14261_s21, 4  ;;  %s1102_s4 = int_to_ptr.hbm [resolvable:$true] %s1101_s4 }
  0xf3   : > { %s1069_s3 = sshll.u32 %s14083_s2, 4  ;;  %s13881_s27 = sshra.s32 %s14477_s9, 4  ;;  %s1070_s3 = int_to_ptr.vmem [resolvable:$true] %s1069_s3  ;;  %s13882_s27 = int_to_ptr.hbm [resolvable:$true] %s13881_s27 }
  0xf4   : > { %s13883_s25 = scalar_lea.hbm %s13882_s27, 768  ;;  %s13888_s13 = scalar_lea.hbm %s14241_s8, 768 }
  0xf5   : > { %p13884_p1 = scmp.ne.s32.totalorder %s13882_s27, %s13883_s25  ;;  %p13889_p7 = scmp.lt.s32.totalorder %s13882_s27, %s14241_s8 }
  0xf6   : > { %p13890_p8 = scmp.lt.s32.totalorder %s13888_s13, %s13883_s25 }
  0xf7   : > { %p13886_p3 = pnand %p13884_p1, %p14345_p2 }
  0xf8   : > { %p13891_p9 = por %p13890_p8, %p13889_p7 }
  0xf9   : > { %p13887_p4 = pneg %p13886_p3 }
  0xfb   : > { %p13892_p13 = pnand %p13891_p9, %p13887_p4 }
  0xfd   : > { %13895 = shalt.err (!%p13892_p13)
}
  0xfe   : > { %13412 = dma.hbm_to_vmem [thread:$0]  (!%p14337_p0), %s14477_s9, 12288, %s1070_s3, [#allocation19], %s17636_s0, %s17636_s0, %s17635_s11  }
  0xff   : > { %s14084_s18 = smov [#allocation23]   ;;  %s13911_s2 = sshra.s32 %s1102_s4, 4  ;;  %s13912_s2 = int_to_ptr.hbm [resolvable:$true] %s13911_s2 }
 0x100   : > { %s1103_s7 = sshll.u32 %s14084_s18, 4  ;;  %s13913_s27 = scalar_lea.hbm %s13912_s2, 64  ;;  %s1104_s7 = int_to_ptr.vmem [resolvable:$true] %s1103_s7 }
 0x101   : > { %p13914_p1 = scmp.ne.s32.totalorder %s13912_s2, %s13913_s27  ;;  %s13918_s25 = scalar_lea.hbm %s14261_s21, 64 }
 0x102   : > { %p13919_p7 = scmp.lt.s32.totalorder %s13912_s2, %s14261_s21  ;;  %p13920_p8 = scmp.lt.s32.totalorder %s13918_s25, %s13913_s27 }
 0x103   : > { %p13916_p3 = pnand %p13914_p1, %p14345_p2 }
 0x104   : > { %p13921_p9 = por %p13920_p8, %p13919_p7 }
 0x105   : > { %p13917_p4 = pneg %p13916_p3 }
 0x107   : > { %p13922_p13 = pnand %p13921_p9, %p13917_p4 }
 0x109   : > { %13925 = shalt.err (!%p13922_p13)
}
 0x10a   : > { %13418 = dma.hbm_to_vmem [thread:$0]  (!%p14337_p0), %s1102_s4, 1024, %s1104_s7, [#allocation22], %s17634_s16, %s17634_s16, %s17633_s22  }
 0x10b   : > { %p10482_p11 = scmp.ge.s32.totalorder %s14031_s28, 2 }
 0x10d   : > { %1116 = sbr.rel (%p10482_p11) target bundleno = 342 (0x156), region = 152 }
 0x112   : > { %1119 = sbr.rel (!%p14312_p5) target bundleno = 342 (0x156), region = 156  ;;  %s1121_s3 = sand.u32 (%p14312_p5), 1, %s14027_s26  }
 0x113   : > { %s10484_s12 = sshll.u32 (%p14312_p5), %s14031_s28, 3  ;;  %s10483_s9 = sshll.u32 (%p14312_p5), %s1121_s3, 9 }
 0x114   : > { %s14519_s11 = scalar_lea.vmem (%p14312_p5), %s14096_s5, %s10484_s12  ;;  %s14524_s4 = scalar_lea.vmem (%p14312_p5), [#allocation2], %s10483_s9 }
 0x115   : > { %v1280_v0 = vld [vmem:[%s14519_s11] sm:$0xff] (%p14312_p5)  ;;  %v1282_v1 = vld [vmem:[%s14519_s11 + $0x10] sm:$0xff] (%p14312_p5) }
 0x116   : > { %v1284_v2 = vld [vmem:[%s14519_s11 + $0x20] sm:$0xff] (%p14312_p5)  ;;  %1281 = vst [vmem:[%s14524_s4] sm:$0xff] (%p14312_p5), %v1280_v0  ;;  %v1286_v3 = vld [vmem:[%s14519_s11 + $0x30] sm:$0xff] (%p14312_p5) }
 0x117   : > { %1283 = vst [vmem:[%s14524_s4 + $0x8] sm:$0xff] %v1282_v1  ;;  %v1288_v4 = vld [vmem:[%s14519_s11 + $0x40] sm:$0xff]  ;;  %v1290_v5 = vld [vmem:[%s14519_s11 + $0x50] sm:$0xff] }
 0x118   : > { %1285 = vst [vmem:[%s14524_s4 + $0x10] sm:$0xff] %v1284_v2  ;;  %v1292_v6 = vld [vmem:[%s14519_s11 + $0x60] sm:$0xff]  ;;  %v1294_v7 = vld [vmem:[%s14519_s11 + $0x70] sm:$0xff] }
 0x119   : > { %1287 = vst [vmem:[%s14524_s4 + $0x18] sm:$0xff] %v1286_v3  ;;  %v1296_v8 = vld [vmem:[%s14519_s11 + $0x80] sm:$0xff]  ;;  %v1298_v9 = vld [vmem:[%s14519_s11 + $0x90] sm:$0xff] }
 0x11a   : > { %1289 = vst [vmem:[%s14524_s4 + $0x20] sm:$0xff] %v1288_v4  ;;  %v1300_v10 = vld [vmem:[%s14519_s11 + $0xa0] sm:$0xff]  ;;  %v1302_v11 = vld [vmem:[%s14519_s11 + $0xb0] sm:$0xff] }
 0x11b   : > { %1291 = vst [vmem:[%s14524_s4 + $0x28] sm:$0xff] %v1290_v5  ;;  %v1304_v12 = vld [vmem:[%s14519_s11 + $0xc0] sm:$0xff]  ;;  %v1306_v13 = vld [vmem:[%s14519_s11 + $0xd0] sm:$0xff] }
 0x11c   : > { %1293 = vst [vmem:[%s14524_s4 + $0x30] sm:$0xff] %v1292_v6  ;;  %v1308_v14 = vld [vmem:[%s14519_s11 + $0xe0] sm:$0xff]  ;;  %v1310_v15 = vld [vmem:[%s14519_s11 + $0xf0] sm:$0xff] }
 0x11d   : > { %1295 = vst [vmem:[%s14524_s4 + $0x38] sm:$0xff] %v1294_v7  ;;  %v1312_v16 = vld [vmem:[%s14519_s11 + $0x100] sm:$0xff]  ;;  %v1314_v17 = vld [vmem:[%s14519_s11 + $0x110] sm:$0xff] }
 0x11e   : > { %1297 = vst [vmem:[%s14524_s4 + $0x40] sm:$0xff] %v1296_v8  ;;  %v1316_v18 = vld [vmem:[%s14519_s11 + $0x120] sm:$0xff]  ;;  %v1318_v19 = vld [vmem:[%s14519_s11 + $0x130] sm:$0xff] }
 0x11f   : > { %1299 = vst [vmem:[%s14524_s4 + $0x48] sm:$0xff] %v1298_v9  ;;  %v1320_v20 = vld [vmem:[%s14519_s11 + $0x140] sm:$0xff]  ;;  %v1322_v21 = vld [vmem:[%s14519_s11 + $0x150] sm:$0xff] }
 0x120   : > { %1301 = vst [vmem:[%s14524_s4 + $0x50] sm:$0xff] %v1300_v10  ;;  %v1324_v22 = vld [vmem:[%s14519_s11 + $0x160] sm:$0xff]  ;;  %v1326_v23 = vld [vmem:[%s14519_s11 + $0x170] sm:$0xff] }
 0x121   : > { %1303 = vst [vmem:[%s14524_s4 + $0x58] sm:$0xff] %v1302_v11  ;;  %v1328_v24 = vld [vmem:[%s14519_s11 + $0x180] sm:$0xff]  ;;  %v1330_v25 = vld [vmem:[%s14519_s11 + $0x190] sm:$0xff] }
 0x122   : > { %1305 = vst [vmem:[%s14524_s4 + $0x60] sm:$0xff] %v1304_v12  ;;  %v1332_v26 = vld [vmem:[%s14519_s11 + $0x1a0] sm:$0xff]  ;;  %v1334_v27 = vld [vmem:[%s14519_s11 + $0x1b0] sm:$0xff] }
 0x123   : > { %1307 = vst [vmem:[%s14524_s4 + $0x68] sm:$0xff] %v1306_v13  ;;  %v1336_v28 = vld [vmem:[%s14519_s11 + $0x1c0] sm:$0xff]  ;;  %v1338_v29 = vld [vmem:[%s14519_s11 + $0x1d0] sm:$0xff] }
 0x124   : > { %1309 = vst [vmem:[%s14524_s4 + $0x70] sm:$0xff] %v1308_v14  ;;  %v1340_v30 = vld [vmem:[%s14519_s11 + $0x1e0] sm:$0xff]  ;;  %v1342_v31 = vld [vmem:[%s14519_s11 + $0x1f0] sm:$0xff] }
 0x125   : > { %1311 = vst [vmem:[%s14524_s4 + $0x78] sm:$0xff] %v1310_v15  ;;  %v1344_v32 = vld [vmem:[%s14519_s11 + $0x200] sm:$0xff]  ;;  %v1346_v33 = vld [vmem:[%s14519_s11 + $0x210] sm:$0xff] }
 0x126   : > { %1313 = vst [vmem:[%s14524_s4 + $0x80] sm:$0xff] %v1312_v16  ;;  %v1348_v34 = vld [vmem:[%s14519_s11 + $0x220] sm:$0xff]  ;;  %v1350_v35 = vld [vmem:[%s14519_s11 + $0x230] sm:$0xff] }
 0x127   : > { %1315 = vst [vmem:[%s14524_s4 + $0x88] sm:$0xff] %v1314_v17  ;;  %v1352_v36 = vld [vmem:[%s14519_s11 + $0x240] sm:$0xff]  ;;  %v1354_v37 = vld [vmem:[%s14519_s11 + $0x250] sm:$0xff] }
 0x128   : > { %1317 = vst [vmem:[%s14524_s4 + $0x90] sm:$0xff] %v1316_v18  ;;  %v1356_v38 = vld [vmem:[%s14519_s11 + $0x260] sm:$0xff]  ;;  %v1358_v39 = vld [vmem:[%s14519_s11 + $0x270] sm:$0xff] }
 0x129   : > { %1319 = vst [vmem:[%s14524_s4 + $0x98] sm:$0xff] %v1318_v19  ;;  %v1360_v40 = vld [vmem:[%s14519_s11 + $0x280] sm:$0xff]  ;;  %v1362_v41 = vld [vmem:[%s14519_s11 + $0x290] sm:$0xff] }
 0x12a   : > { %1321 = vst [vmem:[%s14524_s4 + $0xa0] sm:$0xff] %v1320_v20  ;;  %v1364_v42 = vld [vmem:[%s14519_s11 + $0x2a0] sm:$0xff]  ;;  %v1366_v43 = vld [vmem:[%s14519_s11 + $0x2b0] sm:$0xff] }
 0x12b   : > { %1323 = vst [vmem:[%s14524_s4 + $0xa8] sm:$0xff] %v1322_v21  ;;  %v1368_v44 = vld [vmem:[%s14519_s11 + $0x2c0] sm:$0xff]  ;;  %v1370_v45 = vld [vmem:[%s14519_s11 + $0x2d0] sm:$0xff] }
 0x12c   : > { %1325 = vst [vmem:[%s14524_s4 + $0xb0] sm:$0xff] %v1324_v22  ;;  %v1372_v46 = vld [vmem:[%s14519_s11 + $0x2e0] sm:$0xff]  ;;  %v1374_v47 = vld [vmem:[%s14519_s11 + $0x2f0] sm:$0xff] }
 0x12d   : > { %1327 = vst [vmem:[%s14524_s4 + $0xb8] sm:$0xff] %v1326_v23  ;;  %v1376_v48 = vld [vmem:[%s14519_s11 + $0x300] sm:$0xff]  ;;  %v1378_v49 = vld [vmem:[%s14519_s11 + $0x310] sm:$0xff] }
 0x12e   : > { %1329 = vst [vmem:[%s14524_s4 + $0xc0] sm:$0xff] %v1328_v24  ;;  %v1380_v50 = vld [vmem:[%s14519_s11 + $0x320] sm:$0xff]  ;;  %v1382_v51 = vld [vmem:[%s14519_s11 + $0x330] sm:$0xff] }
 0x12f   : > { %1331 = vst [vmem:[%s14524_s4 + $0xc8] sm:$0xff] %v1330_v25  ;;  %v1384_v52 = vld [vmem:[%s14519_s11 + $0x340] sm:$0xff]  ;;  %v1386_v53 = vld [vmem:[%s14519_s11 + $0x350] sm:$0xff] }
 0x130   : > { %1333 = vst [vmem:[%s14524_s4 + $0xd0] sm:$0xff] %v1332_v26  ;;  %v1388_v54 = vld [vmem:[%s14519_s11 + $0x360] sm:$0xff]  ;;  %v1390_v55 = vld [vmem:[%s14519_s11 + $0x370] sm:$0xff] }
 0x131   : > { %1335 = vst [vmem:[%s14524_s4 + $0xd8] sm:$0xff] %v1334_v27  ;;  %v1392_v56 = vld [vmem:[%s14519_s11 + $0x380] sm:$0xff]  ;;  %v1394_v57 = vld [vmem:[%s14519_s11 + $0x390] sm:$0xff] }
 0x132   : > { %1337 = vst [vmem:[%s14524_s4 + $0xe0] sm:$0xff] %v1336_v28  ;;  %v1396_v58 = vld [vmem:[%s14519_s11 + $0x3a0] sm:$0xff]  ;;  %v1398_v59 = vld [vmem:[%s14519_s11 + $0x3b0] sm:$0xff] }
 0x133   : > { %1339 = vst [vmem:[%s14524_s4 + $0xe8] sm:$0xff] %v1338_v29  ;;  %v1400_v60 = vld [vmem:[%s14519_s11 + $0x3c0] sm:$0xff]  ;;  %v1402_v61 = vld [vmem:[%s14519_s11 + $0x3d0] sm:$0xff] }
 0x134   : > { %1341 = vst [vmem:[%s14524_s4 + $0xf0] sm:$0xff] %v1340_v30  ;;  %v1404_v62 = vld [vmem:[%s14519_s11 + $0x3e0] sm:$0xff]  ;;  %v1406_v63 = vld [vmem:[%s14519_s11 + $0x3f0] sm:$0xff] }
 0x135   : > { %1343 = vst [vmem:[%s14524_s4 + $0xf8] sm:$0xff] %v1342_v31 }
 0x136   : > { %1345 = vst [vmem:[%s14524_s4 + $0x100] sm:$0xff] %v1344_v32 }
 0x137   : > { %1347 = vst [vmem:[%s14524_s4 + $0x108] sm:$0xff] %v1346_v33 }
 0x138   : > { %1349 = vst [vmem:[%s14524_s4 + $0x110] sm:$0xff] %v1348_v34 }
 0x139   : > { %1351 = vst [vmem:[%s14524_s4 + $0x118] sm:$0xff] %v1350_v35 }
 0x13a   : > { %1353 = vst [vmem:[%s14524_s4 + $0x120] sm:$0xff] %v1352_v36 }
 0x13b   : > { %1355 = vst [vmem:[%s14524_s4 + $0x128] sm:$0xff] %v1354_v37 }
 0x13c   : > { %1357 = vst [vmem:[%s14524_s4 + $0x130] sm:$0xff] %v1356_v38 }
 0x13d   : > { %1359 = vst [vmem:[%s14524_s4 + $0x138] sm:$0xff] %v1358_v39 }
 0x13e   : > { %1361 = vst [vmem:[%s14524_s4 + $0x140] sm:$0xff] %v1360_v40 }
 0x13f   : > { %1363 = vst [vmem:[%s14524_s4 + $0x148] sm:$0xff] %v1362_v41 }
 0x140   : > { %1365 = vst [vmem:[%s14524_s4 + $0x150] sm:$0xff] %v1364_v42 }
 0x141   : > { %1367 = vst [vmem:[%s14524_s4 + $0x158] sm:$0xff] %v1366_v43 }
 0x142   : > { %1369 = vst [vmem:[%s14524_s4 + $0x160] sm:$0xff] %v1368_v44 }
 0x143   : > { %1371 = vst [vmem:[%s14524_s4 + $0x168] sm:$0xff] %v1370_v45 }
 0x144   : > { %1373 = vst [vmem:[%s14524_s4 + $0x170] sm:$0xff] %v1372_v46 }
 0x145   : > { %1375 = vst [vmem:[%s14524_s4 + $0x178] sm:$0xff] %v1374_v47 }
 0x146   : > { %1377 = vst [vmem:[%s14524_s4 + $0x180] sm:$0xff] %v1376_v48 }
 0x147   : > { %1379 = vst [vmem:[%s14524_s4 + $0x188] sm:$0xff] %v1378_v49 }
 0x148   : > { %1381 = vst [vmem:[%s14524_s4 + $0x190] sm:$0xff] %v1380_v50 }
 0x149   : > { %1383 = vst [vmem:[%s14524_s4 + $0x198] sm:$0xff] %v1382_v51 }
 0x14a   : > { %1385 = vst [vmem:[%s14524_s4 + $0x1a0] sm:$0xff] %v1384_v52 }
 0x14b   : > { %1387 = vst [vmem:[%s14524_s4 + $0x1a8] sm:$0xff] %v1386_v53 }
 0x14c   : > { %1389 = vst [vmem:[%s14524_s4 + $0x1b0] sm:$0xff] %v1388_v54 }
 0x14d   : > { %1391 = vst [vmem:[%s14524_s4 + $0x1b8] sm:$0xff] %v1390_v55 }
 0x14e   : > { %1393 = vst [vmem:[%s14524_s4 + $0x1c0] sm:$0xff] %v1392_v56 }
 0x14f   : > { %1395 = vst [vmem:[%s14524_s4 + $0x1c8] sm:$0xff] %v1394_v57 }
 0x150   : > { %1397 = vst [vmem:[%s14524_s4 + $0x1d0] sm:$0xff] %v1396_v58 }
 0x151   : > { %1399 = vst [vmem:[%s14524_s4 + $0x1d8] sm:$0xff] %v1398_v59 }
 0x152   : > { %1401 = vst [vmem:[%s14524_s4 + $0x1e0] sm:$0xff] %v1400_v60 }
 0x153   : > { %1403 = vst [vmem:[%s14524_s4 + $0x1e8] sm:$0xff] %v1402_v61 }
 0x154   : > { %1405 = vst [vmem:[%s14524_s4 + $0x1f0] sm:$0xff] %v1404_v62 }
 0x155   : > { %1407 = vst [vmem:[%s14524_s4 + $0x1f8] sm:$0xff] %v1406_v63 }
 0x156 PF: > { %1416 = sbr.rel (%p14327_p12) target bundleno = 4188 (0x105c), region = 194 }
 0x15b   : > { %s17637_s15 = sld [smem:[#allocation59_spill]]  ;;  %s14654_s1 = sand.u32 1, %s14023_s23  }
 0x15c   : > { %s10486_s22 = sshll.u32 %s14654_s1, 9 }
 0x15d   : > { %s14657_s16 = scalar_lea.vmem [#allocation2], %s10486_s22 }
 0x161   : > { %p17638_p5 = scmp.eq.s32.totalorder %s17637_s15, 0 }
 0x163   : > { %13986 = dma.done.wait (%p17638_p5), [#allocation4], 1536   ;;  %p17639_p0 = pmov %p17638_p5 }
 0x165   : > { %13988 = vsyncadd (%p17639_p0), [#allocation4], 4294965760  ;;  %p17640_p2 = pmov %p17639_p0 }
 0x166   : > { %p17641_p1 = pmov %p17639_p0 }
 0x167   : > { %13990 = dma.done.wait (%p17640_p2), [#allocation7], 3072  }
 0x168   : > { %13992 = vsyncadd (%p17641_p1), [#allocation7], 4294964224  ;;  %p17642_p12 = pmov %p17639_p0 }
 0x169   : > { %p17643_p3 = pmov %p17639_p0 }
 0x16a   : > { %13994 = dma.done.wait (%p17642_p12), [#allocation10], 3072  }
 0x16b   : > { %13996 = vsyncadd (%p17643_p3), [#allocation10], 4294964224  ;;  %p17644_p4 = pmov %p17639_p0 }
 0x16c   : > { %p17645_p7 = pmov %p17639_p0 }
 0x16d   : > { %13998 = dma.done.wait (%p17644_p4), [#allocation13], 6144  }
 0x16e   : > { %14000 = vsyncadd (%p17645_p7), [#allocation13], 4294961152  ;;  %p17646_p8 = pmov %p17639_p0 }
 0x16f   : > { %p17647_p9 = pmov %p17639_p0 }
 0x170   : > { %14002 = dma.done.wait (%p17646_p8), [#allocation16], 5120  }
 0x171   : > { %14004 = vsyncadd (%p17647_p9), [#allocation16], 4294962176  ;;  %p17648_p13 = pmov %p17639_p0 }
 0x172   : > { %p17649_p5 = pmov %p17639_p0 }
 0x173   : > { %14006 = dma.done.wait (%p17648_p13), [#allocation19], 24576  }
 0x174   : > { %14008 = vsyncadd (%p17649_p5), [#allocation19], 4294942720 }
 0x175   : > { %14010 = dma.done.wait (%p17639_p0), [#allocation22], 3072   ;;  %p17650_p2 = pmov %p17639_p0 }
 0x176   : > { %s17651_s10 = sld [smem:[#allocation33_spill]]  ;;  %vm1770_vm0 = vcmask 1040384   ;;  %vm1771_vm1 = vcmask 1041408   ;;  %v14085_v0 = vmov 65535   ;;  %v1574_v4 = vld [vmem:[%s14657_s16] sm:$0xff]  ;;  %v1575_v5 = vld [vmem:[%s14657_s16 + $0x8] sm:$0xff] }
 0x177   : > { %14012 = vsyncadd (%p17650_p2), [#allocation22], 4294964224  ;;  %v1772_v1 = vsel %vm1770_vm0, 4294967295, %v14085_v0  ;;  %v1638_v7 = vpack.c.bf16 %v1575_v5, %v1574_v4  ;;  %vm1673_vm2 = vcmask 23552   ;;  %v1576_v8 = vld [vmem:[%s14657_s16 + $0x10] sm:$0xff]  ;;  %v1577_v9 = vld [vmem:[%s14657_s16 + $0x18] sm:$0xff] }
 0x178   : > { %v1773_v2 = vsel %vm1771_vm1, %v1772_v1, 0  ;;  %v1639_v10 = vpack.c.bf16 %v1577_v9, %v1576_v8  ;;  %v1578_v11 = vld [vmem:[%s14657_s16 + $0x20] sm:$0xff]  ;;  %v1579_v12 = vld [vmem:[%s14657_s16 + $0x28] sm:$0xff]  ;;  %v1580_v14 = vld [vmem:[%s14657_s16 + $0x30] sm:$0xff]  ;;  %s17652_s0 = sld [smem:[#allocation34_spill]]  ;;  %vm2180_vm3 = vcmask 523264  }
 0x179   : > { %v1640_v13 = vpack.c.bf16 %v1579_v12, %v1578_v11  ;;  %v1581_v15 = vld [vmem:[%s14657_s16 + $0x38] sm:$0xff]  ;;  %v1582_v17 = vld [vmem:[%s14657_s16 + $0x40] sm:$0xff]  ;;  %v1583_v18 = vld [vmem:[%s14657_s16 + $0x48] sm:$0xff]  ;;  %v17541_v51 = vmov 0.0   ;;  %s17684_s13 = sld [smem:[#allocation35_spill]] }
 0x17a   : > { %v1641_v16 = vpack.c.bf16 %v1581_v15, %v1580_v14  ;;  %v1642_v19 = vpack.c.bf16 %v1583_v18, %v1582_v17  ;;  %v1584_v20 = vld [vmem:[%s14657_s16 + $0x50] sm:$0xff]  ;;  %v1585_v21 = vld [vmem:[%s14657_s16 + $0x58] sm:$0xff]  ;;  %v1586_v23 = vld [vmem:[%s14657_s16 + $0x60] sm:$0xff]  ;;  %s17690_s18 = sld [smem:[#allocation37_spill]] }
 0x17b   : > { %v1643_v22 = vpack.c.bf16 %v1585_v21, %v1584_v20  ;;  %v1587_v24 = vld [vmem:[%s14657_s16 + $0x68] sm:$0xff]  ;;  %v12812_v26 = vld [vmem:[#allocation3 + $0x18] sm:$0xff]  ;;  %v12811_v27 = vld [vmem:[#allocation3 + $0x10] sm:$0xff]  ;;  %s17710_s7 = sld [smem:[#allocation39_spill]] }
 0x17c   : > { %v1572_v3 = vld [vmem:[%s17651_s10] sm:$0x3]  ;;  %v1644_v25 = vpack.c.bf16 %v1587_v24, %v1586_v23  ;;  %2394 = vmatpush.bf16.msra.mxu2 %v12812_v26  ;;  %v12810_v28 = vld [vmem:[#allocation3 + $0x8] sm:$0xff]  ;;  %v1588_v29 = vld [vmem:[%s14657_s16 + $0x70] sm:$0xff]  ;;  %s17726_s2 = sld [smem:[#allocation40_spill]] }
 0x17d   : > { %v1775_v6 = vand.u32 %v1773_v2, %v1572_v3  ;;  %v1589_v30 = vld [vmem:[%s14657_s16 + $0x78] sm:$0xff]  ;;  %v12809_v31 = vld [vmem:[#allocation3] sm:$0xff]  ;;  %v12815_v34 = vld [vmem:[#allocation3 + $0x30] sm:$0xff]  ;;  %s17727_s27 = sld [smem:[#allocation43_spill]] }
 0x17e   : > { %v1645_v32 = vpack.c.bf16 %v1589_v30, %v1588_v29  ;;  %v12816_v33 = vld [vmem:[#allocation3 + $0x38] sm:$0xff]  ;;  %v12814_v35 = vld [vmem:[#allocation3 + $0x28] sm:$0xff]  ;;  %v1590_v36 = vld [vmem:[%s14657_s16 + $0x80] sm:$0xff]  ;;  %s17730_s25 = sld [smem:[#allocation41_spill]] }
 0x17f   : > { %1784 = vmatpush.bf16.msra.mxu0 %v1775_v6  ;;  %2233 = vmatpush.bf16.msra.mxu1 %v12816_v33  ;;  %v1591_v37 = vld [vmem:[%s14657_s16 + $0x88] sm:$0xff]  ;;  %v12813_v38 = vld [vmem:[#allocation3 + $0x20] sm:$0xff]  ;;  %v1592_v48 = vld [vmem:[%s14657_s16 + $0x90] sm:$0xff]  ;;  %s17732_s3 = sld [smem:[#allocation44_spill]] }
 0x180   : > { %2395 = vmatpush.bf16.msra.mxu2 %v12811_v27  ;;  %13321 = vmatpush.bf16.msra.mxu3 %v12816_v33  ;;  %v14715_v39 = vld [vmem:[%s17652_s0] ss:$0 sm:$0xff]  ;;  %v1646_v40 = vpack.c.bf16 %v1591_v37, %v1590_v36  ;;  %v1593_v49 = vld [vmem:[%s14657_s16 + $0x98] sm:$0xff]  ;;  %v1595_v62 = vld [vmem:[%s14657_s16 + $0xa8] sm:$0xff]  ;;  %s17733_s12 = sld [smem:[#allocation42_spill]] }
 0x181   : > { %v1647_v53 = vpack.c.bf16 %v1593_v49, %v1592_v48  ;;  %v1594_v61 = vld [vmem:[%s14657_s16 + $0xa0] sm:$0xff]  ;;  %v1596_v9 = vld [vmem:[%s14657_s16 + $0xb0] sm:$0xff]  ;;  %s17734_s9 = sld [smem:[#allocation46_spill]] }
 0x182   : > { %10501 = vmatmul.msk.bf16.vlgmr.msra.gmra.mxu0 %vm1673_vm2, %v1638_v7  ;;  %v1648_v1 = vpack.c.bf16 %v1595_v62, %v1594_v61  ;;  %v1598_v21 = vld [vmem:[%s14657_s16 + $0xc0] sm:$0xff]  ;;  %v1600_v33 = vld [vmem:[%s14657_s16 + $0xd0] sm:$0xff]  ;;  %v1605_v61 = vld [vmem:[%s14657_s16 + $0xf8] sm:$0xff]  ;;  %s17735_s11 = sld [smem:[#allocation48_spill]] }
 0x183   : > { %2234 = vmatpush.bf16.msra.mxu1 %v12815_v34  ;;  %s17736_s4 = sld [smem:[#allocation47_spill]] }
 0x184   : > { %2396 = vmatpush.bf16.msra.mxu2 %v12810_v28  ;;  %13322 = vmatpush.bf16.msra.mxu3 %v12815_v34  ;;  %v1601_v34 = vld [vmem:[%s14657_s16 + $0xd8] sm:$0xff]  ;;  %s17737_s22 = sld [smem:[#allocation50_spill]] }
 0x185   : > { %v1651_v37 = vpack.c.bf16 %v1601_v34, %v1600_v33  ;;  %s17739_s10 = sld [smem:[#allocation49_spill]] }
 0x186   : > { %s17741_s0 = sld [smem:[#allocation52_spill]] }
 0x187   : > { %2235 = vmatpush.bf16.msra.mxu1 %v12814_v35 }
 0x188   : > { %2397 = vmatpush.bf16.msra.mxu2 %v12809_v31  ;;  %13323 = vmatpush.bf16.msra.mxu3 %v12814_v35 }
 0x18b   : > { %2236 = vmatpush.bf16.msra.mxu1 %v12813_v38 }
 0x18c   : > { %13324 = vmatpush.bf16.msra.mxu3 %v12813_v38 }
 0x192   : > { %10502 = vmatmul.msk.bf16.gmra.mxu0 %vm1673_vm2, %v1639_v10  ;;  %v1597_v10 = vld [vmem:[%s14657_s16 + $0xb8] sm:$0xff] }
 0x1a2   : > { %10503 = vmatmul.msk.bf16.gmra.mxu0 %vm1673_vm2, %v1640_v13  ;;  %v1649_v13 = vpack.c.bf16 %v1597_v10, %v1596_v9  ;;  %v1606_v9 = vld [vmem:[%s14657_s16 + $0x100] sm:$0xff]  ;;  %v1607_v10 = vld [vmem:[%s14657_s16 + $0x108] sm:$0xff] }
 0x1b2   : > { %10504 = vmatmul.msk.bf16.gmra.mxu0 %vm1673_vm2, %v1641_v16 }
 0x1c2   : > { %10505 = vmatmul.msk.bf16.gmra.mxu0 %vm1673_vm2, %v1642_v19 }
 0x1d2   : > { %10506 = vmatmul.msk.bf16.gmra.mxu0 %vm1673_vm2, %v1643_v22  ;;  %v1599_v22 = vld [vmem:[%s14657_s16 + $0xc8] sm:$0xff] }
 0x1e2   : > { %10507 = vmatmul.msk.bf16.gmra.mxu0 %vm1673_vm2, %v1644_v25  ;;  %v1650_v25 = vpack.c.bf16 %v1599_v22, %v1598_v21 }
 0x1f2   : > { %10508 = vmatmul.msk.bf16.gmra.mxu0 %vm1673_vm2, %v1645_v32 }
 0x1ff   : > { %v1786_v41 = vpop.f32.mrf.mxu0 }
 0x200   : > { %v1787_v42 = vadd.f32 %v14715_v39, %v1786_v41 }
 0x202   : > { %10509 = vmatmul.msk.bf16.gmra.mxu0 %vm1673_vm2, %v1646_v40  ;;  %v1946_v43 = vmax.f32 %v1787_v42, 0.0 }
 0x204   : > { %v2010_v46 = vmax.f32 %v1946_v43, 0.0 }
 0x207   : > { %v1788_v44 = vpop.f32.mrf.mxu0 }
 0x208   : > { %v1789_v45 = vadd.f32 %v14715_v39, %v1788_v44 }
 0x20a   : > { %v1947_v47 = vmax.f32 %v1789_v45, 0.0 }
 0x20c   : > { %v14722_v50 = vmax.f32 %v2010_v46, %v1947_v47  ;;  %v1602_v46 = vld [vmem:[%s14657_s16 + $0xe0] sm:$0xff] }
 0x20e   : > { %17653 = vst [vmem:[#allocation64_spill] sm:$0xff] %v14722_v50  ;;  %v2124_v52 = vpack.c.bf16 %v14722_v50, %v17541_v51 }
 0x20f   : > { %v1791_v54 = vpop.f32.mrf.mxu0 }
 0x210   : > { %10581 = vmatmul.msk.bf16.vlgmr.msra.gmra.mxu2 %vm2180_vm3, %v2124_v52  ;;  %v1792_v55 = vadd.f32 %v14715_v39, %v1791_v54 }
 0x212   : > { %10510 = vmatmul.msk.bf16.gmra.mxu0 %vm1673_vm2, %v1647_v53  ;;  %v1948_v56 = vmax.f32 %v1792_v55, 0.0 }
 0x214   : > { %v2011_v59 = vmax.f32 %v1947_v47, %v1948_v56  ;;  %v1603_v47 = vld [vmem:[%s14657_s16 + $0xe8] sm:$0xff] }
 0x215   : > { %v1652_v52 = vpack.c.bf16 %v1603_v47, %v1602_v46 }
 0x217   : > { %v1793_v57 = vpop.f32.mrf.mxu0 }
 0x218   : > { %v1794_v58 = vadd.f32 %v14715_v39, %v1793_v57 }
 0x21a   : > { %v1949_v60 = vmax.f32 %v1794_v58, 0.0 }
 0x21c   : > { %v14732_v63 = vmax.f32 %v2011_v59, %v1949_v60 }
 0x21e   : > { %17654 = vst [vmem:[#allocation65_spill] sm:$0xff] %v14732_v63  ;;  %v2140_v0 = vpack.c.bf16 %v14732_v63, %v14722_v50  ;;  %v12839_v50 = vld [vmem:[#allocation8 + $0x30] sm:$0xff] }
 0x21f   : > { %v1796_v2 = vpop.f32.mrf.mxu0 }
 0x220   : > { %10549 = vmatmul.msk.bf16.vlgmr.msra.gmra.mxu1 %vm2180_vm3, %v2140_v0  ;;  %v1797_v3 = vadd.f32 %v14715_v39, %v1796_v2 }
 0x222   : > { %10511 = vmatmul.msk.bf16.gmra.mxu0 %vm1673_vm2, %v1648_v1  ;;  %v1950_v4 = vmax.f32 %v1797_v3, 0.0 }
 0x224   : > { %v2012_v7 = vmax.f32 %v1949_v60, %v1950_v4  ;;  %v1604_v60 = vld [vmem:[%s14657_s16 + $0xf0] sm:$0xff] }
 0x225   : > { %v1653_v1 = vpack.c.bf16 %v1605_v61, %v1604_v60 }
 0x227   : > { %v1798_v5 = vpop.f32.mrf.mxu0 }
 0x228   : > { %v1799_v6 = vadd.f32 %v14715_v39, %v1798_v5 }
 0x22a   : > { %v1951_v8 = vmax.f32 %v1799_v6, 0.0 }
 0x22c   : > { %v14742_v11 = vmax.f32 %v2012_v7, %v1951_v8 }
 0x22e   : > { %17655 = vst [vmem:[#allocation66_spill] sm:$0xff] %v14742_v11  ;;  %v14746_v12 = vpack.c.bf16 %v14742_v11, %v14732_v63 }
 0x22f   : > { %v1801_v14 = vpop.f32.mrf.mxu0 }
 0x230   : > { %10582 = vmatmul.msk.bf16.gmra.mxu2 %vm2180_vm3, %v14746_v12  ;;  %v1802_v15 = vadd.f32 %v14715_v39, %v1801_v14 }
 0x232   : > { %10512 = vmatmul.msk.bf16.gmra.mxu0 %vm1673_vm2, %v1649_v13  ;;  %v1952_v16 = vmax.f32 %v1802_v15, 0.0  ;;  %v1654_v15 = vpack.c.bf16 %v1607_v10, %v1606_v9  ;;  %v1614_v10 = vld [vmem:[%s14657_s16 + $0x140] sm:$0xff] }
 0x234   : > { %v2013_v19 = vmax.f32 %v1951_v8, %v1952_v16 }
 0x237   : > { %v1803_v17 = vpop.f32.mrf.mxu0 }
 0x238   : > { %v1804_v18 = vadd.f32 %v14715_v39, %v1803_v17 }
 0x23a   : > { %v1953_v20 = vmax.f32 %v1804_v18, 0.0 }
 0x23c   : > { %v14755_v23 = vmax.f32 %v2013_v19, %v1953_v20 }
 0x23e   : > { %17656 = vst [vmem:[#allocation67_spill] sm:$0xff] %v14755_v23  ;;  %v2141_v24 = vpack.c.bf16 %v14755_v23, %v14742_v11 }
 0x23f   : > { %v1806_v26 = vpop.f32.mrf.mxu0 }
 0x240   : > { %10550 = vmatmul.msk.bf16.gmra.mxu1 %vm2180_vm3, %v2141_v24  ;;  %v1807_v27 = vadd.f32 %v14715_v39, %v1806_v26  ;;  %v1608_v24 = vld [vmem:[%s14657_s16 + $0x110] sm:$0xff] }
 0x242   : > { %10513 = vmatmul.msk.bf16.gmra.mxu0 %vm1673_vm2, %v1650_v25  ;;  %v1954_v28 = vmax.f32 %v1807_v27, 0.0  ;;  %v1609_v25 = vld [vmem:[%s14657_s16 + $0x118] sm:$0xff] }
 0x244   : > { %v2014_v31 = vmax.f32 %v1953_v20, %v1954_v28  ;;  %v1655_v28 = vpack.c.bf16 %v1609_v25, %v1608_v24 }
 0x247   : > { %v1808_v29 = vpop.f32.mrf.mxu0 }
 0x248   : > { %v1809_v30 = vadd.f32 %v14715_v39, %v1808_v29 }
 0x24a   : > { %v1955_v32 = vmax.f32 %v1809_v30, 0.0 }
 0x24c   : > { %v14765_v35 = vmax.f32 %v2014_v31, %v1955_v32 }
 0x24e   : > { %17657 = vst [vmem:[#allocation68_spill] sm:$0xff] %v14765_v35  ;;  %v14769_v36 = vpack.c.bf16 %v14765_v35, %v14755_v23  ;;  %v12820_v23 = vld [vmem:[#allocation3 + $0x58] sm:$0xff] }
 0x24f   : > { %v1811_v38 = vpop.f32.mrf.mxu0  ;;  %2511 = vmatpush.bf16.msrb.mxu3 %v12820_v23 }
 0x250   : > { %10583 = vmatmul.msk.bf16.gmra.mxu2 %vm2180_vm3, %v14769_v36  ;;  %v1812_v40 = vadd.f32 %v14715_v39, %v1811_v38  ;;  %v1610_v38 = vld [vmem:[%s14657_s16 + $0x120] sm:$0xff] }
 0x252   : > { %10514 = vmatmul.msk.bf16.gmra.mxu0 %vm1673_vm2, %v1651_v37  ;;  %v1956_v41 = vmax.f32 %v1812_v40, 0.0  ;;  %v1611_v40 = vld [vmem:[%s14657_s16 + $0x128] sm:$0xff] }
 0x253   : > { %v1656_v46 = vpack.c.bf16 %v1611_v40, %v1610_v38 }
 0x254   : > { %v2015_v44 = vmax.f32 %v1955_v32, %v1956_v41 }
 0x257   : > { %v1813_v42 = vpop.f32.mrf.mxu0 }
 0x258   : > { %v1814_v43 = vadd.f32 %v14715_v39, %v1813_v42 }
 0x25a   : > { %v1957_v45 = vmax.f32 %v1814_v43, 0.0 }
 0x25c   : > { %v14778_v48 = vmax.f32 %v2015_v44, %v1957_v45 }
 0x25e   : > { %17658 = vst [vmem:[#allocation69_spill] sm:$0xff] %v14778_v48  ;;  %v2142_v49 = vpack.c.bf16 %v14778_v48, %v14765_v35 }
 0x25f   : > { %v1816_v53 = vpop.f32.mrf.mxu0 }
 0x260   : > { %10551 = vmatmul.msk.bf16.gmra.mxu1 %vm2180_vm3, %v2142_v49  ;;  %v1817_v54 = vadd.f32 %v14715_v39, %v1816_v53 }
 0x262   : > { %10515 = vmatmul.msk.bf16.gmra.mxu0 %vm1673_vm2, %v1652_v52  ;;  %v1958_v55 = vmax.f32 %v1817_v54, 0.0 }
 0x264   : > { %v2016_v58 = vmax.f32 %v1957_v45, %v1958_v55 }
 0x267   : > { %v1818_v56 = vpop.f32.mrf.mxu0 }
 0x268   : > { %v1819_v57 = vadd.f32 %v14715_v39, %v1818_v56 }
 0x26a   : > { %v1959_v59 = vmax.f32 %v1819_v57, 0.0  ;;  %v1612_v57 = vld [vmem:[%s14657_s16 + $0x130] sm:$0xff] }
 0x26c   : > { %v14788_v62 = vmax.f32 %v2016_v58, %v1959_v59  ;;  %v1613_v58 = vld [vmem:[%s14657_s16 + $0x138] sm:$0xff] }
 0x26d   : > { %v1657_v61 = vpack.c.bf16 %v1613_v58, %v1612_v57 }
 0x26e   : > { %17659 = vst [vmem:[#allocation70_spill] sm:$0xff] %v14788_v62  ;;  %v14792_v0 = vpack.c.bf16 %v14788_v62, %v14778_v48 }
 0x26f   : > { %v1821_v2 = vpop.f32.mrf.mxu0 }
 0x270   : > { %10584 = vmatmul.msk.bf16.gmra.mxu2 %vm2180_vm3, %v14792_v0  ;;  %v1822_v3 = vadd.f32 %v14715_v39, %v1821_v2 }
 0x272   : > { %10516 = vmatmul.msk.bf16.gmra.mxu0 %vm1673_vm2, %v1653_v1  ;;  %v1960_v4 = vmax.f32 %v1822_v3, 0.0 }
 0x274   : > { %v2017_v7 = vmax.f32 %v1959_v59, %v1960_v4 }
 0x277   : > { %v1823_v5 = vpop.f32.mrf.mxu0 }
 0x278   : > { %v1824_v6 = vadd.f32 %v14715_v39, %v1823_v5 }
 0x27a   : > { %v1961_v8 = vmax.f32 %v1824_v6, 0.0 }
 0x27c   : > { %v14801_v13 = vmax.f32 %v2017_v7, %v1961_v8 }
 0x27e   : > { %17660 = vst [vmem:[#allocation71_spill] sm:$0xff] %v14801_v13  ;;  %v2143_v14 = vpack.c.bf16 %v14801_v13, %v14788_v62 }
 0x27f   : > { %v1826_v16 = vpop.f32.mrf.mxu0 }
 0x280   : > { %10552 = vmatmul.msk.bf16.gmra.mxu1 %vm2180_vm3, %v2143_v14  ;;  %v1827_v17 = vadd.f32 %v14715_v39, %v1826_v16  ;;  %v1615_v14 = vld [vmem:[%s14657_s16 + $0x148] sm:$0xff] }
 0x282   : > { %10517 = vmatmul.msk.bf16.gmra.mxu0 %vm1673_vm2, %v1654_v15  ;;  %v1962_v18 = vmax.f32 %v1827_v17, 0.0 }
 0x284   : > { %v2018_v21 = vmax.f32 %v1961_v8, %v1962_v18 }
 0x287   : > { %v1828_v19 = vpop.f32.mrf.mxu0 }
 0x288   : > { %v1829_v20 = vadd.f32 %v14715_v39, %v1828_v19 }
 0x28a   : > { %v1963_v22 = vmax.f32 %v1829_v20, 0.0  ;;  %v1658_v20 = vpack.c.bf16 %v1615_v14, %v1614_v10  ;;  %v1620_v14 = vld [vmem:[%s14657_s16 + $0x170] sm:$0xff] }
 0x28c   : > { %v14811_v26 = vmax.f32 %v2018_v21, %v1963_v22 }
 0x28e   : > { %17661 = vst [vmem:[#allocation72_spill] sm:$0xff] %v14811_v26  ;;  %v14815_v27 = vpack.c.bf16 %v14811_v26, %v14801_v13 }
 0x28f   : > { %v1831_v29 = vpop.f32.mrf.mxu0 }
 0x290   : > { %10585 = vmatmul.msk.bf16.gmra.mxu2 %vm2180_vm3, %v14815_v27  ;;  %v1832_v30 = vadd.f32 %v14715_v39, %v1831_v29 }
 0x292   : > { %10518 = vmatmul.msk.bf16.gmra.mxu0 %vm1673_vm2, %v1655_v28  ;;  %v1964_v31 = vmax.f32 %v1832_v30, 0.0 }
 0x293   : > { %v2399_v42 = vpop.f32.mrf.mxu2 }
 0x294   : > { %v2019_v34 = vmax.f32 %v1963_v22, %v1964_v31  ;;  %v1616_v31 = vld [vmem:[%s14657_s16 + $0x150] sm:$0xff] }
 0x297   : > { %v1833_v32 = vpop.f32.mrf.mxu0 }
 0x298   : > { %v1834_v33 = vadd.f32 %v14715_v39, %v1833_v32  ;;  %v1617_v32 = vld [vmem:[%s14657_s16 + $0x158] sm:$0xff] }
 0x29a   : > { %v1965_v37 = vmax.f32 %v1834_v33, 0.0 }
 0x29b   : > { %v14846_v3 = vpop.f32.mrf.mxu2 }
 0x29c   : > { %v14824_v41 = vmax.f32 %v2019_v34, %v1965_v37 }
 0x29d   : > { %v2238_v43 = vpop.f32.mrf.mxu1 }
 0x29e   : > { %17662 = vst [vmem:[#allocation73_spill] sm:$0xff] %v14824_v41  ;;  %v14826_v44 = vadd.f32 %v2399_v42, %v2238_v43  ;;  %v2144_v45 = vpack.c.bf16 %v14824_v41, %v14811_v26 }
 0x29f   : > { %v1836_v47 = vpop.f32.mrf.mxu0 }
 0x2a0   : > { %10553 = vmatmul.msk.bf16.gmra.mxu1 %vm2180_vm3, %v2144_v45  ;;  %v1837_v49 = vadd.f32 %v14715_v39, %v1836_v47 }
 0x2a2   : > { %10519 = vmatmul.msk.bf16.gmra.mxu0 %vm1673_vm2, %v1656_v46  ;;  %v1966_v52 = vmax.f32 %v1837_v49, 0.0 }
 0x2a4   : > { %v2020_v55 = vmax.f32 %v1965_v37, %v1966_v52  ;;  %v1659_v37 = vpack.c.bf16 %v1617_v32, %v1616_v31 }
 0x2a5   : > { %v14848_v4 = vpop.f32.mrf.mxu1 }
 0x2a7   : > { %v1838_v53 = vpop.f32.mrf.mxu0 }
 0x2a8   : > { %v1839_v54 = vadd.f32 %v14715_v39, %v1838_v53  ;;  %v1618_v53 = vld [vmem:[%s14657_s16 + $0x160] sm:$0xff] }
 0x2aa   : > { %v1967_v56 = vmax.f32 %v1839_v54, 0.0  ;;  %v1619_v54 = vld [vmem:[%s14657_s16 + $0x168] sm:$0xff] }
 0x2ac   : > { %v14836_v59 = vmax.f32 %v2020_v55, %v1967_v56 }
 0x2ae   : > { %17663 = vst [vmem:[#allocation74_spill] sm:$0xff] %v14836_v59  ;;  %v14840_v60 = vpack.c.bf16 %v14836_v59, %v14824_v41 }
 0x2af   : > { %v1841_v1 = vpop.f32.mrf.mxu0 }
 0x2b0   : > { %10586 = vmatmul.msk.bf16.gmra.mxu2 %vm2180_vm3, %v14840_v60  ;;  %v1842_v2 = vadd.f32 %v14715_v39, %v1841_v1  ;;  %v1660_v1 = vpack.c.bf16 %v1619_v54, %v1618_v53 }
 0x2b2   : > { %10520 = vmatmul.msk.bf16.gmra.mxu0 %vm1673_vm2, %v1657_v61  ;;  %v1968_v5 = vmax.f32 %v1842_v2, 0.0 }
 0x2b3   : > { %v2404_v16 = vpop.f32.mrf.mxu2 }
 0x2b4   : > { %v2021_v8 = vmax.f32 %v1967_v56, %v1968_v5 }
 0x2b7   : > { %v1843_v6 = vpop.f32.mrf.mxu0 }
 0x2b8   : > { %v1844_v7 = vadd.f32 %v14715_v39, %v1843_v6 }
 0x2ba   : > { %v1969_v9 = vmax.f32 %v1844_v7, 0.0 }
 0x2bb   : > { %v14875_v42 = vpop.f32.mrf.mxu2 }
 0x2bc   : > { %v14853_v15 = vmax.f32 %v2021_v8, %v1969_v9 }
 0x2bd   : > { %v2243_v17 = vpop.f32.mrf.mxu1 }
 0x2be   : > { %17664 = vst [vmem:[#allocation75_spill] sm:$0xff] %v14853_v15  ;;  %v14855_v18 = vadd.f32 %v2404_v16, %v2243_v17  ;;  %v2145_v19 = vpack.c.bf16 %v14853_v15, %v14836_v59  ;;  %v1621_v16 = vld [vmem:[%s14657_s16 + $0x178] sm:$0xff] }
 0x2bf   : > { %v1846_v21 = vpop.f32.mrf.mxu0 }
 0x2c0   : > { %10554 = vmatmul.msk.bf16.gmra.mxu1 %vm2180_vm3, %v2145_v19  ;;  %v1847_v22 = vadd.f32 %v14715_v39, %v1846_v21 }
 0x2c2   : > { %10521 = vmatmul.msk.bf16.gmra.mxu0 %vm1673_vm2, %v1658_v20  ;;  %v1970_v24 = vmax.f32 %v1847_v22, 0.0  ;;  %v1661_v20 = vpack.c.bf16 %v1621_v16, %v1620_v14 }
 0x2c4   : > { %v2022_v29 = vmax.f32 %v1969_v9, %v1970_v24 }
 0x2c5   : > { %v14877_v43 = vpop.f32.mrf.mxu1 }
 0x2c7   : > { %v1848_v25 = vpop.f32.mrf.mxu0 }
 0x2c8   : > { %v1849_v28 = vadd.f32 %v14715_v39, %v1848_v25 }
 0x2ca   : > { %v1971_v30 = vmax.f32 %v1849_v28, 0.0 }
 0x2cc   : > { %v14865_v33 = vmax.f32 %v2022_v29, %v1971_v30 }
 0x2ce   : > { %17665 = vst [vmem:[#allocation76_spill] sm:$0xff] %v14865_v33  ;;  %v14869_v34 = vpack.c.bf16 %v14865_v33, %v14853_v15 }
 0x2cf   : > { %v1851_v38 = vpop.f32.mrf.mxu0 }
 0x2d0   : > { %10587 = vmatmul.msk.bf16.gmra.mxu2 %vm2180_vm3, %v14869_v34  ;;  %v1852_v40 = vadd.f32 %v14715_v39, %v1851_v38  ;;  %v1623_v38 = vld [vmem:[%s14657_s16 + $0x188] sm:$0xff] }
 0x2d2   : > { %10522 = vmatmul.msk.bf16.gmra.mxu0 %vm1673_vm2, %v1659_v37  ;;  %v1972_v45 = vmax.f32 %v1852_v40, 0.0  ;;  %v1622_v37 = vld [vmem:[%s14657_s16 + $0x180] sm:$0xff] }
 0x2d3   : > { %v2409_v56 = vpop.f32.mrf.mxu2 }
 0x2d4   : > { %v2023_v49 = vmax.f32 %v1971_v30, %v1972_v45 }
 0x2d7   : > { %v1853_v46 = vpop.f32.mrf.mxu0 }
 0x2d8   : > { %v1854_v47 = vadd.f32 %v14715_v39, %v1853_v46 }
 0x2da   : > { %v1973_v52 = vmax.f32 %v1854_v47, 0.0 }
 0x2db   : > { %v14904_v24 = vpop.f32.mrf.mxu2 }
 0x2dc   : > { %v14882_v55 = vmax.f32 %v2023_v49, %v1973_v52 }
 0x2dd   : > { %v2248_v57 = vpop.f32.mrf.mxu1 }
 0x2de   : > { %17666 = vst [vmem:[#allocation77_spill] sm:$0xff] %v14882_v55  ;;  %v14884_v58 = vadd.f32 %v2409_v56, %v2248_v57  ;;  %v2146_v61 = vpack.c.bf16 %v14882_v55, %v14865_v33 }
 0x2df   : > { %v1856_v2 = vpop.f32.mrf.mxu0 }
 0x2e0   : > { %10555 = vmatmul.msk.bf16.gmra.mxu1 %vm2180_vm3, %v2146_v61  ;;  %v1857_v5 = vadd.f32 %v14715_v39, %v1856_v2 }
 0x2e2   : > { %10523 = vmatmul.msk.bf16.gmra.mxu0 %vm1673_vm2, %v1660_v1  ;;  %v1974_v6 = vmax.f32 %v1857_v5, 0.0  ;;  %v1624_v5 = vld [vmem:[%s14657_s16 + $0x190] sm:$0xff] }
 0x2e4   : > { %v2024_v9 = vmax.f32 %v1973_v52, %v1974_v6  ;;  %v1662_v52 = vpack.c.bf16 %v1623_v38, %v1622_v37  ;;  %v1625_v6 = vld [vmem:[%s14657_s16 + $0x198] sm:$0xff] }
 0x2e5   : > { %v14906_v25 = vpop.f32.mrf.mxu1 }
 0x2e7   : > { %v1858_v7 = vpop.f32.mrf.mxu0 }
 0x2e8   : > { %v1859_v8 = vadd.f32 %v14715_v39, %v1858_v7 }
 0x2ea   : > { %v1975_v10 = vmax.f32 %v1859_v8, 0.0 }
 0x2ec   : > { %v14894_v17 = vmax.f32 %v2024_v9, %v1975_v10  ;;  %v1663_v9 = vpack.c.bf16 %v1625_v6, %v1624_v5  ;;  %v1628_v5 = vld [vmem:[%s14657_s16 + $0x1b0] sm:$0xff]  ;;  %v1629_v6 = vld [vmem:[%s14657_s16 + $0x1b8] sm:$0xff] }
 0x2ee   : > { %17667 = vst [vmem:[#allocation78_spill] sm:$0xff] %v14894_v17  ;;  %v14898_v19 = vpack.c.bf16 %v14894_v17, %v14882_v55 }
 0x2ef   : > { %v1861_v21 = vpop.f32.mrf.mxu0 }
 0x2f0   : > { %10588 = vmatmul.msk.bf16.gmra.mxu2 %vm2180_vm3, %v14898_v19  ;;  %v1862_v22 = vadd.f32 %v14715_v39, %v1861_v21 }
 0x2f2   : > { %10524 = vmatmul.msk.bf16.gmra.mxu0 %vm1673_vm2, %v1661_v20  ;;  %v1976_v28 = vmax.f32 %v1862_v22, 0.0 }
 0x2f3   : > { %v2414_v45 = vpop.f32.mrf.mxu2 }
 0x2f4   : > { %v2025_v31 = vmax.f32 %v1975_v10, %v1976_v28 }
 0x2f7   : > { %v1863_v29 = vpop.f32.mrf.mxu0 }
 0x2f8   : > { %v1864_v30 = vadd.f32 %v14715_v39, %v1863_v29 }
 0x2fa   : > { %v1977_v32 = vmax.f32 %v1864_v30, 0.0 }
 0x2fb   : > { %v14933_v16 = vpop.f32.mrf.mxu2 }
 0x2fc   : > { %v14911_v40 = vmax.f32 %v2025_v31, %v1977_v32  ;;  %v1626_v31 = vld [vmem:[%s14657_s16 + $0x1a0] sm:$0xff] }
 0x2fd   : > { %v2253_v46 = vpop.f32.mrf.mxu1 }
 0x2fe   : > { %17668 = vst [vmem:[#allocation79_spill] sm:$0xff] %v14911_v40  ;;  %v14913_v47 = vadd.f32 %v2414_v45, %v2253_v46  ;;  %v2147_v49 = vpack.c.bf16 %v14911_v40, %v14894_v17 }
 0x2ff   : > { %v1866_v53 = vpop.f32.mrf.mxu0 }
 0x300   : > { %10556 = vmatmul.msk.bf16.gmra.mxu1 %vm2180_vm3, %v2147_v49  ;;  %v1867_v54 = vadd.f32 %v14715_v39, %v1866_v53 }
 0x302   : > { %10525 = vmatmul.msk.bf16.gmra.mxu0 %vm1673_vm2, %v1662_v52  ;;  %v1978_v56 = vmax.f32 %v1867_v54, 0.0 }
 0x304   : > { %v2026_v1 = vmax.f32 %v1977_v32, %v1978_v56  ;;  %v1627_v32 = vld [vmem:[%s14657_s16 + $0x1a8] sm:$0xff] }
 0x305   : > { %v14935_v20 = vpop.f32.mrf.mxu1  ;;  %v1664_v52 = vpack.c.bf16 %v1627_v32, %v1626_v31 }
 0x307   : > { %v1868_v57 = vpop.f32.mrf.mxu0 }
 0x308   : > { %v1869_v61 = vadd.f32 %v14715_v39, %v1868_v57 }
 0x30a   : > { %v1979_v2 = vmax.f32 %v1869_v61, 0.0 }
 0x30c   : > { %v14923_v7 = vmax.f32 %v2026_v1, %v1979_v2 }
 0x30e   : > { %17669 = vst [vmem:[#allocation80_spill] sm:$0xff] %v14923_v7  ;;  %v14927_v8 = vpack.c.bf16 %v14923_v7, %v14911_v40  ;;  %v12840_v40 = vld [vmem:[#allocation8 + $0x38] sm:$0xff] }
 0x30f   : > { %v1871_v10 = vpop.f32.mrf.mxu0  ;;  %3455 = vmatpush.bf16.msrb.mxu0 %v12840_v40 }
 0x310   : > { %10589 = vmatmul.msk.bf16.gmra.mxu2 %vm2180_vm3, %v14927_v8  ;;  %v1872_v14 = vadd.f32 %v14715_v39, %v1871_v10 }
 0x312   : > { %10526 = vmatmul.msk.bf16.gmra.mxu0 %vm1673_vm2, %v1663_v9  ;;  %v1980_v21 = vmax.f32 %v1872_v14, 0.0  ;;  %v1665_v14 = vpack.c.bf16 %v1629_v6, %v1628_v5 }
 0x313   : > { %v2419_v38 = vpop.f32.mrf.mxu2  ;;  %3456 = vmatpush.bf16.msrb.mxu0 %v12839_v50  ;;  %v12831_v50 = vld [vmem:[#allocation6 + $0x50] sm:$0xff] }
 0x314   : > { %v2027_v29 = vmax.f32 %v1979_v2, %v1980_v21 }
 0x317   : > { %v1873_v22 = vpop.f32.mrf.mxu0 }
 0x318   : > { %v1874_v28 = vadd.f32 %v14715_v39, %v1873_v22 }
 0x31a   : > { %v1981_v30 = vmax.f32 %v1874_v28, 0.0 }
 0x31b   : > { %v14962_v28 = vpop.f32.mrf.mxu2 }
 0x31c   : > { %v14940_v37 = vmax.f32 %v2027_v29, %v1981_v30 }
 0x31d   : > { %v2258_v45 = vpop.f32.mrf.mxu1 }
 0x31e   : > { %17670 = vst [vmem:[#allocation81_spill] sm:$0xff] %v14940_v37  ;;  %v14942_v46 = vadd.f32 %v2419_v38, %v2258_v45  ;;  %v2148_v49 = vpack.c.bf16 %v14940_v37, %v14923_v7 }
 0x31f   : > { %v1876_v53 = vpop.f32.mrf.mxu0 }
 0x320   : > { %10557 = vmatmul.msk.bf16.gmra.mxu1 %vm2180_vm3, %v2148_v49  ;;  %v1877_v54 = vadd.f32 %v14715_v39, %v1876_v53  ;;  %v1630_v49 = vld [vmem:[%s14657_s16 + $0x1c0] sm:$0xff] }
 0x322   : > { %10527 = vmatmul.msk.bf16.gmra.mxu0 %vm1673_vm2, %v1664_v52  ;;  %v1982_v56 = vmax.f32 %v1877_v54, 0.0  ;;  %v1631_v52 = vld [vmem:[%s14657_s16 + $0x1c8] sm:$0xff] }
 0x324   : > { %v2028_v1 = vmax.f32 %v1981_v30, %v1982_v56 }
 0x325   : > { %v14964_v29 = vpop.f32.mrf.mxu1 }
 0x327   : > { %v1878_v57 = vpop.f32.mrf.mxu0 }
 0x328   : > { %v1879_v61 = vadd.f32 %v14715_v39, %v1878_v57 }
 0x32a   : > { %v1983_v2 = vmax.f32 %v1879_v61, 0.0 }
 0x32c   : > { %v14952_v9 = vmax.f32 %v2028_v1, %v1983_v2  ;;  %v1666_v1 = vpack.c.bf16 %v1631_v52, %v1630_v49 }
 0x32e   : > { %17671 = vst [vmem:[#allocation82_spill] sm:$0xff] %v14952_v9  ;;  %v14956_v10 = vpack.c.bf16 %v14952_v9, %v14940_v37  ;;  %v1636_v37 = vld [vmem:[%s14657_s16 + $0x1f0] sm:$0xff] }
 0x32f   : > { %v1881_v21 = vpop.f32.mrf.mxu0 }
 0x330   : > { %10590 = vmatmul.msk.bf16.gmra.mxu2 %vm2180_vm3, %v14956_v10  ;;  %v1882_v22 = vadd.f32 %v14715_v39, %v1881_v21 }
 0x332   : > { %10528 = vmatmul.msk.bf16.gmra.mxu0 %vm1673_vm2, %v1665_v14  ;;  %v1984_v30 = vmax.f32 %v1882_v22, 0.0 }
 0x333   : > { %v2424_v54 = vpop.f32.mrf.mxu2 }
 0x334   : > { %v2029_v38 = vmax.f32 %v1983_v2, %v1984_v30 }
 0x337   : > { %v1883_v31 = vpop.f32.mrf.mxu0 }
 0x338   : > { %v1884_v32 = vadd.f32 %v14715_v39, %v1883_v31  ;;  %v1632_v31 = vld [vmem:[%s14657_s16 + $0x1d0] sm:$0xff] }
 0x33a   : > { %v1985_v45 = vmax.f32 %v1884_v32, 0.0  ;;  %v1633_v32 = vld [vmem:[%s14657_s16 + $0x1d8] sm:$0xff] }
 0x33b   : > { %v1667_v52 = vpack.c.bf16 %v1633_v32, %v1632_v31 }
 0x33c   : > { %v14969_v53 = vmax.f32 %v2029_v38, %v1985_v45 }
 0x33d   : > { %v2263_v56 = vpop.f32.mrf.mxu1 }
 0x33e   : > { %17672 = vst [vmem:[#allocation83_spill] sm:$0xff] %v14969_v53  ;;  %v14971_v57 = vadd.f32 %v2424_v54, %v2263_v56  ;;  %v2149_v61 = vpack.c.bf16 %v14969_v53, %v14952_v9 }
 0x33f   : > { %v1886_v5 = vpop.f32.mrf.mxu0 }
 0x340   : > { %10558 = vmatmul.msk.bf16.gmra.mxu1 %vm2180_vm3, %v2149_v61  ;;  %v1887_v2 = vadd.f32 %v14715_v39, %v1886_v5 }
 0x342   : > { %10529 = vmatmul.msk.bf16.gmra.mxu0 %vm1673_vm2, %v1666_v1  ;;  %v1986_v6 = vmax.f32 %v1887_v2, 0.0 }
 0x344   : > { %v2030_v22 = vmax.f32 %v1985_v45, %v1986_v6  ;;  %v14991_v45 = vpop.f32.mrf.mxu2 }
 0x345   : > { %v14993_v61 = vpop.f32.mrf.mxu1 }
 0x347   : > { %v1888_v14 = vpop.f32.mrf.mxu0 }
 0x348   : > { %v1889_v21 = vadd.f32 %v14715_v39, %v1888_v14 }
 0x34a   : > { %v1987_v30 = vmax.f32 %v1889_v21, 0.0  ;;  %v1634_v21 = vld [vmem:[%s14657_s16 + $0x1e0] sm:$0xff] }
 0x34c   : > { %v14981_v38 = vmax.f32 %v2030_v22, %v1987_v30  ;;  %v1635_v22 = vld [vmem:[%s14657_s16 + $0x1e8] sm:$0xff] }
 0x34e   : > { %17673 = vst [vmem:[#allocation84_spill] sm:$0xff] %v14981_v38  ;;  %v14985_v49 = vpack.c.bf16 %v14981_v38, %v14969_v53  ;;  %v1668_v53 = vpack.c.bf16 %v1635_v22, %v1634_v21 }
 0x34f   : > { %v1891_v54 = vpop.f32.mrf.mxu0 }
 0x350   : > { %10591 = vmatmul.msk.bf16.gmra.mxu2 %vm2180_vm3, %v14985_v49  ;;  %v1892_v56 = vadd.f32 %v14715_v39, %v1891_v54 }
 0x352   : > { %10530 = vmatmul.msk.bf16.gmra.mxu0 %vm1673_vm2, %v1667_v52  ;;  %v1988_v1 = vmax.f32 %v1892_v56, 0.0 }
 0x353   : > { %v2429_v32 = vpop.f32.mrf.mxu2 }
 0x354   : > { %v2031_v6 = vmax.f32 %v1987_v30, %v1988_v1 }
 0x357   : > { %v1893_v5 = vpop.f32.mrf.mxu0 }
 0x358   : > { %v1894_v2 = vadd.f32 %v14715_v39, %v1893_v5 }
 0x35a   : > { %v1989_v14 = vmax.f32 %v1894_v2, 0.0 }
 0x35c   : > { %v14998_v31 = vmax.f32 %v2031_v6, %v1989_v14 }
 0x35d   : > { %v2268_v54 = vpop.f32.mrf.mxu1 }
 0x35e   : > { %17674 = vst [vmem:[#allocation85_spill] sm:$0xff] %v14998_v31  ;;  %v15000_v51 = vadd.f32 %v2429_v32, %v2268_v54  ;;  %v2150_v52 = vpack.c.bf16 %v14998_v31, %v14981_v38  ;;  %v1637_v32 = vld [vmem:[%s14657_s16 + $0x1f8] sm:$0xff]  ;;  %s17738_s16 = smov %s17737_s22 }
 0x35f   : > { %v1896_v56 = vpop.f32.mrf.mxu0  ;;  %v1669_v22 = vpack.c.bf16 %v1637_v32, %v1636_v37 }
 0x360   : > { %10559 = vmatmul.msk.bf16.gmra.mxu1 %vm2180_vm3, %v2150_v52  ;;  %v1897_v30 = vadd.f32 %v14715_v39, %v1896_v56  ;;  %v15020_v56 = vpop.f32.mrf.mxu2 }
 0x362   : > { %10531 = vmatmul.msk.bf16.gmra.mxu0 %vm1673_vm2, %v1668_v53  ;;  %v1990_v1 = vmax.f32 %v1897_v30, 0.0 }
 0x364   : > { %v2032_v6 = vmax.f32 %v1989_v14, %v1990_v1 }
 0x365   : > { %v15022_v14 = vpop.f32.mrf.mxu1 }
 0x367   : > { %v1898_v5 = vpop.f32.mrf.mxu0 }
 0x368   : > { %v1899_v2 = vadd.f32 %v14715_v39, %v1898_v5 }
 0x36a   : > { %v1991_v9 = vmax.f32 %v1899_v2, 0.0 }
 0x36c   : > { %v15010_v54 = vmax.f32 %v2032_v6, %v1991_v9 }
 0x36e   : > { %17675 = vst [vmem:[#allocation86_spill] sm:$0xff] %v15010_v54  ;;  %v15014_v21 = vpack.c.bf16 %v15010_v54, %v14998_v31 }
 0x36f   : > { %v1901_v52 = vpop.f32.mrf.mxu0 }
 0x370   : > { %10592 = vmatmul.msk.bf16.gmra.mxu2 %vm2180_vm3, %v15014_v21  ;;  %v1902_v53 = vadd.f32 %v14715_v39, %v1901_v52 }
 0x372   : > { %10532 = vmatmul.msk.bf16.gmra.mxu0 %vm1673_vm2, %v1669_v22  ;;  %v1992_v30 = vmax.f32 %v1902_v53, 0.0 }
 0x373   : > { %v2434_v37 = vpop.f32.mrf.mxu2 }
 0x374   : > { %v2033_v2 = vmax.f32 %v1991_v9, %v1992_v30 }
 0x377   : > { %v1903_v1 = vpop.f32.mrf.mxu0 }
 0x378   : > { %v1904_v5 = vadd.f32 %v14715_v39, %v1903_v1 }
 0x37a   : > { %v1993_v6 = vmax.f32 %v1904_v5, 0.0 }
 0x37c   : > { %v15025_v31 = vmax.f32 %v2033_v2, %v1993_v6 }
 0x37d   : > { %v2273_v32 = vpop.f32.mrf.mxu1 }
 0x37e   : > { %17676 = vst [vmem:[#allocation87_spill] sm:$0xff] %v15025_v31  ;;  %v15027_v38 = vadd.f32 %v2434_v37, %v2273_v32  ;;  %v2151_v52 = vpack.c.bf16 %v15025_v31, %v15010_v54 }
 0x37f   : > { %v1906_v22 = vpop.f32.mrf.mxu0 }
 0x380   : > { %10560 = vmatmul.msk.bf16.gmra.mxu1 %vm2180_vm3, %v2151_v52  ;;  %v1907_v7 = vadd.f32 %v14715_v39, %v1906_v22 }
 0x382   : > { %v1994_v53 = vmax.f32 %v1907_v7, 0.0  ;;  %v15043_v7 = vpop.f32.mrf.mxu2 }
 0x384   : > { %v2034_v30 = vmax.f32 %v1993_v6, %v1994_v53 }
 0x385   : > { %v15045_v52 = vpop.f32.mrf.mxu1 }
 0x387   : > { %v1908_v17 = vpop.f32.mrf.mxu0 }
 0x388   : > { %v1909_v9 = vadd.f32 %v14715_v39, %v1908_v17 }
 0x38a   : > { %v1995_v1 = vmax.f32 %v1909_v9, 0.0 }
 0x38c   : > { %v15034_v5 = vmax.f32 %v2034_v30, %v1995_v1  ;;  %v12828_v30 = vld [vmem:[#allocation6 + $0x38] sm:$0xff] }
 0x38d   : > { %2803 = vmatpush.bf16.msrb.mxu1 %v12828_v30 }
 0x38e   : > { %17677 = vst [vmem:[#allocation88_spill] sm:$0xff] %v15034_v5  ;;  %v15038_v2 = vpack.c.bf16 %v15034_v5, %v15025_v31 }
 0x38f   : > { %v1911_v37 = vpop.f32.mrf.mxu0 }
 0x390   : > { %10593 = vmatmul.msk.bf16.gmra.mxu2 %vm2180_vm3, %v15038_v2  ;;  %v1912_v32 = vadd.f32 %v14715_v39, %v1911_v37 }
 0x392   : > { %v1996_v17 = vmax.f32 %v1912_v32, 0.0 }
 0x393   : > { %v2439_v31 = vpop.f32.mrf.mxu2 }
 0x394   : > { %v2035_v22 = vmax.f32 %v1995_v1, %v1996_v17 }
 0x397   : > { %v1913_v40 = vpop.f32.mrf.mxu0 }
 0x398   : > { %v1914_v6 = vadd.f32 %v14715_v39, %v1913_v40 }
 0x39a   : > { %v1997_v53 = vmax.f32 %v1914_v6, 0.0 }
 0x39c   : > { %v15048_v9 = vmax.f32 %v2035_v22, %v1997_v53 }
 0x39d   : > { %v2278_v54 = vpop.f32.mrf.mxu1 }
 0x39e   : > { %17678 = vst [vmem:[#allocation89_spill] sm:$0xff] %v15048_v9  ;;  %v15050_v55 = vadd.f32 %v2439_v31, %v2278_v54  ;;  %v2152_v37 = vpack.c.bf16 %v15048_v9, %v15034_v5 }
 0x39f   : > { %v1916_v33 = vpop.f32.mrf.mxu0 }
 0x3a0   : > { %10561 = vmatmul.msk.bf16.gmra.mxu1 %vm2180_vm3, %v2152_v37  ;;  %v1917_v32 = vadd.f32 %v14715_v39, %v1916_v33  ;;  %v15066_v37 = vpop.f32.mrf.mxu2 }
 0x3a2   : > { %v1998_v15 = vmax.f32 %v1917_v32, 0.0 }
 0x3a4   : > { %v2036_v17 = vmax.f32 %v1997_v53, %v1998_v15 }
 0x3a5   : > { %v15068_v33 = vpop.f32.mrf.mxu1 }
 0x3a7   : > { %v1918_v40 = vpop.f32.mrf.mxu0 }
 0x3a8   : > { %v1919_v1 = vadd.f32 %v14715_v39, %v1918_v40 }
 0x3aa   : > { %v1999_v6 = vmax.f32 %v1919_v1, 0.0 }
 0x3ac   : > { %v15057_v22 = vmax.f32 %v2036_v17, %v1999_v6 }
 0x3ae   : > { %17679 = vst [vmem:[#allocation90_spill] sm:$0xff] %v15057_v22  ;;  %v15061_v31 = vpack.c.bf16 %v15057_v22, %v15048_v9 }
 0x3af   : > { %v1921_v54 = vpop.f32.mrf.mxu0 }
 0x3b0   : > { %10594 = vmatmul.msk.bf16.gmra.mxu2 %vm2180_vm3, %v15061_v31  ;;  %v1922_v30 = vadd.f32 %v14715_v39, %v1921_v54 }
 0x3b2   : > { %v2000_v32 = vmax.f32 %v1922_v30, 0.0 }
 0x3b3   : > { %v2444_v9 = vpop.f32.mrf.mxu2 }
 0x3b4   : > { %v2037_v53 = vmax.f32 %v1999_v6, %v2000_v32 }
 0x3b7   : > { %v1923_v40 = vpop.f32.mrf.mxu0 }
 0x3b8   : > { %v1924_v15 = vadd.f32 %v14715_v39, %v1923_v40 }
 0x3ba   : > { %v2001_v1 = vmax.f32 %v1924_v15, 0.0 }
 0x3bc   : > { %v15071_v17 = vmax.f32 %v2037_v53, %v2001_v1  ;;  %v12827_v53 = vld [vmem:[#allocation6 + $0x30] sm:$0xff] }
 0x3bd   : > { %v2283_v5 = vpop.f32.mrf.mxu1  ;;  %2804 = vmatpush.bf16.msrb.mxu1 %v12827_v53 }
 0x3be   : > { %17680 = vst [vmem:[#allocation91_spill] sm:$0xff] %v15071_v17  ;;  %v15073_v59 = vadd.f32 %v2444_v9, %v2283_v5  ;;  %v2153_v41 = vpack.c.bf16 %v15071_v17, %v15057_v22 }
 0x3bf   : > { %v1926_v54 = vpop.f32.mrf.mxu0 }
 0x3c0   : > { %10562 = vmatmul.msk.bf16.gmra.mxu1 %vm2180_vm3, %v2153_v41  ;;  %v1927_v26 = vadd.f32 %v14715_v39, %v1926_v54  ;;  %v15089_v54 = vpop.f32.mrf.mxu2 }
 0x3c2   : > { %v2002_v30 = vmax.f32 %v1927_v26, 0.0 }
 0x3c4   : > { %v2038_v6 = vmax.f32 %v2001_v1, %v2002_v30 }
 0x3c5   : > { %v15091_v26 = vpop.f32.mrf.mxu1 }
 0x3c7   : > { %v1928_v13 = vpop.f32.mrf.mxu0 }
 0x3c8   : > { %v1929_v40 = vadd.f32 %v14715_v39, %v1928_v13 }
 0x3ca   : > { %v2003_v32 = vmax.f32 %v1929_v40, 0.0 }
 0x3cc   : > { %v15080_v15 = vmax.f32 %v2038_v6, %v2003_v32 }
 0x3ce   : > { %17681 = vst [vmem:[#allocation92_spill] sm:$0xff] %v15080_v15  ;;  %v15084_v5 = vpack.c.bf16 %v15080_v15, %v15071_v17 }
 0x3cf   : > { %v1931_v9 = vpop.f32.mrf.mxu0 }
 0x3d0   : > { %10595 = vmatmul.msk.bf16.gmra.mxu2 %vm2180_vm3, %v15084_v5  ;;  %v1932_v41 = vadd.f32 %v14715_v39, %v1931_v9 }
 0x3d2   : > { %v2004_v13 = vmax.f32 %v1932_v41, 0.0  ;;  %v12819_v41 = vld [vmem:[#allocation3 + $0x50] sm:$0xff] }
 0x3d3   : > { %v2449_v22 = vpop.f32.mrf.mxu2  ;;  %2512 = vmatpush.bf16.msrb.mxu3 %v12819_v41 }
 0x3d4   : > { %v2039_v40 = vmax.f32 %v2003_v32, %v2004_v13  ;;  %v12818_v13 = vld [vmem:[#allocation3 + $0x48] sm:$0xff] }
 0x3d7   : > { %v1933_v1 = vpop.f32.mrf.mxu0  ;;  %2513 = vmatpush.bf16.msrb.mxu3 %v12818_v13 }
 0x3d8   : > { %v1934_v30 = vadd.f32 %v14715_v39, %v1933_v1  ;;  %v12824_v1 = vld [vmem:[#allocation6 + $0x18] sm:$0xff] }
 0x3d9   : > { %2964 = vmatpush.bf16.msrb.mxu2 %v12824_v1 }
 0x3da   : > { %v2005_v6 = vmax.f32 %v1934_v30, 0.0 }
 0x3db   : > { %v15112_v41 = vpop.f32.mrf.mxu2 }
 0x3dc   : > { %v15094_v17 = vmax.f32 %v2039_v40, %v2005_v6 }
 0x3dd   : > { %v2288_v62 = vpop.f32.mrf.mxu1 }
 0x3de   : > { %17682 = vst [vmem:[#allocation93_spill] sm:$0xff] %v15094_v17  ;;  %v15096_v48 = vadd.f32 %v2449_v22, %v2288_v62  ;;  %v2154_v9 = vpack.c.bf16 %v15094_v17, %v15080_v15  ;;  %v12817_v62 = vld [vmem:[#allocation3 + $0x40] sm:$0xff] }
 0x3df   : > { %v1936_v35 = vpop.f32.mrf.mxu0  ;;  %2514 = vmatpush.bf16.msrb.mxu3 %v12817_v62 }
 0x3e0   : > { %10563 = vmatmul.msk.bf16.gmra.mxu1 %vm2180_vm3, %v2154_v9  ;;  %v1937_v53 = vadd.f32 %v14715_v39, %v1936_v35 }
 0x3e2   : > { %v2006_v32 = vmax.f32 %v1937_v53, 0.0 }
 0x3e4   : > { %v2040_v22 = vmax.f32 %v2005_v6, %v2006_v32 }
 0x3e5   : > { %v15114_v53 = vpop.f32.mrf.mxu1 }
 0x3e7   : > { %v1938_v30 = vpop.f32.mrf.mxu0 }
 0x3e8   : > { %v1939_v40 = vadd.f32 %v14715_v39, %v1938_v30 }
 0x3ea   : > { %v2007_v15 = vmax.f32 %v1939_v40, 0.0 }
 0x3ec   : > { %v15103_v11 = vmax.f32 %v2040_v22, %v2007_v15 }
 0x3ee   : > { %17683 = vst [vmem:[#allocation94_spill] sm:$0xff] %v15103_v11  ;;  %v15107_v23 = vpack.c.bf16 %v15103_v11, %v15094_v17  ;;  %v12832_v17 = vld [vmem:[#allocation6 + $0x58] sm:$0xff] }
 0x3ef   : > { %v1941_v35 = vpop.f32.mrf.mxu0 }
 0x3f0   : > { %10596 = vmatmul.msk.bf16.gmra.mxu2 %vm2180_vm3, %v15107_v23  ;;  %v1942_v9 = vadd.f32 %v14715_v39, %v1941_v35 }
 0x3f2   : > { %v2008_v13 = vmax.f32 %v1942_v9, 0.0 }
 0x3f3   : > { %v2454_v62 = vpop.f32.mrf.mxu2 }
 0x3f4   : > { %v2041_v1 = vmax.f32 %v2007_v15, %v2008_v13 }
 0x3f7   : > { %v1943_v6 = vpop.f32.mrf.mxu0 }
 0x3f8   : > { %v1944_v32 = vadd.f32 %v14715_v39, %v1943_v6  ;;  %v12826_v39 = vld [vmem:[#allocation6 + $0x28] sm:$0xff] }
 0x3f9   : > { %2805 = vmatpush.bf16.msrb.mxu1 %v12826_v39 }
 0x3fa   : > { %v2009_v30 = vmax.f32 %v1944_v32, 0.0 }
 0x3fb   : > { %v15126_v15 = vpop.f32.mrf.mxu2 }
 0x3fc   : > { %v15117_v40 = vmax.f32 %v2041_v1, %v2009_v30  ;;  %v12823_v1 = vld [vmem:[#allocation6 + $0x10] sm:$0xff] }
 0x3fd   : > { %v2293_v22 = vpop.f32.mrf.mxu1  ;;  %2965 = vmatpush.bf16.msrb.mxu2 %v12823_v1  ;;  %v12822_v1 = vld [vmem:[#allocation6 + $0x8] sm:$0xff] }
 0x3fe   : > { %v15119_v63 = vadd.f32 %v2454_v62, %v2293_v22  ;;  %v2155_v35 = vpack.c.bf16 %v15117_v40, %v15103_v11 }
 0x400   : > { %10564 = vmatmul.msk.bf16.vlgmr.msra.gmra.mxu3 %vm2180_vm3, %v2155_v35  ;;  %v12825_v35 = vld [vmem:[#allocation6 + $0x20] sm:$0xff] }
 0x401   : > { %3081 = vmatpush.bf16.msra.mxu3 %v12832_v17  ;;  %2806 = vmatpush.bf16.msrb.mxu1 %v12825_v35 }
 0x402   : > { %2966 = vmatpush.bf16.msrb.mxu2 %v12822_v1 }
 0x405   : > { %v15128_v9 = vpop.f32.mrf.mxu1  ;;  %3082 = vmatpush.bf16.msra.mxu3 %v12831_v50 }
 0x410   : > { %10613 = vmatmul.msk.bf16.vlgmr.msrb.gmra.mxu3 %vm2180_vm3, %v14746_v12 }
 0x413   : > { %v2459_v13 = vpop.f32.mrf.mxu2 }
 0x41b   : > { %v15136_v12 = vpop.f32.mrf.mxu2 }
 0x41d   : > { %v2298_v6 = vpop.f32.mrf.mxu1 }
 0x41e   : > { %v15130_v32 = vadd.f32 %v2459_v13, %v2298_v6 }
 0x420   : > { %10614 = vmatmul.msk.bf16.gmra.mxu3 %vm2180_vm3, %v14769_v36 }
 0x425   : > { %v15138_v17 = vpop.f32.mrf.mxu1 }
 0x430   : > { %10615 = vmatmul.msk.bf16.gmra.mxu3 %vm2180_vm3, %v14792_v0 }
 0x433   : > { %v2464_v30 = vpop.f32.mrf.mxu2 }
 0x43b   : > { %v15146_v36 = vpop.f32.mrf.mxu2 }
 0x43d   : > { %v2303_v62 = vpop.f32.mrf.mxu1 }
 0x43e   : > { %v15140_v22 = vadd.f32 %v2464_v30, %v2303_v62 }
 0x440   : > { %10616 = vmatmul.msk.bf16.gmra.mxu3 %vm2180_vm3, %v14815_v27  ;;  %v12830_v27 = vld [vmem:[#allocation6 + $0x48] sm:$0xff] }
 0x441   : > { %3083 = vmatpush.bf16.msra.mxu3 %v12830_v27 }
 0x445   : > { %v15148_v0 = vpop.f32.mrf.mxu1 }
 0x450   : > { %10617 = vmatmul.msk.bf16.gmra.mxu3 %vm2180_vm3, %v14840_v60  ;;  %v12821_v60 = vld [vmem:[#allocation6] sm:$0xff] }
 0x451   : > { %2967 = vmatpush.bf16.msrb.mxu2 %v12821_v60 }
 0x453   : > { %v2469_v39 = vpop.f32.mrf.mxu2 }
 0x45b   : > { %v15156_v50 = vpop.f32.mrf.mxu2 }
 0x45d   : > { %v2308_v13 = vpop.f32.mrf.mxu1 }
 0x45e   : > { %v15150_v6 = vadd.f32 %v2469_v39, %v2308_v13  ;;  %v12836_v39 = vld [vmem:[#allocation8 + $0x18] sm:$0xff] }
 0x45f   : > { %3616 = vmatpush.bf16.msra.mxu1 %v12836_v39 }
 0x460   : > { %10618 = vmatmul.msk.bf16.gmra.mxu3 %vm2180_vm3, %v14869_v34  ;;  %v12838_v34 = vld [vmem:[#allocation8 + $0x28] sm:$0xff] }
 0x461   : > { %3457 = vmatpush.bf16.msrb.mxu0 %v12838_v34 }
 0x470   : > { %10619 = vmatmul.msk.bf16.gmra.mxu3 %vm2180_vm3, %v14898_v19  ;;  %v15167_v19 = vld [vmem:[%s17684_s13] ss:$0 sm:$0xff]  ;;  %s17743_s13 = sld [smem:[#allocation51_spill]] }
 0x473   : > { %v2474_v30 = vpop.f32.mrf.mxu2 }
 0x480   : > { %10620 = vmatmul.msk.bf16.gmra.mxu3 %vm2180_vm3, %v14927_v8 }
 0x483   : > { %v2313_v62 = vpop.f32.mrf.mxu3 }
 0x484   : > { %v15160_v35 = vadd.f32 %v2474_v30, %v2313_v62  ;;  %v2402_v30 = vadd.f32 %v14846_v3, %v14848_v4  ;;  %v17687_v62 = vmov 0.0  }
 0x486   : > { %17685 = vst [vmem:[#allocation95_spill] sm:$0xff] %v15160_v35 }
 0x48b   : > { %v15162_v13 = vpop.f32.mrf.mxu3 }
 0x48c   : > { %17686 = vst [vmem:[#allocation96_spill] sm:$0xff] %v15162_v13 }
 0x490   : > { %10621 = vmatmul.msk.bf16.gmra.mxu3 %vm2180_vm3, %v14956_v10 }
 0x493   : > { %v2516_v1 = vpop.f32.mrf.mxu3 }
 0x494   : > { %v2596_v27 = vadd.f32 %v2516_v1, %v14826_v44 }
 0x496   : > { %v2631_v8 = vadd.f32 %v15167_v19, %v2596_v27 }
 0x498   : > { %v2663_v60 = vmax.f32 %v2631_v8, 0.0 }
 0x49a   : > { %v2695_v11 = vpack.c.bf16 %v2663_v60, %v17687_v62 }
 0x49b   : > { %v2518_v35 = vpop.f32.mrf.mxu3 }
 0x49c   : > { %v2597_v13 = vadd.f32 %v2518_v35, %v2402_v30  ;;  %10677 = vmatmul.msk.bf16.vlgmr.msrb.gmra.mxu2 %vm2180_vm3, %v2695_v11  ;;  %v2407_v35 = vadd.f32 %v14875_v42, %v14877_v43 }
 0x49e   : > { %v2632_v34 = vadd.f32 %v15167_v19, %v2597_v13 }
 0x4a0   : > { %v2664_v10 = vmax.f32 %v2632_v34, 0.0  ;;  %10622 = vmatmul.msk.bf16.gmra.mxu3 %vm2180_vm3, %v14985_v49 }
 0x4a2   : > { %v2711_v39 = vpack.c.bf16 %v2664_v10, %v2663_v60  ;;  %v12829_v60 = vld [vmem:[#allocation6 + $0x40] sm:$0xff] }
 0x4a3   : > { %v2521_v44 = vpop.f32.mrf.mxu3  ;;  %3084 = vmatpush.bf16.msra.mxu3 %v12829_v60 }
 0x4a4   : > { %v2598_v1 = vadd.f32 %v2521_v44, %v14855_v18  ;;  %10645 = vmatmul.msk.bf16.vlgmr.msrb.gmra.mxu1 %vm2180_vm3, %v2711_v39 }
 0x4a6   : > { %v2633_v3 = vadd.f32 %v15167_v19, %v2598_v1 }
 0x4a8   : > { %v2665_v4 = vmax.f32 %v2633_v3, 0.0 }
 0x4aa   : > { %v15183_v27 = vpack.c.bf16 %v2665_v4, %v2664_v10  ;;  %v2412_v10 = vadd.f32 %v14904_v24, %v14906_v25 }
 0x4ab   : > { %v2523_v11 = vpop.f32.mrf.mxu3 }
 0x4ac   : > { %v2599_v13 = vadd.f32 %v2523_v11, %v2407_v35  ;;  %10678 = vmatmul.msk.bf16.gmra.mxu2 %vm2180_vm3, %v15183_v27  ;;  %v2417_v11 = vadd.f32 %v14933_v16, %v14935_v20 }
 0x4ae   : > { %v2634_v49 = vadd.f32 %v15167_v19, %v2599_v13 }
 0x4b0   : > { %v2666_v8 = vmax.f32 %v2634_v49, 0.0  ;;  %10623 = vmatmul.msk.bf16.gmra.mxu3 %vm2180_vm3, %v15014_v21  ;;  %v12835_v49 = vld [vmem:[#allocation8 + $0x10] sm:$0xff] }
 0x4b1   : > { %3617 = vmatpush.bf16.msra.mxu1 %v12835_v49 }
 0x4b2   : > { %v2712_v18 = vpack.c.bf16 %v2666_v8, %v2665_v4 }
 0x4b3   : > { %v2526_v30 = vpop.f32.mrf.mxu3 }
 0x4b4   : > { %v2600_v34 = vadd.f32 %v2526_v30, %v14884_v58  ;;  %10646 = vmatmul.msk.bf16.gmra.mxu1 %vm2180_vm3, %v2712_v18 }
 0x4b6   : > { %v2635_v42 = vadd.f32 %v15167_v19, %v2600_v34 }
 0x4b8   : > { %v2667_v43 = vmax.f32 %v2635_v42, 0.0  ;;  %v2422_v42 = vadd.f32 %v14962_v28, %v14964_v29 }
 0x4ba   : > { %v15195_v39 = vpack.c.bf16 %v2667_v43, %v2666_v8 }
 0x4bb   : > { %v2528_v44 = vpop.f32.mrf.mxu3 }
 0x4bc   : > { %v2601_v1 = vadd.f32 %v2528_v44, %v2412_v10  ;;  %10679 = vmatmul.msk.bf16.gmra.mxu2 %vm2180_vm3, %v15195_v39 }
 0x4be   : > { %v2636_v21 = vadd.f32 %v15167_v19, %v2601_v1 }
 0x4c0   : > { %v2668_v3 = vmax.f32 %v2636_v21, 0.0  ;;  %10624 = vmatmul.msk.bf16.gmra.mxu3 %vm2180_vm3, %v15038_v2 }
 0x4c2   : > { %v2713_v58 = vpack.c.bf16 %v2668_v3, %v2667_v43 }
 0x4c3   : > { %v2531_v4 = vpop.f32.mrf.mxu3 }
 0x4c4   : > { %v2602_v35 = vadd.f32 %v2531_v4, %v14913_v47  ;;  %10647 = vmatmul.msk.bf16.gmra.mxu1 %vm2180_vm3, %v2713_v58  ;;  %v2427_v58 = vadd.f32 %v14991_v45, %v14993_v61 }
 0x4c6   : > { %v2637_v24 = vadd.f32 %v15167_v19, %v2602_v35 }
 0x4c8   : > { %v2669_v25 = vmax.f32 %v2637_v24, 0.0 }
 0x4ca   : > { %v15207_v13 = vpack.c.bf16 %v2669_v25, %v2668_v3 }
 0x4cb   : > { %v2533_v8 = vpop.f32.mrf.mxu3 }
 0x4cc   : > { %v2603_v18 = vadd.f32 %v2533_v8, %v2417_v11  ;;  %10680 = vmatmul.msk.bf16.gmra.mxu2 %vm2180_vm3, %v15207_v13  ;;  %v12844_v11 = vld [vmem:[#allocation8 + $0x58] sm:$0xff] }
 0x4cd   : > { %3733 = vmatpush.bf16.msra.mxu2 %v12844_v11 }
 0x4ce   : > { %v2638_v2 = vadd.f32 %v15167_v19, %v2603_v18  ;;  %v2432_v18 = vadd.f32 %v15020_v56, %v15022_v14 }
 0x4d0   : > { %v2670_v47 = vmax.f32 %v2638_v2, 0.0  ;;  %10625 = vmatmul.msk.bf16.gmra.mxu3 %vm2180_vm3, %v15061_v31 }
 0x4d2   : > { %v2714_v60 = vpack.c.bf16 %v2670_v47, %v2669_v25 }
 0x4d3   : > { %v2536_v30 = vpop.f32.mrf.mxu3 }
 0x4d4   : > { %v2604_v34 = vadd.f32 %v2536_v30, %v14942_v46  ;;  %10648 = vmatmul.msk.bf16.gmra.mxu1 %vm2180_vm3, %v2714_v60 }
 0x4d6   : > { %v2639_v16 = vadd.f32 %v15167_v19, %v2604_v34 }
 0x4d8   : > { %v2671_v20 = vmax.f32 %v2639_v16, 0.0 }
 0x4da   : > { %v15219_v43 = vpack.c.bf16 %v2671_v20, %v2670_v47 }
 0x4db   : > { %v2538_v10 = vpop.f32.mrf.mxu3 }
 0x4dc   : > { %v2605_v44 = vadd.f32 %v2538_v10, %v2422_v42  ;;  %10681 = vmatmul.msk.bf16.gmra.mxu2 %vm2180_vm3, %v15219_v43  ;;  %v2437_v42 = vadd.f32 %v15043_v7, %v15045_v52 }
 0x4de   : > { %v2640_v31 = vadd.f32 %v15167_v19, %v2605_v44  ;;  %v12837_v44 = vld [vmem:[#allocation8 + $0x20] sm:$0xff] }
 0x4df   : > { %3458 = vmatpush.bf16.msrb.mxu0 %v12837_v44 }
 0x4e0   : > { %v2672_v1 = vmax.f32 %v2640_v31, 0.0  ;;  %10626 = vmatmul.msk.bf16.gmra.mxu3 %vm2180_vm3, %v15084_v5  ;;  %v12834_v31 = vld [vmem:[#allocation8 + $0x8] sm:$0xff] }
 0x4e1   : > { %3618 = vmatpush.bf16.msra.mxu1 %v12834_v31 }
 0x4e2   : > { %v2715_v46 = vpack.c.bf16 %v2672_v1, %v2671_v20 }
 0x4e3   : > { %v2541_v21 = vpop.f32.mrf.mxu3 }
 0x4e4   : > { %v2606_v3 = vadd.f32 %v2541_v21, %v14971_v57  ;;  %10649 = vmatmul.msk.bf16.gmra.mxu1 %vm2180_vm3, %v2715_v46 }
 0x4e6   : > { %v2641_v28 = vadd.f32 %v15167_v19, %v2606_v3 }
 0x4e8   : > { %v2673_v29 = vmax.f32 %v2641_v28, 0.0 }
 0x4ea   : > { %v15231_v4 = vpack.c.bf16 %v2673_v29, %v2672_v1 }
 0x4eb   : > { %v2543_v35 = vpop.f32.mrf.mxu3 }
 0x4ec   : > { %v2607_v24 = vadd.f32 %v2543_v35, %v2427_v58  ;;  %10682 = vmatmul.msk.bf16.gmra.mxu2 %vm2180_vm3, %v15231_v4  ;;  %v15267_v35 = vpop.f32.mrf.mxu1 }
 0x4ee   : > { %v2642_v5 = vadd.f32 %v15167_v19, %v2607_v24  ;;  %v2442_v24 = vadd.f32 %v15066_v37, %v15068_v33 }
 0x4f0   : > { %v2674_v25 = vmax.f32 %v2642_v5, 0.0  ;;  %10627 = vmatmul.msk.bf16.gmra.mxu3 %vm2180_vm3, %v15107_v23 }
 0x4f2   : > { %v2716_v57 = vpack.c.bf16 %v2674_v25, %v2673_v29  ;;  %v15265_v29 = vpop.f32.mrf.mxu2 }
 0x4f3   : > { %v2546_v49 = vpop.f32.mrf.mxu3 }
 0x4f4   : > { %v2608_v8 = vadd.f32 %v2546_v49, %v15000_v51  ;;  %10650 = vmatmul.msk.bf16.gmra.mxu1 %vm2180_vm3, %v2716_v57  ;;  %v2479_v51 = vpack.c.bf16 0.0, %v15117_v40 }
 0x4f6   : > { %v2643_v45 = vadd.f32 %v15167_v19, %v2608_v8 }
 0x4f8   : > { %v2675_v61 = vmax.f32 %v2643_v45, 0.0 }
 0x4fa   : > { %v15243_v2 = vpack.c.bf16 %v2675_v61, %v2674_v25 }
 0x4fb   : > { %v2548_v47 = vpop.f32.mrf.mxu3 }
 0x4fc   : > { %v2609_v60 = vadd.f32 %v2548_v47, %v2432_v18  ;;  %10683 = vmatmul.msk.bf16.gmra.mxu2 %vm2180_vm3, %v15243_v2 }
 0x4fe   : > { %v2644_v23 = vadd.f32 %v15167_v19, %v2609_v60 }
 0x500   : > { %v2676_v30 = vmax.f32 %v2644_v23, 0.0  ;;  %10628 = vmatmul.msk.bf16.gmra.mxu3 %vm2180_vm3, %v2479_v51  ;;  %v2447_v23 = vadd.f32 %v15089_v54, %v15091_v26  ;;  %v12843_v54 = vld [vmem:[#allocation8 + $0x50] sm:$0xff] }
 0x501   : > { %3734 = vmatpush.bf16.msra.mxu2 %v12843_v54 }
 0x502   : > { %v2717_v34 = vpack.c.bf16 %v2676_v30, %v2675_v61 }
 0x503   : > { %v2551_v16 = vpop.f32.mrf.mxu3 }
 0x504   : > { %v2610_v20 = vadd.f32 %v2551_v16, %v15027_v38  ;;  %10651 = vmatmul.msk.bf16.gmra.mxu1 %vm2180_vm3, %v2717_v34 }
 0x506   : > { %v2645_v56 = vadd.f32 %v15167_v19, %v2610_v20 }
 0x508   : > { %v2677_v14 = vmax.f32 %v2645_v56, 0.0 }
 0x50a   : > { %v15255_v10 = vpack.c.bf16 %v2677_v14, %v2676_v30 }
 0x50b   : > { %v2553_v1 = vpop.f32.mrf.mxu3 }
 0x50c   : > { %v2611_v46 = vadd.f32 %v2553_v1, %v2437_v42  ;;  %10684 = vmatmul.msk.bf16.gmra.mxu2 %vm2180_vm3, %v15255_v10 }
 0x50e   : > { %v2646_v38 = vadd.f32 %v15167_v19, %v2611_v46 }
 0x510   : > { %v2678_v21 = vmax.f32 %v2646_v38, 0.0  ;;  %10709 = vmatmul.msk.bf16.vlgmr.msra.gmra.mxu3 %vm2180_vm3, %v15183_v27 }
 0x512   : > { %v2718_v3 = vpack.c.bf16 %v2678_v21, %v2677_v14 }
 0x513   : > { %v2556_v28 = vpop.f32.mrf.mxu3 }
 0x514   : > { %v2612_v7 = vadd.f32 %v2556_v28, %v15050_v55  ;;  %10652 = vmatmul.msk.bf16.gmra.mxu1 %vm2180_vm3, %v2718_v3 }
 0x516   : > { %v2647_v52 = vadd.f32 %v15167_v19, %v2612_v7 }
 0x518   : > { %v2679_v58 = vmax.f32 %v2647_v52, 0.0 }
 0x51a   : > { %v15271_v5 = vpack.c.bf16 %v2679_v58, %v2678_v21  ;;  %v2452_v21 = vadd.f32 %v15112_v41, %v15114_v53 }
 0x51b   : > { %v2558_v25 = vpop.f32.mrf.mxu3 }
 0x51c   : > { %v2613_v27 = vadd.f32 %v2558_v25, %v2442_v24  ;;  %10685 = vmatmul.msk.bf16.gmra.mxu2 %vm2180_vm3, %v15271_v5 }
 0x51e   : > { %v2648_v55 = vadd.f32 %v15167_v19, %v2613_v27 }
 0x51f   : > { %v2969_v57 = vpop.f32.mrf.mxu2 }
 0x520   : > { %v2680_v11 = vmax.f32 %v2648_v55, 0.0  ;;  %10710 = vmatmul.msk.bf16.gmra.mxu3 %vm2180_vm3, %v15195_v39 }
 0x521   : > { %v2808_v49 = vpop.f32.mrf.mxu1 }
 0x522   : > { %v2719_v8 = vpack.c.bf16 %v2680_v11, %v2679_v58  ;;  %v15278_v45 = vadd.f32 %v2969_v57, %v2808_v49 }
 0x523   : > { %v2561_v61 = vpop.f32.mrf.mxu3 }
 0x524   : > { %v2614_v37 = vadd.f32 %v2561_v61, %v15073_v59  ;;  %10653 = vmatmul.msk.bf16.gmra.mxu1 %vm2180_vm3, %v2719_v8  ;;  %v2457_v8 = vadd.f32 %v15126_v15, %v15128_v9 }
 0x526   : > { %v2649_v33 = vadd.f32 %v15167_v19, %v2614_v37  ;;  %v12833_v37 = vld [vmem:[#allocation8] sm:$0xff] }
 0x527   : > { %v2971_v18 = vpop.f32.mrf.mxu2  ;;  %3619 = vmatpush.bf16.msra.mxu1 %v12833_v37 }
 0x528   : > { %v2681_v47 = vmax.f32 %v2649_v33, 0.0 }
 0x529   : > { %v2810_v60 = vpop.f32.mrf.mxu1 }
 0x52a   : > { %v15285_v51 = vpack.c.bf16 %v2681_v47, %v2680_v11  ;;  %v15287_v39 = vadd.f32 %v2971_v18, %v2810_v60 }
 0x52b   : > { %v2563_v30 = vpop.f32.mrf.mxu3 }
 0x52c   : > { %v2615_v34 = vadd.f32 %v2563_v30, %v2447_v23  ;;  %10686 = vmatmul.msk.bf16.gmra.mxu2 %vm2180_vm3, %v15285_v51 }
 0x52e   : > { %v2650_v59 = vadd.f32 %v15167_v19, %v2615_v34 }
 0x52f   : > { %v2974_v16 = vpop.f32.mrf.mxu2 }
 0x530   : > { %v2682_v20 = vmax.f32 %v2650_v59, 0.0  ;;  %10711 = vmatmul.msk.bf16.gmra.mxu3 %vm2180_vm3, %v15207_v13 }
 0x531   : > { %v2813_v56 = vpop.f32.mrf.mxu1 }
 0x532   : > { %v2720_v14 = vpack.c.bf16 %v2682_v20, %v2681_v47  ;;  %v15294_v42 = vadd.f32 %v2974_v16, %v2813_v56 }
 0x533   : > { %v2566_v26 = vpop.f32.mrf.mxu3 }
 0x534   : > { %v2616_v44 = vadd.f32 %v2566_v26, %v15096_v48  ;;  %10654 = vmatmul.msk.bf16.gmra.mxu1 %vm2180_vm3, %v2720_v14  ;;  %v2462_v14 = vadd.f32 %v15136_v12, %v15138_v17 }
 0x536   : > { %v2651_v31 = vadd.f32 %v15167_v19, %v2616_v44 }
 0x537   : > { %v2976_v1 = vpop.f32.mrf.mxu2 }
 0x538   : > { %v2683_v46 = vmax.f32 %v2651_v31, 0.0 }
 0x539   : > { %v2815_v38 = vpop.f32.mrf.mxu1 }
 0x53a   : > { %v15301_v13 = vpack.c.bf16 %v2683_v46, %v2682_v20  ;;  %v15303_v3 = vadd.f32 %v2976_v1, %v2815_v38 }
 0x53b   : > { %v2568_v28 = vpop.f32.mrf.mxu3 }
 0x53c   : > { %v2617_v7 = vadd.f32 %v2568_v28, %v2452_v21  ;;  %10687 = vmatmul.msk.bf16.gmra.mxu2 %vm2180_vm3, %v15301_v13 }
 0x53e   : > { %v2652_v48 = vadd.f32 %v15167_v19, %v2617_v7 }
 0x53f   : > { %v2979_v52 = vpop.f32.mrf.mxu2 }
 0x540   : > { %v2684_v58 = vmax.f32 %v2652_v48, 0.0  ;;  %10712 = vmatmul.msk.bf16.gmra.mxu3 %vm2180_vm3, %v15219_v43 }
 0x541   : > { %v2818_v24 = vpop.f32.mrf.mxu1 }
 0x542   : > { %v2721_v25 = vpack.c.bf16 %v2684_v58, %v2683_v46  ;;  %v15310_v27 = vadd.f32 %v2979_v52, %v2818_v24 }
 0x543   : > { %v2571_v41 = vpop.f32.mrf.mxu3 }
 0x544   : > { %v2618_v53 = vadd.f32 %v2571_v41, %v15119_v63  ;;  %10655 = vmatmul.msk.bf16.gmra.mxu1 %vm2180_vm3, %v2721_v25 }
 0x546   : > { %v2653_v55 = vadd.f32 %v15167_v19, %v2618_v53 }
 0x547   : > { %v2981_v57 = vpop.f32.mrf.mxu2 }
 0x548   : > { %v2685_v11 = vmax.f32 %v2653_v55, 0.0 }
 0x549   : > { %v2820_v49 = vpop.f32.mrf.mxu1 }
 0x54a   : > { %v15317_v61 = vpack.c.bf16 %v2685_v11, %v2684_v58  ;;  %v15319_v43 = vadd.f32 %v2981_v57, %v2820_v49  ;;  %v2467_v58 = vadd.f32 %v15146_v36, %v15148_v0  ;;  %v12842_v49 = vld [vmem:[#allocation8 + $0x48] sm:$0xff] }
 0x54b   : > { %v2573_v33 = vpop.f32.mrf.mxu3  ;;  %3735 = vmatpush.bf16.msra.mxu2 %v12842_v49 }
 0x54c   : > { %v2619_v18 = vadd.f32 %v2573_v33, %v2457_v8  ;;  %10688 = vmatmul.msk.bf16.gmra.mxu2 %vm2180_vm3, %v15317_v61 }
 0x54e   : > { %v2654_v63 = vadd.f32 %v15167_v19, %v2619_v18 }
 0x54f   : > { %v2984_v47 = vpop.f32.mrf.mxu2 }
 0x550   : > { %v2686_v60 = vmax.f32 %v2654_v63, 0.0  ;;  %10713 = vmatmul.msk.bf16.gmra.mxu3 %vm2180_vm3, %v15231_v4 }
 0x551   : > { %v2823_v23 = vpop.f32.mrf.mxu1 }
 0x552   : > { %v2722_v15 = vpack.c.bf16 %v2686_v60, %v2685_v11  ;;  %v15326_v9 = vadd.f32 %v2984_v47, %v2823_v23 }
 0x553   : > { %v2576_v30 = vpop.f32.mrf.mxu3 }
 0x554   : > { %v2620_v34 = vadd.f32 %v2576_v30, %v15130_v32  ;;  %10656 = vmatmul.msk.bf16.gmra.mxu1 %vm2180_vm3, %v2722_v15 }
 0x556   : > { %v2655_v59 = vadd.f32 %v15167_v19, %v2620_v34 }
 0x557   : > { %v2986_v16 = vpop.f32.mrf.mxu2 }
 0x558   : > { %v2687_v20 = vmax.f32 %v2655_v59, 0.0 }
 0x559   : > { %v2825_v56 = vpop.f32.mrf.mxu1 }
 0x55a   : > { %v15333_v54 = vpack.c.bf16 %v2687_v20, %v2686_v60  ;;  %v15335_v4 = vadd.f32 %v2986_v16, %v2825_v56 }
 0x55b   : > { %v2578_v26 = vpop.f32.mrf.mxu3 }
 0x55c   : > { %v2621_v44 = vadd.f32 %v2578_v26, %v2462_v14  ;;  %10689 = vmatmul.msk.bf16.gmra.mxu2 %vm2180_vm3, %v15333_v54 }
 0x55e   : > { %v2656_v32 = vadd.f32 %v15167_v19, %v2621_v44 }
 0x55f   : > { %v2989_v31 = vpop.f32.mrf.mxu2 }
 0x560   : > { %v2688_v1 = vmax.f32 %v2656_v32, 0.0  ;;  %10714 = vmatmul.msk.bf16.gmra.mxu3 %vm2180_vm3, %v15243_v2  ;;  %v12841_v32 = vld [vmem:[#allocation8 + $0x40] sm:$0xff] }
 0x561   : > { %v2828_v46 = vpop.f32.mrf.mxu1  ;;  %3736 = vmatpush.bf16.msra.mxu2 %v12841_v32 }
 0x562   : > { %v2723_v38 = vpack.c.bf16 %v2688_v1, %v2687_v20  ;;  %v15342_v21 = vadd.f32 %v2989_v31, %v2828_v46  ;;  %v12852_v20 = vld [vmem:[#allocation9 + $0x38] sm:$0xff] }
 0x563   : > { %v2581_v12 = vpop.f32.mrf.mxu3  ;;  %4025 = vmatpush.bf16.msrb.mxu3 %v12852_v20 }
 0x564   : > { %v2622_v17 = vadd.f32 %v2581_v12, %v15140_v22  ;;  %10657 = vmatmul.msk.bf16.gmra.mxu1 %vm2180_vm3, %v2723_v38  ;;  %v12848_v12 = vld [vmem:[#allocation9 + $0x18] sm:$0xff] }
 0x565   : > { %4186 = vmatpush.bf16.msra.mxu0 %v12848_v12 }
 0x566   : > { %v2657_v28 = vadd.f32 %v15167_v19, %v2622_v17  ;;  %v12856_v17 = vld [vmem:[#allocation9 + $0x58] sm:$0xff] }
 0x567   : > { %v15347_v7 = vpop.f32.mrf.mxu2  ;;  %4303 = vmatpush.bf16.msrb.mxu1 %v12856_v17 }
 0x568   : > { %v2689_v48 = vmax.f32 %v2657_v28, 0.0 }
 0x569   : > { %v15349_v52 = vpop.f32.mrf.mxu1 }
 0x56a   : > { %v15353_v2 = vpack.c.bf16 %v2689_v48, %v2688_v1 }
 0x56b   : > { %v2583_v24 = vpop.f32.mrf.mxu3 }
 0x56c   : > { %v2623_v25 = vadd.f32 %v2583_v24, %v2467_v58  ;;  %10690 = vmatmul.msk.bf16.gmra.mxu2 %vm2180_vm3, %v15353_v2 }
 0x56e   : > { %v2658_v22 = vadd.f32 %v15167_v19, %v2623_v25 }
 0x56f   : > { %v2994_v41 = vpop.f32.mrf.mxu2 }
 0x570   : > { %v2690_v53 = vmax.f32 %v2658_v22, 0.0  ;;  %10715 = vmatmul.msk.bf16.gmra.mxu3 %vm2180_vm3, %v15255_v10  ;;  %v2472_v10 = vadd.f32 %v15156_v50, %v15267_v35  ;;  %v17688_v50 = vld [vmem:[#allocation95_spill] sm:$0xff]  ;;  %v15404_v22 = vld [vmem:[%s17690_s18] ss:$0 sm:$0xff]  ;;  %s17762_s18 = sld [smem:[#allocation53_spill]] }
 0x571   : > { %v2833_v55 = vpop.f32.mrf.mxu1 }
 0x572   : > { %v2724_v57 = vpack.c.bf16 %v2690_v53, %v2689_v48  ;;  %v15360_v11 = vadd.f32 %v2994_v41, %v2833_v55 }
 0x573   : > { %v2586_v36 = vpop.f32.mrf.mxu3 }
 0x574   : > { %v2624_v0 = vadd.f32 %v2586_v36, %v15150_v6  ;;  %10658 = vmatmul.msk.bf16.gmra.mxu1 %vm2180_vm3, %v2724_v57 }
 0x576   : > { %v2659_v8 = vadd.f32 %v15167_v19, %v2624_v0 }
 0x577   : > { %v15365_v37 = vpop.f32.mrf.mxu2 }
 0x578   : > { %v2691_v33 = vmax.f32 %v2659_v8, 0.0 }
 0x579   : > { %v15367_v18 = vpop.f32.mrf.mxu1 }
 0x57a   : > { %v15371_v63 = vpack.c.bf16 %v2691_v33, %v2690_v53 }
 0x57b   : > { %v2588_v47 = vpop.f32.mrf.mxu3 }
 0x57c   : > { %v2625_v60 = vadd.f32 %v2588_v47, %v2472_v10  ;;  %10691 = vmatmul.msk.bf16.gmra.mxu2 %vm2180_vm3, %v15371_v63  ;;  %v17692_v47 = vld [vmem:[#allocation65_spill] sm:$0xff] }
 0x57e   : > { %v2660_v6 = vadd.f32 %v15167_v19, %v2625_v60 }
 0x57f   : > { %v2999_v23 = vpop.f32.mrf.mxu2 }
 0x580   : > { %v2692_v15 = vmax.f32 %v2660_v6, 0.0  ;;  %10716 = vmatmul.msk.bf16.gmra.mxu3 %vm2180_vm3, %v15271_v5  ;;  %v17689_v5 = vld [vmem:[#allocation96_spill] sm:$0xff] }
 0x581   : > { %v2838_v30 = vpop.f32.mrf.mxu1  ;;  %v2477_v31 = vadd.f32 %v15265_v29, %v17689_v5 }
 0x582   : > { %v2725_v34 = vpack.c.bf16 %v2692_v15, %v2691_v33  ;;  %v15378_v59 = vadd.f32 %v2999_v23, %v2838_v30 }
 0x583   : > { %v2591_v16 = vpop.f32.mrf.mxu3 }
 0x584   : > { %v2626_v35 = vadd.f32 %v2591_v16, %v17688_v50  ;;  %10659 = vmatmul.msk.bf16.gmra.mxu1 %vm2180_vm3, %v2725_v34  ;;  %v17693_v50 = vld [vmem:[#allocation66_spill] sm:$0xff] }
 0x586   : > { %v2661_v56 = vadd.f32 %v15167_v19, %v2626_v35 }
 0x587   : > { %v15383_v14 = vpop.f32.mrf.mxu2 }
 0x588   : > { %v2693_v26 = vmax.f32 %v2661_v56, 0.0 }
 0x589   : > { %v15385_v44 = vpop.f32.mrf.mxu1 }
 0x58a   : > { %v15389_v1 = vpack.c.bf16 %v2693_v26, %v2692_v15 }
 0x58b   : > { %v2593_v46 = vpop.f32.mrf.mxu3 }
 0x58c   : > { %v2627_v38 = vadd.f32 %v2593_v46, %v2477_v31  ;;  %10692 = vmatmul.msk.bf16.gmra.mxu2 %vm2180_vm3, %v15389_v1  ;;  %v17694_v46 = vld [vmem:[#allocation67_spill] sm:$0xff] }
 0x58e   : > { %v15394_v28 = vadd.f32 %v15167_v19, %v2627_v38 }
 0x58f   : > { %v3004_v48 = vpop.f32.mrf.mxu2 }
 0x590   : > { %v2694_v58 = vmax.f32 %v15394_v28, 0.0  ;;  %10717 = vmatmul.msk.bf16.gmra.mxu3 %vm2180_vm3, %v15285_v51  ;;  %v17691_v51 = vld [vmem:[#allocation64_spill] sm:$0xff] }
 0x591   : > { %v2843_v29 = vpop.f32.mrf.mxu1 }
 0x592   : > { %v2726_v24 = vpack.c.bf16 %v2694_v58, %v2693_v26  ;;  %v15401_v25 = vadd.f32 %v3004_v48, %v2843_v29 }
 0x593   : > { %v3086_v41 = vpop.f32.mrf.mxu3 }
 0x594   : > { %v3166_v19 = vadd.f32 %v3086_v41, %v15278_v45  ;;  %10660 = vmatmul.msk.bf16.gmra.mxu1 %vm2180_vm3, %v2726_v24 }
 0x596   : > { %v3201_v53 = vadd.f32 %v15404_v22, %v3166_v19 }
 0x597   : > { %v15409_v55 = vpop.f32.mrf.mxu2 }
 0x598   : > { %v3233_v49 = vadd.f32 %v3201_v53, %v17691_v51 }
 0x599   : > { %v15411_v57 = vpop.f32.mrf.mxu1 }
 0x59a   : > { %v15415_v8 = vmax.f32 %v3233_v49, 0.0 }
 0x59b   : > { %v3088_v36 = vpop.f32.mrf.mxu3 }
 0x59c   : > { %v3167_v0 = vadd.f32 %v3088_v36, %v15287_v39  ;;  %v3347_v6 = vpack.c.bf16 %v15415_v8, %v17687_v62 }
 0x59e   : > { %v3202_v33 = vadd.f32 %v15404_v22, %v3167_v0 }
 0x59f   : > { %v3009_v10 = vpop.f32.mrf.mxu2 }
 0x5a0   : > { %v3234_v45 = vadd.f32 %v3202_v33, %v17692_v47  ;;  %10718 = vmatmul.msk.bf16.gmra.mxu3 %vm2180_vm3, %v15301_v13  ;;  %v17696_v47 = vld [vmem:[#allocation69_spill] sm:$0xff] }
 0x5a1   : > { %v2848_v60 = vpop.f32.mrf.mxu1 }
 0x5a2   : > { %v15423_v23 = vmax.f32 %v3234_v45, 0.0  ;;  %v15425_v15 = vadd.f32 %v3009_v10, %v2848_v60 }
 0x5a3   : > { %v3091_v30 = vpop.f32.mrf.mxu3 }
 0x5a4   : > { %v3363_v39 = vpack.c.bf16 %v15423_v23, %v15415_v8  ;;  %v3168_v34 = vadd.f32 %v3091_v30, %v15294_v42  ;;  %10773 = vmatmul.msk.bf16.vlgmr.msra.gmra.mxu1 %vm2180_vm3, %v3347_v6 }
 0x5a6   : > { %v3203_v16 = vadd.f32 %v15404_v22, %v3168_v34  ;;  %10741 = vmatmul.msk.bf16.vlgmr.msrb.gmra.mxu0 %vm2180_vm3, %v3363_v39  ;;  %v12851_v39 = vld [vmem:[#allocation9 + $0x30] sm:$0xff] }
 0x5a7   : > { %v15433_v13 = vpop.f32.mrf.mxu2  ;;  %4026 = vmatpush.bf16.msrb.mxu3 %v12851_v39 }
 0x5a8   : > { %v3235_v35 = vadd.f32 %v3203_v16, %v17693_v50 }
 0x5a9   : > { %v15436_v20 = vpop.f32.mrf.mxu1 }
 0x5aa   : > { %v15438_v56 = vmax.f32 %v3235_v35, 0.0  ;;  %v17697_v35 = vld [vmem:[#allocation70_spill] sm:$0xff] }
 0x5ab   : > { %v3093_v26 = vpop.f32.mrf.mxu3 }
 0x5ac   : > { %v3348_v32 = vpack.c.bf16 %v15438_v56, %v15423_v23  ;;  %v3169_v42 = vadd.f32 %v3093_v26, %v15303_v3 }
 0x5ae   : > { %v3204_v5 = vadd.f32 %v15404_v22, %v3169_v42  ;;  %10805 = vmatmul.msk.bf16.vlgmr.msra.gmra.mxu2 %vm2180_vm3, %v3348_v32 }
 0x5af   : > { %v3014_v31 = vpop.f32.mrf.mxu2 }
 0x5b0   : > { %v3236_v38 = vadd.f32 %v3204_v5, %v17694_v46  ;;  %10719 = vmatmul.msk.bf16.gmra.mxu3 %vm2180_vm3, %v15317_v61  ;;  %v17695_v61 = vld [vmem:[#allocation68_spill] sm:$0xff] }
 0x5b1   : > { %v2853_v12 = vpop.f32.mrf.mxu1  ;;  %v12847_v5 = vld [vmem:[#allocation9 + $0x10] sm:$0xff] }
 0x5b2   : > { %v15448_v17 = vmax.f32 %v3236_v38, 0.0  ;;  %v15450_v48 = vadd.f32 %v3014_v31, %v2853_v12  ;;  %4187 = vmatpush.bf16.msra.mxu0 %v12847_v5 }
 0x5b3   : > { %v3096_v29 = vpop.f32.mrf.mxu3 }
 0x5b4   : > { %v3170_v24 = vadd.f32 %v3096_v29, %v15310_v27  ;;  %10774 = vmatmul.msk.bf16.gmra.mxu1 %vm2180_vm3, %v3348_v32  ;;  %v3364_v3 = vpack.c.bf16 %v15448_v17, %v15438_v56 }
 0x5b6   : > { %v3205_v41 = vadd.f32 %v15404_v22, %v3170_v24  ;;  %10742 = vmatmul.msk.bf16.gmra.mxu0 %vm2180_vm3, %v3364_v3  ;;  %v17698_v24 = vld [vmem:[#allocation71_spill] sm:$0xff] }
 0x5b7   : > { %v15458_v19 = vpop.f32.mrf.mxu2 }
 0x5b8   : > { %v3237_v53 = vadd.f32 %v3205_v41, %v17695_v61 }
 0x5b9   : > { %v15461_v51 = vpop.f32.mrf.mxu1 }
 0x5ba   : > { %v15463_v49 = vmax.f32 %v3237_v53, 0.0 }
 0x5bb   : > { %v3098_v36 = vpop.f32.mrf.mxu3 }
 0x5bc   : > { %v3171_v27 = vadd.f32 %v3098_v36, %v15319_v43  ;;  %v3349_v0 = vpack.c.bf16 %v15463_v49, %v15448_v17 }
 0x5be   : > { %v3206_v33 = vadd.f32 %v15404_v22, %v3171_v27  ;;  %10806 = vmatmul.msk.bf16.gmra.mxu2 %vm2180_vm3, %v3349_v0 }
 0x5bf   : > { %v3019_v10 = vpop.f32.mrf.mxu2 }
 0x5c0   : > { %v3238_v45 = vadd.f32 %v3206_v33, %v17696_v47  ;;  %10720 = vmatmul.msk.bf16.gmra.mxu3 %vm2180_vm3, %v15333_v54 }
 0x5c1   : > { %v2858_v60 = vpop.f32.mrf.mxu1 }
 0x5c2   : > { %v15473_v6 = vmax.f32 %v3238_v45, 0.0  ;;  %v15475_v30 = vadd.f32 %v3019_v10, %v2858_v60  ;;  %v2992_v45 = vadd.f32 %v15347_v7, %v15349_v52 }
 0x5c3   : > { %v3101_v43 = vpop.f32.mrf.mxu3 }
 0x5c4   : > { %v3172_v34 = vadd.f32 %v3101_v43, %v15326_v9  ;;  %10775 = vmatmul.msk.bf16.gmra.mxu1 %vm2180_vm3, %v3349_v0  ;;  %v3365_v16 = vpack.c.bf16 %v15473_v6, %v15463_v49  ;;  %v12855_v9 = vld [vmem:[#allocation9 + $0x50] sm:$0xff] }
 0x5c5   : > { %4304 = vmatpush.bf16.msrb.mxu1 %v12855_v9 }
 0x5c6   : > { %v3207_v50 = vadd.f32 %v15404_v22, %v3172_v34  ;;  %10743 = vmatmul.msk.bf16.gmra.mxu0 %vm2180_vm3, %v3365_v16 }
 0x5c7   : > { %v15483_v54 = vpop.f32.mrf.mxu2 }
 0x5c8   : > { %v3239_v26 = vadd.f32 %v3207_v50, %v17697_v35  ;;  %v17700_v50 = vld [vmem:[#allocation73_spill] sm:$0xff] }
 0x5c9   : > { %v15486_v32 = vpop.f32.mrf.mxu1 }
 0x5ca   : > { %v15488_v42 = vmax.f32 %v3239_v26, 0.0 }
 0x5cb   : > { %v3103_v31 = vpop.f32.mrf.mxu3 }
 0x5cc   : > { %v3173_v46 = vadd.f32 %v3103_v31, %v15335_v4  ;;  %v3350_v38 = vpack.c.bf16 %v15488_v42, %v15473_v6 }
 0x5ce   : > { %v3208_v12 = vadd.f32 %v15404_v22, %v3173_v46  ;;  %10807 = vmatmul.msk.bf16.gmra.mxu2 %vm2180_vm3, %v3350_v38 }
 0x5cf   : > { %v3024_v29 = vpop.f32.mrf.mxu2 }
 0x5d0   : > { %v3240_v3 = vadd.f32 %v3208_v12, %v17698_v24  ;;  %10721 = vmatmul.msk.bf16.gmra.mxu3 %vm2180_vm3, %v15353_v2  ;;  %v17699_v2 = vld [vmem:[#allocation72_spill] sm:$0xff]  ;;  %v2997_v24 = vadd.f32 %v15365_v37, %v15367_v18 }
 0x5d1   : > { %v2863_v41 = vpop.f32.mrf.mxu1 }
 0x5d2   : > { %v15498_v61 = vmax.f32 %v3240_v3, 0.0  ;;  %v15500_v53 = vadd.f32 %v3024_v29, %v2863_v41 }
 0x5d3   : > { %v3106_v4 = vpop.f32.mrf.mxu3 }
 0x5d4   : > { %v3174_v36 = vadd.f32 %v3106_v4, %v15342_v21  ;;  %10776 = vmatmul.msk.bf16.gmra.mxu1 %vm2180_vm3, %v3350_v38  ;;  %v3366_v27 = vpack.c.bf16 %v15498_v61, %v15488_v42 }
 0x5d6   : > { %v3209_v0 = vadd.f32 %v15404_v22, %v3174_v36  ;;  %10744 = vmatmul.msk.bf16.gmra.mxu0 %vm2180_vm3, %v3366_v27 }
 0x5d7   : > { %v15508_v33 = vpop.f32.mrf.mxu2 }
 0x5d8   : > { %v3241_v10 = vadd.f32 %v3209_v0, %v17699_v2  ;;  %v17702_v0 = vld [vmem:[#allocation75_spill] sm:$0xff] }
 0x5d9   : > { %v15511_v47 = vpop.f32.mrf.mxu1 }
 0x5da   : > { %v15515_v60 = vmax.f32 %v3241_v10, 0.0 }
 0x5db   : > { %v3108_v21 = vpop.f32.mrf.mxu3 }
 0x5dc   : > { %v3175_v39 = vadd.f32 %v3108_v21, %v2992_v45  ;;  %v3351_v43 = vpack.c.bf16 %v15515_v60, %v15498_v61 }
 0x5de   : > { %v3210_v34 = vadd.f32 %v15404_v22, %v3175_v39  ;;  %10808 = vmatmul.msk.bf16.gmra.mxu2 %vm2180_vm3, %v3351_v43 }
 0x5df   : > { %v3029_v16 = vpop.f32.mrf.mxu2 }
 0x5e0   : > { %v3242_v35 = vadd.f32 %v3210_v34, %v17700_v50  ;;  %10722 = vmatmul.msk.bf16.gmra.mxu3 %vm2180_vm3, %v15371_v63  ;;  %v17701_v63 = vld [vmem:[#allocation74_spill] sm:$0xff] }
 0x5e1   : > { %v2868_v26 = vpop.f32.mrf.mxu1 }
 0x5e2   : > { %v15524_v5 = vmax.f32 %v3242_v35, 0.0  ;;  %v15526_v7 = vadd.f32 %v3029_v16, %v2868_v26  ;;  %v3002_v35 = vadd.f32 %v15383_v14, %v15385_v44 }
 0x5e3   : > { %v3111_v52 = vpop.f32.mrf.mxu3 }
 0x5e4   : > { %v3176_v9 = vadd.f32 %v3111_v52, %v15360_v11  ;;  %10777 = vmatmul.msk.bf16.gmra.mxu1 %vm2180_vm3, %v3351_v43  ;;  %v3367_v31 = vpack.c.bf16 %v15524_v5, %v15515_v60 }
 0x5e6   : > { %v3211_v46 = vadd.f32 %v15404_v22, %v3176_v9  ;;  %10745 = vmatmul.msk.bf16.gmra.mxu0 %vm2180_vm3, %v3367_v31  ;;  %v3049_v31 = vpack.c.bf16 0.0, %v2694_v58 }
 0x5e7   : > { %v15534_v38 = vpop.f32.mrf.mxu2 }
 0x5e8   : > { %v3243_v12 = vadd.f32 %v3211_v46, %v17701_v63 }
 0x5e9   : > { %v15537_v29 = vpop.f32.mrf.mxu1 }
 0x5ea   : > { %v15541_v3 = vmax.f32 %v3243_v12, 0.0  ;;  %v17704_v12 = vld [vmem:[#allocation77_spill] sm:$0xff] }
 0x5eb   : > { %v3113_v11 = vpop.f32.mrf.mxu3 }
 0x5ec   : > { %v3177_v41 = vadd.f32 %v3113_v11, %v2997_v24  ;;  %v3352_v4 = vpack.c.bf16 %v15541_v3, %v15524_v5 }
 0x5ee   : > { %v3212_v36 = vadd.f32 %v15404_v22, %v3177_v41  ;;  %10809 = vmatmul.msk.bf16.gmra.mxu2 %vm2180_vm3, %v3352_v4  ;;  %v12850_v41 = vld [vmem:[#allocation9 + $0x28] sm:$0xff] }
 0x5ef   : > { %v3034_v27 = vpop.f32.mrf.mxu2  ;;  %4027 = vmatpush.bf16.msrb.mxu3 %v12850_v41 }
 0x5f0   : > { %v3244_v2 = vadd.f32 %v3212_v36, %v17702_v0  ;;  %10723 = vmatmul.msk.bf16.gmra.mxu3 %vm2180_vm3, %v15389_v1  ;;  %v17703_v1 = vld [vmem:[#allocation76_spill] sm:$0xff]  ;;  %v17705_v0 = vld [vmem:[#allocation78_spill] sm:$0xff] }
 0x5f1   : > { %v2873_v10 = vpop.f32.mrf.mxu1 }
 0x5f2   : > { %v15550_v45 = vmax.f32 %v3244_v2, 0.0  ;;  %v15552_v37 = vadd.f32 %v3034_v27, %v2873_v10 }
 0x5f3   : > { %v3116_v18 = vpop.f32.mrf.mxu3 }
 0x5f4   : > { %v3178_v21 = vadd.f32 %v3116_v18, %v15378_v59  ;;  %10778 = vmatmul.msk.bf16.gmra.mxu1 %vm2180_vm3, %v3352_v4  ;;  %v3368_v39 = vpack.c.bf16 %v15550_v45, %v15541_v3  ;;  %v3007_v18 = vadd.f32 %v15409_v55, %v15411_v57 }
 0x5f6   : > { %v3213_v43 = vadd.f32 %v15404_v22, %v3178_v21  ;;  %10746 = vmatmul.msk.bf16.gmra.mxu0 %vm2180_vm3, %v3368_v39  ;;  %v12846_v21 = vld [vmem:[#allocation9 + $0x8] sm:$0xff] }
 0x5f7   : > { %v15560_v34 = vpop.f32.mrf.mxu2  ;;  %v12854_v39 = vld [vmem:[#allocation9 + $0x48] sm:$0xff]  ;;  %4188 = vmatpush.bf16.msra.mxu0 %v12846_v21  ;;  %v17708_v21 = vld [vmem:[#allocation81_spill] sm:$0xff] }
 0x5f8   : > { %v3245_v16 = vadd.f32 %v3213_v43, %v17703_v1  ;;  %4305 = vmatpush.bf16.msrb.mxu1 %v12854_v39 }
 0x5f9   : > { %v15563_v50 = vpop.f32.mrf.mxu1 }
 0x5fa   : > { %v15567_v26 = vmax.f32 %v3245_v16, 0.0 }
 0x5fb   : > { %v3118_v59 = vpop.f32.mrf.mxu3 }
 0x5fc   : > { %v3179_v52 = vadd.f32 %v3118_v59, %v3002_v35  ;;  %v3353_v9 = vpack.c.bf16 %v15567_v26, %v15550_v45  ;;  %v17706_v59 = vld [vmem:[#allocation79_spill] sm:$0xff] }
 0x5fe   : > { %v3214_v46 = vadd.f32 %v15404_v22, %v3179_v52  ;;  %10810 = vmatmul.msk.bf16.gmra.mxu2 %vm2180_vm3, %v3353_v9 }
 0x5ff   : > { %v3039_v63 = vpop.f32.mrf.mxu2 }
 0x600   : > { %v3246_v24 = vadd.f32 %v3214_v46, %v17704_v12  ;;  %10724 = vmatmul.msk.bf16.gmra.mxu3 %vm2180_vm3, %v3049_v31 }
 0x601   : > { %v2878_v14 = vpop.f32.mrf.mxu1 }
 0x602   : > { %v15577_v44 = vmax.f32 %v3246_v24, 0.0  ;;  %v15579_v11 = vadd.f32 %v3039_v63, %v2878_v14  ;;  %v17707_v14 = vld [vmem:[#allocation80_spill] sm:$0xff] }
 0x603   : > { %v3121_v4 = vpop.f32.mrf.mxu3 }
 0x604   : > { %v3180_v36 = vadd.f32 %v3121_v4, %v15401_v25  ;;  %10779 = vmatmul.msk.bf16.gmra.mxu1 %vm2180_vm3, %v3353_v9  ;;  %v3369_v28 = vpack.c.bf16 %v15577_v44, %v15567_v26 }
 0x606   : > { %v3215_v58 = vadd.f32 %v15404_v22, %v3180_v36  ;;  %10747 = vmatmul.msk.bf16.gmra.mxu0 %vm2180_vm3, %v3369_v28  ;;  %v3012_v36 = vadd.f32 %v15433_v13, %v15436_v20 }
 0x607   : > { %v15587_v27 = vpop.f32.mrf.mxu2 }
 0x608   : > { %v3247_v2 = vadd.f32 %v3215_v58, %v17705_v0 }
 0x609   : > { %v15590_v10 = vpop.f32.mrf.mxu1 }
 0x60a   : > { %v15594_v25 = vmax.f32 %v3247_v2, 0.0  ;;  %v12849_v2 = vld [vmem:[#allocation9 + $0x20] sm:$0xff] }
 0x60b   : > { %v3123_v43 = vpop.f32.mrf.mxu3  ;;  %4028 = vmatpush.bf16.msrb.mxu3 %v12849_v2 }
 0x60c   : > { %v3181_v1 = vadd.f32 %v3123_v43, %v3007_v18  ;;  %v3354_v16 = vpack.c.bf16 %v15594_v25, %v15577_v44 }
 0x60e   : > { %v3216_v35 = vadd.f32 %v15404_v22, %v3181_v1  ;;  %10811 = vmatmul.msk.bf16.gmra.mxu2 %vm2180_vm3, %v3354_v16 }
 0x60f   : > { %v3044_v9 = vpop.f32.mrf.mxu2 }
 0x610   : > { %v3248_v52 = vadd.f32 %v3216_v35, %v17706_v59 }
 0x611   : > { %v2883_v31 = vpop.f32.mrf.mxu1 }
 0x612   : > { %v15601_v55 = vmax.f32 %v3248_v52, 0.0  ;;  %v15603_v57 = vadd.f32 %v3044_v9, %v2883_v31  ;;  %v17709_v52 = vld [vmem:[#allocation82_spill] sm:$0xff] }
 0x613   : > { %v3126_v46 = vpop.f32.mrf.mxu3 }
 0x614   : > { %v3182_v63 = vadd.f32 %v3126_v46, %v15425_v15  ;;  %10780 = vmatmul.msk.bf16.gmra.mxu1 %vm2180_vm3, %v3354_v16  ;;  %v3370_v12 = vpack.c.bf16 %v15601_v55, %v15594_v25 }
 0x616   : > { %v3217_v24 = vadd.f32 %v15404_v22, %v3182_v63  ;;  %10748 = vmatmul.msk.bf16.gmra.mxu0 %vm2180_vm3, %v3370_v12  ;;  %v3017_v63 = vadd.f32 %v15458_v19, %v15461_v51 }
 0x617   : > { %v15632_v31 = vpop.f32.mrf.mxu2 }
 0x618   : > { %v3249_v41 = vadd.f32 %v3217_v24, %v17707_v14 }
 0x619   : > { %v15612_v4 = vpop.f32.mrf.mxu1 }
 0x61a   : > { %v15616_v28 = vmax.f32 %v3249_v41, 0.0 }
 0x61b   : > { %v3128_v58 = vpop.f32.mrf.mxu3 }
 0x61c   : > { %v3183_v15 = vadd.f32 %v3128_v58, %v3012_v36  ;;  %v3355_v0 = vpack.c.bf16 %v15616_v28, %v15601_v55  ;;  %v17711_v58 = vld [vmem:[#allocation83_spill] sm:$0xff] }
 0x61e   : > { %v3218_v18 = vadd.f32 %v15404_v22, %v3183_v15  ;;  %10812 = vmatmul.msk.bf16.gmra.mxu2 %vm2180_vm3, %v3355_v0 }
 0x620   : > { %v3250_v39 = vadd.f32 %v3218_v18, %v17708_v21 }
 0x621   : > { %v3621_v43 = vpop.f32.mrf.mxu1 }
 0x622   : > { %v15623_v1 = vmax.f32 %v3250_v39, 0.0 }
 0x623   : > { %v3131_v16 = vpop.f32.mrf.mxu3  ;;  %v3460_v13 = vpop.f32.mrf.mxu0 }
 0x624   : > { %v3184_v20 = vadd.f32 %v3131_v16, %v15450_v48  ;;  %10781 = vmatmul.msk.bf16.gmra.mxu1 %vm2180_vm3, %v3355_v0  ;;  %v3371_v35 = vpack.c.bf16 %v15623_v1, %v15616_v28  ;;  %v3622_v21 = vadd.f32 %v3621_v43, %v3460_v13 }
 0x626   : > { %v3219_v59 = vadd.f32 %v15404_v22, %v3184_v20  ;;  %10749 = vmatmul.msk.bf16.gmra.mxu0 %vm2180_vm3, %v3371_v35  ;;  %v15650_v35 = vld [vmem:[%s17710_s7] ss:$0 sm:$0xff]  ;;  %s17763_s7 = sld [smem:[#allocation54_spill]] }
 0x628   : > { %v3251_v9 = vadd.f32 %v3219_v59, %v17709_v52 }
 0x629   : > { %v3623_v46 = vpop.f32.mrf.mxu1 }
 0x62a   : > { %v15636_v12 = vmax.f32 %v3251_v9, 0.0  ;;  %v17712_v9 = vld [vmem:[#allocation84_spill] sm:$0xff] }
 0x62b   : > { %v3133_v48 = vpop.f32.mrf.mxu3  ;;  %v3462_v24 = vpop.f32.mrf.mxu0 }
 0x62c   : > { %v3185_v14 = vadd.f32 %v3133_v48, %v3017_v63  ;;  %v3356_v41 = vpack.c.bf16 %v15636_v12, %v15623_v1  ;;  %v3624_v52 = vadd.f32 %v3623_v46, %v3462_v24 }
 0x62e   : > { %v3220_v36 = vadd.f32 %v15404_v22, %v3185_v14  ;;  %10813 = vmatmul.msk.bf16.gmra.mxu2 %vm2180_vm3, %v3356_v41 }
 0x630   : > { %v3252_v15 = vadd.f32 %v3220_v36, %v17711_v58 }
 0x631   : > { %v3626_v0 = vpop.f32.mrf.mxu1  ;;  %v3738_v2 = vpop.f32.mrf.mxu2 }
 0x632   : > { %v15643_v18 = vmax.f32 %v3252_v15, 0.0  ;;  %v3818_v20 = vadd.f32 %v3738_v2, %v3622_v21 }
 0x633   : > { %v3136_v19 = vpop.f32.mrf.mxu3  ;;  %v3465_v51 = vpop.f32.mrf.mxu0 }
 0x634   : > { %v3186_v39 = vadd.f32 %v3136_v19, %v15475_v30  ;;  %10782 = vmatmul.msk.bf16.gmra.mxu1 %vm2180_vm3, %v3356_v41  ;;  %v3372_v16 = vpack.c.bf16 %v15643_v18, %v15636_v12  ;;  %v3022_v30 = vadd.f32 %v15483_v54, %v15486_v32  ;;  %v15658_v43 = vadd.f32 %v15650_v35, %v3818_v20 }
 0x635   : > { %v3627_v54 = vadd.f32 %v3626_v0, %v3465_v51 }
 0x636   : > { %v3221_v59 = vadd.f32 %v15404_v22, %v3186_v39  ;;  %10750 = vmatmul.msk.bf16.gmra.mxu0 %vm2180_vm3, %v3372_v16  ;;  %v3885_v24 = vmax.f32 %v15658_v43, 0.0  ;;  %v17713_v39 = vld [vmem:[#allocation85_spill] sm:$0xff] }
 0x638   : > { %v3253_v63 = vadd.f32 %v3221_v59, %v17712_v9 }
 0x639   : > { %v3628_v48 = vpop.f32.mrf.mxu1  ;;  %v3740_v14 = vpop.f32.mrf.mxu2 }
 0x63a   : > { %v15660_v13 = vmax.f32 %v3253_v63, 0.0  ;;  %v3819_v41 = vadd.f32 %v3740_v14, %v3624_v52 }
 0x63b   : > { %v3138_v36 = vpop.f32.mrf.mxu3  ;;  %v3467_v58 = vpop.f32.mrf.mxu0 }
 0x63c   : > { %v3854_v15 = vadd.f32 %v15650_v35, %v3819_v41  ;;  %v3187_v2 = vadd.f32 %v3138_v36, %v3022_v30  ;;  %v3357_v46 = vpack.c.bf16 %v15660_v13, %v15643_v18 }
 0x63e   : > { %v3886_v19 = vmax.f32 %v3854_v15, 0.0  ;;  %v3222_v21 = vadd.f32 %v15404_v22, %v3187_v2  ;;  %10814 = vmatmul.msk.bf16.gmra.mxu2 %vm2180_vm3, %v3357_v46  ;;  %v3629_v15 = vadd.f32 %v3628_v48, %v3467_v58 }
 0x640   : > { %v3933_v32 = vpack.c.bf16 %v3886_v19, %v3885_v24  ;;  %v3254_v16 = vadd.f32 %v3222_v21, %v17713_v39  ;;  %v17714_v21 = vld [vmem:[#allocation86_spill] sm:$0xff] }
 0x641   : > { %v3631_v20 = vpop.f32.mrf.mxu1  ;;  %v3743_v59 = vpop.f32.mrf.mxu2 }
 0x642   : > { %v15671_v52 = vmax.f32 %v3254_v16, 0.0  ;;  %v3820_v9 = vadd.f32 %v3743_v59, %v3627_v54  ;;  %10837 = vmatmul.msk.bf16.vlgmr.msrb.gmra.mxu3 %vm2180_vm3, %v3933_v32  ;;  %v12845_v59 = vld [vmem:[#allocation9] sm:$0xff] }
 0x643   : > { %v3141_v63 = vpop.f32.mrf.mxu3  ;;  %v3470_v14 = vpop.f32.mrf.mxu0  ;;  %4189 = vmatpush.bf16.msra.mxu0 %v12845_v59 }
 0x644   : > { %v3855_v30 = vadd.f32 %v15650_v35, %v3820_v9  ;;  %v3188_v41 = vadd.f32 %v3141_v63, %v15500_v53  ;;  %10783 = vmatmul.msk.bf16.gmra.mxu1 %vm2180_vm3, %v3357_v46  ;;  %v3373_v0 = vpack.c.bf16 %v15671_v52, %v15660_v13  ;;  %v3027_v53 = vadd.f32 %v15508_v33, %v15511_v47  ;;  %v12853_v9 = vld [vmem:[#allocation9 + $0x40] sm:$0xff] }
 0x645   : > { %4306 = vmatpush.bf16.msrb.mxu1 %v12853_v9  ;;  %v3632_v33 = vadd.f32 %v3631_v20, %v3470_v14 }
 0x646   : > { %v3887_v51 = vmax.f32 %v3855_v30, 0.0  ;;  %v3223_v36 = vadd.f32 %v15404_v22, %v3188_v41  ;;  %10751 = vmatmul.msk.bf16.gmra.mxu0 %vm2180_vm3, %v3373_v0 }
 0x648   : > { %v15681_v2 = vpack.c.bf16 %v3887_v51, %v3886_v19  ;;  %v3255_v54 = vadd.f32 %v3223_v36, %v17714_v21  ;;  %v17715_v36 = vld [vmem:[#allocation87_spill] sm:$0xff] }
 0x649   : > { %v3633_v32 = vpop.f32.mrf.mxu1  ;;  %v3745_v39 = vpop.f32.mrf.mxu2 }
 0x64a   : > { %v15686_v16 = vmax.f32 %v3255_v54, 0.0  ;;  %v3821_v46 = vadd.f32 %v3745_v39, %v3629_v15 }
 0x64b   : > { %v3143_v63 = vpop.f32.mrf.mxu3  ;;  %v3472_v30 = vpop.f32.mrf.mxu0 }
 0x64c   : > { %v3856_v41 = vadd.f32 %v15650_v35, %v3821_v46  ;;  %v3189_v0 = vadd.f32 %v3143_v63, %v3027_v53  ;;  %v3358_v48 = vpack.c.bf16 %v15686_v16, %v15671_v52 }
 0x64e   : > { %v3888_v58 = vmax.f32 %v3856_v41, 0.0  ;;  %v3224_v19 = vadd.f32 %v15404_v22, %v3189_v0  ;;  %10815 = vmatmul.msk.bf16.gmra.mxu2 %vm2180_vm3, %v3358_v48  ;;  %v3634_v41 = vadd.f32 %v3633_v32, %v3472_v30 }
 0x650   : > { %v3934_v47 = vpack.c.bf16 %v3888_v58, %v3887_v51  ;;  %v3256_v15 = vadd.f32 %v3224_v19, %v17715_v36  ;;  %v17716_v19 = vld [vmem:[#allocation88_spill] sm:$0xff] }
 0x651   : > { %v3636_v21 = vpop.f32.mrf.mxu1  ;;  %v3748_v54 = vpop.f32.mrf.mxu2 }
 0x652   : > { %v15694_v39 = vmax.f32 %v3256_v15, 0.0  ;;  %v3822_v46 = vadd.f32 %v3748_v54, %v3632_v33  ;;  %10838 = vmatmul.msk.bf16.gmra.mxu3 %vm2180_vm3, %v3934_v47 }
 0x653   : > { %v3146_v53 = vpop.f32.mrf.mxu3  ;;  %v3475_v63 = vpop.f32.mrf.mxu0 }
 0x654   : > { %v3857_v59 = vadd.f32 %v15650_v35, %v3822_v46  ;;  %v3190_v9 = vadd.f32 %v3146_v53, %v15526_v7  ;;  %10784 = vmatmul.msk.bf16.gmra.mxu1 %vm2180_vm3, %v3358_v48  ;;  %v3374_v20 = vpack.c.bf16 %v15694_v39, %v15686_v16  ;;  %v3032_v7 = vadd.f32 %v15534_v38, %v15537_v29 }
 0x656   : > { %v3889_v14 = vmax.f32 %v3857_v59, 0.0  ;;  %v3225_v51 = vadd.f32 %v15404_v22, %v3190_v9  ;;  %10752 = vmatmul.msk.bf16.gmra.mxu0 %vm2180_vm3, %v3374_v20  ;;  %v3637_v9 = vadd.f32 %v3636_v21, %v3475_v63 }
 0x658   : > { %v15704_v0 = vpack.c.bf16 %v3889_v14, %v3888_v58  ;;  %v3257_v33 = vadd.f32 %v3225_v51, %v17716_v19  ;;  %v17717_v51 = vld [vmem:[#allocation89_spill] sm:$0xff] }
 0x659   : > { %v3638_v47 = vpop.f32.mrf.mxu1  ;;  %v3750_v36 = vpop.f32.mrf.mxu2 }
 0x65a   : > { %v15709_v15 = vmax.f32 %v3257_v33, 0.0  ;;  %v3823_v48 = vadd.f32 %v3750_v36, %v3634_v41 }
 0x65b   : > { %v3148_v54 = vpop.f32.mrf.mxu3  ;;  %v3477_v46 = vpop.f32.mrf.mxu0 }
 0x65c   : > { %v3858_v53 = vadd.f32 %v15650_v35, %v3823_v48  ;;  %v3191_v59 = vadd.f32 %v3148_v54, %v3032_v7  ;;  %v3359_v32 = vpack.c.bf16 %v15709_v15, %v15694_v39 }
 0x65e   : > { %v3890_v30 = vmax.f32 %v3858_v53, 0.0  ;;  %v3226_v58 = vadd.f32 %v15404_v22, %v3191_v59  ;;  %10816 = vmatmul.msk.bf16.gmra.mxu2 %vm2180_vm3, %v3359_v32  ;;  %v3639_v53 = vadd.f32 %v3638_v47, %v3477_v46 }
 0x660   : > { %v3935_v20 = vpack.c.bf16 %v3890_v30, %v3889_v14  ;;  %v3258_v38 = vadd.f32 %v3226_v58, %v17717_v51  ;;  %v17718_v58 = vld [vmem:[#allocation90_spill] sm:$0xff] }
 0x661   : > { %v3641_v29 = vpop.f32.mrf.mxu1  ;;  %v3753_v19 = vpop.f32.mrf.mxu2 }
 0x662   : > { %v15717_v41 = vmax.f32 %v3258_v38, 0.0  ;;  %v3824_v33 = vadd.f32 %v3753_v19, %v3637_v9  ;;  %10839 = vmatmul.msk.bf16.gmra.mxu3 %vm2180_vm3, %v3935_v20 }
 0x663   : > { %v3151_v36 = vpop.f32.mrf.mxu3  ;;  %v3480_v7 = vpop.f32.mrf.mxu0 }
 0x664   : > { %v3859_v48 = vadd.f32 %v15650_v35, %v3824_v33  ;;  %v3192_v54 = vadd.f32 %v3151_v36, %v15552_v37  ;;  %10785 = vmatmul.msk.bf16.gmra.mxu1 %vm2180_vm3, %v3359_v32  ;;  %v3375_v21 = vpack.c.bf16 %v15717_v41, %v15709_v15  ;;  %v3037_v37 = vadd.f32 %v15560_v34, %v15563_v50 }
 0x666   : > { %v3891_v63 = vmax.f32 %v3859_v48, 0.0  ;;  %v3227_v14 = vadd.f32 %v15404_v22, %v3192_v54  ;;  %10753 = vmatmul.msk.bf16.gmra.mxu0 %vm2180_vm3, %v3375_v21  ;;  %v3642_v54 = vadd.f32 %v3641_v29, %v3480_v7 }
 0x668   : > { %v15727_v59 = vpack.c.bf16 %v3891_v63, %v3890_v30  ;;  %v3259_v9 = vadd.f32 %v3227_v14, %v17718_v58  ;;  %v17719_v14 = vld [vmem:[#allocation91_spill] sm:$0xff] }
 0x669   : > { %v3643_v20 = vpop.f32.mrf.mxu1  ;;  %v3755_v51 = vpop.f32.mrf.mxu2 }
 0x66a   : > { %v15732_v38 = vmax.f32 %v3259_v9, 0.0  ;;  %v3825_v32 = vadd.f32 %v3755_v51, %v3639_v53 }
 0x66b   : > { %v3153_v19 = vpop.f32.mrf.mxu3  ;;  %v3482_v33 = vpop.f32.mrf.mxu0 }
 0x66c   : > { %v3860_v36 = vadd.f32 %v15650_v35, %v3825_v32  ;;  %v3193_v48 = vadd.f32 %v3153_v19, %v3037_v37  ;;  %v3360_v47 = vpack.c.bf16 %v15732_v38, %v15717_v41 }
 0x66e   : > { %v3892_v46 = vmax.f32 %v3860_v36, 0.0  ;;  %v3228_v30 = vadd.f32 %v15404_v22, %v3193_v48  ;;  %10817 = vmatmul.msk.bf16.gmra.mxu2 %vm2180_vm3, %v3360_v47  ;;  %v3644_v36 = vadd.f32 %v3643_v20, %v3482_v33 }
 0x670   : > { %v3936_v21 = vpack.c.bf16 %v3892_v46, %v3891_v63  ;;  %v3260_v34 = vadd.f32 %v3228_v30, %v17719_v14  ;;  %v17720_v30 = vld [vmem:[#allocation92_spill] sm:$0xff] }
 0x671   : > { %v3646_v50 = vpop.f32.mrf.mxu1  ;;  %v3758_v58 = vpop.f32.mrf.mxu2 }
 0x672   : > { %v15740_v53 = vmax.f32 %v3260_v34, 0.0  ;;  %v3826_v9 = vadd.f32 %v3758_v58, %v3642_v54  ;;  %10840 = vmatmul.msk.bf16.gmra.mxu3 %vm2180_vm3, %v3936_v21 }
 0x673   : > { %v3156_v51 = vpop.f32.mrf.mxu3  ;;  %v3485_v37 = vpop.f32.mrf.mxu0 }
 0x674   : > { %v3861_v32 = vadd.f32 %v15650_v35, %v3826_v9  ;;  %v3194_v19 = vadd.f32 %v3156_v51, %v15579_v11  ;;  %10786 = vmatmul.msk.bf16.gmra.mxu1 %vm2180_vm3, %v3360_v47  ;;  %v3376_v29 = vpack.c.bf16 %v15740_v53, %v15732_v38  ;;  %v3042_v11 = vadd.f32 %v15587_v27, %v15590_v10 }
 0x676   : > { %v3893_v7 = vmax.f32 %v3861_v32, 0.0  ;;  %v3229_v63 = vadd.f32 %v15404_v22, %v3194_v19  ;;  %10754 = vmatmul.msk.bf16.gmra.mxu0 %vm2180_vm3, %v3376_v29  ;;  %v3647_v19 = vadd.f32 %v3646_v50, %v3485_v37 }
 0x678   : > { %v15750_v48 = vpack.c.bf16 %v3893_v7, %v3892_v46  ;;  %v3261_v54 = vadd.f32 %v3229_v63, %v17720_v30  ;;  %v17722_v63 = vld [vmem:[#allocation93_spill] sm:$0xff] }
 0x679   : > { %v3648_v21 = vpop.f32.mrf.mxu1  ;;  %v3760_v14 = vpop.f32.mrf.mxu2 }
 0x67a   : > { %v15755_v34 = vmax.f32 %v3261_v54, 0.0  ;;  %v3827_v47 = vadd.f32 %v3760_v14, %v3644_v36 }
 0x67b   : > { %v3158_v58 = vpop.f32.mrf.mxu3  ;;  %v3487_v9 = vpop.f32.mrf.mxu0 }
 0x67c   : > { %17721 = vst [vmem:[#allocation95_spill] sm:$0xff] %v15755_v34  ;;  %v3862_v51 = vadd.f32 %v15650_v35, %v3827_v47  ;;  %v3195_v32 = vadd.f32 %v3158_v58, %v3042_v11  ;;  %v3361_v20 = vpack.c.bf16 %v15755_v34, %v15740_v53 }
 0x67e   : > { %v3894_v33 = vmax.f32 %v3862_v51, 0.0  ;;  %v3230_v46 = vadd.f32 %v15404_v22, %v3195_v32  ;;  %10818 = vmatmul.msk.bf16.gmra.mxu2 %vm2180_vm3, %v3361_v20  ;;  %v3649_v51 = vadd.f32 %v3648_v21, %v3487_v9 }
 0x680   : > { %v3937_v29 = vpack.c.bf16 %v3894_v33, %v3893_v7  ;;  %v3262_v27 = vadd.f32 %v3230_v46, %v17722_v63  ;;  %v17723_v46 = vld [vmem:[#allocation94_spill] sm:$0xff] }
 0x681   : > { %v3651_v10 = vpop.f32.mrf.mxu1  ;;  %v3763_v30 = vpop.f32.mrf.mxu2 }
 0x682   : > { %v15763_v36 = vmax.f32 %v3262_v27, 0.0  ;;  %v3828_v54 = vadd.f32 %v3763_v30, %v3647_v19  ;;  %10841 = vmatmul.msk.bf16.gmra.mxu3 %vm2180_vm3, %v3937_v29 }
 0x683   : > { %v3161_v14 = vpop.f32.mrf.mxu3  ;;  %v3490_v11 = vpop.f32.mrf.mxu0 }
 0x684   : > { %v3863_v47 = vadd.f32 %v15650_v35, %v3828_v54  ;;  %v3196_v58 = vadd.f32 %v3161_v14, %v15603_v57  ;;  %10787 = vmatmul.msk.bf16.gmra.mxu1 %vm2180_vm3, %v3361_v20  ;;  %v3377_v50 = vpack.c.bf16 %v15763_v36, %v15755_v34  ;;  %v3047_v57 = vadd.f32 %v15632_v31, %v15612_v4  ;;  %v12864_v31 = vld [vmem:[#allocation11 + $0x38] sm:$0xff] }
 0x685   : > { %4670 = vmatpush.bf16.msrb.mxu2 %v12864_v31 }
 0x686   : > { %v3895_v37 = vmax.f32 %v3863_v47, 0.0  ;;  %v3231_v7 = vadd.f32 %v15404_v22, %v3196_v58  ;;  %10755 = vmatmul.msk.bf16.gmra.mxu0 %vm2180_vm3, %v3377_v50  ;;  %v3652_v58 = vadd.f32 %v3651_v10, %v3490_v11 }
 0x688   : > { %v15773_v32 = vpack.c.bf16 %v3895_v37, %v3894_v33  ;;  %v3263_v19 = vadd.f32 %v3231_v7, %v17723_v46 }
 0x689   : > { %v3653_v29 = vpop.f32.mrf.mxu1  ;;  %v3765_v63 = vpop.f32.mrf.mxu2 }
 0x68a   : > { %v15778_v27 = vmax.f32 %v3263_v19, 0.0  ;;  %v3829_v20 = vadd.f32 %v3765_v63, %v3649_v51 }
 0x68b   : > { %v3163_v30 = vpop.f32.mrf.mxu3  ;;  %v3492_v54 = vpop.f32.mrf.mxu0 }
 0x68c   : > { %17724 = vst [vmem:[#allocation96_spill] sm:$0xff] %v15778_v27  ;;  %v3864_v14 = vadd.f32 %v15650_v35, %v3829_v20  ;;  %v3197_v47 = vadd.f32 %v3163_v30, %v3047_v57  ;;  %v3362_v21 = vpack.c.bf16 %v15778_v27, %v15763_v36 }
 0x68e   : > { %v3896_v9 = vmax.f32 %v3864_v14, 0.0  ;;  %v3232_v33 = vadd.f32 %v15404_v22, %v3197_v47  ;;  %10819 = vmatmul.msk.bf16.gmra.mxu2 %vm2180_vm3, %v3362_v21 }
 0x690   : > { %v3938_v50 = vpack.c.bf16 %v3896_v9, %v3895_v37  ;;  %v3264_v4 = vadd.f32 %v3232_v33, %v15117_v40  ;;  %v3654_v40 = vadd.f32 %v3653_v29, %v3492_v54  ;;  %v3917_v54 = vpack.c.bf16 %v3885_v24, %v17687_v62 }
 0x691   : > { %v3656_v7 = vpop.f32.mrf.mxu1  ;;  %v3768_v51 = vpop.f32.mrf.mxu2 }
 0x692   : > { %v15786_v46 = vmax.f32 %v3264_v4, 0.0  ;;  %v3830_v19 = vadd.f32 %v3768_v51, %v3652_v58  ;;  %10842 = vmatmul.msk.bf16.gmra.mxu3 %vm2180_vm3, %v3938_v50 }
 0x693   : > { %v3495_v63 = vpop.f32.mrf.mxu0 }
 0x694   : > { %17725 = vst [vmem:[#allocation64_spill] sm:$0xff] %v15786_v46  ;;  %v3865_v57 = vadd.f32 %v15650_v35, %v3830_v19  ;;  %10788 = vmatmul.msk.bf16.gmra.mxu1 %vm2180_vm3, %v3362_v21  ;;  %v3378_v22 = vpack.c.bf16 %v15786_v46, %v15778_v27  ;;  %v3701_v33 = vpack.c.bf16 0.0, %v15786_v46  ;;  %v3657_v21 = vadd.f32 %v3656_v7, %v3495_v63 }
 0x696   : > { %v3897_v10 = vmax.f32 %v3865_v57, 0.0  ;;  %10756 = vmatmul.msk.bf16.gmra.mxu0 %vm2180_vm3, %v3378_v22 }
 0x698   : > { %v15794_v11 = vpack.c.bf16 %v3897_v10, %v3896_v9 }
 0x699   : > { %v3658_v37 = vpop.f32.mrf.mxu1  ;;  %v3770_v20 = vpop.f32.mrf.mxu2 }
 0x69a   : > { %v3831_v30 = vadd.f32 %v3770_v20, %v3654_v40 }
 0x69b   : > { %v3497_v14 = vpop.f32.mrf.mxu0 }
 0x69c   : > { %v3866_v47 = vadd.f32 %v15650_v35, %v3831_v30  ;;  %v3659_v7 = vadd.f32 %v3658_v37, %v3497_v14 }
 0x69e   : > { %v3898_v58 = vmax.f32 %v3866_v47, 0.0  ;;  %10820 = vmatmul.msk.bf16.gmra.mxu2 %vm2180_vm3, %v3701_v33 }
 0x6a0   : > { %v3939_v50 = vpack.c.bf16 %v3898_v58, %v3897_v10 }
 0x6a1   : > { %v3661_v4 = vpop.f32.mrf.mxu1  ;;  %v3773_v31 = vpop.f32.mrf.mxu2 }
 0x6a2   : > { %v3832_v51 = vadd.f32 %v3773_v31, %v3657_v21  ;;  %10843 = vmatmul.msk.bf16.gmra.mxu3 %vm2180_vm3, %v3939_v50 }
 0x6a3   : > { %v3500_v29 = vpop.f32.mrf.mxu0 }
 0x6a4   : > { %v3867_v9 = vadd.f32 %v15650_v35, %v3832_v51  ;;  %10901 = vmatmul.msk.bf16.vlgmr.msrb.gmra.mxu1 %vm2180_vm3, %v15681_v2  ;;  %v3662_v43 = vadd.f32 %v3661_v4, %v3500_v29 }
 0x6a6   : > { %v3899_v19 = vmax.f32 %v3867_v9, 0.0  ;;  %10869 = vmatmul.msk.bf16.vlgmr.msra.gmra.mxu0 %vm2180_vm3, %v3917_v54 }
 0x6a8   : > { %v15807_v63 = vpack.c.bf16 %v3899_v19, %v3898_v58 }
 0x6a9   : > { %v3663_v57 = vpop.f32.mrf.mxu1  ;;  %v3775_v22 = vpop.f32.mrf.mxu2 }
 0x6aa   : > { %v3833_v10 = vadd.f32 %v3775_v22, %v3659_v7 }
 0x6ab   : > { %v3502_v40 = vpop.f32.mrf.mxu0 }
 0x6ac   : > { %v3868_v20 = vadd.f32 %v15650_v35, %v3833_v10  ;;  %v3664_v14 = vadd.f32 %v3663_v57, %v3502_v40 }
 0x6ae   : > { %v3900_v30 = vmax.f32 %v3868_v20, 0.0 }
 0x6b0   : > { %v3940_v24 = vpack.c.bf16 %v3900_v30, %v3899_v19 }
 0x6b1   : > { %v3666_v47 = vpop.f32.mrf.mxu1  ;;  %v3778_v33 = vpop.f32.mrf.mxu2 }
 0x6b2   : > { %v3834_v21 = vadd.f32 %v3778_v33, %v3662_v43  ;;  %10844 = vmatmul.msk.bf16.gmra.mxu3 %vm2180_vm3, %v3940_v24 }
 0x6b3   : > { %v3505_v50 = vpop.f32.mrf.mxu0 }
 0x6b4   : > { %v3869_v31 = vadd.f32 %v15650_v35, %v3834_v21  ;;  %10902 = vmatmul.msk.bf16.gmra.mxu1 %vm2180_vm3, %v15704_v0  ;;  %v3667_v7 = vadd.f32 %v3666_v47, %v3505_v50 }
 0x6b6   : > { %v3901_v37 = vmax.f32 %v3869_v31, 0.0  ;;  %10870 = vmatmul.msk.bf16.gmra.mxu0 %vm2180_vm3, %v15681_v2 }
 0x6b8   : > { %v15816_v58 = vpack.c.bf16 %v3901_v37, %v3900_v30 }
 0x6b9   : > { %v3668_v4 = vpop.f32.mrf.mxu1  ;;  %v3780_v51 = vpop.f32.mrf.mxu2 }
 0x6ba   : > { %v3835_v29 = vadd.f32 %v3780_v51, %v3664_v14 }
 0x6bb   : > { %v3507_v54 = vpop.f32.mrf.mxu0 }
 0x6bc   : > { %v3870_v9 = vadd.f32 %v15650_v35, %v3835_v29  ;;  %v3669_v40 = vadd.f32 %v3668_v4, %v3507_v54  ;;  %v12863_v29 = vld [vmem:[#allocation11 + $0x30] sm:$0xff] }
 0x6bd   : > { %4671 = vmatpush.bf16.msrb.mxu2 %v12863_v29 }
 0x6be   : > { %v3902_v19 = vmax.f32 %v3870_v9, 0.0 }
 0x6c0   : > { %v3941_v22 = vpack.c.bf16 %v3902_v19, %v3901_v37 }
 0x6c1   : > { %v3671_v10 = vpop.f32.mrf.mxu1  ;;  %v3783_v20 = vpop.f32.mrf.mxu2 }
 0x6c2   : > { %v3836_v43 = vadd.f32 %v3783_v20, %v3667_v7  ;;  %10845 = vmatmul.msk.bf16.gmra.mxu3 %vm2180_vm3, %v3941_v22 }
 0x6c3   : > { %v3510_v24 = vpop.f32.mrf.mxu0 }
 0x6c4   : > { %v3871_v2 = vadd.f32 %v15650_v35, %v3836_v43  ;;  %10903 = vmatmul.msk.bf16.gmra.mxu1 %vm2180_vm3, %v15727_v59  ;;  %v3672_v14 = vadd.f32 %v3671_v10, %v3510_v24 }
 0x6c6   : > { %v3903_v57 = vmax.f32 %v3871_v2, 0.0  ;;  %10871 = vmatmul.msk.bf16.gmra.mxu0 %vm2180_vm3, %v15704_v0 }
 0x6c8   : > { %v15825_v30 = vpack.c.bf16 %v3903_v57, %v3902_v19 }
 0x6c9   : > { %v3673_v47 = vpop.f32.mrf.mxu1  ;;  %v3785_v33 = vpop.f32.mrf.mxu2 }
 0x6ca   : > { %v3837_v21 = vadd.f32 %v3785_v33, %v3669_v40 }
 0x6cb   : > { %v3512_v50 = vpop.f32.mrf.mxu0 }
 0x6cc   : > { %v3872_v31 = vadd.f32 %v15650_v35, %v3837_v21  ;;  %v3674_v19 = vadd.f32 %v3673_v47, %v3512_v50  ;;  %v15841_v47 = vpop.f32.mrf.mxu3 }
 0x6ce   : > { %v3904_v37 = vmax.f32 %v3872_v31, 0.0 }
 0x6d0   : > { %v3942_v51 = vpack.c.bf16 %v3904_v37, %v3903_v57 }
 0x6d1   : > { %v3676_v9 = vpop.f32.mrf.mxu1  ;;  %v3788_v7 = vpop.f32.mrf.mxu2 }
 0x6d2   : > { %v3838_v22 = vadd.f32 %v3788_v7, %v3672_v14  ;;  %10846 = vmatmul.msk.bf16.gmra.mxu3 %vm2180_vm3, %v3942_v51 }
 0x6d3   : > { %v3515_v0 = vpop.f32.mrf.mxu0 }
 0x6d4   : > { %v3873_v4 = vadd.f32 %v15650_v35, %v3838_v22  ;;  %10904 = vmatmul.msk.bf16.gmra.mxu1 %vm2180_vm3, %v15750_v48  ;;  %v3677_v33 = vadd.f32 %v3676_v9, %v3515_v0 }
 0x6d6   : > { %v3905_v54 = vmax.f32 %v3873_v4, 0.0  ;;  %10872 = vmatmul.msk.bf16.gmra.mxu0 %vm2180_vm3, %v15727_v59 }
 0x6d8   : > { %v15834_v10 = vpack.c.bf16 %v3905_v54, %v3904_v37 }
 0x6d9   : > { %v3678_v20 = vpop.f32.mrf.mxu1  ;;  %v3790_v43 = vpop.f32.mrf.mxu2 }
 0x6da   : > { %v3839_v24 = vadd.f32 %v3790_v43, %v3674_v19  ;;  %v15848_v43 = vpop.f32.mrf.mxu3 }
 0x6db   : > { %v3517_v2 = vpop.f32.mrf.mxu0 }
 0x6dc   : > { %v3874_v57 = vadd.f32 %v15650_v35, %v3839_v24  ;;  %v3679_v37 = vadd.f32 %v3678_v20, %v3517_v2 }
 0x6de   : > { %v3906_v40 = vmax.f32 %v3874_v57, 0.0 }
 0x6e0   : > { %v3943_v21 = vpack.c.bf16 %v3906_v40, %v3905_v54 }
 0x6e1   : > { %v3681_v31 = vpop.f32.mrf.mxu1  ;;  %v3793_v14 = vpop.f32.mrf.mxu2 }
 0x6e2   : > { %v3840_v51 = vadd.f32 %v3793_v14, %v3677_v33  ;;  %10847 = vmatmul.msk.bf16.gmra.mxu3 %vm2180_vm3, %v3943_v21 }
 0x6e3   : > { %v3520_v29 = vpop.f32.mrf.mxu0 }
 0x6e4   : > { %v3875_v59 = vadd.f32 %v15650_v35, %v3840_v51  ;;  %10905 = vmatmul.msk.bf16.gmra.mxu1 %vm2180_vm3, %v15773_v32  ;;  %v3682_v24 = vadd.f32 %v3681_v31, %v3520_v29 }
 0x6e6   : > { %v3907_v50 = vmax.f32 %v3875_v59, 0.0  ;;  %10873 = vmatmul.msk.bf16.gmra.mxu0 %vm2180_vm3, %v15750_v48  ;;  %v15858_v59 = vpop.f32.mrf.mxu3 }
 0x6e8   : > { %v15845_v9 = vpack.c.bf16 %v3907_v50, %v3906_v40 }
 0x6e9   : > { %v3683_v7 = vpop.f32.mrf.mxu1  ;;  %v3795_v22 = vpop.f32.mrf.mxu2 }
 0x6ea   : > { %v3841_v0 = vadd.f32 %v3795_v22, %v3679_v37 }
 0x6eb   : > { %v3522_v4 = vpop.f32.mrf.mxu0 }
 0x6ec   : > { %v3876_v54 = vadd.f32 %v15650_v35, %v3841_v0  ;;  %v3684_v40 = vadd.f32 %v3683_v7, %v3522_v4 }
 0x6ee   : > { %v3908_v19 = vmax.f32 %v3876_v54, 0.0  ;;  %v15862_v7 = vpop.f32.mrf.mxu3 }
 0x6f0   : > { %v3944_v57 = vpack.c.bf16 %v3908_v19, %v3907_v50 }
 0x6f1   : > { %v3686_v33 = vpop.f32.mrf.mxu1  ;;  %v3798_v21 = vpop.f32.mrf.mxu2 }
 0x6f2   : > { %v3842_v14 = vadd.f32 %v3798_v21, %v3682_v24  ;;  %10848 = vmatmul.msk.bf16.gmra.mxu3 %vm2180_vm3, %v3944_v57 }
 0x6f3   : > { %v3525_v48 = vpop.f32.mrf.mxu0 }
 0x6f4   : > { %v3877_v20 = vadd.f32 %v15650_v35, %v3842_v14  ;;  %10906 = vmatmul.msk.bf16.gmra.mxu1 %vm2180_vm3, %v15794_v11  ;;  %v3687_v54 = vadd.f32 %v3686_v33, %v3525_v48 }
 0x6f6   : > { %v3909_v2 = vmax.f32 %v3877_v20, 0.0  ;;  %10874 = vmatmul.msk.bf16.gmra.mxu0 %vm2180_vm3, %v15773_v32 }
 0x6f8   : > { %v15856_v51 = vpack.c.bf16 %v3909_v2, %v3908_v19 }
 0x6f9   : > { %v3688_v31 = vpop.f32.mrf.mxu1  ;;  %v3800_v29 = vpop.f32.mrf.mxu2 }
 0x6fa   : > { %v3843_v50 = vadd.f32 %v3800_v29, %v3684_v40 }
 0x6fb   : > { %v3527_v37 = vpop.f32.mrf.mxu0 }
 0x6fc   : > { %v3878_v22 = vadd.f32 %v15650_v35, %v3843_v50  ;;  %v3689_v20 = vadd.f32 %v3688_v31, %v3527_v37  ;;  %v12859_v37 = vld [vmem:[#allocation11 + $0x10] sm:$0xff] }
 0x6fe   : > { %v3910_v0 = vmax.f32 %v3878_v22, 0.0  ;;  %v15872_v22 = vpop.f32.mrf.mxu3 }
 0x700   : > { %v3945_v24 = vpack.c.bf16 %v3910_v0, %v3909_v2 }
 0x701   : > { %v3691_v57 = vpop.f32.mrf.mxu1  ;;  %v3803_v21 = vpop.f32.mrf.mxu2 }
 0x702   : > { %v3844_v14 = vadd.f32 %v3803_v21, %v3687_v54  ;;  %10849 = vmatmul.msk.bf16.gmra.mxu3 %vm2180_vm3, %v3945_v24 }
 0x703   : > { %v3530_v32 = vpop.f32.mrf.mxu0 }
 0x704   : > { %v3879_v4 = vadd.f32 %v15650_v35, %v3844_v14  ;;  %10907 = vmatmul.msk.bf16.gmra.mxu1 %vm2180_vm3, %v15807_v63  ;;  %v3692_v24 = vadd.f32 %v3691_v57, %v3530_v32  ;;  %v12862_v57 = vld [vmem:[#allocation11 + $0x28] sm:$0xff] }
 0x705   : > { %4672 = vmatpush.bf16.msrb.mxu2 %v12862_v57 }
 0x706   : > { %v3911_v19 = vmax.f32 %v3879_v4, 0.0  ;;  %10875 = vmatmul.msk.bf16.gmra.mxu0 %vm2180_vm3, %v15794_v11  ;;  %v12860_v4 = vld [vmem:[#allocation11 + $0x18] sm:$0xff]  ;;  %v15880_v32 = vpop.f32.mrf.mxu3 }
 0x707   : > { %4767 = vmatpush.bf16.msra.mxu3 %v12860_v4  ;;  %v12857_v4 = vld [vmem:[#allocation11] sm:$0xff] }
 0x708   : > { %v15869_v33 = vpack.c.bf16 %v3911_v19, %v3910_v0 }
 0x709   : > { %v3693_v48 = vpop.f32.mrf.mxu1  ;;  %v3805_v2 = vpop.f32.mrf.mxu2 }
 0x70a   : > { %v3845_v40 = vadd.f32 %v3805_v2, %v3689_v20 }
 0x70b   : > { %v3532_v29 = vpop.f32.mrf.mxu0  ;;  %4768 = vmatpush.bf16.msra.mxu3 %v12859_v37 }
 0x70c   : > { %v3880_v50 = vadd.f32 %v15650_v35, %v3845_v40  ;;  %v12858_v40 = vld [vmem:[#allocation11 + $0x8] sm:$0xff] }
 0x70e   : > { %v3912_v54 = vmax.f32 %v3880_v50, 0.0 }
 0x70f   : > { %4769 = vmatpush.bf16.msra.mxu3 %v12858_v40 }
 0x710   : > { %v3946_v21 = vpack.c.bf16 %v3912_v54, %v3911_v19  ;;  %v3694_v19 = vadd.f32 %v3693_v48, %v3532_v29 }
 0x711   : > { %v3696_v14 = vpop.f32.mrf.mxu1  ;;  %v3808_v46 = vpop.f32.mrf.mxu2 }
 0x712   : > { %v3846_v27 = vadd.f32 %v3808_v46, %v3692_v24  ;;  %10850 = vmatmul.msk.bf16.gmra.mxu3 %vm2180_vm3, %v3946_v21  ;;  %v12861_v24 = vld [vmem:[#allocation11 + $0x20] sm:$0xff] }
 0x713   : > { %v3535_v11 = vpop.f32.mrf.mxu0  ;;  %4673 = vmatpush.bf16.msrb.mxu2 %v12861_v24  ;;  %4770 = vmatpush.bf16.msra.mxu3 %v12857_v4 }
 0x714   : > { %v3881_v31 = vadd.f32 %v15650_v35, %v3846_v27  ;;  %10908 = vmatmul.msk.bf16.gmra.mxu1 %vm2180_vm3, %v15816_v58 }
 0x716   : > { %v3913_v0 = vmax.f32 %v3881_v31, 0.0  ;;  %10876 = vmatmul.msk.bf16.gmra.mxu0 %vm2180_vm3, %v15807_v63  ;;  %v3697_v31 = vadd.f32 %v3696_v14, %v3535_v11 }
 0x718   : > { %v15882_v46 = vpack.c.bf16 %v3913_v0, %v3912_v54  ;;  %v15886_v54 = vpop.f32.mrf.mxu3 }
 0x719   : > { %v3698_v20 = vpop.f32.mrf.mxu1  ;;  %v3810_v2 = vpop.f32.mrf.mxu2 }
 0x71a   : > { %v3847_v27 = vadd.f32 %v3810_v2, %v3694_v19 }
 0x71b   : > { %v3537_v50 = vpop.f32.mrf.mxu0 }
 0x71c   : > { %v3882_v21 = vadd.f32 %v15650_v35, %v3847_v27  ;;  %v3699_v14 = vadd.f32 %v3698_v20, %v3537_v50 }
 0x71e   : > { %v3914_v63 = vmax.f32 %v3882_v21, 0.0 }
 0x720   : > { %v3947_v37 = vpack.c.bf16 %v3914_v63, %v3913_v0 }
 0x721   : > { %v3813_v34 = vpop.f32.mrf.mxu2  ;;  %v4308_v48 = vpop.f32.mrf.mxu1 }
 0x722   : > { %v3848_v29 = vadd.f32 %v3813_v34, %v3697_v31  ;;  %10851 = vmatmul.msk.bf16.gmra.mxu3 %vm2180_vm3, %v3947_v37  ;;  %v15900_v31 = vpop.f32.mrf.mxu3 }
 0x723   : > { %v4191_v57 = vpop.f32.mrf.mxu0 }
 0x724   : > { %v3883_v19 = vadd.f32 %v15650_v35, %v3848_v29  ;;  %10909 = vmatmul.msk.bf16.gmra.mxu1 %vm2180_vm3, %v15825_v30  ;;  %v4192_v24 = vadd.f32 %v4191_v57, %v15841_v47 }
 0x726   : > { %v3915_v2 = vmax.f32 %v3883_v19, 0.0  ;;  %10877 = vmatmul.msk.bf16.gmra.mxu0 %vm2180_vm3, %v15816_v58  ;;  %v4388_v29 = vadd.f32 %v4308_v48, %v4192_v24  ;;  %v15904_v58 = vld [vmem:[%s17726_s2] ss:$0 sm:$0xff]  ;;  %s17779_s2 = sld [smem:[#allocation55_spill]] }
 0x728   : > { %v15893_v11 = vpack.c.bf16 %v3915_v2, %v3914_v63 }
 0x729   : > { %v3815_v0 = vpop.f32.mrf.mxu2  ;;  %v4310_v34 = vpop.f32.mrf.mxu1 }
 0x72a   : > { %v3849_v40 = vadd.f32 %v3815_v0, %v3699_v14  ;;  %v15916_v19 = vpop.f32.mrf.mxu3 }
 0x72b   : > { %v4193_v27 = vpop.f32.mrf.mxu0 }
 0x72c   : > { %v15897_v21 = vadd.f32 %v15650_v35, %v3849_v40  ;;  %v4194_v4 = vadd.f32 %v4193_v27, %v15848_v43  ;;  %v4423_v35 = vadd.f32 %v15904_v58, %v4388_v29 }
 0x72e   : > { %v3916_v37 = vmax.f32 %v15897_v21, 0.0  ;;  %v4389_v50 = vadd.f32 %v4310_v34, %v4194_v4 }
 0x730   : > { %v3948_v20 = vpack.c.bf16 %v3916_v37, %v3915_v2  ;;  %v4424_v57 = vadd.f32 %v15904_v58, %v4389_v50  ;;  %v4455_v2 = vadd.f32 %v4423_v35, %v15415_v8 }
 0x731   : > { %v4313_v63 = vpop.f32.mrf.mxu1 }
 0x732   : > { %10852 = vmatmul.msk.bf16.gmra.mxu3 %vm2180_vm3, %v3948_v20  ;;  %v4456_v14 = vadd.f32 %v4424_v57, %v15423_v23  ;;  %v4052_v23 = vpop.f32.mrf.mxu3 }
 0x733   : > { %v4196_v47 = vpop.f32.mrf.mxu0 }
 0x734   : > { %v4197_v43 = vadd.f32 %v4196_v47, %v15858_v59  ;;  %10910 = vmatmul.msk.bf16.gmra.mxu1 %vm2180_vm3, %v15834_v10  ;;  %v4487_v59 = vmax.f32 %v4455_v2, 0.0  ;;  %v4488_v24 = vmax.f32 %v4456_v14, 0.0 }
 0x736   : > { %v4390_v48 = vadd.f32 %v4313_v63, %v4197_v43  ;;  %10878 = vmatmul.msk.bf16.gmra.mxu0 %vm2180_vm3, %v15825_v30  ;;  %v4602_v50 = vpack.c.bf16 %v4488_v24, %v17687_v62 }
 0x738   : > { %v4425_v0 = vadd.f32 %v15904_v58, %v4390_v48 }
 0x739   : > { %v4315_v34 = vpop.f32.mrf.mxu1 }
 0x73a   : > { %v4457_v40 = vadd.f32 %v4425_v0, %v15438_v56  ;;  %v4055_v43 = vpop.f32.mrf.mxu3 }
 0x73b   : > { %v4198_v27 = vpop.f32.mrf.mxu0 }
 0x73c   : > { %v4489_v4 = vmax.f32 %v4457_v40, 0.0  ;;  %v4199_v29 = vadd.f32 %v4198_v27, %v15862_v7 }
 0x73e   : > { %v15923_v20 = vpack.c.bf16 %v4489_v4, %v4487_v59  ;;  %v4391_v30 = vadd.f32 %v4315_v34, %v4199_v29 }
 0x740   : > { %v4426_v8 = vadd.f32 %v15904_v58, %v4391_v30  ;;  %10933 = vmatmul.msk.bf16.vlgmr.msrb.gmra.mxu2 %vm2180_vm3, %v15923_v20 }
 0x741   : > { %v4318_v63 = vpop.f32.mrf.mxu1 }
 0x742   : > { %v4458_v56 = vadd.f32 %v4426_v8, %v15448_v17  ;;  %10957 = vmatmul.msk.bf16.vlgmr.msra.gmra.mxu3 %vm2180_vm3, %v4602_v50  ;;  %v4057_v29 = vpop.f32.mrf.mxu3 }
 0x743   : > { %v4201_v47 = vpop.f32.mrf.mxu0 }
 0x744   : > { %v4490_v35 = vmax.f32 %v4458_v56, 0.0  ;;  %10911 = vmatmul.msk.bf16.gmra.mxu1 %vm2180_vm3, %v15845_v9  ;;  %v4202_v2 = vadd.f32 %v4201_v47, %v15872_v22 }
 0x746   : > { %v15933_v7 = vpack.c.bf16 %v4490_v35, %v4488_v24  ;;  %10879 = vmatmul.msk.bf16.gmra.mxu0 %vm2180_vm3, %v15834_v10  ;;  %v4392_v0 = vadd.f32 %v4318_v63, %v4202_v2 }
 0x748   : > { %v4427_v24 = vadd.f32 %v15904_v58, %v4392_v0 }
 0x749   : > { %v4320_v57 = vpop.f32.mrf.mxu1 }
 0x74a   : > { %v4459_v30 = vadd.f32 %v4427_v24, %v15463_v49  ;;  %v4060_v2 = vpop.f32.mrf.mxu3 }
 0x74b   : > { %v4203_v48 = vpop.f32.mrf.mxu0 }
 0x74c   : > { %v4204_v14 = vadd.f32 %v4203_v48, %v15880_v32 }
 0x74e   : > { %v4393_v17 = vadd.f32 %v4320_v57, %v4204_v14 }
 0x750   : > { %v4428_v34 = vadd.f32 %v15904_v58, %v4393_v17 }
 0x751   : > { %v4323_v40 = vpop.f32.mrf.mxu1 }
 0x752   : > { %v4460_v27 = vadd.f32 %v4428_v34, %v15473_v6 }
 0x753   : > { %v4206_v59 = vpop.f32.mrf.mxu0 }
 0x754   : > { %v4492_v4 = vmax.f32 %v4460_v27, 0.0  ;;  %v4207_v10 = vadd.f32 %v4206_v59, %v15886_v54  ;;  %10912 = vmatmul.msk.bf16.gmra.mxu1 %vm2180_vm3, %v15856_v51  ;;  %v4491_v54 = vmax.f32 %v4459_v30, 0.0 }
 0x756   : > { %v4394_v22 = vadd.f32 %v4323_v40, %v4207_v10  ;;  %10880 = vmatmul.msk.bf16.gmra.mxu0 %vm2180_vm3, %v15845_v9  ;;  %v4603_v32 = vpack.c.bf16 %v4492_v4, %v4490_v35 }
 0x758   : > { %v4429_v50 = vadd.f32 %v15904_v58, %v4394_v22  ;;  %10958 = vmatmul.msk.bf16.gmra.mxu3 %vm2180_vm3, %v4603_v32 }
 0x759   : > { %v4325_v6 = vpop.f32.mrf.mxu1 }
 0x75a   : > { %v4461_v8 = vadd.f32 %v4429_v50, %v15488_v42 }
 0x75b   : > { %v4208_v63 = vpop.f32.mrf.mxu0 }
 0x75c   : > { %v4493_v56 = vmax.f32 %v4461_v8, 0.0  ;;  %v4209_v47 = vadd.f32 %v4208_v63, %v15900_v31  ;;  %v4062_v31 = vpop.f32.mrf.mxu3 }
 0x75e   : > { %v4395_v57 = vadd.f32 %v4325_v6, %v4209_v47  ;;  %v15952_v48 = vpack.c.bf16 %v4493_v56, %v4491_v54 }
 0x760   : > { %v4430_v9 = vadd.f32 %v15904_v58, %v4395_v57  ;;  %10934 = vmatmul.msk.bf16.gmra.mxu2 %vm2180_vm3, %v15952_v48 }
 0x761   : > { %v4328_v49 = vpop.f32.mrf.mxu1 }
 0x762   : > { %v4462_v35 = vadd.f32 %v4430_v9, %v15498_v61 }
 0x763   : > { %v4211_v14 = vpop.f32.mrf.mxu0 }
 0x764   : > { %v4494_v17 = vmax.f32 %v4462_v35, 0.0  ;;  %10913 = vmatmul.msk.bf16.gmra.mxu1 %vm2180_vm3, %v15869_v33  ;;  %v4212_v40 = vadd.f32 %v4211_v14, %v15916_v19  ;;  %v4065_v32 = vpop.f32.mrf.mxu3 }
 0x766   : > { %10881 = vmatmul.msk.bf16.gmra.mxu0 %vm2180_vm3, %v15856_v51  ;;  %v15962_v42 = vpack.c.bf16 %v4494_v17, %v4492_v4  ;;  %v4396_v24 = vadd.f32 %v4328_v49, %v4212_v40 }
 0x768   : > { %v4431_v50 = vadd.f32 %v15904_v58, %v4396_v24 }
 0x769   : > { %v4330_v0 = vpop.f32.mrf.mxu1 }
 0x76b   : > { %v4213_v34 = vpop.f32.mrf.mxu0 }
 0x76c   : > { %v4214_v27 = vadd.f32 %v4213_v34, %v4052_v23  ;;  %v4463_v23 = vadd.f32 %v4431_v50, %v15515_v60  ;;  %v4067_v57 = vpop.f32.mrf.mxu3 }
 0x76e   : > { %v4397_v59 = vadd.f32 %v4330_v0, %v4214_v27  ;;  %v4495_v56 = vmax.f32 %v4463_v23, 0.0 }
 0x770   : > { %v4432_v61 = vadd.f32 %v15904_v58, %v4397_v59 }
 0x771   : > { %v4333_v10 = vpop.f32.mrf.mxu1 }
 0x772   : > { %v4464_v22 = vadd.f32 %v4432_v61, %v15524_v5 }
 0x773   : > { %v4216_v30 = vpop.f32.mrf.mxu0 }
 0x774   : > { %v4496_v51 = vmax.f32 %v4464_v22, 0.0  ;;  %v4217_v4 = vadd.f32 %v4216_v30, %v4055_v43  ;;  %10914 = vmatmul.msk.bf16.gmra.mxu1 %vm2180_vm3, %v15882_v46  ;;  %v4271_v22 = vpack.c.bf16 0.0, %v3916_v37 }
 0x776   : > { %v4398_v6 = vadd.f32 %v4333_v10, %v4217_v4  ;;  %10882 = vmatmul.msk.bf16.gmra.mxu0 %vm2180_vm3, %v15869_v33  ;;  %v4604_v19 = vpack.c.bf16 %v4496_v51, %v4494_v17 }
 0x778   : > { %v4433_v8 = vadd.f32 %v15904_v58, %v4398_v6  ;;  %10959 = vmatmul.msk.bf16.gmra.mxu3 %vm2180_vm3, %v4604_v19 }
 0x779   : > { %v4335_v5 = vpop.f32.mrf.mxu1 }
 0x77a   : > { %v4465_v63 = vadd.f32 %v4433_v8, %v15541_v3 }
 0x77b   : > { %v4218_v54 = vpop.f32.mrf.mxu0 }
 0x77c   : > { %v4497_v43 = vmax.f32 %v4465_v63, 0.0  ;;  %v4219_v47 = vadd.f32 %v4218_v54, %v4057_v29  ;;  %v4070_v29 = vpop.f32.mrf.mxu3 }
 0x77e   : > { %v4399_v9 = vadd.f32 %v4335_v5, %v4219_v47  ;;  %v15976_v49 = vpack.c.bf16 %v4497_v43, %v4495_v56 }
 0x780   : > { %v4434_v33 = vadd.f32 %v15904_v58, %v4399_v9  ;;  %10935 = vmatmul.msk.bf16.gmra.mxu2 %vm2180_vm3, %v15976_v49 }
 0x781   : > { %v4338_v60 = vpop.f32.mrf.mxu1 }
 0x782   : > { %v4466_v35 = vadd.f32 %v4434_v33, %v15550_v45 }
 0x783   : > { %v4221_v14 = vpop.f32.mrf.mxu0 }
 0x784   : > { %v4498_v17 = vmax.f32 %v4466_v35, 0.0  ;;  %10915 = vmatmul.msk.bf16.gmra.mxu1 %vm2180_vm3, %v15893_v11  ;;  %v4222_v40 = vadd.f32 %v4221_v14, %v4060_v2  ;;  %v4072_v45 = vpop.f32.mrf.mxu3  ;;  %v12868_v2 = vld [vmem:[#allocation11 + $0x58] sm:$0xff] }
 0x785   : > { %4872 = vmatpush.bf16.msra.mxu2 %v12868_v2 }
 0x786   : > { %10883 = vmatmul.msk.bf16.gmra.mxu0 %vm2180_vm3, %v15882_v46  ;;  %v15986_v3 = vpack.c.bf16 %v4498_v17, %v4496_v51  ;;  %v4400_v24 = vadd.f32 %v4338_v60, %v4222_v40 }
 0x788   : > { %v4435_v46 = vadd.f32 %v15904_v58, %v4400_v24 }
 0x789   : > { %v4340_v0 = vpop.f32.mrf.mxu1 }
 0x78a   : > { %v4467_v19 = vadd.f32 %v4435_v46, %v15567_v26 }
 0x78b   : > { %v4223_v34 = vpop.f32.mrf.mxu0 }
 0x78c   : > { %v4224_v27 = vadd.f32 %v4223_v34, %v4062_v31  ;;  %v4075_v23 = vpop.f32.mrf.mxu3  ;;  %v4499_v8 = vmax.f32 %v4467_v19, 0.0 }
 0x78e   : > { %v4401_v59 = vadd.f32 %v4340_v0, %v4224_v27 }
 0x790   : > { %v4436_v61 = vadd.f32 %v15904_v58, %v4401_v59 }
 0x791   : > { %v4343_v10 = vpop.f32.mrf.mxu1 }
 0x792   : > { %v4468_v30 = vadd.f32 %v4436_v61, %v15577_v44 }
 0x793   : > { %v4226_v50 = vpop.f32.mrf.mxu0 }
 0x794   : > { %v4500_v51 = vmax.f32 %v4468_v30, 0.0  ;;  %v4227_v4 = vadd.f32 %v4226_v50, %v4065_v32  ;;  %10916 = vmatmul.msk.bf16.gmra.mxu1 %vm2180_vm3, %v4271_v22  ;;  %v4077_v33 = vpop.f32.mrf.mxu3  ;;  %v12892_v30 = vld [vmem:[#allocation12 + $0xb8] sm:$0xff]  ;;  %v12867_v50 = vld [vmem:[#allocation11 + $0x50] sm:$0xff] }
 0x795   : > { %5227 = vmatpush.bf16.msra.mxu1 %v12892_v30  ;;  %4873 = vmatpush.bf16.msra.mxu2 %v12867_v50 }
 0x796   : > { %v4402_v31 = vadd.f32 %v4343_v10, %v4227_v4  ;;  %10884 = vmatmul.msk.bf16.gmra.mxu0 %vm2180_vm3, %v15893_v11  ;;  %v4605_v6 = vpack.c.bf16 %v4500_v51, %v4498_v17  ;;  %v12876_v17 = vld [vmem:[#allocation12 + $0x38] sm:$0xff] }
 0x797   : > { %5129 = vmatpush.bf16.msrb.mxu0 %v12876_v17 }
 0x798   : > { %v4437_v21 = vadd.f32 %v15904_v58, %v4402_v31  ;;  %10960 = vmatmul.msk.bf16.gmra.mxu3 %vm2180_vm3, %v4605_v6 }
 0x799   : > { %v4345_v44 = vpop.f32.mrf.mxu1 }
 0x79a   : > { %v4469_v37 = vadd.f32 %v4437_v21, %v15594_v25 }
 0x79b   : > { %v4228_v32 = vpop.f32.mrf.mxu0 }
 0x79c   : > { %v4501_v5 = vmax.f32 %v4469_v37, 0.0  ;;  %v4229_v63 = vadd.f32 %v4228_v32, %v4067_v57  ;;  %v4080_v34 = vpop.f32.mrf.mxu3 }
 0x79e   : > { %v4403_v54 = vadd.f32 %v4345_v44, %v4229_v63  ;;  %v16000_v56 = vpack.c.bf16 %v4501_v5, %v4499_v8 }
 0x7a0   : > { %v4438_v11 = vadd.f32 %v15904_v58, %v4403_v54  ;;  %10936 = vmatmul.msk.bf16.gmra.mxu2 %vm2180_vm3, %v16000_v56 }
 0x7a1   : > { %v4348_v26 = vpop.f32.mrf.mxu1 }
 0x7a2   : > { %v4470_v43 = vadd.f32 %v4438_v11, %v15601_v55 }
 0x7a3   : > { %v4231_v47 = vpop.f32.mrf.mxu0 }
 0x7a4   : > { %v4502_v9 = vmax.f32 %v4470_v43, 0.0  ;;  %v4232_v14 = vadd.f32 %v4231_v47, %v4070_v29  ;;  %v4082_v4 = vpop.f32.mrf.mxu3  ;;  %v12875_v47 = vld [vmem:[#allocation12 + $0x30] sm:$0xff] }
 0x7a5   : > { %5130 = vmatpush.bf16.msrb.mxu0 %v12875_v47 }
 0x7a6   : > { %v16006_v25 = vpack.c.bf16 %v4502_v9, %v4500_v51  ;;  %v4404_v40 = vadd.f32 %v4348_v26, %v4232_v14 }
 0x7a8   : > { %v4439_v61 = vadd.f32 %v15904_v58, %v4404_v40 }
 0x7a9   : > { %v4350_v60 = vpop.f32.mrf.mxu1 }
 0x7ab   : > { %v4233_v35 = vpop.f32.mrf.mxu0 }
 0x7ac   : > { %v4234_v57 = vadd.f32 %v4233_v35, %v4072_v45  ;;  %v4471_v45 = vadd.f32 %v4439_v61, %v15616_v28  ;;  %v4085_v8 = vpop.f32.mrf.mxu3 }
 0x7ae   : > { %v4405_v0 = vadd.f32 %v4350_v60, %v4234_v57  ;;  %v4503_v6 = vmax.f32 %v4471_v45, 0.0 }
 0x7b0   : > { %v4440_v27 = vadd.f32 %v15904_v58, %v4405_v0 }
 0x7b1   : > { %v4353_v59 = vpop.f32.mrf.mxu1 }
 0x7b2   : > { %v4472_v24 = vadd.f32 %v4440_v27, %v15623_v1  ;;  %v12891_v27 = vld [vmem:[#allocation12 + $0xb0] sm:$0xff] }
 0x7b3   : > { %v4236_v55 = vpop.f32.mrf.mxu0  ;;  %5228 = vmatpush.bf16.msra.mxu1 %v12891_v27 }
 0x7b4   : > { %v4504_v10 = vmax.f32 %v4472_v24, 0.0  ;;  %v4237_v22 = vadd.f32 %v4236_v55, %v4075_v23 }
 0x7b6   : > { %v4406_v46 = vadd.f32 %v4353_v59, %v4237_v22  ;;  %v4606_v29 = vpack.c.bf16 %v4504_v10, %v4502_v9  ;;  %v4087_v9 = vpop.f32.mrf.mxu3  ;;  %v12866_v59 = vld [vmem:[#allocation11 + $0x48] sm:$0xff] }
 0x7b7   : > { %4874 = vmatpush.bf16.msra.mxu2 %v12866_v59 }
 0x7b8   : > { %v4441_v51 = vadd.f32 %v15904_v58, %v4406_v46  ;;  %10961 = vmatmul.msk.bf16.gmra.mxu3 %vm2180_vm3, %v4606_v29 }
 0x7b9   : > { %v4355_v2 = vpop.f32.mrf.mxu1 }
 0x7ba   : > { %v4473_v1 = vadd.f32 %v4441_v51, %v15636_v12 }
 0x7bb   : > { %v4238_v31 = vpop.f32.mrf.mxu0 }
 0x7bc   : > { %v4505_v19 = vmax.f32 %v4473_v1, 0.0  ;;  %v4239_v21 = vadd.f32 %v4238_v31, %v4077_v33 }
 0x7be   : > { %v4407_v44 = vadd.f32 %v4355_v2, %v4239_v21  ;;  %v16015_v37 = vpack.c.bf16 %v4505_v19, %v4503_v6  ;;  %v4090_v55 = vpop.f32.mrf.mxu3 }
 0x7c0   : > { %v4442_v23 = vadd.f32 %v15904_v58, %v4407_v44  ;;  %10937 = vmatmul.msk.bf16.gmra.mxu2 %vm2180_vm3, %v16015_v37 }
 0x7c1   : > { %v4358_v28 = vpop.f32.mrf.mxu1 }
 0x7c2   : > { %v4474_v32 = vadd.f32 %v4442_v23, %v15643_v18 }
 0x7c3   : > { %v4241_v5 = vpop.f32.mrf.mxu0 }
 0x7c4   : > { %v4506_v63 = vmax.f32 %v4474_v32, 0.0  ;;  %v4242_v26 = vadd.f32 %v4241_v5, %v4080_v34  ;;  %v12874_v32 = vld [vmem:[#allocation12 + $0x28] sm:$0xff] }
 0x7c5   : > { %5131 = vmatpush.bf16.msrb.mxu0 %v12874_v32 }
 0x7c6   : > { %v16021_v54 = vpack.c.bf16 %v4506_v63, %v4504_v10  ;;  %v4408_v60 = vadd.f32 %v4358_v28, %v4242_v26 }
 0x7c8   : > { %v4443_v17 = vadd.f32 %v15904_v58, %v4408_v60 }
 0x7c9   : > { %v4360_v12 = vpop.f32.mrf.mxu1 }
 0x7ca   : > { %v4475_v61 = vadd.f32 %v4443_v17, %v15660_v13  ;;  %v4092_v13 = vpop.f32.mrf.mxu3 }
 0x7cb   : > { %v4243_v11 = vpop.f32.mrf.mxu0 }
 0x7cc   : > { %v4244_v43 = vadd.f32 %v4243_v11, %v4082_v4  ;;  %v4507_v50 = vmax.f32 %v4475_v61, 0.0 }
 0x7ce   : > { %v4409_v33 = vadd.f32 %v4360_v12, %v4244_v43 }
 0x7d0   : > { %v4444_v35 = vadd.f32 %v15904_v58, %v4409_v33  ;;  %v12865_v33 = vld [vmem:[#allocation11 + $0x40] sm:$0xff] }
 0x7d1   : > { %v4363_v14 = vpop.f32.mrf.mxu1  ;;  %4875 = vmatpush.bf16.msra.mxu2 %v12865_v33  ;;  %v12872_v33 = vld [vmem:[#allocation12 + $0x18] sm:$0xff] }
 0x7d2   : > { %v4476_v57 = vadd.f32 %v4444_v35, %v15671_v52  ;;  %v4095_v21 = vpop.f32.mrf.mxu3 }
 0x7d3   : > { %v4246_v18 = vpop.f32.mrf.mxu0 }
 0x7d4   : > { %v4508_v0 = vmax.f32 %v4476_v57, 0.0  ;;  %v4247_v40 = vadd.f32 %v4246_v18, %v4085_v8 }
 0x7d6   : > { %v4410_v24 = vadd.f32 %v4363_v14, %v4247_v40  ;;  %v4607_v34 = vpack.c.bf16 %v4508_v0, %v4506_v63 }
 0x7d8   : > { %v4445_v10 = vadd.f32 %v15904_v58, %v4410_v24  ;;  %10962 = vmatmul.msk.bf16.gmra.mxu3 %vm2180_vm3, %v4607_v34 }
 0x7d9   : > { %v4365_v22 = vpop.f32.mrf.mxu1 }
 0x7da   : > { %v4477_v52 = vadd.f32 %v4445_v10, %v15686_v16  ;;  %v4097_v60 = vpop.f32.mrf.mxu3 }
 0x7db   : > { %v4248_v30 = vpop.f32.mrf.mxu0 }
 0x7dc   : > { %v4509_v46 = vmax.f32 %v4477_v52, 0.0  ;;  %v4249_v29 = vadd.f32 %v4248_v30, %v4087_v9  ;;  %v12890_v9 = vld [vmem:[#allocation12 + $0xa8] sm:$0xff]  ;;  %v12873_v30 = vld [vmem:[#allocation12 + $0x20] sm:$0xff] }
 0x7dd   : > { %5229 = vmatpush.bf16.msra.mxu1 %v12890_v9  ;;  %5132 = vmatpush.bf16.msrb.mxu0 %v12873_v30  ;;  %v12896_v9 = vld [vmem:[%s17727_s27 + $0x18] sm:$0xff] }
 0x7de   : > { %v4411_v45 = vadd.f32 %v4365_v22, %v4249_v29  ;;  %v16030_v51 = vpack.c.bf16 %v4509_v46, %v4507_v50  ;;  %5342 = vmatpush.bf16.msrb.mxu2 %v12896_v9 }
 0x7e0   : > { %v4446_v4 = vadd.f32 %v15904_v58, %v4411_v45  ;;  %10938 = vmatmul.msk.bf16.gmra.mxu2 %vm2180_vm3, %v16030_v51 }
 0x7e1   : > { %v4368_v2 = vpop.f32.mrf.mxu1  ;;  %5133 = vmatpush.bf16.msrb.mxu0 %v12872_v33 }
 0x7e2   : > { %v4478_v1 = vadd.f32 %v4446_v4, %v15694_v39 }
 0x7e3   : > { %v4251_v31 = vpop.f32.mrf.mxu0 }
 0x7e4   : > { %v4510_v6 = vmax.f32 %v4478_v1, 0.0  ;;  %v4252_v23 = vadd.f32 %v4251_v31, %v4090_v55  ;;  %v4100_v55 = vpop.f32.mrf.mxu3 }
 0x7e6   : > { %v16036_v19 = vpack.c.bf16 %v4510_v6, %v4508_v0  ;;  %v4412_v5 = vadd.f32 %v4368_v2, %v4252_v23 }
 0x7e8   : > { %v4447_v39 = vadd.f32 %v15904_v58, %v4412_v5  ;;  %v17728_v5 = vld [vmem:[#allocation95_spill] sm:$0xff] }
 0x7e9   : > { %v4370_v16 = vpop.f32.mrf.mxu1 }
 0x7ea   : > { %v4479_v57 = vadd.f32 %v4447_v39, %v15709_v15 }
 0x7eb   : > { %v4253_v44 = vpop.f32.mrf.mxu0 }
 0x7ec   : > { %v4254_v28 = vadd.f32 %v4253_v44, %v4092_v13  ;;  %v4511_v40 = vmax.f32 %v4479_v57, 0.0  ;;  %v4102_v50 = vpop.f32.mrf.mxu3  ;;  %v12889_v13 = vld [vmem:[#allocation12 + $0xa0] sm:$0xff]  ;;  %v12883_v57 = vld [vmem:[#allocation12 + $0x70] sm:$0xff] }
 0x7ed   : > { %5230 = vmatpush.bf16.msra.mxu1 %v12889_v13 }
 0x7ee   : > { %v4413_v8 = vadd.f32 %v4370_v16, %v4254_v28 }
 0x7f0   : > { %v4448_v63 = vadd.f32 %v15904_v58, %v4413_v8 }
 0x7f1   : > { %v4373_v12 = vpop.f32.mrf.mxu1 }
 0x7f2   : > { %v4480_v11 = vadd.f32 %v4448_v63, %v15717_v41 }
 0x7f3   : > { %v4256_v26 = vpop.f32.mrf.mxu0 }
 0x7f4   : > { %v4512_v43 = vmax.f32 %v4480_v11, 0.0  ;;  %v4257_v47 = vadd.f32 %v4256_v26, %v4095_v21 }
 0x7f6   : > { %v4414_v35 = vadd.f32 %v4373_v12, %v4257_v47  ;;  %v4608_v14 = vpack.c.bf16 %v4512_v43, %v4510_v6  ;;  %v12884_v47 = vld [vmem:[#allocation12 + $0x78] sm:$0xff] }
 0x7f7   : > { %5032 = vmatpush.bf16.msrb.mxu3 %v12884_v47 }
 0x7f8   : > { %v4449_v18 = vadd.f32 %v15904_v58, %v4414_v35  ;;  %10963 = vmatmul.msk.bf16.gmra.mxu3 %vm2180_vm3, %v4608_v14  ;;  %v12888_v35 = vld [vmem:[#allocation12 + $0x98] sm:$0xff] }
 0x7f9   : > { %v4375_v17 = vpop.f32.mrf.mxu1  ;;  %5231 = vmatpush.bf16.msra.mxu1 %v12888_v35 }
 0x7fa   : > { %v4481_v41 = vadd.f32 %v4449_v18, %v15732_v38 }
 0x7fb   : > { %v4258_v0 = vpop.f32.mrf.mxu0  ;;  %5033 = vmatpush.bf16.msrb.mxu3 %v12883_v57 }
 0x7fc   : > { %v4513_v27 = vmax.f32 %v4481_v41, 0.0  ;;  %v4259_v59 = vadd.f32 %v4258_v0, %v4097_v60  ;;  %v16070_v60 = vpop.f32.mrf.mxu2  ;;  %v12882_v41 = vld [vmem:[#allocation12 + $0x68] sm:$0xff]  ;;  %v12895_v0 = vld [vmem:[%s17727_s27 + $0x10] sm:$0xff] }
 0x7fd   : > { %5343 = vmatpush.bf16.msrb.mxu2 %v12895_v0  ;;  %v12904_v0 = vld [vmem:[#allocation14 + $0x38] sm:$0xff] }
 0x7fe   : > { %v4415_v24 = vadd.f32 %v4375_v17, %v4259_v59  ;;  %v16045_v34 = vpack.c.bf16 %v4513_v27, %v4511_v40  ;;  %v12871_v40 = vld [vmem:[#allocation12 + $0x10] sm:$0xff] }
 0x7ff   : > { %5034 = vmatpush.bf16.msrb.mxu3 %v12882_v41  ;;  %5134 = vmatpush.bf16.msrb.mxu0 %v12871_v40  ;;  %v12887_v59 = vld [vmem:[#allocation12 + $0x90] sm:$0xff] }
 0x800   : > { %v4450_v61 = vadd.f32 %v15904_v58, %v4415_v24  ;;  %10939 = vmatmul.msk.bf16.gmra.mxu2 %vm2180_vm3, %v16045_v34  ;;  %5232 = vmatpush.bf16.msra.mxu1 %v12887_v59 }
 0x801   : > { %v4378_v15 = vpop.f32.mrf.mxu1 }
 0x802   : > { %v4482_v10 = vadd.f32 %v4450_v61, %v15740_v53  ;;  %v4105_v53 = vpop.f32.mrf.mxu3  ;;  %v12894_v61 = vld [vmem:[%s17727_s27 + $0x8] sm:$0xff] }
 0x803   : > { %v4261_v22 = vpop.f32.mrf.mxu0  ;;  %5344 = vmatpush.bf16.msrb.mxu2 %v12894_v61 }
 0x804   : > { %v4514_v52 = vmax.f32 %v4482_v10, 0.0  ;;  %v4262_v45 = vadd.f32 %v4261_v22, %v4100_v55  ;;  %v16072_v14 = vpop.f32.mrf.mxu2  ;;  %v12880_v55 = vld [vmem:[#allocation12 + $0x58] sm:$0xff]  ;;  %v12886_v22 = vld [vmem:[#allocation12 + $0x88] sm:$0xff] }
 0x805   : > { %5233 = vmatpush.bf16.msra.mxu1 %v12886_v22  ;;  %v12920_v22 = vld [vmem:[#allocation14 + $0xb8] sm:$0xff] }
 0x806   : > { %v16051_v38 = vpack.c.bf16 %v4514_v52, %v4512_v43  ;;  %v4416_v1 = vadd.f32 %v4378_v15, %v4262_v45  ;;  %v12870_v15 = vld [vmem:[#allocation12 + $0x8] sm:$0xff] }
 0x807   : > { %5135 = vmatpush.bf16.msrb.mxu0 %v12870_v15 }
 0x808   : > { %v4451_v21 = vadd.f32 %v15904_v58, %v4416_v1 }
 0x809   : > { %v4380_v46 = vpop.f32.mrf.mxu1 }
 0x80a   : > { %v4483_v63 = vadd.f32 %v4451_v21, %v17728_v5 }
 0x80b   : > { %v4263_v29 = vpop.f32.mrf.mxu0 }
 0x80c   : > { %v4264_v4 = vadd.f32 %v4263_v29, %v4102_v50  ;;  %v4515_v26 = vmax.f32 %v4483_v63, 0.0  ;;  %v16076_v18 = vpop.f32.mrf.mxu2  ;;  %v12878_v50 = vld [vmem:[#allocation12 + $0x48] sm:$0xff]  ;;  %v12869_v29 = vld [vmem:[#allocation12] sm:$0xff] }
 0x80d   : > { %5136 = vmatpush.bf16.msrb.mxu0 %v12869_v29 }
 0x80e   : > { %v4417_v2 = vadd.f32 %v4380_v46, %v4264_v4  ;;  %v12893_v46 = vld [vmem:[%s17727_s27] sm:$0xff]  ;;  %v4107_v4 = vpop.f32.mrf.mxu3 }
 0x80f   : > { %5345 = vmatpush.bf16.msrb.mxu2 %v12893_v46 }
 0x810   : > { %v4452_v31 = vadd.f32 %v15904_v58, %v4417_v2  ;;  %v12885_v2 = vld [vmem:[#allocation12 + $0x80] sm:$0xff] }
 0x811   : > { %v4383_v28 = vpop.f32.mrf.mxu1  ;;  %5234 = vmatpush.bf16.msra.mxu1 %v12885_v2  ;;  %5678 = vmatpush.bf16.msra.mxu0 %v12904_v0  ;;  %v12909_v0 = vld [vmem:[#allocation14 + $0x60] sm:$0xff] }
 0x812   : > { %v16055_v6 = vadd.f32 %v4452_v31, %v15763_v36  ;;  %v17729_v36 = vld [vmem:[#allocation96_spill] sm:$0xff] }
 0x813   : > { %v4266_v16 = vpop.f32.mrf.mxu0 }
 0x814   : > { %v4516_v44 = vmax.f32 %v16055_v6, 0.0  ;;  %v4267_v23 = vadd.f32 %v4266_v16, %v4105_v53  ;;  %v16080_v17 = vpop.f32.mrf.mxu2  ;;  %v17731_v16 = vld [vmem:[#allocation64_spill] sm:$0xff] }
 0x815   : > { %5776 = vmatpush.bf16.msrb.mxu1 %v12920_v22  ;;  %v12917_v22 = vld [vmem:[#allocation14 + $0xa0] sm:$0xff] }
 0x816   : > { %v4418_v32 = vadd.f32 %v4383_v28, %v4267_v23  ;;  %v4609_v8 = vpack.c.bf16 %v4516_v44, %v4514_v52  ;;  %v12879_v52 = vld [vmem:[#allocation12 + $0x50] sm:$0xff]  ;;  %v12877_v28 = vld [vmem:[#allocation12 + $0x40] sm:$0xff]  ;;  %v4772_v5 = vpop.f32.mrf.mxu3 }
 0x818   : > { %v4453_v12 = vadd.f32 %v15904_v58, %v4418_v32  ;;  %10964 = vmatmul.msk.bf16.gmra.mxu3 %vm2180_vm3, %v4609_v8 }
 0x819   : > { %v4385_v1 = vpop.f32.mrf.mxu1 }
 0x81a   : > { %v4485_v11 = vadd.f32 %v4453_v12, %v17729_v36  ;;  %v16128_v36 = vld [vmem:[%s17730_s25] ss:$0 sm:$0xff]  ;;  %s17780_s25 = sld [smem:[#allocation57_spill]] }
 0x81b   : > { %v4268_v45 = vpop.f32.mrf.mxu0 }
 0x81c   : > { %v4517_v39 = vmax.f32 %v4485_v11, 0.0  ;;  %v16083_v27 = vpop.f32.mrf.mxu2 }
 0x81e   : > { %v16065_v43 = vpack.c.bf16 %v4517_v39, %v4515_v26 }
 0x820   : > { %10940 = vmatmul.msk.bf16.gmra.mxu2 %vm2180_vm3, %v16065_v43 }
 0x824   : > { %v16087_v24 = vpop.f32.mrf.mxu2 }
 0x830   : > { %10981 = vmatmul.msk.bf16.vlgmr.msra.gmra.mxu2 %vm2180_vm3, %v15933_v7  ;;  %v12881_v7 = vld [vmem:[#allocation12 + $0x60] sm:$0xff] }
 0x831   : > { %5035 = vmatpush.bf16.msrb.mxu3 %v12881_v7 }
 0x835   : > { %5036 = vmatpush.bf16.msrb.mxu3 %v12880_v55 }
 0x839   : > { %5037 = vmatpush.bf16.msrb.mxu3 %v12879_v52 }
 0x83d   : > { %5038 = vmatpush.bf16.msrb.mxu3 %v12878_v50 }
 0x840   : > { %10982 = vmatmul.msk.bf16.gmra.mxu2 %vm2180_vm3, %v15962_v42  ;;  %v16089_v42 = vpop.f32.mrf.mxu2 }
 0x841   : > { %5039 = vmatpush.bf16.msrb.mxu3 %v12877_v28 }
 0x848   : > { %v16094_v10 = vpop.f32.mrf.mxu2 }
 0x850   : > { %10983 = vmatmul.msk.bf16.gmra.mxu2 %vm2180_vm3, %v15986_v3  ;;  %v16096_v3 = vpop.f32.mrf.mxu2 }
 0x858   : > { %v16100_v30 = vpop.f32.mrf.mxu2 }
 0x860   : > { %10984 = vmatmul.msk.bf16.gmra.mxu2 %vm2180_vm3, %v16006_v25 }
 0x863   : > { %v16102_v25 = vpop.f32.mrf.mxu2 }
 0x86b   : > { %v16107_v13 = vpop.f32.mrf.mxu2 }
 0x870   : > { %10985 = vmatmul.msk.bf16.gmra.mxu2 %vm2180_vm3, %v16021_v54  ;;  %v4269_v54 = vadd.f32 %v4268_v45, %v4107_v4  ;;  %v12911_v4 = vld [vmem:[#allocation14 + $0x70] sm:$0xff] }
 0x872   : > { %v4419_v31 = vadd.f32 %v4385_v1, %v4269_v54  ;;  %v12903_v54 = vld [vmem:[#allocation14 + $0x30] sm:$0xff] }
 0x873   : > { %5679 = vmatpush.bf16.msra.mxu0 %v12903_v54 }
 0x874   : > { %v4454_v53 = vadd.f32 %v15904_v58, %v4419_v31  ;;  %v4773_v58 = vadd.f32 %v4772_v5, %v16070_v60  ;;  %v12912_v60 = vld [vmem:[#allocation14 + $0x78] sm:$0xff] }
 0x875   : > { %5581 = vmatpush.bf16.msra.mxu3 %v12912_v60 }
 0x876   : > { %v4486_v21 = vadd.f32 %v4454_v53, %v17731_v16 }
 0x878   : > { %v4518_v23 = vmax.f32 %v4486_v21, 0.0 }
 0x879   : > { %5582 = vmatpush.bf16.msra.mxu3 %v12911_v4 }
 0x87a   : > { %v4819_v8 = vpack.c.bf16 %v4518_v23, %v4516_v44  ;;  %v12919_v23 = vld [vmem:[#allocation14 + $0xb0] sm:$0xff] }
 0x87b   : > { %5777 = vmatpush.bf16.msrb.mxu1 %v12919_v23 }
 0x880   : > { %10986 = vmatmul.msk.bf16.gmra.mxu2 %vm2180_vm3, %v16036_v19 }
 0x883   : > { %v16111_v19 = vpop.f32.mrf.mxu2 }
 0x88b   : > { %v16115_v32 = vpop.f32.mrf.mxu2 }
 0x890   : > { %10987 = vmatmul.msk.bf16.gmra.mxu2 %vm2180_vm3, %v16051_v38  ;;  %v4774_v38 = vpop.f32.mrf.mxu3 }
 0x891   : > { %v4775_v47 = vadd.f32 %v4774_v38, %v16072_v14 }
 0x898   : > { %v4777_v11 = vpop.f32.mrf.mxu3 }
 0x899   : > { %v4778_v40 = vadd.f32 %v4777_v11, %v16076_v18  ;;  %v12902_v11 = vld [vmem:[#allocation14 + $0x28] sm:$0xff] }
 0x89a   : > { %5680 = vmatpush.bf16.msra.mxu0 %v12902_v11  ;;  %v12915_v11 = vld [vmem:[#allocation14 + $0x90] sm:$0xff] }
 0x8a0   : > { %10988 = vmatmul.msk.bf16.gmra.mxu2 %vm2180_vm3, %v4819_v8  ;;  %v4779_v57 = vpop.f32.mrf.mxu3 }
 0x8a1   : > { %v4780_v52 = vadd.f32 %v4779_v57, %v16080_v17 }
 0x8a3   : > { %v16120_v63 = vpop.f32.mrf.mxu2 }
 0x8a8   : > { %v4782_v55 = vpop.f32.mrf.mxu3 }
 0x8a9   : > { %v4783_v2 = vadd.f32 %v4782_v55, %v16083_v27 }
 0x8ab   : > { %v16122_v12 = vpop.f32.mrf.mxu2 }
 0x8b0   : > { %11101 = vmatmul.msk.bf16.vlgmr.msrb.gmra.mxu2 %vm2180_vm3, %v15923_v20  ;;  %v4784_v29 = vpop.f32.mrf.mxu3 }
 0x8b1   : > { %v4785_v28 = vadd.f32 %v4784_v29, %v16087_v24  ;;  %v12908_v29 = vld [vmem:[#allocation14 + $0x58] sm:$0xff] }
 0x8b3   : > { %v4877_v26 = vpop.f32.mrf.mxu2 }
 0x8b4   : > { %v4917_v39 = vadd.f32 %v4877_v26, %v4773_v58  ;;  %v12910_v58 = vld [vmem:[#allocation14 + $0x68] sm:$0xff] }
 0x8b5   : > { %5583 = vmatpush.bf16.msra.mxu3 %v12910_v58 }
 0x8b6   : > { %v4936_v6 = vadd.f32 %v16128_v36, %v4917_v39 }
 0x8b8   : > { %v4952_v44 = vmax.f32 %v4936_v6, 0.0  ;;  %v4787_v16 = vpop.f32.mrf.mxu3 }
 0x8b9   : > { %v4788_v39 = vadd.f32 %v4787_v16, %v16089_v42  ;;  %5584 = vmatpush.bf16.msra.mxu3 %v12909_v0 }
 0x8ba   : > { %v4968_v9 = vpack.c.bf16 %v4952_v44, %v17687_v62 }
 0x8bb   : > { %v4879_v33 = vpop.f32.mrf.mxu2 }
 0x8bc   : > { %v4918_v35 = vadd.f32 %v4879_v33, %v4775_v47  ;;  %5137 = vmatmul.bf16.vlgmr.msrb.gmra.mxu0 %v4968_v9  ;;  %v12918_v33 = vld [vmem:[#allocation14 + $0xa8] sm:$0xff] }
 0x8bd   : > { %5778 = vmatpush.bf16.msrb.mxu1 %v12918_v33  ;;  %5585 = vmatpush.bf16.msra.mxu3 %v12908_v29  ;;  %v16180_v29 = vld [vmem:[%s17733_s12] ss:$0 sm:$0xff]  ;;  %s12806_s12 = sshll.u32 %s17637_s15, 3  ;;  %s13961_s15 = scalar_lea.hbm %s17780_s25, 16 }
 0x8be   : > { %v4937_v20 = vadd.f32 %v16128_v36, %v4918_v35 }
 0x8c0   : > { %v4953_v41 = vmax.f32 %v4937_v20, 0.0  ;;  %11102 = vmatmul.msk.bf16.gmra.mxu2 %vm2180_vm3, %v15952_v48  ;;  %v4789_v26 = vpop.f32.mrf.mxu3 }
 0x8c1   : > { %v4790_v57 = vadd.f32 %v4789_v26, %v16094_v10  ;;  %5779 = vmatpush.bf16.msrb.mxu1 %v12917_v22 }
 0x8c2   : > { %v4976_v59 = vpack.c.bf16 %v4953_v41, %v4952_v44 }
 0x8c3   : > { %v4882_v14 = vpop.f32.mrf.mxu2 }
 0x8c4   : > { %v4919_v7 = vadd.f32 %v4882_v14, %v4778_v40  ;;  %5040 = vmatmul.bf16.vlgmr.msrb.gmra.mxu3 %v4976_v59  ;;  %v12901_v40 = vld [vmem:[#allocation14 + $0x20] sm:$0xff] }
 0x8c5   : > { %5681 = vmatpush.bf16.msra.mxu0 %v12901_v40 }
 0x8c6   : > { %v4938_v61 = vadd.f32 %v16128_v36, %v4919_v7 }
 0x8c8   : > { %v4954_v15 = vmax.f32 %v4938_v61, 0.0  ;;  %v4792_v35 = vpop.f32.mrf.mxu3 }
 0x8c9   : > { %v4793_v59 = vadd.f32 %v4792_v35, %v16096_v3 }
 0x8ca   : > { %v4969_v50 = vpack.c.bf16 %v4954_v15, %v4953_v41 }
 0x8cb   : > { %v4884_v48 = vpop.f32.mrf.mxu2 }
 0x8cc   : > { %v4920_v46 = vadd.f32 %v4884_v48, %v4780_v52  ;;  %5142 = vmatmul.bf16.gmra.mxu0 %v4969_v50  ;;  %5235 = vmatmul.bf16.vlgmr.msra.gmra.mxu1 %v4969_v50 }
 0x8ce   : > { %v4939_v18 = vadd.f32 %v16128_v36, %v4920_v46 }
 0x8d0   : > { %v4955_v45 = vmax.f32 %v4939_v18, 0.0  ;;  %11103 = vmatmul.msk.bf16.gmra.mxu2 %vm2180_vm3, %v15976_v49  ;;  %v4794_v10 = vpop.f32.mrf.mxu3 }
 0x8d1   : > { %v4795_v52 = vadd.f32 %v4794_v10, %v16100_v30 }
 0x8d2   : > { %v4977_v1 = vpack.c.bf16 %v4955_v45, %v4954_v15 }
 0x8d3   : > { %v4887_v17 = vpop.f32.mrf.mxu2 }
 0x8d4   : > { %v4921_v31 = vadd.f32 %v4887_v17, %v4783_v2  ;;  %5045 = vmatmul.bf16.gmra.mxu3 %v4977_v1 }
 0x8d6   : > { %v4940_v53 = vadd.f32 %v16128_v36, %v4921_v31 }
 0x8d8   : > { %v4956_v21 = vmax.f32 %v4940_v53, 0.0  ;;  %v12916_v53 = vld [vmem:[#allocation14 + $0x98] sm:$0xff] }
 0x8d9   : > { %5780 = vmatpush.bf16.msrb.mxu1 %v12916_v53 }
 0x8da   : > { %v4970_v8 = vpack.c.bf16 %v4956_v21, %v4955_v45  ;;  %v12900_v45 = vld [vmem:[#allocation14 + $0x18] sm:$0xff] }
 0x8db   : > { %v4889_v49 = vpop.f32.mrf.mxu2  ;;  %5682 = vmatpush.bf16.msra.mxu0 %v12900_v45 }
 0x8dc   : > { %v4922_v5 = vadd.f32 %v4889_v49, %v4785_v28  ;;  %5147 = vmatmul.bf16.gmra.mxu0 %v4970_v8  ;;  %5240 = vmatmul.bf16.gmra.mxu1 %v4970_v8  ;;  %v12907_v49 = vld [vmem:[#allocation14 + $0x50] sm:$0xff] }
 0x8dd   : > { %5586 = vmatpush.bf16.msra.mxu3 %v12907_v49  ;;  %5781 = vmatpush.bf16.msrb.mxu1 %v12915_v11  ;;  %v12928_v11 = vld [vmem:[#allocation15 + $0x38] sm:$0xff] }
 0x8de   : > { %v4941_v27 = vadd.f32 %v16128_v36, %v4922_v5  ;;  %v12899_v5 = vld [vmem:[#allocation14 + $0x10] sm:$0xff] }
 0x8df   : > { %5683 = vmatpush.bf16.msra.mxu0 %v12899_v5 }
 0x8e0   : > { %v4957_v38 = vmax.f32 %v4941_v27, 0.0  ;;  %11104 = vmatmul.msk.bf16.gmra.mxu2 %vm2180_vm3, %v16000_v56 }
 0x8e2   : > { %v4978_v6 = vpack.c.bf16 %v4957_v38, %v4956_v21 }
 0x8e3   : > { %v4892_v24 = vpop.f32.mrf.mxu2 }
 0x8e4   : > { %v4923_v44 = vadd.f32 %v4892_v24, %v4788_v39  ;;  %5050 = vmatmul.bf16.gmra.mxu3 %v4978_v6 }
 0x8e6   : > { %v4942_v47 = vadd.f32 %v16128_v36, %v4923_v44 }
 0x8e8   : > { %v4958_v9 = vmax.f32 %v4942_v47, 0.0 }
 0x8ea   : > { %v4971_v20 = vpack.c.bf16 %v4958_v9, %v4957_v38 }
 0x8eb   : > { %v4894_v56 = vpop.f32.mrf.mxu2 }
 0x8ec   : > { %v4924_v41 = vadd.f32 %v4894_v56, %v4790_v57  ;;  %5152 = vmatmul.bf16.gmra.mxu0 %v4971_v20  ;;  %5245 = vmatmul.bf16.gmra.mxu1 %v4971_v20  ;;  %v12898_v57 = vld [vmem:[#allocation14 + $0x8] sm:$0xff] }
 0x8ed   : > { %5684 = vmatpush.bf16.msra.mxu0 %v12898_v57  ;;  %v12944_v57 = vld [vmem:[#allocation15 + $0xb8] sm:$0xff] }
 0x8ee   : > { %v4943_v42 = vadd.f32 %v16128_v36, %v4924_v41 }
 0x8f0   : > { %v4959_v60 = vmax.f32 %v4943_v42, 0.0  ;;  %11105 = vmatmul.msk.bf16.gmra.mxu2 %vm2180_vm3, %v16015_v37  ;;  %v4797_v37 = vpop.f32.mrf.mxu3  ;;  %v12914_v42 = vld [vmem:[#allocation14 + $0x88] sm:$0xff] }
 0x8f1   : > { %v4798_v4 = vadd.f32 %v4797_v37, %v16102_v25  ;;  %5782 = vmatpush.bf16.msrb.mxu1 %v12914_v42 }
 0x8f2   : > { %v4979_v14 = vpack.c.bf16 %v4959_v60, %v4958_v9 }
 0x8f3   : > { %v4897_v7 = vpop.f32.mrf.mxu2 }
 0x8f4   : > { %v4925_v55 = vadd.f32 %v4897_v7, %v4793_v59  ;;  %5055 = vmatmul.bf16.gmra.mxu3 %v4979_v14 }
 0x8f6   : > { %v4944_v61 = vadd.f32 %v16128_v36, %v4925_v55  ;;  %v12897_v55 = vld [vmem:[#allocation14] sm:$0xff] }
 0x8f7   : > { %5685 = vmatpush.bf16.msra.mxu0 %v12897_v55 }
 0x8f8   : > { %v4960_v15 = vmax.f32 %v4944_v61, 0.0  ;;  %v4799_v1 = vpop.f32.mrf.mxu3 }
 0x8f9   : > { %v4800_v16 = vadd.f32 %v4799_v1, %v16107_v13 }
 0x8fa   : > { %v4972_v50 = vpack.c.bf16 %v4960_v15, %v4959_v60 }
 0x8fb   : > { %v4899_v48 = vpop.f32.mrf.mxu2  ;;  %6135 = vmatpush.bf16.msrb.mxu0 %v12944_v57 }
 0x8fc   : > { %v4926_v46 = vadd.f32 %v4899_v48, %v4795_v52  ;;  %5157 = vmatmul.bf16.gmra.mxu0 %v4972_v50  ;;  %5250 = vmatmul.bf16.gmra.mxu1 %v4972_v50 }
 0x8fe   : > { %v4945_v3 = vadd.f32 %v16128_v36, %v4926_v46 }
 0x900   : > { %v4961_v18 = vmax.f32 %v4945_v3, 0.0  ;;  %11106 = vmatmul.msk.bf16.gmra.mxu2 %vm2180_vm3, %v16030_v51  ;;  %v4802_v25 = vpop.f32.mrf.mxu3 }
 0x901   : > { %v4803_v27 = vadd.f32 %v4802_v25, %v16111_v19  ;;  %v12906_v19 = vld [vmem:[#allocation14 + $0x48] sm:$0xff] }
 0x902   : > { %v4980_v54 = vpack.c.bf16 %v4961_v18, %v4960_v15  ;;  %5587 = vmatpush.bf16.msra.mxu3 %v12906_v19  ;;  %v12905_v15 = vld [vmem:[#allocation14 + $0x40] sm:$0xff] }
 0x903   : > { %v4902_v30 = vpop.f32.mrf.mxu2 }
 0x904   : > { %v4927_v2 = vadd.f32 %v4902_v30, %v4798_v4  ;;  %5060 = vmatmul.bf16.gmra.mxu3 %v4980_v54 }
 0x906   : > { %v4946_v17 = vadd.f32 %v16128_v36, %v4927_v2  ;;  %5588 = vmatpush.bf16.msra.mxu3 %v12905_v15 }
 0x908   : > { %v4962_v31 = vmax.f32 %v4946_v17, 0.0  ;;  %v4804_v39 = vpop.f32.mrf.mxu3 }
 0x909   : > { %v4805_v24 = vadd.f32 %v4804_v39, %v16115_v32 }
 0x90a   : > { %v4973_v21 = vpack.c.bf16 %v4962_v31, %v4961_v18  ;;  %6037 = vmatpush.bf16.msrb.mxu3 %v12928_v11 }
 0x90b   : > { %v4904_v51 = vpop.f32.mrf.mxu2 }
 0x90c   : > { %v4928_v23 = vadd.f32 %v4904_v51, %v4800_v16  ;;  %5162 = vmatmul.bf16.gmra.mxu0 %v4973_v21  ;;  %5255 = vmatmul.bf16.gmra.mxu1 %v4973_v21 }
 0x90e   : > { %v4947_v28 = vadd.f32 %v16128_v36, %v4928_v23 }
 0x910   : > { %v4963_v8 = vmax.f32 %v4947_v28, 0.0  ;;  %11107 = vmatmul.msk.bf16.gmra.mxu2 %vm2180_vm3, %v16045_v34  ;;  %v4807_v33 = vpop.f32.mrf.mxu3 }
 0x911   : > { %v4808_v20 = vadd.f32 %v4807_v33, %v16120_v63 }
 0x912   : > { %v4981_v38 = vpack.c.bf16 %v4963_v8, %v4962_v31 }
 0x913   : > { %v4907_v13 = vpop.f32.mrf.mxu2 }
 0x914   : > { %v4929_v58 = vadd.f32 %v4907_v13, %v4803_v27  ;;  %5065 = vmatmul.bf16.gmra.mxu3 %v4981_v38 }
 0x916   : > { %v4948_v26 = vadd.f32 %v16128_v36, %v4929_v58  ;;  %v12936_v58 = vld [vmem:[#allocation15 + $0x78] sm:$0xff] }
 0x917   : > { %5940 = vmatpush.bf16.msra.mxu2 %v12936_v58 }
 0x918   : > { %v4964_v6 = vmax.f32 %v4948_v26, 0.0  ;;  %v4809_v40 = vpop.f32.mrf.mxu3 }
 0x919   : > { %v4810_v59 = vadd.f32 %v4809_v40, %v16122_v12  ;;  %v12913_v12 = vld [vmem:[#allocation14 + $0x80] sm:$0xff] }
 0x91a   : > { %v4974_v44 = vpack.c.bf16 %v4964_v6, %v4963_v8  ;;  %5783 = vmatpush.bf16.msrb.mxu1 %v12913_v12 }
 0x91b   : > { %v4909_v34 = vpop.f32.mrf.mxu2 }
 0x91c   : > { %v4930_v47 = vadd.f32 %v4909_v34, %v4805_v24  ;;  %5167 = vmatmul.bf16.gmra.mxu0 %v4974_v44  ;;  %5260 = vmatmul.bf16.gmra.mxu1 %v4974_v44 }
 0x91e   : > { %v4949_v9 = vadd.f32 %v16128_v36, %v4930_v47 }
 0x920   : > { %v4965_v35 = vmax.f32 %v4949_v9, 0.0  ;;  %11108 = vmatmul.msk.bf16.gmra.mxu2 %vm2180_vm3, %v16065_v43 }
 0x922   : > { %v4982_v56 = vpack.c.bf16 %v4965_v35, %v4964_v6 }
 0x923   : > { %v4912_v41 = vpop.f32.mrf.mxu2 }
 0x924   : > { %v4931_v32 = vadd.f32 %v4912_v41, %v4808_v20  ;;  %5070 = vmatmul.bf16.gmra.mxu3 %v4982_v56 }
 0x926   : > { %v4950_v60 = vadd.f32 %v16128_v36, %v4931_v32 }
 0x928   : > { %v4966_v0 = vmax.f32 %v4950_v60, 0.0 }
 0x92a   : > { %v4975_v14 = vpack.c.bf16 %v4966_v0, %v4965_v35 }
 0x92b   : > { %v4914_v10 = vpop.f32.mrf.mxu2 }
 0x92c   : > { %v4932_v7 = vadd.f32 %v4914_v10, %v4810_v59  ;;  %5172 = vmatmul.bf16.gmra.mxu0 %v4975_v14  ;;  %5265 = vmatmul.bf16.gmra.mxu1 %v4975_v14 }
 0x92e   : > { %v4951_v43 = vadd.f32 %v16128_v36, %v4932_v7  ;;  %v16177_v36 = vld [vmem:[%s17732_s3] ss:$0 sm:$0xff]  ;;  %v12935_v7 = vld [vmem:[#allocation15 + $0x70] sm:$0xff]  ;;  %s17781_s3 = sld [smem:[#allocation56_spill]] }
 0x92f   : > { %5941 = vmatpush.bf16.msra.mxu2 %v12935_v7 }
 0x930   : > { %v4967_v63 = vmax.f32 %v4951_v43, 0.0  ;;  %v12927_v43 = vld [vmem:[#allocation15 + $0x30] sm:$0xff] }
 0x931   : > { %6038 = vmatpush.bf16.msrb.mxu3 %v12927_v43 }
 0x932   : > { %v4983_v61 = vpack.c.bf16 %v4967_v63, %v4966_v0  ;;  %v5178_v50 = vpack.c.bf16 0.0, %v4967_v63 }
 0x933   : > { %v5347_v22 = vpop.f32.mrf.mxu2 }
 0x934   : > { %5075 = vmatmul.bf16.gmra.mxu3 %v4983_v61  ;;  %v5348_v2 = vadd.f32 %v16177_v36, %v5347_v22 }
 0x939   : > { %v5138_v52 = vpop.f32.mrf.mxu0 }
 0x93b   : > { %v5349_v37 = vpop.f32.mrf.mxu2 }
 0x93c   : > { %5270 = vmatmul.bf16.gmra.mxu1 %v5178_v50  ;;  %v5350_v8 = vadd.f32 %v16177_v36, %v5349_v37 }
 0x941   : > { %v5140_v48 = vpop.f32.mrf.mxu0 }
 0x943   : > { %v5352_v46 = vpop.f32.mrf.mxu2 }
 0x944   : > { %v5353_v44 = vadd.f32 %v16177_v36, %v5352_v46 }
 0x947   : > { %v5041_v3 = vpop.f32.mrf.mxu3 }
 0x948   : > { %v5139_v18 = vadd.f32 %v5138_v52, %v5041_v3  ;;  %v12943_v3 = vld [vmem:[#allocation15 + $0xb0] sm:$0xff] }
 0x949   : > { %v5143_v45 = vpop.f32.mrf.mxu0  ;;  %v5236_v4 = vpop.f32.mrf.mxu1  ;;  %6136 = vmatpush.bf16.msrb.mxu0 %v12943_v3 }
 0x94a   : > { %v5276_v54 = vadd.f32 %v5236_v4, %v5139_v18 }
 0x94b   : > { %v5354_v30 = vpop.f32.mrf.mxu2 }
 0x94c   : > { %v5295_v1 = vadd.f32 %v16180_v29, %v5276_v54  ;;  %v5355_v42 = vadd.f32 %v16177_v36, %v5354_v30 }
 0x94e   : > { %v5387_v17 = vadd.f32 %v5348_v2, %v5295_v1 }
 0x94f   : > { %v5043_v31 = vpop.f32.mrf.mxu3 }
 0x950   : > { %v16184_v53 = vmax.f32 %v5387_v17, 0.0  ;;  %v5141_v16 = vadd.f32 %v5140_v48, %v5043_v31 }
 0x951   : > { %v5145_v21 = vpop.f32.mrf.mxu0  ;;  %v5238_v51 = vpop.f32.mrf.mxu1 }
 0x952   : > { %v5517_v23 = vpack.c.bf16 %v16184_v53, %v17687_v62  ;;  %v5277_v25 = vadd.f32 %v5238_v51, %v5141_v16  ;;  %v12926_v51 = vld [vmem:[#allocation15 + $0x28] sm:$0xff] }
 0x953   : > { %v5357_v28 = vpop.f32.mrf.mxu2  ;;  %6039 = vmatpush.bf16.msrb.mxu3 %v12926_v51 }
 0x954   : > { %v5296_v49 = vadd.f32 %v16180_v29, %v5277_v25  ;;  %5686 = vmatmul.bf16.vlgmr.msra.gmra.mxu0 %v5517_v23  ;;  %v5358_v22 = vadd.f32 %v16177_v36, %v5357_v28 }
 0x956   : > { %v5388_v5 = vadd.f32 %v5350_v8, %v5296_v49 }
 0x957   : > { %v5046_v27 = vpop.f32.mrf.mxu3 }
 0x958   : > { %v16190_v38 = vmax.f32 %v5388_v5, 0.0  ;;  %v5144_v13 = vadd.f32 %v5143_v45, %v5046_v27 }
 0x959   : > { %v5148_v26 = vpop.f32.mrf.mxu0  ;;  %v5241_v39 = vpop.f32.mrf.mxu1 }
 0x95a   : > { %v5525_v6 = vpack.c.bf16 %v16190_v38, %v16184_v53  ;;  %v5278_v24 = vadd.f32 %v5241_v39, %v5144_v13  ;;  %v12942_v39 = vld [vmem:[#allocation15 + $0xa8] sm:$0xff] }
 0x95b   : > { %v5359_v47 = vpop.f32.mrf.mxu2  ;;  %6137 = vmatpush.bf16.msrb.mxu0 %v12942_v39 }
 0x95c   : > { %v5297_v34 = vadd.f32 %v16180_v29, %v5278_v24  ;;  %5589 = vmatmul.bf16.vlgmr.msra.gmra.mxu3 %v5525_v6  ;;  %v5360_v30 = vadd.f32 %v16177_v36, %v5359_v47 }
 0x95e   : > { %v5389_v19 = vadd.f32 %v5353_v44, %v5297_v34 }
 0x95f   : > { %v5048_v9 = vpop.f32.mrf.mxu3 }
 0x960   : > { %v16196_v33 = vmax.f32 %v5389_v19, 0.0  ;;  %v5146_v35 = vadd.f32 %v5145_v21, %v5048_v9  ;;  %v12934_v21 = vld [vmem:[#allocation15 + $0x68] sm:$0xff] }
 0x961   : > { %v5150_v20 = vpop.f32.mrf.mxu0  ;;  %v5243_v56 = vpop.f32.mrf.mxu1  ;;  %5942 = vmatpush.bf16.msra.mxu2 %v12934_v21 }
 0x962   : > { %v5279_v41 = vadd.f32 %v5243_v56, %v5146_v35  ;;  %v5518_v32 = vpack.c.bf16 %v16196_v33, %v16190_v38 }
 0x963   : > { %v5362_v40 = vpop.f32.mrf.mxu2 }
 0x964   : > { %v5298_v60 = vadd.f32 %v16180_v29, %v5279_v41  ;;  %5691 = vmatmul.bf16.gmra.mxu0 %v5518_v32  ;;  %5784 = vmatmul.bf16.vlgmr.msrb.gmra.mxu1 %v5518_v32  ;;  %v5363_v5 = vadd.f32 %v16177_v36, %v5362_v40  ;;  %v12933_v41 = vld [vmem:[#allocation15 + $0x60] sm:$0xff] }
 0x965   : > { %v12925_v32 = vld [vmem:[#allocation15 + $0x20] sm:$0xff]  ;;  %5943 = vmatpush.bf16.msra.mxu2 %v12933_v41 }
 0x966   : > { %v5390_v0 = vadd.f32 %v5355_v42, %v5298_v60  ;;  %6040 = vmatpush.bf16.msrb.mxu3 %v12925_v32 }
 0x967   : > { %v5051_v59 = vpop.f32.mrf.mxu3 }
 0x968   : > { %v16202_v14 = vmax.f32 %v5390_v0, 0.0  ;;  %v5149_v10 = vadd.f32 %v5148_v26, %v5051_v59 }
 0x969   : > { %v5153_v63 = vpop.f32.mrf.mxu0  ;;  %v5246_v55 = vpop.f32.mrf.mxu1 }
 0x96a   : > { %v5280_v61 = vadd.f32 %v5246_v55, %v5149_v10  ;;  %v5526_v15 = vpack.c.bf16 %v16202_v14, %v16196_v33 }
 0x96b   : > { %v5364_v48 = vpop.f32.mrf.mxu2 }
 0x96c   : > { %v5299_v52 = vadd.f32 %v16180_v29, %v5280_v61  ;;  %5594 = vmatmul.bf16.gmra.mxu3 %v5526_v15  ;;  %v5365_v47 = vadd.f32 %v16177_v36, %v5364_v48  ;;  %v12941_v15 = vld [vmem:[#allocation15 + $0xa0] sm:$0xff] }
 0x96d   : > { %6138 = vmatpush.bf16.msrb.mxu0 %v12941_v15 }
 0x96e   : > { %v5391_v50 = vadd.f32 %v5358_v22, %v5299_v52 }
 0x96f   : > { %v5053_v12 = vpop.f32.mrf.mxu3 }
 0x970   : > { %v16208_v37 = vmax.f32 %v5391_v50, 0.0  ;;  %v5151_v46 = vadd.f32 %v5150_v20, %v5053_v12 }
 0x971   : > { %v5155_v18 = vpop.f32.mrf.mxu0  ;;  %v5248_v45 = vpop.f32.mrf.mxu1 }
 0x972   : > { %v5281_v4 = vadd.f32 %v5248_v45, %v5151_v46  ;;  %v5519_v54 = vpack.c.bf16 %v16208_v37, %v16202_v14 }
 0x973   : > { %v5367_v49 = vpop.f32.mrf.mxu2 }
 0x974   : > { %v5300_v2 = vadd.f32 %v16180_v29, %v5281_v4  ;;  %5696 = vmatmul.bf16.gmra.mxu0 %v5519_v54  ;;  %5789 = vmatmul.bf16.gmra.mxu1 %v5519_v54  ;;  %v5368_v40 = vadd.f32 %v16177_v36, %v5367_v49  ;;  %v12932_v54 = vld [vmem:[#allocation15 + $0x58] sm:$0xff] }
 0x975   : > { %5944 = vmatpush.bf16.msra.mxu2 %v12932_v54  ;;  %v12940_v49 = vld [vmem:[#allocation15 + $0x98] sm:$0xff] }
 0x976   : > { %v5392_v1 = vadd.f32 %v5360_v30, %v5300_v2  ;;  %v12924_v30 = vld [vmem:[#allocation15 + $0x18] sm:$0xff]  ;;  %6139 = vmatpush.bf16.msrb.mxu0 %v12940_v49 }
 0x977   : > { %v5056_v17 = vpop.f32.mrf.mxu3  ;;  %6041 = vmatpush.bf16.msrb.mxu3 %v12924_v30  ;;  %v12938_v30 = vld [vmem:[#allocation15 + $0x88] sm:$0xff] }
 0x978   : > { %v16214_v31 = vmax.f32 %v5392_v1, 0.0  ;;  %v5154_v16 = vadd.f32 %v5153_v63, %v5056_v17 }
 0x979   : > { %v5158_v23 = vpop.f32.mrf.mxu0  ;;  %v5251_v25 = vpop.f32.mrf.mxu1 }
 0x97a   : > { %v5282_v28 = vadd.f32 %v5251_v25, %v5154_v16  ;;  %v5527_v8 = vpack.c.bf16 %v16214_v31, %v16208_v37 }
 0x97b   : > { %v5369_v9 = vpop.f32.mrf.mxu2 }
 0x97c   : > { %v5301_v27 = vadd.f32 %v16180_v29, %v5282_v28  ;;  %5599 = vmatmul.bf16.gmra.mxu3 %v5527_v8  ;;  %v5370_v12 = vadd.f32 %v16177_v36, %v5369_v9  ;;  %v12923_v9 = vld [vmem:[#allocation15 + $0x10] sm:$0xff] }
 0x97d   : > { %6042 = vmatpush.bf16.msrb.mxu3 %v12923_v9 }
 0x97e   : > { %v5393_v13 = vadd.f32 %v5363_v5, %v5301_v27 }
 0x97f   : > { %v5058_v58 = vpop.f32.mrf.mxu3 }
 0x980   : > { %v16220_v11 = vmax.f32 %v5393_v13, 0.0  ;;  %v5156_v26 = vadd.f32 %v5155_v18, %v5058_v58 }
 0x981   : > { %v5253_v6 = vpop.f32.mrf.mxu1  ;;  %v5160_v34 = vpop.f32.mrf.mxu0 }
 0x982   : > { %v5283_v24 = vadd.f32 %v5253_v6, %v5156_v26  ;;  %v5520_v44 = vpack.c.bf16 %v16220_v11, %v16214_v31 }
 0x983   : > { %v5372_v43 = vpop.f32.mrf.mxu2 }
 0x984   : > { %v5302_v19 = vadd.f32 %v16180_v29, %v5283_v24  ;;  %5701 = vmatmul.bf16.gmra.mxu0 %v5520_v44  ;;  %5794 = vmatmul.bf16.gmra.mxu1 %v5520_v44  ;;  %v5373_v21 = vadd.f32 %v16177_v36, %v5372_v43 }
 0x986   : > { %v5394_v35 = vadd.f32 %v5365_v47, %v5302_v19  ;;  %v12931_v19 = vld [vmem:[#allocation15 + $0x50] sm:$0xff] }
 0x987   : > { %v5061_v57 = vpop.f32.mrf.mxu3  ;;  %5945 = vmatpush.bf16.msra.mxu2 %v12931_v19  ;;  %v12937_v19 = vld [vmem:[#allocation15 + $0x80] sm:$0xff] }
 0x988   : > { %v16226_v20 = vmax.f32 %v5394_v35, 0.0  ;;  %v5159_v56 = vadd.f32 %v5158_v23, %v5061_v57  ;;  %v12939_v35 = vld [vmem:[#allocation15 + $0x90] sm:$0xff] }
 0x989   : > { %v5256_v42 = vpop.f32.mrf.mxu1  ;;  %v5163_v10 = vpop.f32.mrf.mxu0  ;;  %6140 = vmatpush.bf16.msrb.mxu0 %v12939_v35 }
 0x98a   : > { %v5284_v60 = vadd.f32 %v5256_v42, %v5159_v56  ;;  %v5528_v0 = vpack.c.bf16 %v16226_v20, %v16220_v11 }
 0x98b   : > { %v5374_v2 = vpop.f32.mrf.mxu2 }
 0x98c   : > { %v5303_v59 = vadd.f32 %v16180_v29, %v5284_v60  ;;  %5604 = vmatmul.bf16.gmra.mxu3 %v5528_v0  ;;  %v5375_v39 = vadd.f32 %v16177_v36, %v5374_v2 }
 0x98d   : > { %6141 = vmatpush.bf16.msrb.mxu0 %v12938_v30 }
 0x98e   : > { %v5395_v7 = vadd.f32 %v5368_v40, %v5303_v59 }
 0x98f   : > { %v5063_v63 = vpop.f32.mrf.mxu3 }
 0x990   : > { %v16232_v55 = vmax.f32 %v5395_v7, 0.0  ;;  %v5161_v61 = vadd.f32 %v5160_v34, %v5063_v63  ;;  %v12930_v63 = vld [vmem:[#allocation15 + $0x48] sm:$0xff] }
 0x991   : > { %v5258_v22 = vpop.f32.mrf.mxu1  ;;  %v5165_v3 = vpop.f32.mrf.mxu0  ;;  %5946 = vmatpush.bf16.msra.mxu2 %v12930_v63  ;;  %6142 = vmatpush.bf16.msrb.mxu0 %v12937_v19 }
 0x992   : > { %v5285_v52 = vadd.f32 %v5258_v22, %v5161_v61  ;;  %v5521_v50 = vpack.c.bf16 %v16232_v55, %v16226_v20  ;;  %v12922_v61 = vld [vmem:[#allocation15 + $0x8] sm:$0xff] }
 0x993   : > { %v5377_v26 = vpop.f32.mrf.mxu2  ;;  %6043 = vmatpush.bf16.msrb.mxu3 %v12922_v61 }
 0x994   : > { %v5304_v48 = vadd.f32 %v16180_v29, %v5285_v52  ;;  %5706 = vmatmul.bf16.gmra.mxu0 %v5521_v50  ;;  %5799 = vmatmul.bf16.gmra.mxu1 %v5521_v50  ;;  %v5378_v42 = vadd.f32 %v16177_v36, %v5377_v26 }
 0x996   : > { %v5396_v46 = vadd.f32 %v5370_v12, %v5304_v48 }
 0x997   : > { %v5066_v18 = vpop.f32.mrf.mxu3 }
 0x998   : > { %v16238_v45 = vmax.f32 %v5396_v46, 0.0  ;;  %v5164_v4 = vadd.f32 %v5163_v10, %v5066_v18 }
 0x999   : > { %v5261_v1 = vpop.f32.mrf.mxu1  ;;  %v5168_v5 = vpop.f32.mrf.mxu0 }
 0x99a   : > { %v5286_v17 = vadd.f32 %v5261_v1, %v5164_v4  ;;  %v5529_v16 = vpack.c.bf16 %v16238_v45, %v16232_v55 }
 0x99b   : > { %v5379_v0 = vpop.f32.mrf.mxu2 }
 0x99c   : > { %v5305_v51 = vadd.f32 %v16180_v29, %v5286_v17  ;;  %5609 = vmatmul.bf16.gmra.mxu3 %v5529_v16  ;;  %v5380_v52 = vadd.f32 %v16177_v36, %v5379_v0 }
 0x99e   : > { %v5397_v23 = vadd.f32 %v5373_v21, %v5305_v51 }
 0x99f   : > { %v5068_v25 = vpop.f32.mrf.mxu3 }
 0x9a0   : > { %v16244_v28 = vmax.f32 %v5397_v23, 0.0  ;;  %v5166_v8 = vadd.f32 %v5165_v3, %v5068_v25 }
 0x9a1   : > { %v5263_v27 = vpop.f32.mrf.mxu1  ;;  %v5170_v32 = vpop.f32.mrf.mxu0 }
 0x9a2   : > { %v5287_v13 = vadd.f32 %v5263_v27, %v5166_v8  ;;  %v5522_v58 = vpack.c.bf16 %v16244_v28, %v16238_v45 }
 0x9a3   : > { %v5382_v46 = vpop.f32.mrf.mxu2 }
 0x9a4   : > { %v5306_v6 = vadd.f32 %v16180_v29, %v5287_v13  ;;  %5711 = vmatmul.bf16.gmra.mxu0 %v5522_v58  ;;  %5804 = vmatmul.bf16.gmra.mxu1 %v5522_v58  ;;  %v5383_v17 = vadd.f32 %v16177_v36, %v5382_v46 }
 0x9a6   : > { %v5398_v24 = vadd.f32 %v5375_v39, %v5306_v6  ;;  %v12921_v6 = vld [vmem:[#allocation15] sm:$0xff] }
 0x9a7   : > { %v5071_v44 = vpop.f32.mrf.mxu3  ;;  %6044 = vmatpush.bf16.msrb.mxu3 %v12921_v6 }
 0x9a8   : > { %v16250_v34 = vmax.f32 %v5398_v24, 0.0  ;;  %v5169_v47 = vadd.f32 %v5168_v5, %v5071_v44  ;;  %v12929_v44 = vld [vmem:[#allocation15 + $0x40] sm:$0xff] }
 0x9a9   : > { %v5266_v57 = vpop.f32.mrf.mxu1  ;;  %v5173_v12 = vpop.f32.mrf.mxu0  ;;  %5947 = vmatpush.bf16.msra.mxu2 %v12929_v44 }
 0x9aa   : > { %v5288_v56 = vadd.f32 %v5266_v57, %v5169_v47  ;;  %v5530_v41 = vpack.c.bf16 %v16250_v34, %v16244_v28 }
 0x9ab   : > { %v5384_v49 = vpop.f32.mrf.mxu2 }
 0x9ac   : > { %v5307_v60 = vadd.f32 %v16180_v29, %v5288_v56  ;;  %5614 = vmatmul.bf16.gmra.mxu3 %v5530_v41  ;;  %v5385_v58 = vadd.f32 %v16177_v36, %v5384_v49  ;;  %v16280_v56 = vld [vmem:[%s17734_s9] ss:$0 sm:$0xff]  ;;  %s10500_s9 = sshll.u32 %s14654_s1, 3 }
 0x9ae   : > { %v5399_v40 = vadd.f32 %v5378_v42, %v5307_v60 }
 0x9af   : > { %v5073_v59 = vpop.f32.mrf.mxu3 }
 0x9b0   : > { %v16256_v10 = vmax.f32 %v5399_v40, 0.0  ;;  %v5171_v7 = vadd.f32 %v5170_v32, %v5073_v59 }
 0x9b1   : > { %v5268_v43 = vpop.f32.mrf.mxu1  ;;  %v5175_v51 = vpop.f32.mrf.mxu0 }
 0x9b2   : > { %v5289_v15 = vadd.f32 %v5268_v43, %v5171_v7  ;;  %v5523_v22 = vpack.c.bf16 %v16256_v10, %v16250_v34 }
 0x9b4   : > { %v5308_v50 = vadd.f32 %v16180_v29, %v5289_v15  ;;  %5716 = vmatmul.bf16.gmra.mxu0 %v5523_v22  ;;  %5809 = vmatmul.bf16.gmra.mxu1 %v5523_v22 }
 0x9b6   : > { %v5400_v48 = vadd.f32 %v5380_v52, %v5308_v50 }
 0x9b7   : > { %v5076_v3 = vpop.f32.mrf.mxu3 }
 0x9b8   : > { %v16262_v18 = vmax.f32 %v5400_v48, 0.0  ;;  %v5174_v4 = vadd.f32 %v5173_v12, %v5076_v3 }
 0x9b9   : > { %v5271_v54 = vpop.f32.mrf.mxu1 }
 0x9ba   : > { %v5290_v2 = vadd.f32 %v5271_v54, %v5174_v4  ;;  %v5531_v1 = vpack.c.bf16 %v16262_v18, %v16256_v10 }
 0x9bc   : > { %v5309_v16 = vadd.f32 %v16180_v29, %v5290_v2  ;;  %5619 = vmatmul.bf16.gmra.mxu3 %v5531_v1 }
 0x9be   : > { %v5401_v21 = vadd.f32 %v5383_v17, %v5309_v16 }
 0x9bf   : > { %v5078_v23 = vpop.f32.mrf.mxu3 }
 0x9c0   : > { %v16268_v25 = vmax.f32 %v5401_v21, 0.0  ;;  %v5176_v8 = vadd.f32 %v5175_v51, %v5078_v23 }
 0x9c1   : > { %v5273_v5 = vpop.f32.mrf.mxu1 }
 0x9c2   : > { %v5291_v27 = vadd.f32 %v5273_v5, %v5176_v8  ;;  %v5524_v13 = vpack.c.bf16 %v16268_v25, %v16262_v18 }
 0x9c4   : > { %v5310_v26 = vadd.f32 %v16180_v29, %v5291_v27  ;;  %5721 = vmatmul.bf16.gmra.mxu0 %v5524_v13  ;;  %5814 = vmatmul.bf16.gmra.mxu1 %v5524_v13 }
 0x9c6   : > { %v5402_v39 = vadd.f32 %v5385_v58, %v5310_v26 }
 0x9c8   : > { %v16274_v24 = vmax.f32 %v5402_v39, 0.0 }
 0x9ca   : > { %v5532_v47 = vpack.c.bf16 %v16274_v24, %v16268_v25  ;;  %v5727_v36 = vpack.c.bf16 0.0, %v16274_v24 }
 0x9cc   : > { %5624 = vmatmul.bf16.gmra.mxu3 %v5532_v47 }
 0x9d1   : > { %v5687_v9 = vpop.f32.mrf.mxu0 }
 0x9d4   : > { %5819 = vmatmul.bf16.gmra.mxu1 %v5727_v36 }
 0x9d9   : > { %v5689_v29 = vpop.f32.mrf.mxu0 }
 0x9df   : > { %v5590_v35 = vpop.f32.mrf.mxu3 }
 0x9e0   : > { %v5688_v57 = vadd.f32 %v5687_v9, %v5590_v35 }
 0x9e1   : > { %v5692_v41 = vpop.f32.mrf.mxu0  ;;  %v5785_v32 = vpop.f32.mrf.mxu1 }
 0x9e2   : > { %v5825_v42 = vadd.f32 %v5785_v32, %v5688_v57 }
 0x9e4   : > { %v5844_v60 = vadd.f32 %v16280_v56, %v5825_v42 }
 0x9e6   : > { %v5860_v0 = vmax.f32 %v5844_v60, 0.0 }
 0x9e7   : > { %v5592_v40 = vpop.f32.mrf.mxu3 }
 0x9e8   : > { %v5876_v59 = vpack.c.bf16 %v5860_v0, %v17687_v62  ;;  %v5690_v7 = vadd.f32 %v5689_v29, %v5592_v40 }
 0x9e9   : > { %v5694_v43 = vpop.f32.mrf.mxu0  ;;  %v5787_v63 = vpop.f32.mrf.mxu1 }
 0x9ea   : > { %v5826_v61 = vadd.f32 %v5787_v63, %v5690_v7  ;;  %6045 = vmatmul.bf16.vlgmr.msrb.gmra.mxu3 %v5876_v59 }
 0x9ec   : > { %v5845_v15 = vadd.f32 %v16280_v56, %v5826_v61 }
 0x9ee   : > { %v5861_v22 = vmax.f32 %v5845_v15, 0.0 }
 0x9ef   : > { %v5595_v52 = vpop.f32.mrf.mxu3 }
 0x9f0   : > { %v5884_v50 = vpack.c.bf16 %v5861_v22, %v5860_v0  ;;  %v5693_v12 = vadd.f32 %v5692_v41, %v5595_v52 }
 0x9f1   : > { %v5697_v48 = vpop.f32.mrf.mxu0  ;;  %v5790_v46 = vpop.f32.mrf.mxu1 }
 0x9f2   : > { %v5827_v3 = vadd.f32 %v5790_v46, %v5693_v12  ;;  %5948 = vmatmul.bf16.vlgmr.msra.gmra.mxu2 %v5884_v50 }
 0x9f4   : > { %v5846_v4 = vadd.f32 %v16280_v56, %v5827_v3 }
 0x9f6   : > { %v5862_v54 = vmax.f32 %v5846_v4, 0.0 }
 0x9f7   : > { %v5597_v30 = vpop.f32.mrf.mxu3 }
 0x9f8   : > { %v5695_v2 = vadd.f32 %v5694_v43, %v5597_v30  ;;  %v5877_v1 = vpack.c.bf16 %v5862_v54, %v5861_v22 }
 0x9f9   : > { %v5699_v17 = vpop.f32.mrf.mxu0  ;;  %v5792_v16 = vpop.f32.mrf.mxu1 }
 0x9fa   : > { %v5828_v21 = vadd.f32 %v5792_v16, %v5695_v2  ;;  %6050 = vmatmul.bf16.gmra.mxu3 %v5877_v1  ;;  %6143 = vmatmul.bf16.vlgmr.msrb.gmra.mxu0 %v5877_v1  ;;  %v12975_v1 = vld [vmem:[%s17735_s11 + $0xf4] sm:$0xf] }
 0x9fc   : > { %v5847_v51 = vadd.f32 %v16280_v56, %v5828_v21 }
 0x9fe   : > { %v5863_v23 = vmax.f32 %v5847_v51, 0.0  ;;  %v11423_v51 = vld [vmem:[%s17735_s11 + $0x70] sm:$0xf] }
 0x9ff   : > { %v5600_v8 = vpop.f32.mrf.mxu3 }
 0xa00   : > { %v5698_v49 = vadd.f32 %v5697_v48, %v5600_v8  ;;  %v5885_v5 = vpack.c.bf16 %v5863_v23, %v5862_v54  ;;  %v11359_v8 = vld [vmem:[%s17735_s11 + $0xf0] sm:$0xf] }
 0xa01   : > { %v5702_v27 = vpop.f32.mrf.mxu0  ;;  %v5795_v13 = vpop.f32.mrf.mxu1 }
 0xa02   : > { %v5829_v58 = vadd.f32 %v5795_v13, %v5698_v49  ;;  %5953 = vmatmul.bf16.gmra.mxu2 %v5885_v5  ;;  %v12976_v13 = vld [vmem:[%s17735_s11 + $0xf4] sm:$0xf0] }
 0xa04   : > { %v5848_v26 = vadd.f32 %v16280_v56, %v5829_v58 }
 0xa06   : > { %v5864_v39 = vmax.f32 %v5848_v26, 0.0  ;;  %v11360_v26 = vor.u32 %v12976_v13, %v11359_v8  ;;  %v11343_v8 = vld [vmem:[%s17735_s11 + $0xd0] sm:$0xf] }
 0xa07   : > { %v5602_v6 = vpop.f32.mrf.mxu3 }
 0xa08   : > { %v5700_v44 = vadd.f32 %v5699_v17, %v5602_v6  ;;  %v5878_v47 = vpack.c.bf16 %v5864_v39, %v5863_v23  ;;  %v11361_v17 = vld [vmem:[%s17735_s11 + $0xf8] sm:$0xf0]  ;;  %v12960_v23 = vld [vmem:[%s17735_s11 + $0x74] sm:$0xf0]  ;;  %6502 = vmatpush.bf16.msra.mxu1 %v11360_v26 }
 0xa09   : > { %v5704_v19 = vpop.f32.mrf.mxu0  ;;  %v5797_v9 = vpop.f32.mrf.mxu1  ;;  %v11364_v21 = vor.u32 %v12975_v1, %v11361_v17  ;;  %v12971_v1 = vld [vmem:[%s17735_s11 + $0xd4] sm:$0xf]  ;;  %v11345_v17 = vld [vmem:[%s17735_s11 + $0xd8] sm:$0xf0] }
 0xa0a   : > { %v5830_v36 = vadd.f32 %v5797_v9, %v5700_v44  ;;  %6055 = vmatmul.bf16.gmra.mxu3 %v5878_v47  ;;  %6148 = vmatmul.bf16.gmra.mxu0 %v5878_v47 }
 0xa0b   : > { %6531 = vmatpush.bf16.msrb.mxu2 %v11364_v21 }
 0xa0c   : > { %v5849_v29 = vadd.f32 %v16280_v56, %v5830_v36 }
 0xa0e   : > { %v5865_v35 = vmax.f32 %v5849_v29, 0.0 }
 0xa0f   : > { %v5605_v57 = vpop.f32.mrf.mxu3 }
 0xa10   : > { %v5703_v41 = vadd.f32 %v5702_v27, %v5605_v57  ;;  %v5886_v32 = vpack.c.bf16 %v5865_v35, %v5864_v39  ;;  %v11424_v27 = vor.u32 %v12960_v23, %v11423_v51  ;;  %v11348_v51 = vor.u32 %v12971_v1, %v11345_v17  ;;  %v12956_v23 = vld [vmem:[%s17735_s11 + $0x54] sm:$0xf0]  ;;  %v11383_v1 = vld [vmem:[%s17735_s11 + $0x20] sm:$0xf]  ;;  %v12950_v17 = vld [vmem:[%s17735_s11 + $0x24] sm:$0xf0] }
 0xa11   : > { %v5707_v42 = vpop.f32.mrf.mxu0  ;;  %v5800_v60 = vpop.f32.mrf.mxu1 }
 0xa12   : > { %v5831_v0 = vadd.f32 %v5800_v60, %v5703_v41  ;;  %5958 = vmatmul.bf16.gmra.mxu2 %v5886_v32  ;;  %6640 = vmatpush.bf16.msra.mxu3 %v11424_v27  ;;  %v12973_v32 = vld [vmem:[%s17735_s11 + $0xe4] sm:$0xf] }
 0xa14   : > { %v5850_v40 = vadd.f32 %v16280_v56, %v5831_v0 }
 0xa16   : > { %v5866_v59 = vmax.f32 %v5850_v40, 0.0  ;;  %v11415_v40 = vld [vmem:[%s17735_s11 + $0x60] sm:$0xf] }
 0xa17   : > { %v5607_v7 = vpop.f32.mrf.mxu3 }
 0xa18   : > { %v5705_v43 = vadd.f32 %v5704_v19, %v5607_v7  ;;  %v5879_v63 = vpack.c.bf16 %v5866_v59, %v5865_v35  ;;  %v11351_v7 = vld [vmem:[%s17735_s11 + $0xe0] sm:$0xf] }
 0xa19   : > { %v5802_v61 = vpop.f32.mrf.mxu1  ;;  %v5709_v22 = vpop.f32.mrf.mxu0 }
 0xa1a   : > { %v5832_v15 = vadd.f32 %v5802_v61, %v5705_v43  ;;  %6060 = vmatmul.bf16.gmra.mxu3 %v5879_v63  ;;  %6153 = vmatmul.bf16.gmra.mxu0 %v5879_v63 }
 0xa1c   : > { %v5851_v52 = vadd.f32 %v16280_v56, %v5832_v15  ;;  %v12974_v15 = vld [vmem:[%s17735_s11 + $0xe4] sm:$0xf0] }
 0xa1e   : > { %v5867_v50 = vmax.f32 %v5851_v52, 0.0 }
 0xa1f   : > { %v5610_v12 = vpop.f32.mrf.mxu3 }
 0xa20   : > { %v5708_v48 = vadd.f32 %v5707_v42, %v5610_v12  ;;  %v5887_v46 = vpack.c.bf16 %v5867_v50, %v5866_v59  ;;  %v11353_v42 = vld [vmem:[%s17735_s11 + $0xe8] sm:$0xf0]  ;;  %v12958_v59 = vld [vmem:[%s17735_s11 + $0x64] sm:$0xf0] }
 0xa21   : > { %v5805_v3 = vpop.f32.mrf.mxu1  ;;  %v5712_v30 = vpop.f32.mrf.mxu0  ;;  %v11356_v0 = vor.u32 %v12973_v32, %v11353_v42  ;;  %v11416_v61 = vor.u32 %v12958_v59, %v11415_v40  ;;  %v12954_v32 = vld [vmem:[%s17735_s11 + $0x44] sm:$0xf0] }
 0xa22   : > { %v5833_v4 = vadd.f32 %v5805_v3, %v5708_v48  ;;  %5963 = vmatmul.bf16.gmra.mxu2 %v5887_v46 }
 0xa23   : > { %6532 = vmatpush.bf16.msrb.mxu2 %v11356_v0  ;;  %6641 = vmatpush.bf16.msra.mxu3 %v11416_v61  ;;  %v11335_v61 = vld [vmem:[%s17735_s11 + $0xc0] sm:$0xf] }
 0xa24   : > { %v5852_v54 = vadd.f32 %v16280_v56, %v5833_v4 }
 0xa26   : > { %v5868_v2 = vmax.f32 %v5852_v54, 0.0 }
 0xa27   : > { %v5612_v16 = vpop.f32.mrf.mxu3  ;;  %6533 = vmatpush.bf16.msrb.mxu2 %v11348_v51 }
 0xa28   : > { %v5710_v49 = vadd.f32 %v5709_v22, %v5612_v16  ;;  %v5880_v5 = vpack.c.bf16 %v5868_v2, %v5867_v50  ;;  %v11352_v50 = vor.u32 %v12974_v15, %v11351_v7  ;;  %v11407_v16 = vld [vmem:[%s17735_s11 + $0x50] sm:$0xf]  ;;  %v12970_v15 = vld [vmem:[%s17735_s11 + $0xc4] sm:$0xf0] }
 0xa29   : > { %v5807_v58 = vpop.f32.mrf.mxu1  ;;  %v5714_v47 = vpop.f32.mrf.mxu0  ;;  %v11408_v27 = vor.u32 %v12956_v23, %v11407_v16  ;;  %v12967_v23 = vld [vmem:[%s17735_s11 + $0xb4] sm:$0xf] }
 0xa2a   : > { %v5834_v39 = vadd.f32 %v5807_v58, %v5710_v49  ;;  %6065 = vmatmul.bf16.gmra.mxu3 %v5880_v5  ;;  %6158 = vmatmul.bf16.gmra.mxu0 %v5880_v5  ;;  %v12972_v49 = vld [vmem:[%s17735_s11 + $0xd4] sm:$0xf0] }
 0xa2b   : > { %6503 = vmatpush.bf16.msra.mxu1 %v11352_v50  ;;  %v11344_v13 = vor.u32 %v12972_v49, %v11343_v8  ;;  %6642 = vmatpush.bf16.msra.mxu3 %v11408_v27  ;;  %v11336_v50 = vor.u32 %v12970_v15, %v11335_v61  ;;  %v11329_v8 = vld [vmem:[%s17735_s11 + $0xb8] sm:$0xf0]  ;;  %v11327_v49 = vld [vmem:[%s17735_s11 + $0xb0] sm:$0xf]  ;;  %v12968_v27 = vld [vmem:[%s17735_s11 + $0xb4] sm:$0xf0] }
 0xa2c   : > { %v5853_v6 = vadd.f32 %v16280_v56, %v5834_v39  ;;  %v11305_v15 = vld [vmem:[%s17735_s11 + $0x88] sm:$0xf0] }
 0xa2e   : > { %v5869_v44 = vmax.f32 %v5853_v6, 0.0 }
 0xa2f   : > { %v5615_v19 = vpop.f32.mrf.mxu3  ;;  %6504 = vmatpush.bf16.msra.mxu1 %v11344_v13  ;;  %v12948_v13 = vld [vmem:[%s17735_s11 + $0x14] sm:$0xf0] }
 0xa30   : > { %v5713_v9 = vadd.f32 %v5712_v30, %v5615_v19  ;;  %v5888_v36 = vpack.c.bf16 %v5869_v44, %v5868_v2 }
 0xa31   : > { %v5810_v29 = vpop.f32.mrf.mxu1  ;;  %v5717_v22 = vpop.f32.mrf.mxu0 }
 0xa32   : > { %v5835_v35 = vadd.f32 %v5810_v29, %v5713_v9  ;;  %5968 = vmatmul.bf16.gmra.mxu2 %v5888_v36  ;;  %v12969_v36 = vld [vmem:[%s17735_s11 + $0xc4] sm:$0xf]  ;;  %v11337_v29 = vld [vmem:[%s17735_s11 + $0xc8] sm:$0xf0] }
 0xa33   : > { %6505 = vmatpush.bf16.msra.mxu1 %v11336_v50 }
 0xa34   : > { %v5854_v57 = vadd.f32 %v16280_v56, %v5835_v35  ;;  %v11399_v35 = vld [vmem:[%s17735_s11 + $0x40] sm:$0xf] }
 0xa36   : > { %v5870_v41 = vmax.f32 %v5854_v57, 0.0 }
 0xa37   : > { %v5617_v60 = vpop.f32.mrf.mxu3 }
 0xa38   : > { %v5715_v43 = vadd.f32 %v5714_v47, %v5617_v60  ;;  %v5881_v63 = vpack.c.bf16 %v5870_v41, %v5869_v44  ;;  %v11400_v60 = vor.u32 %v12954_v32, %v11399_v35  ;;  %v12964_v32 = vld [vmem:[%s17735_s11 + $0x94] sm:$0xf0] }
 0xa39   : > { %v5812_v52 = vpop.f32.mrf.mxu1  ;;  %v5719_v21 = vpop.f32.mrf.mxu0 }
 0xa3a   : > { %v5836_v12 = vadd.f32 %v5812_v52, %v5715_v43  ;;  %6070 = vmatmul.bf16.gmra.mxu3 %v5881_v63  ;;  %6163 = vmatmul.bf16.gmra.mxu0 %v5881_v63 }
 0xa3b   : > { %6643 = vmatpush.bf16.msra.mxu3 %v11400_v60 }
 0xa3c   : > { %v5855_v48 = vadd.f32 %v16280_v56, %v5836_v12 }
 0xa3e   : > { %v5871_v46 = vmax.f32 %v5855_v48, 0.0 }
 0xa3f   : > { %v5620_v3 = vpop.f32.mrf.mxu3 }
 0xa40   : > { %v5718_v4 = vadd.f32 %v5717_v22, %v5620_v3  ;;  %v5889_v54 = vpack.c.bf16 %v5871_v46, %v5870_v41  ;;  %v11340_v41 = vor.u32 %v12969_v36, %v11337_v29  ;;  %v11391_v3 = vld [vmem:[%s17735_s11 + $0x30] sm:$0xf]  ;;  %v12946_v36 = vld [vmem:[%s17735_s11 + $0x4] sm:$0xf0] }
 0xa41   : > { %v5815_v30 = vpop.f32.mrf.mxu1  ;;  %v5722_v9 = vpop.f32.mrf.mxu0 }
 0xa42   : > { %v5837_v2 = vadd.f32 %v5815_v30, %v5718_v4  ;;  %5973 = vmatmul.bf16.gmra.mxu2 %v5889_v54  ;;  %v12952_v4 = vld [vmem:[%s17735_s11 + $0x34] sm:$0xf0] }
 0xa43   : > { %6534 = vmatpush.bf16.msrb.mxu2 %v11340_v41  ;;  %v11392_v30 = vor.u32 %v12952_v4, %v11391_v3  ;;  %v11311_v41 = vld [vmem:[%s17735_s11 + $0x90] sm:$0xf] }
 0xa44   : > { %v5856_v5 = vadd.f32 %v16280_v56, %v5837_v2  ;;  %v11312_v60 = vor.u32 %v12964_v32, %v11311_v41 }
 0xa45   : > { %6644 = vmatpush.bf16.msra.mxu3 %v11392_v30  ;;  %v16348_v30 = vld [vmem:[%s17736_s4] ss:$0 sm:$0xff] }
 0xa46   : > { %v5872_v58 = vmax.f32 %v5856_v5, 0.0  ;;  %v11332_v5 = vor.u32 %v12967_v23, %v11329_v8 }
 0xa47   : > { %v5622_v26 = vpop.f32.mrf.mxu3 }
 0xa48   : > { %v5720_v39 = vadd.f32 %v5719_v21, %v5622_v26  ;;  %v5882_v6 = vpack.c.bf16 %v5872_v58, %v5871_v46  ;;  %v11384_v21 = vor.u32 %v12950_v17, %v11383_v1  ;;  %6535 = vmatpush.bf16.msrb.mxu2 %v11332_v5 }
 0xa49   : > { %v5817_v44 = vpop.f32.mrf.mxu1  ;;  %v5724_v22 = vpop.f32.mrf.mxu0 }
 0xa4a   : > { %v5838_v47 = vadd.f32 %v5817_v44, %v5720_v39  ;;  %6075 = vmatmul.bf16.gmra.mxu3 %v5882_v6  ;;  %6168 = vmatmul.bf16.gmra.mxu0 %v5882_v6  ;;  %v11319_v39 = vld [vmem:[%s17735_s11 + $0xa0] sm:$0xf]  ;;  %v12966_v6 = vld [vmem:[%s17735_s11 + $0xa4] sm:$0xf0]  ;;  %v12965_v44 = vld [vmem:[%s17735_s11 + $0xa4] sm:$0xf] }
 0xa4b   : > { %6645 = vmatpush.bf16.msra.mxu3 %v11384_v21 }
 0xa4c   : > { %v5857_v19 = vadd.f32 %v16280_v56, %v5838_v47  ;;  %v11320_v47 = vor.u32 %v12966_v6, %v11319_v39 }
 0xa4e   : > { %v5873_v57 = vmax.f32 %v5857_v19, 0.0  ;;  %v11321_v19 = vld [vmem:[%s17735_s11 + $0xa8] sm:$0xf0] }
 0xa4f   : > { %v5625_v42 = vpop.f32.mrf.mxu3  ;;  %v11324_v29 = vor.u32 %v12965_v44, %v11321_v19 }
 0xa50   : > { %v5723_v0 = vadd.f32 %v5722_v9, %v5625_v42  ;;  %v5890_v40 = vpack.c.bf16 %v5873_v57, %v5872_v58  ;;  %v11328_v58 = vor.u32 %v12968_v27, %v11327_v49  ;;  %v11367_v9 = vld [vmem:[%s17735_s11] sm:$0xf]  ;;  %v12963_v42 = vld [vmem:[%s17735_s11 + $0x94] sm:$0xf] }
 0xa51   : > { %v5820_v59 = vpop.f32.mrf.mxu1  ;;  %v11368_v35 = vor.u32 %v12946_v36, %v11367_v9  ;;  %6536 = vmatpush.bf16.msrb.mxu2 %v11324_v29 }
 0xa52   : > { %v5839_v7 = vadd.f32 %v5820_v59, %v5723_v0  ;;  %5978 = vmatmul.bf16.gmra.mxu2 %v5890_v40  ;;  %6506 = vmatpush.bf16.msra.mxu1 %v11328_v58  ;;  %v11313_v0 = vld [vmem:[%s17735_s11 + $0x98] sm:$0xf0] }
 0xa53   : > { %v11316_v40 = vor.u32 %v12963_v42, %v11313_v0 }
 0xa54   : > { %v5858_v43 = vadd.f32 %v16280_v56, %v5839_v7  ;;  %v11303_v7 = vld [vmem:[%s17735_s11 + $0x80] sm:$0xf] }
 0xa55   : > { %6537 = vmatpush.bf16.msrb.mxu2 %v11316_v40 }
 0xa56   : > { %v5874_v63 = vmax.f32 %v5858_v43, 0.0  ;;  %6507 = vmatpush.bf16.msra.mxu1 %v11320_v47  ;;  %v12962_v43 = vld [vmem:[%s17735_s11 + $0x84] sm:$0xf0] }
 0xa57   : > { %v5627_v52 = vpop.f32.mrf.mxu3  ;;  %v11304_v61 = vor.u32 %v12962_v43, %v11303_v7 }
 0xa58   : > { %v5725_v12 = vadd.f32 %v5724_v22, %v5627_v52  ;;  %v5883_v48 = vpack.c.bf16 %v5874_v63, %v5873_v57 }
 0xa59   : > { %v5822_v46 = vpop.f32.mrf.mxu1 }
 0xa5a   : > { %v5840_v54 = vadd.f32 %v5822_v46, %v5725_v12  ;;  %6080 = vmatmul.bf16.gmra.mxu3 %v5883_v48  ;;  %6173 = vmatmul.bf16.gmra.mxu0 %v5883_v48 }
 0xa5b   : > { %6508 = vmatpush.bf16.msra.mxu1 %v11312_v60 }
 0xa5c   : > { %v5859_v2 = vadd.f32 %v16280_v56, %v5840_v54  ;;  %v11375_v56 = vld [vmem:[%s17735_s11 + $0x10] sm:$0xf] }
 0xa5d   : > { %v11376_v26 = vor.u32 %v12948_v13, %v11375_v56 }
 0xa5e   : > { %v5875_v16 = vmax.f32 %v5859_v2, 0.0 }
 0xa5f   : > { %6646 = vmatpush.bf16.msra.mxu3 %v11376_v26  ;;  %6509 = vmatpush.bf16.msra.mxu1 %v11304_v61  ;;  %v11487_v61 = vld [vmem:[%s17735_s11 + $0x170] sm:$0xf] }
 0xa60   : > { %v5891_v51 = vpack.c.bf16 %v5875_v16, %v5874_v63  ;;  %v6086_v57 = vpack.c.bf16 0.0, %v5875_v16  ;;  %v12961_v63 = vld [vmem:[%s17735_s11 + $0x84] sm:$0xf] }
 0xa61   : > { %v11308_v22 = vor.u32 %v12961_v63, %v11305_v15  ;;  %v12992_v15 = vld [vmem:[%s17735_s11 + $0x174] sm:$0xf0] }
 0xa62   : > { %5983 = vmatmul.bf16.gmra.mxu2 %v5891_v51 }
 0xa63   : > { %6647 = vmatpush.bf16.msra.mxu3 %v11368_v35  ;;  %6538 = vmatpush.bf16.msrb.mxu2 %v11308_v22  ;;  %v12991_v22 = vld [vmem:[%s17735_s11 + $0x174] sm:$0xf] }
 0xa6a   : > { %6178 = vmatmul.bf16.gmra.mxu0 %v6086_v57 }
 0xa6d   : > { %v6046_v59 = vpop.f32.mrf.mxu3 }
 0xa75   : > { %v5949_v52 = vpop.f32.mrf.mxu2  ;;  %v6048_v50 = vpop.f32.mrf.mxu3 }
 0xa76   : > { %v6047_v3 = vadd.f32 %v6046_v59, %v5949_v52 }
 0xa77   : > { %v6144_v12 = vpop.f32.mrf.mxu0 }
 0xa78   : > { %v6184_v1 = vadd.f32 %v6144_v12, %v6047_v3  ;;  %v11488_v12 = vor.u32 %v12992_v15, %v11487_v61 }
 0xa7a   : > { %v6203_v23 = vadd.f32 %v16348_v30, %v6184_v1  ;;  %v11425_v1 = vld [vmem:[%s17735_s11 + $0x78] sm:$0xf0]  ;;  %6782 = vmatpush.bf16.msra.mxu2 %v11488_v12 }
 0xa7c   : > { %v6219_v13 = vadd.f32 %v6203_v23, %v16184_v53 }
 0xa7d   : > { %v5951_v48 = vpop.f32.mrf.mxu2  ;;  %v6051_v46 = vpop.f32.mrf.mxu3 }
 0xa7e   : > { %v6049_v4 = vadd.f32 %v6048_v50, %v5951_v48  ;;  %v6235_v6 = vmax.f32 %v6219_v13, 0.0  ;;  %v11489_v48 = vld [vmem:[%s17735_s11 + $0x178] sm:$0xf0] }
 0xa7f   : > { %v6146_v54 = vpop.f32.mrf.mxu0 }
 0xa80   : > { %v6185_v2 = vadd.f32 %v6146_v54, %v6049_v4  ;;  %v11492_v54 = vor.u32 %v12991_v22, %v11489_v48  ;;  %v11463_v48 = vld [vmem:[%s17735_s11 + $0x140] sm:$0xf] }
 0xa82   : > { %v6204_v17 = vadd.f32 %v16348_v30, %v6185_v2  ;;  %v12959_v2 = vld [vmem:[%s17735_s11 + $0x74] sm:$0xf]  ;;  %6811 = vmatpush.bf16.msrb.mxu3 %v11492_v54 }
 0xa84   : > { %v6220_v16 = vadd.f32 %v6204_v17, %v16190_v38 }
 0xa85   : > { %v5954_v21 = vpop.f32.mrf.mxu2  ;;  %v6053_v51 = vpop.f32.mrf.mxu3 }
 0xa86   : > { %v6236_v8 = vmax.f32 %v6220_v16, 0.0  ;;  %v6052_v49 = vadd.f32 %v6051_v46, %v5954_v21  ;;  %v11428_v16 = vor.u32 %v12959_v2, %v11425_v1  ;;  %v12985_v2 = vld [vmem:[%s17735_s11 + $0x144] sm:$0xf]  ;;  %v11465_v1 = vld [vmem:[%s17735_s11 + $0x148] sm:$0xf0] }
 0xa87   : > { %v6149_v5 = vpop.f32.mrf.mxu0 }
 0xa88   : > { %v16354_v27 = vpack.c.bf16 %v6236_v8, %v17687_v62  ;;  %v6186_v56 = vadd.f32 %v6149_v5, %v6052_v49  ;;  %6669 = vmatpush.bf16.msrb.mxu1 %v11428_v16 }
 0xa8a   : > { %v6205_v58 = vadd.f32 %v16348_v30, %v6186_v56  ;;  %6648 = vmatmul.bf16.vlgmr.msra.gmra.mxu3 %v16354_v27 }
 0xa8c   : > { %v6221_v26 = vadd.f32 %v6205_v58, %v16196_v33 }
 0xa8d   : > { %v5956_v38 = vpop.f32.mrf.mxu2  ;;  %v6056_v39 = vpop.f32.mrf.mxu3 }
 0xa8e   : > { %v6237_v44 = vmax.f32 %v6221_v26, 0.0  ;;  %v6054_v47 = vadd.f32 %v6053_v51, %v5956_v38 }
 0xa8f   : > { %v6151_v19 = vpop.f32.mrf.mxu0 }
 0xa90   : > { %v16360_v9 = vpack.c.bf16 %v6237_v44, %v6235_v6  ;;  %v6187_v36 = vadd.f32 %v6151_v19, %v6054_v47  ;;  %v11479_v6 = vld [vmem:[%s17735_s11 + $0x160] sm:$0xf]  ;;  %v12989_v44 = vld [vmem:[%s17735_s11 + $0x164] sm:$0xf]  ;;  %v11481_v19 = vld [vmem:[%s17735_s11 + $0x168] sm:$0xf0] }
 0xa92   : > { %v6206_v29 = vadd.f32 %v16348_v30, %v6187_v36  ;;  %6510 = vmatmul.bf16.vlgmr.msra.gmra.mxu1 %v16360_v9  ;;  %6539 = vmatmul.bf16.vlgmr.msrb.gmra.mxu2 %v16360_v9  ;;  %v12957_v36 = vld [vmem:[%s17735_s11 + $0x64] sm:$0xf] }
 0xa94   : > { %v6222_v53 = vadd.f32 %v6206_v29, %v16202_v14  ;;  %v11417_v29 = vld [vmem:[%s17735_s11 + $0x68] sm:$0xf0] }
 0xa95   : > { %v5959_v33 = vpop.f32.mrf.mxu2  ;;  %v6058_v35 = vpop.f32.mrf.mxu3 }
 0xa96   : > { %v6238_v57 = vmax.f32 %v6222_v53, 0.0  ;;  %v6057_v0 = vadd.f32 %v6056_v39, %v5959_v33  ;;  %v11484_v53 = vor.u32 %v12989_v44, %v11481_v19  ;;  %v11420_v33 = vor.u32 %v12957_v36, %v11417_v29  ;;  %v12951_v19 = vld [vmem:[%s17735_s11 + $0x34] sm:$0xf]  ;;  %v11393_v36 = vld [vmem:[%s17735_s11 + $0x38] sm:$0xf0] }
 0xa97   : > { %v6154_v41 = vpop.f32.mrf.mxu0 }
 0xa98   : > { %v16366_v32 = vpack.c.bf16 %v6238_v57, %v6236_v8  ;;  %v6188_v43 = vadd.f32 %v6154_v41, %v6057_v0  ;;  %6812 = vmatpush.bf16.msrb.mxu3 %v11484_v53  ;;  %6670 = vmatpush.bf16.msrb.mxu1 %v11420_v33  ;;  %v12988_v41 = vld [vmem:[%s17735_s11 + $0x154] sm:$0xf0] }
 0xa9a   : > { %v6207_v46 = vadd.f32 %v16348_v30, %v6188_v43 }
 0xa9c   : > { %v6223_v51 = vadd.f32 %v6207_v46, %v16208_v37  ;;  %v12990_v37 = vld [vmem:[%s17735_s11 + $0x164] sm:$0xf0] }
 0xa9d   : > { %v5961_v42 = vpop.f32.mrf.mxu2  ;;  %v6061_v60 = vpop.f32.mrf.mxu3  ;;  %v11480_v47 = vor.u32 %v12990_v37, %v11479_v6  ;;  %v12986_v46 = vld [vmem:[%s17735_s11 + $0x144] sm:$0xf0] }
 0xa9e   : > { %v6059_v40 = vadd.f32 %v6058_v35, %v5961_v42  ;;  %v6239_v56 = vmax.f32 %v6223_v51, 0.0  ;;  %v12987_v42 = vld [vmem:[%s17735_s11 + $0x154] sm:$0xf]  ;;  %v11464_v54 = vor.u32 %v12986_v46, %v11463_v48  ;;  %v11439_v46 = vld [vmem:[%s17735_s11 + $0x110] sm:$0xf] }
 0xa9f   : > { %v6156_v59 = vpop.f32.mrf.mxu0  ;;  %6783 = vmatpush.bf16.msra.mxu2 %v11480_v47 }
 0xaa0   : > { %v6189_v7 = vadd.f32 %v6156_v59, %v6059_v40  ;;  %v11473_v59 = vld [vmem:[%s17735_s11 + $0x158] sm:$0xf0] }
 0xaa1   : > { %v11476_v43 = vor.u32 %v12987_v42, %v11473_v59 }
 0xaa2   : > { %v6208_v14 = vadd.f32 %v16348_v30, %v6189_v7 }
 0xaa3   : > { %6813 = vmatpush.bf16.msrb.mxu3 %v11476_v43 }
 0xaa4   : > { %v16370_v63 = vadd.f32 %v6208_v14, %v16214_v31  ;;  %v12955_v14 = vld [vmem:[%s17735_s11 + $0x54] sm:$0xf] }
 0xaa5   : > { %v5964_v52 = vpop.f32.mrf.mxu2  ;;  %v6063_v50 = vpop.f32.mrf.mxu3 }
 0xaa6   : > { %v6062_v3 = vadd.f32 %v6061_v60, %v5964_v52  ;;  %v6240_v4 = vmax.f32 %v16370_v63, 0.0  ;;  %v11409_v63 = vld [vmem:[%s17735_s11 + $0x58] sm:$0xf0] }
 0xaa7   : > { %v6159_v17 = vpop.f32.mrf.mxu0 }
 0xaa8   : > { %v6190_v31 = vadd.f32 %v6159_v17, %v6062_v3  ;;  %v16380_v21 = vpack.c.bf16 %v6240_v4, %v6238_v57  ;;  %v11471_v57 = vld [vmem:[%s17735_s11 + $0x150] sm:$0xf]  ;;  %v12953_v17 = vld [vmem:[%s17735_s11 + $0x44] sm:$0xf] }
 0xaa9   : > { %v11472_v40 = vor.u32 %v12988_v41, %v11471_v57 }
 0xaaa   : > { %v6209_v23 = vadd.f32 %v16348_v30, %v6190_v31  ;;  %6653 = vmatmul.bf16.gmra.mxu3 %v16380_v21  ;;  %v11468_v31 = vor.u32 %v12985_v2, %v11465_v1 }
 0xaab   : > { %6784 = vmatpush.bf16.msra.mxu2 %v11472_v40 }
 0xaac   : > { %v6225_v8 = vadd.f32 %v6209_v23, %v16220_v11  ;;  %6814 = vmatpush.bf16.msrb.mxu3 %v11468_v31  ;;  %v11433_v31 = vld [vmem:[%s17735_s11 + $0x108] sm:$0xf0] }
 0xaad   : > { %v5966_v49 = vpop.f32.mrf.mxu2  ;;  %v6066_v5 = vpop.f32.mrf.mxu3 }
 0xaae   : > { %v6241_v13 = vmax.f32 %v6225_v8, 0.0  ;;  %v6064_v58 = vadd.f32 %v6063_v50, %v5966_v49 }
 0xaaf   : > { %v6161_v26 = vpop.f32.mrf.mxu0  ;;  %6785 = vmatpush.bf16.msra.mxu2 %v11464_v54  ;;  %v12947_v54 = vld [vmem:[%s17735_s11 + $0x14] sm:$0xf] }
 0xab0   : > { %v16386_v38 = vpack.c.bf16 %v6241_v13, %v6239_v56  ;;  %v6191_v39 = vadd.f32 %v6161_v26, %v6064_v58  ;;  %v12984_v56 = vld [vmem:[%s17735_s11 + $0x134] sm:$0xf0]  ;;  %v12983_v13 = vld [vmem:[%s17735_s11 + $0x134] sm:$0xf] }
 0xab2   : > { %v6210_v11 = vadd.f32 %v16348_v30, %v6191_v39  ;;  %6515 = vmatmul.bf16.gmra.mxu1 %v16386_v38  ;;  %6544 = vmatmul.bf16.gmra.mxu2 %v16386_v38  ;;  %v11457_v39 = vld [vmem:[%s17735_s11 + $0x138] sm:$0xf0] }
 0xab3   : > { %v11460_v47 = vor.u32 %v12983_v13, %v11457_v39  ;;  %v11369_v39 = vld [vmem:[%s17735_s11 + $0x8] sm:$0xf0] }
 0xab4   : > { %v6226_v35 = vadd.f32 %v6210_v11, %v16226_v20  ;;  %v11412_v20 = vor.u32 %v12955_v14, %v11409_v63  ;;  %v12982_v63 = vld [vmem:[%s17735_s11 + $0x124] sm:$0xf0] }
 0xab5   : > { %v5969_v60 = vpop.f32.mrf.mxu2  ;;  %v6068_v0 = vpop.f32.mrf.mxu3  ;;  %6815 = vmatpush.bf16.msrb.mxu3 %v11460_v47 }
 0xab6   : > { %v6242_v7 = vmax.f32 %v6226_v35, 0.0  ;;  %6671 = vmatpush.bf16.msrb.mxu1 %v11412_v20  ;;  %v6067_v50 = vadd.f32 %v6066_v5, %v5969_v60  ;;  %v11455_v5 = vld [vmem:[%s17735_s11 + $0x130] sm:$0xf]  ;;  %v12981_v60 = vld [vmem:[%s17735_s11 + $0x124] sm:$0xf] }
 0xab7   : > { %v6164_v61 = vpop.f32.mrf.mxu0  ;;  %v11456_v26 = vor.u32 %v12984_v56, %v11455_v5  ;;  %v12978_v5 = vld [vmem:[%s17735_s11 + $0x104] sm:$0xf0] }
 0xab8   : > { %v16404_v15 = vpack.c.bf16 %v6242_v7, %v6240_v4  ;;  %v11401_v4 = vld [vmem:[%s17735_s11 + $0x48] sm:$0xf0]  ;;  %v6192_v23 = vadd.f32 %v6164_v61, %v6067_v50  ;;  %v12949_v61 = vld [vmem:[%s17735_s11 + $0x24] sm:$0xf]  ;;  %v11441_v50 = vld [vmem:[%s17735_s11 + $0x118] sm:$0xf0] }
 0xab9   : > { %v11404_v51 = vor.u32 %v12953_v17, %v11401_v4  ;;  %6786 = vmatpush.bf16.msra.mxu2 %v11456_v26  ;;  %v11377_v17 = vld [vmem:[%s17735_s11 + $0x18] sm:$0xf0]  ;;  %v12945_v26 = vld [vmem:[%s17735_s11 + $0x4] sm:$0xf] }
 0xaba   : > { %v6211_v6 = vadd.f32 %v16348_v30, %v6192_v23 }
 0xabb   : > { %6672 = vmatpush.bf16.msrb.mxu1 %v11404_v51  ;;  %v11380_v51 = vor.u32 %v12947_v54, %v11377_v17  ;;  %v11535_v17 = vld [vmem:[%s17738_s16 + $0x150] sm:$0xf] }
 0xabc   : > { %v6227_v35 = vadd.f32 %v6211_v6, %v16232_v55  ;;  %v11447_v55 = vld [vmem:[%s17735_s11 + $0x120] sm:$0xf] }
 0xabd   : > { %v5971_v22 = vpop.f32.mrf.mxu2  ;;  %v6071_v52 = vpop.f32.mrf.mxu3 }
 0xabe   : > { %v6069_v12 = vadd.f32 %v6068_v0, %v5971_v22  ;;  %v11449_v0 = vld [vmem:[%s17735_s11 + $0x128] sm:$0xf0]  ;;  %v6243_v40 = vmax.f32 %v6227_v35, 0.0 }
 0xabf   : > { %v6166_v3 = vpop.f32.mrf.mxu0  ;;  %v11385_v22 = vld [vmem:[%s17735_s11 + $0x28] sm:$0xf0] }
 0xac0   : > { %v6193_v16 = vadd.f32 %v6166_v3, %v6069_v12  ;;  %v11388_v12 = vor.u32 %v12949_v61, %v11385_v22  ;;  %v12980_v3 = vld [vmem:[%s17735_s11 + $0x114] sm:$0xf0] }
 0xac1   : > { %v11440_v1 = vor.u32 %v12980_v3, %v11439_v46 }
 0xac2   : > { %v6212_v8 = vadd.f32 %v16348_v30, %v6193_v16  ;;  %v12977_v16 = vld [vmem:[%s17735_s11 + $0x104] sm:$0xf] }
 0xac3   : > { %v11436_v23 = vor.u32 %v12977_v16, %v11433_v31  ;;  %v13036_v16 = vld [vmem:[%s17738_s16 + $0x154] sm:$0xf0] }
 0xac4   : > { %v16414_v49 = vadd.f32 %v6212_v8, %v16238_v45  ;;  %v11396_v45 = vor.u32 %v12951_v19, %v11393_v36  ;;  %v11431_v8 = vld [vmem:[%s17735_s11 + $0x100] sm:$0xf]  ;;  %v11536_v31 = vor.u32 %v13036_v16, %v11535_v17  ;;  %v13037_v17 = vld [vmem:[%s17738_s16 + $0x164] sm:$0xf]  ;;  %v11545_v16 = vld [vmem:[%s17738_s16 + $0x168] sm:$0xf0] }
 0xac5   : > { %v5974_v58 = vpop.f32.mrf.mxu2  ;;  %v6073_v29 = vpop.f32.mrf.mxu3  ;;  %v11432_v13 = vor.u32 %v12978_v5, %v11431_v8  ;;  %v11527_v8 = vld [vmem:[%s17738_s16 + $0x140] sm:$0xf]  ;;  %v13034_v5 = vld [vmem:[%s17738_s16 + $0x144] sm:$0xf0] }
 0xac6   : > { %v6072_v37 = vadd.f32 %v6071_v52, %v5974_v58  ;;  %v6244_v44 = vmax.f32 %v16414_v49, 0.0  ;;  %6673 = vmatpush.bf16.msrb.mxu1 %v11396_v45  ;;  %v12979_v52 = vld [vmem:[%s17735_s11 + $0x114] sm:$0xf] }
 0xac7   : > { %v6169_v11 = vpop.f32.mrf.mxu0  ;;  %v11444_v48 = vor.u32 %v12979_v52, %v11441_v50  ;;  %v11551_v52 = vld [vmem:[%s17737_s22 + $0x170] sm:$0xf]  ;;  %v13040_v50 = vld [vmem:[%s17738_s16 + $0x174] sm:$0xf0]  ;;  %s10236_s22 = scalar_lea.hbm %s17780_s25, %s12806_s12 }
 0xac8   : > { %v6194_v53 = vadd.f32 %v6169_v11, %v6072_v37  ;;  %v16426_v33 = vpack.c.bf16 %v6244_v44, %v6242_v7  ;;  %v11452_v7 = vor.u32 %v12981_v60, %v11449_v0  ;;  %v11372_v37 = vor.u32 %v12945_v26, %v11369_v39  ;;  %v13032_v26 = vld [vmem:[%s17738_s16 + $0x134] sm:$0xf0]  ;;  %v11615_v39 = vld [vmem:[%s17738_s16 + $0x1f0] sm:$0xf] }
 0xaca   : > { %v6213_v57 = vadd.f32 %v16348_v30, %v6194_v53  ;;  %6658 = vmatmul.bf16.gmra.mxu3 %v16426_v33  ;;  %6674 = vmatpush.bf16.msrb.mxu1 %v11388_v12  ;;  %v11552_v12 = vor.u32 %v13040_v50, %v11551_v52  ;;  %v11503_v52 = vld [vmem:[%s17738_s16 + $0x110] sm:$0xf]  ;;  %v13028_v50 = vld [vmem:[%s17738_s16 + $0x114] sm:$0xf0] }
 0xacb   : > { %6816 = vmatpush.bf16.msrb.mxu3 %v11452_v7 }
 0xacc   : > { %v6229_v41 = vadd.f32 %v6213_v57, %v16244_v28  ;;  %v11448_v28 = vor.u32 %v12982_v63, %v11447_v55  ;;  %7069 = vmatpush.bf16.msra.mxu0 %v11552_v12  ;;  %v11583_v12 = vld [vmem:[%s17738_s16 + $0x1b0] sm:$0xf] }
 0xacd   : > { %v5976_v42 = vpop.f32.mrf.mxu2  ;;  %v6076_v20 = vpop.f32.mrf.mxu3 }
 0xace   : > { %v6245_v59 = vmax.f32 %v6229_v41, 0.0  ;;  %6787 = vmatpush.bf16.msra.mxu2 %v11448_v28  ;;  %v6074_v4 = vadd.f32 %v6073_v29, %v5976_v42  ;;  %6675 = vmatpush.bf16.msrb.mxu1 %v11380_v51 }
 0xacf   : > { %v6171_v43 = vpop.f32.mrf.mxu0  ;;  %6817 = vmatpush.bf16.msrb.mxu3 %v11444_v48 }
 0xad0   : > { %v16434_v14 = vpack.c.bf16 %v6245_v59, %v6243_v40  ;;  %v6195_v58 = vadd.f32 %v6171_v43, %v6074_v4 }
 0xad2   : > { %6520 = vmatmul.bf16.gmra.mxu1 %v16434_v14  ;;  %6549 = vmatmul.bf16.gmra.mxu2 %v16434_v14  ;;  %v6214_v19 = vadd.f32 %v16348_v30, %v6195_v58 }
 0xad3   : > { %6788 = vmatpush.bf16.msra.mxu2 %v11440_v1  ;;  %6818 = vmatpush.bf16.msrb.mxu3 %v11436_v23 }
 0xad4   : > { %6676 = vmatpush.bf16.msrb.mxu1 %v11372_v37  ;;  %v6230_v53 = vadd.f32 %v6214_v19, %v16250_v34  ;;  %v13056_v37 = vld [vmem:[%s17738_s16 + $0x1f4] sm:$0xf0]  ;;  %v11607_v19 = vld [vmem:[%s17738_s16 + $0x1e0] sm:$0xf] }
 0xad5   : > { %v5979_v2 = vpop.f32.mrf.mxu2  ;;  %v6078_v6 = vpop.f32.mrf.mxu3 }
 0xad6   : > { %v6077_v36 = vadd.f32 %v6076_v20, %v5979_v2  ;;  %v6246_v59 = vmax.f32 %v6230_v53, 0.0  ;;  %v11599_v53 = vld [vmem:[%s17738_s16 + $0x1d0] sm:$0xf] }
 0xad7   : > { %v6174_v56 = vpop.f32.mrf.mxu0  ;;  %6789 = vmatpush.bf16.msra.mxu2 %v11432_v13 }
 0xad8   : > { %v6196_v35 = vadd.f32 %v6174_v56, %v6077_v36  ;;  %v6700_v51 = vpack.c.bf16 %v6246_v59, %v6244_v44  ;;  %v11528_v56 = vor.u32 %v13034_v5, %v11527_v8  ;;  %v13054_v36 = vld [vmem:[%s17738_s16 + $0x1e4] sm:$0xf0]  ;;  %v11575_v5 = vld [vmem:[%s17738_s16 + $0x1a0] sm:$0xf] }
 0xada   : > { %v6215_v0 = vadd.f32 %v16348_v30, %v6196_v35  ;;  %v13052_v35 = vld [vmem:[%s17738_s16 + $0x1d4] sm:$0xf0] }
 0xadc   : > { %v6231_v61 = vadd.f32 %v6215_v0, %v16256_v10  ;;  %v11543_v10 = vld [vmem:[%s17738_s16 + $0x160] sm:$0xf] }
 0xadd   : > { %v5981_v47 = vpop.f32.mrf.mxu2  ;;  %v6081_v42 = vpop.f32.mrf.mxu3 }
 0xade   : > { %v6079_v29 = vadd.f32 %v6078_v6, %v5981_v47  ;;  %v6247_v20 = vmax.f32 %v6231_v61, 0.0  ;;  %v11616_v47 = vor.u32 %v13056_v37, %v11615_v39  ;;  %v13033_v39 = vld [vmem:[%s17738_s16 + $0x144] sm:$0xf]  ;;  %v13047_v37 = vld [vmem:[%s17738_s16 + $0x1b4] sm:$0xf] }
 0xadf   : > { %v6176_v11 = vpop.f32.mrf.mxu0 }
 0xae0   : > { %v6197_v45 = vadd.f32 %v6176_v11, %v6079_v29  ;;  %7098 = vmatpush.bf16.msra.mxu1 %v11616_v47  ;;  %v11511_v29 = vld [vmem:[%s17738_s16 + $0x120] sm:$0xf]  ;;  %v11608_v11 = vor.u32 %v13054_v36, %v11607_v19  ;;  %v11585_v19 = vld [vmem:[%s17738_s16 + $0x1b8] sm:$0xf0] }
 0xae2   : > { %v6216_v57 = vadd.f32 %v16348_v30, %v6197_v45  ;;  %v13030_v45 = vld [vmem:[%s17738_s16 + $0x124] sm:$0xf0] }
 0xae4   : > { %v6232_v41 = vadd.f32 %v6216_v57, %v16262_v18  ;;  %7099 = vmatpush.bf16.msra.mxu1 %v11608_v11 }
 0xae5   : > { %v5984_v60 = vpop.f32.mrf.mxu2  ;;  %v6083_v46 = vpop.f32.mrf.mxu3 }
 0xae6   : > { %v6082_v40 = vadd.f32 %v6081_v42, %v5984_v60  ;;  %v6248_v7 = vmax.f32 %v6232_v41, 0.0  ;;  %v11512_v41 = vor.u32 %v13030_v45, %v11511_v29  ;;  %v11600_v42 = vor.u32 %v13052_v35, %v11599_v53  ;;  %v13031_v45 = vld [vmem:[%s17738_s16 + $0x134] sm:$0xf]  ;;  %v11521_v53 = vld [vmem:[%s17738_s16 + $0x138] sm:$0xf0] }
 0xae7   : > { %v6179_v43 = vpop.f32.mrf.mxu0  ;;  %v11588_v29 = vor.u32 %v13047_v37, %v11585_v19  ;;  %v13045_v35 = vld [vmem:[%s17738_s16 + $0x1a4] sm:$0xf]  ;;  %v13024_v19 = vld [vmem:[%s17738_s16 + $0xf4] sm:$0xf0] }
 0xae8   : > { %v6198_v55 = vadd.f32 %v6179_v43, %v6082_v40  ;;  %v6417_v63 = vpack.c.bf16 %v6248_v7, %v6246_v59  ;;  %7100 = vmatpush.bf16.msra.mxu1 %v11600_v42  ;;  %v11591_v59 = vld [vmem:[%s17738_s16 + $0x1c0] sm:$0xf]  ;;  %v11577_v42 = vld [vmem:[%s17738_s16 + $0x1a8] sm:$0xf0] }
 0xaea   : > { %v6217_v34 = vadd.f32 %v16348_v30, %v6198_v55  ;;  %6663 = vmatmul.bf16.gmra.mxu3 %v6417_v63 }
 0xaec   : > { %v6233_v18 = vadd.f32 %v6217_v34, %v16268_v25  ;;  %v13038_v25 = vld [vmem:[%s17738_s16 + $0x164] sm:$0xf0]  ;;  %v13055_v34 = vld [vmem:[%s17738_s16 + $0x1f4] sm:$0xf] }
 0xaed   : > { %v11544_v48 = vor.u32 %v13038_v25, %v11543_v10  ;;  %v5986_v1 = vpop.f32.mrf.mxu2  ;;  %v11504_v10 = vor.u32 %v13028_v50, %v11503_v52  ;;  %v13048_v25 = vld [vmem:[%s17738_s16 + $0x1b4] sm:$0xf0]  ;;  %v11569_v52 = vld [vmem:[%s17738_s16 + $0x198] sm:$0xf0] }
 0xaee   : > { %v6249_v28 = vmax.f32 %v6233_v18, 0.0  ;;  %v11617_v18 = vld [vmem:[%s17738_s16 + $0x1f8] sm:$0xf0] }
 0xaef   : > { %7070 = vmatpush.bf16.msra.mxu0 %v11544_v48  ;;  %v13039_v48 = vld [vmem:[%s17738_s16 + $0x174] sm:$0xf] }
 0xaf0   : > { %v16462_v22 = vpack.c.bf16 %v6249_v28, %v6247_v20  ;;  %v11620_v28 = vor.u32 %v13055_v34, %v11617_v18  ;;  %v11513_v18 = vld [vmem:[%s17738_s16 + $0x128] sm:$0xf0] }
 0xaf2   : > { %6525 = vmatmul.bf16.gmra.mxu1 %v16462_v22  ;;  %6554 = vmatmul.bf16.gmra.mxu2 %v16462_v22 }
 0xaf3   : > { %7071 = vmatpush.bf16.msra.mxu0 %v11536_v31  ;;  %7156 = vmatpush.bf16.msra.mxu3 %v11620_v28  ;;  %v13051_v31 = vld [vmem:[%s17738_s16 + $0x1d4] sm:$0xf] }
 0xaf4   : > { %v13043_v28 = vld [vmem:[%s17738_s16 + $0x194] sm:$0xf] }
 0xaf7   : > { %7072 = vmatpush.bf16.msra.mxu0 %v11528_v56  ;;  %v13046_v56 = vld [vmem:[%s17738_s16 + $0x1a4] sm:$0xf0] }
 0xafa   : > { %6819 = vmatmul.bf16.vlgmr.msrb.gmra.mxu3 %v16366_v32 }
 0xb02   : > { %6677 = vmatmul.bf16.vlgmr.msrb.gmra.mxu1 %v16354_v27  ;;  %6790 = vmatmul.bf16.vlgmr.msra.gmra.mxu2 %v16366_v32  ;;  %v6084_v27 = vadd.f32 %v6083_v46, %v5986_v1  ;;  %v6181_v32 = vpop.f32.mrf.mxu0  ;;  %v11553_v46 = vld [vmem:[%s17738_s16 + $0x178] sm:$0xf0]  ;;  %v13053_v1 = vld [vmem:[%s17738_s16 + $0x1e4] sm:$0xf] }
 0xb04   : > { %v6199_v4 = vadd.f32 %v6181_v32, %v6084_v27  ;;  %v11609_v27 = vld [vmem:[%s17738_s16 + $0x1e8] sm:$0xf0] }
 0xb05   : > { %v11612_v32 = vor.u32 %v13053_v1, %v11609_v27  ;;  %v13042_v1 = vld [vmem:[%s17738_s16 + $0x184] sm:$0xf0]  ;;  %v13027_v27 = vld [vmem:[%s17738_s16 + $0x114] sm:$0xf] }
 0xb06   : > { %v6218_v23 = vadd.f32 %v16348_v30, %v6199_v4  ;;  %v11548_v4 = vor.u32 %v13037_v17, %v11545_v16  ;;  %v11505_v17 = vld [vmem:[%s17738_s16 + $0x118] sm:$0xf0]  ;;  %v13041_v16 = vld [vmem:[%s17738_s16 + $0x184] sm:$0xf] }
 0xb07   : > { %7157 = vmatpush.bf16.msra.mxu3 %v11612_v32 }
 0xb0a   : > { %6824 = vmatmul.bf16.gmra.mxu3 %v16404_v15 }
 0xb0d   : > { %v6649_v3 = vpop.f32.mrf.mxu3 }
 0xb0f   : > { %v6511_v54 = vpop.f32.mrf.mxu1 }
 0xb10   : > { %v16474_v2 = vadd.f32 %v6649_v3, %v6511_v54  ;;  %v11584_v3 = vor.u32 %v13048_v25, %v11583_v12  ;;  %v11556_v54 = vor.u32 %v13039_v48, %v11553_v46  ;;  %v11572_v12 = vor.u32 %v13043_v28, %v11569_v52  ;;  %v13026_v25 = vld [vmem:[%s17738_s16 + $0x104] sm:$0xf0] }
 0xb12   : > { %6682 = vmatmul.bf16.gmra.mxu1 %v16380_v21  ;;  %6795 = vmatmul.bf16.gmra.mxu2 %v16404_v15  ;;  %v6234_v21 = vadd.f32 %v6218_v23, %v16274_v24 }
 0xb13   : > { %7127 = vmatpush.bf16.msrb.mxu2 %v11556_v54  ;;  %v11559_v54 = vld [vmem:[%s17738_s16 + $0x180] sm:$0xf] }
 0xb14   : > { %v6250_v15 = vmax.f32 %v6234_v21, 0.0  ;;  %v11576_v21 = vor.u32 %v13046_v56, %v11575_v5  ;;  %v11560_v32 = vor.u32 %v13042_v1, %v11559_v54  ;;  %v13025_v56 = vld [vmem:[%s17738_s16 + $0x104] sm:$0xf]  ;;  %v11663_v1 = vld [vmem:[%s17738_s16 + $0x50] sm:$0xf] }
 0xb15   : > { %v16487_v49 = vpop.f32.mrf.mxu3  ;;  %v16503_v57 = vpop.f32.mrf.mxu2 }
 0xb16   : > { %v6701_v30 = vpack.c.bf16 %v6250_v15, %v6248_v7  ;;  %v13050_v7 = vld [vmem:[%s17738_s16 + $0x1c4] sm:$0xf0]  ;;  %v13035_v15 = vld [vmem:[%s17738_s16 + $0x154] sm:$0xf] }
 0xb17   : > { %v16489_v44 = vpop.f32.mrf.mxu1  ;;  %v11592_v43 = vor.u32 %v13050_v7, %v11591_v59  ;;  %7128 = vmatpush.bf16.msrb.mxu2 %v11548_v4  ;;  %v11580_v7 = vor.u32 %v13045_v35, %v11577_v42  ;;  %v13006_v42 = vld [vmem:[%s17738_s16 + $0x64] sm:$0xf0] }
 0xb19   : > { %7101 = vmatpush.bf16.msra.mxu1 %v11592_v43  ;;  %v11567_v43 = vld [vmem:[%s17738_s16 + $0x190] sm:$0xf] }
 0xb1a   : > { %6829 = vmatmul.bf16.gmra.mxu3 %v6700_v51 }
 0xb1d   : > { %v16509_v40 = vpop.f32.mrf.mxu2  ;;  %7102 = vmatpush.bf16.msra.mxu1 %v11584_v3 }
 0xb21   : > { %7103 = vmatpush.bf16.msra.mxu1 %v11576_v21  ;;  %v11497_v21 = vld [vmem:[%s17738_s16 + $0x108] sm:$0xf0] }
 0xb22   : > { %6687 = vmatmul.bf16.gmra.mxu1 %v16426_v33  ;;  %6800 = vmatmul.bf16.gmra.mxu2 %v6700_v51  ;;  %v11519_v33 = vld [vmem:[%s17738_s16 + $0x130] sm:$0xf]  ;;  %v11601_v51 = vld [vmem:[%s17738_s16 + $0x1d8] sm:$0xf0] }
 0xb23   : > { %v11520_v6 = vor.u32 %v13032_v26, %v11519_v33  ;;  %v11604_v23 = vor.u32 %v13051_v31, %v11601_v51  ;;  %v11593_v33 = vld [vmem:[%s17738_s16 + $0x1c8] sm:$0xf0]  ;;  %v11508_v51 = vor.u32 %v13027_v27, %v11505_v17  ;;  %v13004_v27 = vld [vmem:[%s17738_s16 + $0x54] sm:$0xf0] }
 0xb24   : > { %v11561_v31 = vld [vmem:[%s17738_s16 + $0x188] sm:$0xf0] }
 0xb25   : > { %7073 = vmatpush.bf16.msra.mxu0 %v11520_v6  ;;  %7158 = vmatpush.bf16.msra.mxu3 %v11604_v23  ;;  %v11529_v6 = vld [vmem:[%s17738_s16 + $0x148] sm:$0xf0]  ;;  %v11564_v23 = vor.u32 %v13041_v16, %v11561_v31  ;;  %v11664_v31 = vor.u32 %v13004_v27, %v11663_v1 }
 0xb26   : > { %v11532_v47 = vor.u32 %v13033_v39, %v11529_v6  ;;  %v11743_v39 = vld [vmem:[%s17738_s16 + $0xf0] sm:$0xf] }
 0xb29   : > { %7074 = vmatpush.bf16.msra.mxu0 %v11512_v41  ;;  %v11524_v41 = vor.u32 %v13031_v45, %v11521_v53  ;;  %v6299_v53 = vld [vmem:[%s17739_s10] sm:$0x3]  ;;  %s1570_s10 = scalar_lea.vmem [#allocation24], %s10500_s9 }
 0xb2a   : > { %6834 = vmatmul.bf16.gmra.mxu3 %v6701_v30 }
 0xb2d   : > { %v6654_v13 = vpop.f32.mrf.mxu3  ;;  %7075 = vmatpush.bf16.msra.mxu0 %v11504_v10  ;;  %v11495_v10 = vld [vmem:[%s17738_s16 + $0x100] sm:$0xf] }
 0xb2e   : > { %v11496_v3 = vor.u32 %v13026_v25, %v11495_v10  ;;  %v16598_v25 = vperm.slane %v6299_v53, 0 }
 0xb2f   : > { %v6516_v58 = vpop.f32.mrf.mxu1 }
 0xb30   : > { %v16491_v24 = vadd.f32 %v6654_v13, %v6516_v58  ;;  %v13049_v13 = vld [vmem:[%s17738_s16 + $0x1c4] sm:$0xf] }
 0xb31   : > { %v11596_v26 = vor.u32 %v13049_v13, %v11593_v33  ;;  %7076 = vmatpush.bf16.msra.mxu0 %v11496_v3  ;;  %v11679_v33 = vld [vmem:[%s17738_s16 + $0x70] sm:$0xf]  ;;  %v6652_v3 = vadd.f32 %v16487_v49, %v16489_v44 }
 0xb32   : > { %6692 = vmatmul.bf16.gmra.mxu1 %v6417_v63  ;;  %6805 = vmatmul.bf16.gmra.mxu2 %v6701_v30  ;;  %v11537_v30 = vld [vmem:[%s17738_s16 + $0x158] sm:$0xf0] }
 0xb33   : > { %v11540_v58 = vor.u32 %v13035_v15, %v11537_v30  ;;  %7159 = vmatpush.bf16.msra.mxu3 %v11596_v26  ;;  %v11500_v15 = vor.u32 %v13025_v56, %v11497_v21  ;;  %v13008_v26 = vld [vmem:[%s17738_s16 + $0x74] sm:$0xf0] }
 0xb35   : > { %v16505_v60 = vpop.f32.mrf.mxu3  ;;  %v16517_v20 = vpop.f32.mrf.mxu2  ;;  %7129 = vmatpush.bf16.msrb.mxu2 %v11540_v58 }
 0xb37   : > { %v16507_v0 = vpop.f32.mrf.mxu1  ;;  %7160 = vmatpush.bf16.msra.mxu3 %v11588_v29  ;;  %v11744_v29 = vor.u32 %v13024_v19, %v11743_v39  ;;  %v11655_v19 = vld [vmem:[%s17738_s16 + $0x40] sm:$0xf] }
 0xb39   : > { %7130 = vmatpush.bf16.msrb.mxu2 %v11532_v47  ;;  %v11680_v47 = vor.u32 %v13008_v26, %v11679_v33  ;;  %v13023_v33 = vld [vmem:[%s17738_s16 + $0xf4] sm:$0xf]  ;;  %v11745_v26 = vld [vmem:[%s17738_s16 + $0xf8] sm:$0xf0] }
 0xb3b   : > { %7161 = vmatpush.bf16.msra.mxu3 %v11580_v7  ;;  %7345 = vmatpush.bf16.msrb.mxu0 %v11680_v47  ;;  %v11735_v7 = vld [vmem:[%s17738_s16 + $0xe0] sm:$0xf] }
 0xb3d   : > { %v16531_v8 = vpop.f32.mrf.mxu2  ;;  %7131 = vmatpush.bf16.msrb.mxu2 %v11524_v41  ;;  %v11671_v41 = vld [vmem:[%s17738_s16 + $0x60] sm:$0xf] }
 0xb3f   : > { %7162 = vmatpush.bf16.msra.mxu3 %v11572_v12 }
 0xb43   : > { %7163 = vmatpush.bf16.msra.mxu3 %v11564_v23 }
 0xb4d   : > { %v6659_v55 = vpop.f32.mrf.mxu3 }
 0xb4f   : > { %v6521_v63 = vpop.f32.mrf.mxu1 }
 0xb50   : > { %v16513_v61 = vadd.f32 %v6659_v55, %v6521_v63  ;;  %v13044_v55 = vld [vmem:[%s17738_s16 + $0x194] sm:$0xf0]  ;;  %v13029_v63 = vld [vmem:[%s17738_s16 + $0x124] sm:$0xf] }
 0xb51   : > { %v11568_v34 = vor.u32 %v13044_v55, %v11567_v43  ;;  %v11516_v50 = vor.u32 %v13029_v63, %v11513_v18  ;;  %v11672_v43 = vor.u32 %v13006_v42, %v11671_v41  ;;  %v13022_v55 = vld [vmem:[%s17738_s16 + $0xe4] sm:$0xf0]  ;;  %v16591_v18 = vperm.slane %v6299_v53, 1 }
 0xb52   : > { %v11736_v63 = vor.u32 %v13022_v55, %v11735_v7  ;;  %v13018_v41 = vld [vmem:[%s17738_s16 + $0xc4] sm:$0xf0] }
 0xb53   : > { %7104 = vmatpush.bf16.msra.mxu1 %v11568_v34  ;;  %7132 = vmatpush.bf16.msrb.mxu2 %v11516_v50 }
 0xb54   : > { %7346 = vmatpush.bf16.msrb.mxu0 %v11672_v43 }
 0xb55   : > { %v16543_v36 = vpop.f32.mrf.mxu2  ;;  %v16545_v11 = vpop.f32.mrf.mxu3 }
 0xb57   : > { %v16551_v59 = vpop.f32.mrf.mxu1  ;;  %7105 = vmatpush.bf16.msra.mxu1 %v11560_v32  ;;  %7133 = vmatpush.bf16.msrb.mxu2 %v11508_v51  ;;  %v11727_v32 = vld [vmem:[%s17738_s16 + $0xd0] sm:$0xf] }
 0xb58   : > { %7347 = vmatpush.bf16.msrb.mxu0 %v11664_v31 }
 0xb5b   : > { %7134 = vmatpush.bf16.msrb.mxu2 %v11500_v15  ;;  %7374 = vmatpush.bf16.msrb.mxu1 %v11744_v29  ;;  %v13002_v29 = vld [vmem:[%s17738_s16 + $0x44] sm:$0xf0] }
 0xb5c   : > { %v11656_v53 = vor.u32 %v13002_v29, %v11655_v19  ;;  %v13016_v19 = vld [vmem:[%s17738_s16 + $0xb4] sm:$0xf0]  ;;  %v13003_v29 = vld [vmem:[%s17738_s16 + $0x54] sm:$0xf] }
 0xb5d   : > { %v16561_v48 = vpop.f32.mrf.mxu2 }
 0xb5e   : > { %7348 = vmatpush.bf16.msrb.mxu0 %v11656_v53 }
 0xb5f   : > { %7375 = vmatpush.bf16.msrb.mxu1 %v11736_v63  ;;  %v13007_v63 = vld [vmem:[%s17738_s16 + $0x74] sm:$0xf] }
 0xb6d   : > { %v6664_v46 = vpop.f32.mrf.mxu3 }
 0xb6f   : > { %v6526_v4 = vpop.f32.mrf.mxu1 }
 0xb70   : > { %v16569_v5 = vadd.f32 %v6664_v46, %v6526_v4  ;;  %v13020_v4 = vld [vmem:[%s17738_s16 + $0xd4] sm:$0xf0] }
 0xb71   : > { %v11728_v49 = vor.u32 %v13020_v4, %v11727_v32  ;;  %v11673_v32 = vld [vmem:[%s17738_s16 + $0x68] sm:$0xf0] }
 0xb73   : > { %7376 = vmatpush.bf16.msrb.mxu1 %v11728_v49  ;;  %v6657_v49 = vadd.f32 %v16505_v60, %v16507_v0 }
 0xb75   : > { %v16573_v30 = vpop.f32.mrf.mxu2  ;;  %v16575_v13 = vpop.f32.mrf.mxu3 }
 0xb77   : > { %v16577_v58 = vpop.f32.mrf.mxu1 }
 0xb7d   : > { %v16582_v6 = vpop.f32.mrf.mxu2  ;;  %v6820_v37 = vpop.f32.mrf.mxu3 }
 0xb7f   : > { %v6678_v45 = vpop.f32.mrf.mxu1 }
 0xb80   : > { %v6679_v35 = vadd.f32 %v6678_v45, %v16503_v57  ;;  %v11748_v45 = vor.u32 %v13023_v33, %v11745_v26 }
 0xb82   : > { %v6841_v34 = vadd.f32 %v6820_v37, %v6679_v35  ;;  %v11719_v35 = vld [vmem:[%s17738_s16 + $0xc0] sm:$0xf]  ;;  %7432 = vmatpush.bf16.msrb.mxu3 %v11748_v45  ;;  %v11665_v45 = vld [vmem:[%s17738_s16 + $0x58] sm:$0xf0] }
 0xb83   : > { %v11720_v7 = vor.u32 %v13018_v41, %v11719_v35  ;;  %v11668_v53 = vor.u32 %v13003_v29, %v11665_v45  ;;  %v13017_v35 = vld [vmem:[%s17738_s16 + $0xc4] sm:$0xf]  ;;  %v11721_v41 = vld [vmem:[%s17738_s16 + $0xc8] sm:$0xf0]  ;;  %v11695_v29 = vld [vmem:[%s17738_s16 + $0x90] sm:$0xf] }
 0xb84   : > { %v16595_v12 = vadd.f32 %v16591_v18, %v6841_v34  ;;  %v11681_v34 = vld [vmem:[%s17738_s16 + $0x78] sm:$0xf0]  ;;  %v13012_v45 = vld [vmem:[%s17738_s16 + $0x94] sm:$0xf0] }
 0xb85   : > { %v6791_v28 = vpop.f32.mrf.mxu2  ;;  %v6822_v52 = vpop.f32.mrf.mxu3  ;;  %7377 = vmatpush.bf16.msrb.mxu1 %v11720_v7 }
 0xb86   : > { %v6840_v10 = vadd.f32 %v6791_v28, %v16474_v2  ;;  %v6878_v17 = vmax.f32 %v16595_v12, 0.0  ;;  %v13021_v28 = vld [vmem:[%s17738_s16 + $0xe4] sm:$0xf] }
 0xb87   : > { %v6680_v50 = vpop.f32.mrf.mxu1  ;;  %v13085_v12 = vld [vmem:[%s17738_s16 + $0x2e4] sm:$0xf] }
 0xb88   : > { %v6681_v57 = vadd.f32 %v6680_v50, %v16509_v40  ;;  %v16609_v2 = vadd.f32 %v16598_v25, %v6840_v10  ;;  %v11737_v10 = vld [vmem:[%s17738_s16 + $0xe8] sm:$0xf0] }
 0xb8a   : > { %v6843_v46 = vadd.f32 %v6822_v52, %v6681_v57  ;;  %v6877_v39 = vmax.f32 %v16609_v2, 0.0  ;;  %v11684_v57 = vor.u32 %v13007_v63, %v11681_v34  ;;  %v13001_v63 = vld [vmem:[%s17738_s16 + $0x44] sm:$0xf]  ;;  %v11657_v34 = vld [vmem:[%s17738_s16 + $0x48] sm:$0xf0] }
 0xb8b   : > { %v11865_v2 = vld [vmem:[%s17738_s16 + $0x2e8] sm:$0xf0] }
 0xb8c   : > { %v6864_v54 = vadd.f32 %v16591_v18, %v6843_v46  ;;  %7403 = vmatpush.bf16.msra.mxu2 %v11684_v57 }
 0xb8d   : > { %v6793_v40 = vpop.f32.mrf.mxu2  ;;  %v6825_v16 = vpop.f32.mrf.mxu3 }
 0xb8e   : > { %v6880_v51 = vmax.f32 %v6864_v54, 0.0  ;;  %v6842_v23 = vadd.f32 %v6793_v40, %v6652_v3  ;;  %v11740_v3 = vor.u32 %v13021_v28, %v11737_v10  ;;  %v13019_v40 = vld [vmem:[%s17738_s16 + $0xd4] sm:$0xf]  ;;  %v11639_v10 = vld [vmem:[%s17738_s16 + $0x20] sm:$0xf] }
 0xb8f   : > { %v6683_v44 = vpop.f32.mrf.mxu1  ;;  %v13015_v28 = vld [vmem:[%s17738_s16 + $0xb4] sm:$0xf] }
 0xb90   : > { %v6902_v56 = vpack.c.bf16 %v6880_v51, %v6878_v17  ;;  %v6863_v21 = vadd.f32 %v16598_v25, %v6842_v23  ;;  %v6684_v15 = vadd.f32 %v6683_v44, %v16517_v20  ;;  %7433 = vmatpush.bf16.msrb.mxu3 %v11740_v3  ;;  %v11703_v3 = vld [vmem:[%s17738_s16 + $0xa0] sm:$0xf] }
 0xb92   : > { %v6879_v37 = vmax.f32 %v6863_v21, 0.0  ;;  %v6845_v47 = vadd.f32 %v6825_v16, %v6684_v15  ;;  %7106 = vmatmul.bf16.vlgmr.msra.gmra.mxu1 %v6902_v56  ;;  %7164 = vmatmul.bf16.vlgmr.msra.gmra.mxu3 %v6902_v56  ;;  %v11647_v56 = vld [vmem:[%s17738_s16 + $0x30] sm:$0xf]  ;;  %v13000_v21 = vld [vmem:[%s17738_s16 + $0x34] sm:$0xf0] }
 0xb93   : > { %v11711_v15 = vld [vmem:[%s17738_s16 + $0xb0] sm:$0xf] }
 0xb94   : > { %v6901_v20 = vpack.c.bf16 %v6879_v37, %v6877_v39  ;;  %v6866_v42 = vadd.f32 %v16591_v18, %v6845_v47  ;;  %v11648_v47 = vor.u32 %v13000_v21, %v11647_v56  ;;  %v13013_v56 = vld [vmem:[%s17738_s16 + $0xa4] sm:$0xf] }
 0xb95   : > { %v6796_v43 = vpop.f32.mrf.mxu2  ;;  %v6827_v55 = vpop.f32.mrf.mxu3 }
 0xb96   : > { %v6882_v52 = vmax.f32 %v6866_v42, 0.0  ;;  %v6844_v50 = vadd.f32 %v6796_v43, %v16491_v24  ;;  %7077 = vmatmul.bf16.vlgmr.msra.gmra.mxu0 %v6901_v20  ;;  %7135 = vmatmul.bf16.vlgmr.msrb.gmra.mxu2 %v6901_v20  ;;  %v13005_v24 = vld [vmem:[%s17738_s16 + $0x64] sm:$0xf]  ;;  %v11724_v42 = vor.u32 %v13017_v35, %v11721_v41 }
 0xb97   : > { %v6685_v46 = vpop.f32.mrf.mxu1  ;;  %v11676_v4 = vor.u32 %v13005_v24, %v11673_v32  ;;  %7349 = vmatpush.bf16.msrb.mxu0 %v11648_v47  ;;  %v12997_v41 = vld [vmem:[%s17738_s16 + $0x24] sm:$0xf] }
 0xb98   : > { %v16630_v54 = vpack.c.bf16 %v6882_v52, %v6880_v51  ;;  %v6865_v1 = vadd.f32 %v16598_v25, %v6844_v50  ;;  %v6686_v27 = vadd.f32 %v6685_v46, %v16531_v8  ;;  %v11729_v51 = vld [vmem:[%s17738_s16 + $0xd8] sm:$0xf0]  ;;  %v11660_v46 = vor.u32 %v13001_v63, %v11657_v34  ;;  %v12994_v63 = vld [vmem:[%s17738_s16 + $0x4] sm:$0xf0] }
 0xb99   : > { %v11732_v23 = vor.u32 %v13019_v40, %v11729_v51  ;;  %7404 = vmatpush.bf16.msra.mxu2 %v11676_v4 }
 0xb9a   : > { %v6881_v16 = vmax.f32 %v6865_v1, 0.0  ;;  %v6847_v31 = vadd.f32 %v6827_v55, %v6686_v27  ;;  %v13014_v1 = vld [vmem:[%s17738_s16 + $0xa4] sm:$0xf0]  ;;  %v11713_v27 = vld [vmem:[%s17738_s16 + $0xb8] sm:$0xf0] }
 0xb9b   : > { %7434 = vmatpush.bf16.msrb.mxu3 %v11732_v23  ;;  %v11704_v40 = vor.u32 %v13014_v1, %v11703_v3  ;;  %v12999_v23 = vld [vmem:[%s17738_s16 + $0x34] sm:$0xf]  ;;  %v11633_v1 = vld [vmem:[%s17738_s16 + $0x18] sm:$0xf0] }
 0xb9c   : > { %v16640_v44 = vpack.c.bf16 %v6881_v16, %v6879_v37  ;;  %v16643_v8 = vadd.f32 %v16591_v18, %v6847_v31  ;;  %v11712_v37 = vor.u32 %v13016_v19, %v11711_v15  ;;  %v11716_v31 = vor.u32 %v13015_v28, %v11713_v27  ;;  %v12995_v3 = vld [vmem:[%s17738_s16 + $0x14] sm:$0xf] }
 0xb9d   : > { %v6798_v33 = vpop.f32.mrf.mxu2  ;;  %v6830_v26 = vpop.f32.mrf.mxu3  ;;  %7405 = vmatpush.bf16.msra.mxu2 %v11668_v53  ;;  %v11696_v53 = vor.u32 %v13012_v45, %v11695_v29  ;;  %v6662_v27 = vadd.f32 %v16545_v11, %v16551_v59 }
 0xb9e   : > { %v6846_v60 = vadd.f32 %v6798_v33, %v6657_v49  ;;  %v6884_v0 = vmax.f32 %v16643_v8, 0.0  ;;  %7378 = vmatpush.bf16.msrb.mxu1 %v11712_v37  ;;  %v11649_v49 = vld [vmem:[%s17738_s16 + $0x38] sm:$0xf0]  ;;  %v12996_v33 = vld [vmem:[%s17738_s16 + $0x14] sm:$0xf0] }
 0xb9f   : > { %v6688_v20 = vpop.f32.mrf.mxu1  ;;  %7435 = vmatpush.bf16.msrb.mxu3 %v11724_v42  ;;  %v13011_v42 = vld [vmem:[%s17738_s16 + $0x94] sm:$0xf] }
 0xba0   : > { %v16655_v7 = vadd.f32 %v16598_v25, %v6846_v60  ;;  %v6689_v43 = vadd.f32 %v6688_v20, %v16543_v36  ;;  %v6904_v55 = vpack.c.bf16 %v6884_v0, %v6882_v52  ;;  %v12998_v36 = vld [vmem:[%s17738_s16 + $0x24] sm:$0xf0]  ;;  %v11705_v60 = vld [vmem:[%s17738_s16 + $0xa8] sm:$0xf0] }
 0xba1   : > { %v11640_v52 = vor.u32 %v12998_v36, %v11639_v10  ;;  %7406 = vmatpush.bf16.msra.mxu2 %v11660_v46  ;;  %v11708_v35 = vor.u32 %v13013_v56, %v11705_v60  ;;  %v11641_v20 = vld [vmem:[%s17738_s16 + $0x28] sm:$0xf0]  ;;  %v11687_v10 = vld [vmem:[%s17738_s16 + $0x80] sm:$0xf]  ;;  %v13010_v36 = vld [vmem:[%s17738_s16 + $0x84] sm:$0xf0] }
 0xba2   : > { %v6883_v50 = vmax.f32 %v16655_v7, 0.0  ;;  %v6849_v57 = vadd.f32 %v6830_v26, %v6689_v43  ;;  %7111 = vmatmul.bf16.gmra.mxu1 %v6904_v55  ;;  %7169 = vmatmul.bf16.gmra.mxu3 %v6904_v55  ;;  %v11652_v26 = vor.u32 %v12999_v23, %v11649_v49  ;;  %v11644_v7 = vor.u32 %v12997_v41, %v11641_v20  ;;  %v11697_v43 = vld [vmem:[%s17738_s16 + $0x98] sm:$0xf0]  ;;  %v11623_v55 = vld [vmem:[%s17738_s16] sm:$0xf] }
 0xba3   : > { %7350 = vmatpush.bf16.msrb.mxu0 %v11640_v52  ;;  %7379 = vmatpush.bf16.msrb.mxu1 %v11704_v40  ;;  %v11700_v46 = vor.u32 %v13011_v42, %v11697_v43  ;;  %v11688_v52 = vor.u32 %v13010_v36, %v11687_v10  ;;  %v11689_v40 = vld [vmem:[%s17738_s16 + $0x88] sm:$0xf0]  ;;  %v11807_v60 = vld [vmem:[%s17738_s16 + $0x270] sm:$0xf]  ;;  %v13088_v41 = vld [vmem:[%s17738_s16 + $0x2f4] sm:$0xf0] }
 0xba4   : > { %v16670_v24 = vadd.f32 %v16591_v18, %v6849_v57  ;;  %v6903_v32 = vpack.c.bf16 %v6883_v50, %v6881_v16  ;;  %v11631_v16 = vld [vmem:[%s17738_s16 + $0x10] sm:$0xf]  ;;  %7436 = vmatpush.bf16.msrb.mxu3 %v11716_v31  ;;  %v11624_v57 = vor.u32 %v12994_v63, %v11623_v55  ;;  %v11799_v20 = vld [vmem:[%s17738_s16 + $0x260] sm:$0xf]  ;;  %v13070_v55 = vld [vmem:[%s17738_s16 + $0x264] sm:$0xf0] }
 0xba5   : > { %v6801_v4 = vpop.f32.mrf.mxu2  ;;  %v6832_v51 = vpop.f32.mrf.mxu3  ;;  %v11632_v19 = vor.u32 %v12996_v33, %v11631_v16  ;;  %7407 = vmatpush.bf16.msra.mxu2 %v11652_v26  ;;  %v11625_v16 = vld [vmem:[%s17738_s16 + $0x8] sm:$0xf0]  ;;  %v11863_v63 = vld [vmem:[%s17738_s16 + $0x2e0] sm:$0xf] }
 0xba6   : > { %v6886_v21 = vmax.f32 %v16670_v24, 0.0  ;;  %v6848_v15 = vadd.f32 %v6801_v4, %v16513_v61  ;;  %7082 = vmatmul.bf16.gmra.mxu0 %v6903_v32  ;;  %7140 = vmatmul.bf16.gmra.mxu2 %v6903_v32  ;;  %v13009_v32 = vld [vmem:[%s17738_s16 + $0x84] sm:$0xf] }
 0xba7   : > { %v6690_v47 = vpop.f32.mrf.mxu1  ;;  %7351 = vmatpush.bf16.msrb.mxu0 %v11632_v19  ;;  %7380 = vmatpush.bf16.msrb.mxu1 %v11696_v53  ;;  %v11692_v56 = vor.u32 %v13009_v32, %v11689_v40  ;;  %v11791_v32 = vld [vmem:[%s17738_s16 + $0x250] sm:$0xf]  ;;  %v13068_v40 = vld [vmem:[%s17738_s16 + $0x254] sm:$0xf0] }
 0xba8   : > { %v6869_v61 = vadd.f32 %v16598_v25, %v6848_v15  ;;  %v6691_v37 = vadd.f32 %v6690_v47, %v16561_v48  ;;  %v16692_v34 = vpack.c.bf16 %v6886_v21, %v6884_v0  ;;  %7437 = vmatpush.bf16.msrb.mxu3 %v11708_v35  ;;  %v11636_v0 = vor.u32 %v12995_v3, %v11633_v1  ;;  %v12993_v15 = vld [vmem:[%s17738_s16 + $0x4] sm:$0xf]  ;;  %v11871_v35 = vld [vmem:[%s17738_s16 + $0x2f0] sm:$0xf] }
 0xba9   : > { %7408 = vmatpush.bf16.msra.mxu2 %v11644_v7  ;;  %v11628_v47 = vor.u32 %v12993_v15, %v11625_v16  ;;  %v11872_v43 = vor.u32 %v13088_v41, %v11871_v35  ;;  %v6894_v15 = vpack.c.bf16 %v6878_v17, %v17687_v62  ;;  %v13087_v16 = vld [vmem:[%s17738_s16 + $0x2f4] sm:$0xf]  ;;  %v11775_v17 = vld [vmem:[%s17738_s16 + $0x230] sm:$0xf]  ;;  %v11801_v35 = vld [vmem:[%s17738_s16 + $0x268] sm:$0xf0] }
 0xbaa   : > { %v6885_v48 = vmax.f32 %v6869_v61, 0.0  ;;  %v6851_v28 = vadd.f32 %v6832_v51, %v6691_v37  ;;  %v13072_v61 = vld [vmem:[%s17738_s16 + $0x274] sm:$0xf0]  ;;  %v13083_v41 = vld [vmem:[%s17738_s16 + $0x2d4] sm:$0xf] }
 0xbab   : > { %7352 = vmatpush.bf16.msrb.mxu0 %v11624_v57  ;;  %7381 = vmatpush.bf16.msrb.mxu1 %v11688_v52  ;;  %v11808_v53 = vor.u32 %v13072_v61, %v11807_v60  ;;  %v11800_v57 = vor.u32 %v13070_v55, %v11799_v20  ;;  %v6667_v52 = vadd.f32 %v16575_v13, %v16577_v58  ;;  %v13080_v61 = vld [vmem:[%s17738_s16 + $0x2b4] sm:$0xf0]  ;;  %v11857_v20 = vld [vmem:[%s17738_s16 + $0x2d8] sm:$0xf0]  ;;  %v11831_v55 = vld [vmem:[%s17738_s16 + $0x2a0] sm:$0xf] }
 0xbac   : > { %v16700_v24 = vpack.c.bf16 %v6885_v48, %v6883_v50  ;;  %v6872_v8 = vadd.f32 %v16591_v18, %v6851_v28  ;;  %7438 = vmatpush.bf16.msrb.mxu3 %v11700_v46 }
 0xbad   : > { %v6803_v31 = vpop.f32.mrf.mxu2  ;;  %v6835_v23 = vpop.f32.mrf.mxu3  ;;  %7409 = vmatpush.bf16.msra.mxu2 %v11636_v0 }
 0xbae   : > { %v6850_v4 = vadd.f32 %v6803_v31, %v6662_v27  ;;  %v6888_v51 = vmax.f32 %v6872_v8, 0.0  ;;  %v11855_v31 = vld [vmem:[%s17738_s16 + $0x2d0] sm:$0xf] }
 0xbaf   : > { %v6693_v49 = vpop.f32.mrf.mxu1  ;;  %7623 = vmatpush.bf16.msra.mxu0 %v11808_v53  ;;  %7652 = vmatpush.bf16.msra.mxu1 %v11872_v43  ;;  %v11868_v53 = vor.u32 %v13085_v12, %v11865_v2  ;;  %v13062_v43 = vld [vmem:[%s17738_s16 + $0x224] sm:$0xf0]  ;;  %v11825_v12 = vld [vmem:[%s17738_s16 + $0x298] sm:$0xf0] }
 0xbb0   : > { %v6871_v11 = vadd.f32 %v16598_v25, %v6850_v4  ;;  %v6694_v59 = vadd.f32 %v6693_v49, %v16573_v30  ;;  %v6906_v50 = vpack.c.bf16 %v6888_v51, %v6886_v21  ;;  %7439 = vmatpush.bf16.msrb.mxu3 %v11692_v56  ;;  %v13084_v4 = vld [vmem:[%s17738_s16 + $0x2d4] sm:$0xf0]  ;;  %v11847_v56 = vld [vmem:[%s17738_s16 + $0x2c0] sm:$0xf] }
 0xbb1   : > { %7410 = vmatpush.bf16.msra.mxu2 %v11628_v47  ;;  %v11856_v49 = vor.u32 %v13084_v4, %v11855_v31  ;;  %v6893_v47 = vpack.c.bf16 %v6877_v39, %v17687_v62  ;;  %v13069_v39 = vld [vmem:[%s17738_s16 + $0x264] sm:$0xf]  ;;  %v11841_v31 = vld [vmem:[%s17738_s16 + $0x2b8] sm:$0xf0]  ;;  %v13063_v4 = vld [vmem:[%s17738_s16 + $0x234] sm:$0xf] }
 0xbb2   : > { %v6887_v33 = vmax.f32 %v6871_v11, 0.0  ;;  %v6853_v26 = vadd.f32 %v6835_v23, %v6694_v59  ;;  %7116 = vmatmul.bf16.gmra.mxu1 %v6906_v50  ;;  %7174 = vmatmul.bf16.gmra.mxu3 %v6906_v50  ;;  %v13066_v23 = vld [vmem:[%s17738_s16 + $0x244] sm:$0xf0] }
 0xbb3   : > { %7624 = vmatpush.bf16.msra.mxu0 %v11800_v57  ;;  %v13082_v11 = vld [vmem:[%s17738_s16 + $0x2c4] sm:$0xf0]  ;;  %v13067_v57 = vld [vmem:[%s17738_s16 + $0x254] sm:$0xf] }
 0xbb4   : > { %v6874_v19 = vadd.f32 %v16591_v18, %v6853_v26  ;;  %v6905_v29 = vpack.c.bf16 %v6887_v33, %v6885_v48  ;;  %v13086_v48 = vld [vmem:[%s17738_s16 + $0x2e4] sm:$0xf0]  ;;  %v11848_v50 = vor.u32 %v13082_v11, %v11847_v56  ;;  %v13060_v56 = vld [vmem:[%s17738_s16 + $0x214] sm:$0xf0]  ;;  %v11823_v11 = vld [vmem:[%s17738_s16 + $0x290] sm:$0xf] }
 0xbb5   : > { %v6806_v30 = vpop.f32.mrf.mxu2  ;;  %v11864_v46 = vor.u32 %v13086_v48, %v11863_v63  ;;  %v11860_v63 = vor.u32 %v13083_v41, %v11857_v20  ;;  %v11817_v20 = vld [vmem:[%s17738_s16 + $0x288] sm:$0xf0] }
 0xbb6   : > { %v6890_v21 = vmax.f32 %v6874_v19, 0.0  ;;  %v6852_v45 = vadd.f32 %v6806_v30, %v16569_v5  ;;  %7087 = vmatmul.bf16.gmra.mxu0 %v6905_v29  ;;  %7145 = vmatmul.bf16.gmra.mxu2 %v6905_v29  ;;  %v6837_v5 = vpop.f32.mrf.mxu3  ;;  %v13071_v19 = vld [vmem:[%s17738_s16 + $0x274] sm:$0xf]  ;;  %v11809_v29 = vld [vmem:[%s17738_s16 + $0x278] sm:$0xf0] }
 0xbb7   : > { %v6695_v37 = vpop.f32.mrf.mxu1  ;;  %7653 = vmatpush.bf16.msra.mxu1 %v11864_v46  ;;  %v13064_v30 = vld [vmem:[%s17738_s16 + $0x234] sm:$0xf0] }
 0xbb8   : > { %v6873_v42 = vadd.f32 %v16598_v25, %v6852_v45  ;;  %v6696_v7 = vadd.f32 %v6695_v37, %v16582_v6  ;;  %v16721_v28 = vpack.c.bf16 %v6890_v21, %v6888_v51  ;;  %v11783_v51 = vld [vmem:[%s17738_s16 + $0x240] sm:$0xf]  ;;  %v11812_v45 = vor.u32 %v13071_v19, %v11809_v29  ;;  %v11769_v19 = vld [vmem:[%s17738_s16 + $0x228] sm:$0xf0]  ;;  %v13075_v29 = vld [vmem:[%s17738_s16 + $0x294] sm:$0xf] }
 0xbb9   : > { %v11784_v59 = vor.u32 %v13066_v23, %v11783_v51  ;;  %v11776_v60 = vor.u32 %v13064_v30, %v11775_v17  ;;  %v11777_v51 = vld [vmem:[%s17738_s16 + $0x238] sm:$0xf0]  ;;  %v13077_v23 = vld [vmem:[%s17738_s16 + $0x2a4] sm:$0xf]  ;;  %v11751_v30 = vld [vmem:[%s17738_s16 + $0x200] sm:$0xf]  ;;  %v11828_v2 = vor.u32 %v13075_v29, %v11825_v12 }
 0xbba   : > { %v6889_v10 = vmax.f32 %v6873_v42, 0.0  ;;  %v6855_v36 = vadd.f32 %v6837_v5, %v6696_v7  ;;  %7681 = vmatpush.bf16.msrb.mxu2 %v11812_v45  ;;  %v11804_v42 = vor.u32 %v13069_v39, %v11801_v35  ;;  %v11767_v7 = vld [vmem:[%s17738_s16 + $0x220] sm:$0xf]  ;;  %v13078_v5 = vld [vmem:[%s17738_s16 + $0x2a4] sm:$0xf0] }
 0xbbb   : > { %7654 = vmatpush.bf16.msra.mxu1 %v11856_v49  ;;  %v11768_v48 = vor.u32 %v13062_v43, %v11767_v7  ;;  %v11759_v49 = vld [vmem:[%s17738_s16 + $0x210] sm:$0xf]  ;;  %v11815_v45 = vld [vmem:[%s17738_s16 + $0x280] sm:$0xf]  ;;  %v13073_v35 = vld [vmem:[%s17738_s16 + $0x284] sm:$0xf] }
 0xbbc   : > { %v16725_v3 = vpack.c.bf16 %v6889_v10, %v6887_v33  ;;  %v16728_v6 = vadd.f32 %v16591_v18, %v6855_v36  ;;  %v11873_v33 = vld [vmem:[%s17738_s16 + $0x2f8] sm:$0xf0]  ;;  %v11832_v36 = vor.u32 %v13078_v5, %v11831_v55  ;;  %v13057_v7 = vld [vmem:[%s17738_s16 + $0x204] sm:$0xf]  ;;  %v11753_v43 = vld [vmem:[%s17738_s16 + $0x208] sm:$0xf0] }
 0xbbd   : > { %v6808_v1 = vpop.f32.mrf.mxu2  ;;  %v11876_v26 = vor.u32 %v13087_v16, %v11873_v33  ;;  %v11833_v16 = vld [vmem:[%s17738_s16 + $0x2a8] sm:$0xf0]  ;;  %v13061_v33 = vld [vmem:[%s17738_s16 + $0x224] sm:$0xf]  ;;  %v11756_v55 = vor.u32 %v13057_v7, %v11753_v43  ;;  %v13103_v5 = vld [vmem:[#allocation17 + $0x74] sm:$0xf] }
 0xbbe   : > { %v6854_v27 = vadd.f32 %v6808_v1, %v6667_v52  ;;  %v6892_v8 = vmax.f32 %v16728_v6, 0.0  ;;  %7682 = vmatpush.bf16.msrb.mxu2 %v11804_v42  ;;  %v13081_v52 = vld [vmem:[%s17738_s16 + $0x2c4] sm:$0xf]  ;;  %v11849_v1 = vld [vmem:[%s17738_s16 + $0x2c8] sm:$0xf0]  ;;  %v11772_v17 = vor.u32 %v13061_v33, %v11769_v19  ;;  %v11820_v42 = vor.u32 %v13073_v35, %v11817_v20 }
 0xbbf   : > { %7655 = vmatpush.bf16.msra.mxu1 %v11848_v50  ;;  %7710 = vmatpush.bf16.msra.mxu3 %v11876_v26  ;;  %v11760_v50 = vor.u32 %v13060_v56, %v11759_v49  ;;  %v13098_v49 = vld [vmem:[#allocation17 + $0x44] sm:$0xf0]  ;;  %v13097_v56 = vld [vmem:[#allocation17 + $0x44] sm:$0xf]  ;;  %v13096_v19 = vld [vmem:[#allocation17 + $0x34] sm:$0xf0] }
 0xbc0   : > { %v16732_v0 = vadd.f32 %v16598_v25, %v6854_v27  ;;  %v6908_v13 = vpack.c.bf16 %v6892_v8, %v6890_v21  ;;  %v11792_v25 = vor.u32 %v13068_v40, %v11791_v32  ;;  %v11839_v21 = vld [vmem:[%s17738_s16 + $0x2b0] sm:$0xf]  ;;  %v11852_v27 = vor.u32 %v13081_v52, %v11849_v1  ;;  %v13079_v32 = vld [vmem:[%s17738_s16 + $0x2b4] sm:$0xf]  ;;  %v13102_v52 = vld [vmem:[#allocation17 + $0x64] sm:$0xf0] }
 0xbc1   : > { %v11840_v37 = vor.u32 %v13080_v61, %v11839_v21  ;;  %v13058_v21 = vld [vmem:[%s17738_s16 + $0x204] sm:$0xf0]  ;;  %v13101_v1 = vld [vmem:[#allocation17 + $0x64] sm:$0xf]  ;;  %v13095_v29 = vld [vmem:[#allocation17 + $0x34] sm:$0xf] }
 0xbc2   : > { %v6891_v58 = vmax.f32 %v16732_v0, 0.0  ;;  %7121 = vmatmul.bf16.gmra.mxu1 %v6908_v13  ;;  %7179 = vmatmul.bf16.gmra.mxu3 %v6908_v13  ;;  %v13065_v13 = vld [vmem:[%s17738_s16 + $0x244] sm:$0xf]  ;;  %v13074_v61 = vld [vmem:[%s17738_s16 + $0x284] sm:$0xf0] }
 0xbc3   : > { %7625 = vmatpush.bf16.msra.mxu0 %v11792_v25  ;;  %7656 = vmatpush.bf16.msra.mxu1 %v11840_v37  ;;  %v11844_v25 = vor.u32 %v13079_v32, %v11841_v31  ;;  %v11816_v39 = vor.u32 %v13074_v61, %v11815_v45  ;;  %v13059_v37 = vld [vmem:[%s17738_s16 + $0x214] sm:$0xf]  ;;  %v11919_v32 = vld [vmem:[#allocation17 + $0x50] sm:$0xf]  ;;  %v11897_v35 = vld [vmem:[#allocation17 + $0x28] sm:$0xf0] }
 0xbc4   : > { %v6907_v18 = vpack.c.bf16 %v6891_v58, %v6889_v10  ;;  %7711 = vmatpush.bf16.msra.mxu3 %v11868_v53  ;;  %v11793_v10 = vld [vmem:[%s17738_s16 + $0x258] sm:$0xf0]  ;;  %v13099_v31 = vld [vmem:[#allocation17 + $0x54] sm:$0xf] }
 0xbc5   : > { %v11796_v46 = vor.u32 %v13067_v57, %v11793_v10  ;;  %v11761_v53 = vld [vmem:[%s17738_s16 + $0x218] sm:$0xf0] }
 0xbc6   : > { %7092 = vmatmul.bf16.gmra.mxu0 %v6907_v18  ;;  %7150 = vmatmul.bf16.gmra.mxu2 %v6907_v18  ;;  %v11785_v18 = vld [vmem:[%s17738_s16 + $0x248] sm:$0xf0]  ;;  %v11764_v41 = vor.u32 %v13059_v37, %v11761_v53  ;;  %v11937_v10 = vld [vmem:[#allocation17 + $0x78] sm:$0xf0]  ;;  %v13094_v37 = vld [vmem:[#allocation17 + $0x24] sm:$0xf0] }
 0xbc7   : > { %7626 = vmatpush.bf16.msra.mxu0 %v11784_v59  ;;  %7657 = vmatpush.bf16.msra.mxu1 %v11832_v36  ;;  %v11788_v40 = vor.u32 %v13065_v13, %v11785_v18  ;;  %v11780_v59 = vor.u32 %v13063_v4, %v11777_v51  ;;  %v11940_v36 = vor.u32 %v13103_v5, %v11937_v10  ;;  %v11929_v13 = vld [vmem:[#allocation17 + $0x68] sm:$0xf0]  ;;  %v11921_v4 = vld [vmem:[#allocation17 + $0x58] sm:$0xf0]  ;;  %v13091_v5 = vld [vmem:[#allocation17 + $0x14] sm:$0xf] }
 0xbc8   : > { %7712 = vmatpush.bf16.msra.mxu3 %v11860_v63  ;;  %7683 = vmatpush.bf16.msrb.mxu2 %v11796_v46  ;;  %v11935_v63 = vld [vmem:[#allocation17 + $0x70] sm:$0xf]  ;;  %v11927_v46 = vld [vmem:[#allocation17 + $0x60] sm:$0xf]  ;;  %v11932_v18 = vor.u32 %v13101_v1, %v11929_v13  ;;  %v11924_v51 = vor.u32 %v13099_v31, %v11921_v4  ;;  %v11881_v31 = vld [vmem:[#allocation17 + $0x8] sm:$0xf0] }
 0xbcb   : > { %7627 = vmatpush.bf16.msra.mxu0 %v11776_v60  ;;  %v11752_v60 = vor.u32 %v13058_v21, %v11751_v30  ;;  %v11905_v30 = vld [vmem:[#allocation17 + $0x38] sm:$0xf0] }
 0xbcc   : > { %7713 = vmatpush.bf16.msra.mxu3 %v11852_v27  ;;  %7684 = vmatpush.bf16.msrb.mxu2 %v11788_v40  ;;  %v11928_v27 = vor.u32 %v13102_v52, %v11927_v46  ;;  %v13100_v40 = vld [vmem:[#allocation17 + $0x54] sm:$0xf0]  ;;  %v11908_v21 = vor.u32 %v13095_v29, %v11905_v30 }
 0xbcf   : > { %7628 = vmatpush.bf16.msra.mxu0 %v11768_v48  ;;  %v13104_v48 = vld [vmem:[#allocation17 + $0x74] sm:$0xf0] }
 0xbd0   : > { %7714 = vmatpush.bf16.msra.mxu3 %v11844_v25  ;;  %7685 = vmatpush.bf16.msrb.mxu2 %v11780_v59  ;;  %v11936_v57 = vor.u32 %v13104_v48, %v11935_v63  ;;  %v11920_v25 = vor.u32 %v13100_v40, %v11919_v32  ;;  %v11913_v59 = vld [vmem:[#allocation17 + $0x48] sm:$0xf0]  ;;  %v11887_v63 = vld [vmem:[#allocation17 + $0x10] sm:$0xf]  ;;  %v13092_v48 = vld [vmem:[#allocation17 + $0x14] sm:$0xf0] }
 0xbd1   : > { %v11888_v10 = vor.u32 %v13092_v48, %v11887_v63  ;;  %v13090_v32 = vld [vmem:[#allocation17 + $0x4] sm:$0xf0] }
 0xbd2   : > { %7382 = vmatmul.bf16.vlgmr.msrb.gmra.mxu1 %v6894_v15  ;;  %7440 = vmatmul.bf16.vlgmr.msrb.gmra.mxu3 %v6894_v15  ;;  %v13076_v15 = vld [vmem:[%s17738_s16 + $0x294] sm:$0xf0] }
 0xbd3   : > { %v11824_v26 = vor.u32 %v13076_v15, %v11823_v11  ;;  %7629 = vmatpush.bf16.msra.mxu0 %v11760_v50  ;;  %v11916_v15 = vor.u32 %v13097_v56, %v11913_v59 }
 0xbd4   : > { %7686 = vmatpush.bf16.msrb.mxu2 %v11772_v17 }
 0xbd5   : > { %7658 = vmatpush.bf16.msra.mxu1 %v11824_v26 }
 0xbd6   : > { %7353 = vmatmul.bf16.vlgmr.msrb.gmra.mxu0 %v6893_v47  ;;  %7411 = vmatmul.bf16.vlgmr.msra.gmra.mxu2 %v6893_v47  ;;  %v11836_v47 = vor.u32 %v13077_v23, %v11833_v16  ;;  %v11911_v23 = vld [vmem:[#allocation17 + $0x40] sm:$0xf] }
 0xbd7   : > { %7630 = vmatpush.bf16.msra.mxu0 %v11752_v60  ;;  %v11912_v11 = vor.u32 %v13098_v49, %v11911_v23 }
 0xbd8   : > { %7715 = vmatpush.bf16.msra.mxu3 %v11836_v47  ;;  %7687 = vmatpush.bf16.msrb.mxu2 %v11764_v41  ;;  %v11903_v47 = vld [vmem:[#allocation17 + $0x30] sm:$0xf] }
 0xbd9   : > { %7659 = vmatpush.bf16.msra.mxu1 %v11816_v39  ;;  %v11904_v17 = vor.u32 %v13096_v19, %v11903_v47  ;;  %v11895_v39 = vld [vmem:[#allocation17 + $0x20] sm:$0xf]  ;;  %v7462_v19 = vpack.c.bf16 0.0, %v6892_v8 }
 0xbda   : > { %v11896_v53 = vor.u32 %v13094_v37, %v11895_v39 }
 0xbdb   : > { %7861 = vmatpush.bf16.msrb.mxu0 %v11936_v57 }
 0xbdc   : > { %7716 = vmatpush.bf16.msra.mxu3 %v11828_v2  ;;  %7688 = vmatpush.bf16.msrb.mxu2 %v11756_v55 }
 0xbdd   : > { %7890 = vmatpush.bf16.msrb.mxu1 %v11940_v36  ;;  %v11889_v36 = vld [vmem:[#allocation17 + $0x18] sm:$0xf0] }
 0xbde   : > { %v11892_v46 = vor.u32 %v13091_v5, %v11889_v36 }
 0xbdf   : > { %7862 = vmatpush.bf16.msrb.mxu0 %v11928_v27 }
 0xbe0   : > { %7717 = vmatpush.bf16.msra.mxu3 %v11820_v42 }
 0xbe1   : > { %7891 = vmatpush.bf16.msrb.mxu1 %v11932_v18  ;;  %v11879_v18 = vld [vmem:[#allocation17] sm:$0xf] }
 0xbe2   : > { %7387 = vmatmul.bf16.gmra.mxu1 %v16630_v54  ;;  %7445 = vmatmul.bf16.gmra.mxu3 %v16630_v54  ;;  %v11880_v40 = vor.u32 %v13090_v32, %v11879_v18 }
 0xbe3   : > { %7863 = vmatpush.bf16.msrb.mxu0 %v11920_v25 }
 0xbe5   : > { %7892 = vmatpush.bf16.msrb.mxu1 %v11924_v51 }
 0xbe6   : > { %7358 = vmatmul.bf16.gmra.mxu0 %v16640_v44  ;;  %7416 = vmatmul.bf16.gmra.mxu2 %v16640_v44 }
 0xbe7   : > { %7864 = vmatpush.bf16.msrb.mxu0 %v11912_v11 }
 0xbe9   : > { %7893 = vmatpush.bf16.msrb.mxu1 %v11916_v15 }
 0xbeb   : > { %7865 = vmatpush.bf16.msrb.mxu0 %v11904_v17 }
 0xbed   : > { %7894 = vmatpush.bf16.msrb.mxu1 %v11908_v21 }
 0xbef   : > { %7866 = vmatpush.bf16.msrb.mxu0 %v11896_v53 }
 0xbf2   : > { %7392 = vmatmul.bf16.gmra.mxu1 %v16692_v34  ;;  %7450 = vmatmul.bf16.gmra.mxu3 %v16692_v34 }
 0xbf3   : > { %7867 = vmatpush.bf16.msrb.mxu0 %v11888_v10 }
 0xbf6   : > { %7363 = vmatmul.bf16.gmra.mxu0 %v16700_v24  ;;  %7421 = vmatmul.bf16.gmra.mxu2 %v16700_v24 }
 0xbf7   : > { %7868 = vmatpush.bf16.msrb.mxu0 %v11880_v40 }
 0xc02   : > { %7397 = vmatmul.bf16.gmra.mxu1 %v16721_v28  ;;  %7455 = vmatmul.bf16.gmra.mxu3 %v16721_v28 }
 0xc06   : > { %7368 = vmatmul.bf16.gmra.mxu0 %v16725_v3  ;;  %7426 = vmatmul.bf16.gmra.mxu2 %v16725_v3 }
 0xc0f   : > { %v7107_v50 = vpop.f32.mrf.mxu1 }
 0xc12   : > { %7660 = vmatmul.bf16.vlgmr.msra.gmra.mxu1 %v16630_v54  ;;  %7718 = vmatmul.bf16.vlgmr.msra.gmra.mxu3 %v16630_v54 }
 0xc13   : > { %v7078_v16 = vpop.f32.mrf.mxu0 }
 0xc14   : > { %v16815_v33 = vadd.f32 %v7107_v50, %v7078_v16 }
 0xc15   : > { %v7165_v26 = vpop.f32.mrf.mxu3 }
 0xc16   : > { %7631 = vmatmul.bf16.vlgmr.msra.gmra.mxu0 %v16640_v44  ;;  %7689 = vmatmul.bf16.vlgmr.msrb.gmra.mxu2 %v16640_v44  ;;  %v13093_v44 = vld [vmem:[#allocation17 + $0x24] sm:$0xf] }
 0xc17   : > { %v7109_v12 = vpop.f32.mrf.mxu1  ;;  %v11900_v20 = vor.u32 %v13093_v44, %v11897_v35 }
 0xc19   : > { %v7136_v45 = vpop.f32.mrf.mxu2  ;;  %7895 = vmatpush.bf16.msrb.mxu1 %v11900_v20 }
 0xc1a   : > { %v16819_v60 = vadd.f32 %v7165_v26, %v7136_v45 }
 0xc1b   : > { %v7080_v54 = vpop.f32.mrf.mxu0 }
 0xc1c   : > { %v16821_v61 = vadd.f32 %v7109_v12, %v7080_v54 }
 0xc1d   : > { %v16823_v2 = vpop.f32.mrf.mxu3  ;;  %7896 = vmatpush.bf16.msrb.mxu1 %v11892_v46 }
 0xc1f   : > { %v7112_v41 = vpop.f32.mrf.mxu1 }
 0xc21   : > { %v16825_v42 = vpop.f32.mrf.mxu2 }
 0xc22   : > { %7665 = vmatmul.bf16.gmra.mxu1 %v16692_v34  ;;  %7723 = vmatmul.bf16.gmra.mxu3 %v16692_v34 }
 0xc23   : > { %v7083_v7 = vpop.f32.mrf.mxu0 }
 0xc24   : > { %v16829_v43 = vadd.f32 %v7112_v41, %v7083_v7 }
 0xc25   : > { %v7170_v55 = vpop.f32.mrf.mxu3 }
 0xc26   : > { %7636 = vmatmul.bf16.gmra.mxu0 %v16700_v24  ;;  %7694 = vmatmul.bf16.gmra.mxu2 %v16700_v24  ;;  %v13089_v24 = vld [vmem:[#allocation17 + $0x4] sm:$0xf] }
 0xc27   : > { %v7114_v57 = vpop.f32.mrf.mxu1  ;;  %v11884_v4 = vor.u32 %v13089_v24, %v11881_v31 }
 0xc29   : > { %v7141_v52 = vpop.f32.mrf.mxu2  ;;  %7897 = vmatpush.bf16.msrb.mxu1 %v11884_v4 }
 0xc2a   : > { %v16833_v1 = vadd.f32 %v7170_v55, %v7141_v52 }
 0xc2b   : > { %v7085_v34 = vpop.f32.mrf.mxu0 }
 0xc2c   : > { %v16835_v27 = vadd.f32 %v7114_v57, %v7085_v34 }
 0xc2d   : > { %v16837_v13 = vpop.f32.mrf.mxu3 }
 0xc2f   : > { %v7117_v25 = vpop.f32.mrf.mxu1 }
 0xc31   : > { %v16839_v51 = vpop.f32.mrf.mxu2 }
 0xc32   : > { %7670 = vmatmul.bf16.gmra.mxu1 %v16721_v28  ;;  %7728 = vmatmul.bf16.gmra.mxu3 %v16721_v28 }
 0xc33   : > { %v7088_v23 = vpop.f32.mrf.mxu0 }
 0xc34   : > { %v7118_v49 = vadd.f32 %v7117_v25, %v7088_v23 }
 0xc35   : > { %v7175_v56 = vpop.f32.mrf.mxu3 }
 0xc36   : > { %7641 = vmatmul.bf16.gmra.mxu0 %v16725_v3  ;;  %7699 = vmatmul.bf16.gmra.mxu2 %v16725_v3  ;;  %v7461_v3 = vpack.c.bf16 0.0, %v6891_v58 }
 0xc37   : > { %v7119_v11 = vpop.f32.mrf.mxu1 }
 0xc39   : > { %v7146_v59 = vpop.f32.mrf.mxu2 }
 0xc3a   : > { %v7176_v50 = vadd.f32 %v7175_v56, %v7146_v59 }
 0xc3b   : > { %v7090_v15 = vpop.f32.mrf.mxu0 }
 0xc3c   : > { %v16845_v16 = vadd.f32 %v7119_v11, %v7090_v15 }
 0xc3d   : > { %v16847_v26 = vpop.f32.mrf.mxu3 }
 0xc3f   : > { %v7122_v47 = vpop.f32.mrf.mxu1 }
 0xc41   : > { %v16851_v28 = vpop.f32.mrf.mxu2 }
 0xc42   : > { %7675 = vmatmul.bf16.gmra.mxu1 %v7462_v19  ;;  %7733 = vmatmul.bf16.gmra.mxu3 %v7462_v19 }
 0xc43   : > { %v7093_v29 = vpop.f32.mrf.mxu0 }
 0xc44   : > { %v7123_v12 = vadd.f32 %v7122_v47, %v7093_v29  ;;  %v13152_v29 = vld [vmem:[#allocation18 + $0x174] sm:$0xf0] }
 0xc45   : > { %v7180_v17 = vpop.f32.mrf.mxu3 }
 0xc46   : > { %7646 = vmatmul.bf16.gmra.mxu0 %v7461_v3  ;;  %7704 = vmatmul.bf16.gmra.mxu2 %v7461_v3 }
 0xc47   : > { %v7124_v30 = vpop.f32.mrf.mxu1 }
 0xc49   : > { %v7151_v21 = vpop.f32.mrf.mxu2 }
 0xc4a   : > { %v7181_v45 = vadd.f32 %v7180_v17, %v7151_v21 }
 0xc4b   : > { %v7095_v54 = vpop.f32.mrf.mxu0 }
 0xc4c   : > { %v16855_v39 = vadd.f32 %v7124_v30, %v7095_v54  ;;  %v13168_v30 = vld [vmem:[#allocation18 + $0x1f4] sm:$0xf0] }
 0xc4d   : > { %v16857_v6 = vpop.f32.mrf.mxu3 }
 0xc4f   : > { %v7383_v8 = vpop.f32.mrf.mxu1 }
 0xc51   : > { %v16859_v37 = vpop.f32.mrf.mxu2 }
 0xc52   : > { %7898 = vmatmul.bf16.vlgmr.msrb.gmra.mxu1 %v16360_v9 }
 0xc53   : > { %v7354_v44 = vpop.f32.mrf.mxu0 }
 0xc54   : > { %v7355_v0 = vadd.f32 %v7354_v44, %v16815_v33 }
 0xc55   : > { %v7441_v58 = vpop.f32.mrf.mxu3 }
 0xc56   : > { %v16863_v53 = vadd.f32 %v7383_v8, %v7355_v0  ;;  %7869 = vmatmul.bf16.vlgmr.msrb.gmra.mxu0 %v16360_v9 }
 0xc57   : > { %v16866_v35 = vpop.f32.mrf.mxu1 }
 0xc59   : > { %v7412_v41 = vpop.f32.mrf.mxu2 }
 0xc5a   : > { %v7413_v20 = vadd.f32 %v7412_v41, %v16819_v60  ;;  %v12001_v41 = vld [vmem:[#allocation18 + $0x178] sm:$0xf0] }
 0xc5b   : > { %v16869_v7 = vpop.f32.mrf.mxu0 }
 0xc5c   : > { %v16871_v55 = vadd.f32 %v7441_v58, %v7413_v20  ;;  %v13151_v58 = vld [vmem:[#allocation18 + $0x174] sm:$0xf] }
 0xc5d   : > { %v16873_v63 = vpop.f32.mrf.mxu3  ;;  %v12004_v20 = vor.u32 %v13151_v58, %v12001_v41  ;;  %v13147_v41 = vld [vmem:[#allocation18 + $0x154] sm:$0xf] }
 0xc5f   : > { %v7388_v48 = vpop.f32.mrf.mxu1  ;;  %8379 = vmatpush.bf16.msra.mxu0 %v12004_v20  ;;  %v13163_v20 = vld [vmem:[#allocation18 + $0x1d4] sm:$0xf] }
 0xc61   : > { %v16875_v5 = vpop.f32.mrf.mxu2 }
 0xc62   : > { %7903 = vmatmul.bf16.gmra.mxu1 %v16386_v38 }
 0xc63   : > { %v7359_v33 = vpop.f32.mrf.mxu0 }
 0xc64   : > { %v7360_v57 = vadd.f32 %v7359_v33, %v16829_v43 }
 0xc65   : > { %v7446_v9 = vpop.f32.mrf.mxu3 }
 0xc66   : > { %v16879_v10 = vadd.f32 %v7388_v48, %v7360_v57  ;;  %7874 = vmatmul.bf16.gmra.mxu0 %v16386_v38  ;;  %v12065_v48 = vld [vmem:[#allocation18 + $0x1f8] sm:$0xf0]  ;;  %v11991_v57 = vld [vmem:[#allocation18 + $0x160] sm:$0xf] }
 0xc67   : > { %v16882_v60 = vpop.f32.mrf.mxu1 }
 0xc69   : > { %v7417_v36 = vpop.f32.mrf.mxu2 }
 0xc6a   : > { %v7418_v46 = vadd.f32 %v7417_v36, %v16833_v1  ;;  %v12055_v36 = vld [vmem:[#allocation18 + $0x1e0] sm:$0xf] }
 0xc6b   : > { %v16885_v52 = vpop.f32.mrf.mxu0 }
 0xc6c   : > { %v16887_v34 = vadd.f32 %v7446_v9, %v7418_v46  ;;  %v13150_v9 = vld [vmem:[#allocation18 + $0x164] sm:$0xf0] }
 0xc6d   : > { %v16889_v18 = vpop.f32.mrf.mxu3 }
 0xc6f   : > { %v7393_v32 = vpop.f32.mrf.mxu1 }
 0xc71   : > { %v16891_v24 = vpop.f32.mrf.mxu2 }
 0xc72   : > { %7908 = vmatmul.bf16.gmra.mxu1 %v16434_v14 }
 0xc73   : > { %v7364_v43 = vpop.f32.mrf.mxu0 }
 0xc74   : > { %v7365_v40 = vadd.f32 %v7364_v43, %v7118_v49  ;;  %v13166_v43 = vld [vmem:[#allocation18 + $0x1e4] sm:$0xf0] }
 0xc75   : > { %v7451_v38 = vpop.f32.mrf.mxu3 }
 0xc76   : > { %v16894_v31 = vadd.f32 %v7393_v32, %v7365_v40  ;;  %7879 = vmatmul.bf16.gmra.mxu0 %v16434_v14  ;;  %v11999_v14 = vld [vmem:[#allocation18 + $0x170] sm:$0xf]  ;;  %v11992_v32 = vor.u32 %v13150_v9, %v11991_v57  ;;  %v11975_v57 = vld [vmem:[#allocation18 + $0x140] sm:$0xf]  ;;  %v13146_v9 = vld [vmem:[#allocation18 + $0x144] sm:$0xf0] }
 0xc77   : > { %v16897_v25 = vpop.f32.mrf.mxu1  ;;  %v12000_v17 = vor.u32 %v13152_v29, %v11999_v14 }
 0xc79   : > { %v7422_v1 = vpop.f32.mrf.mxu2  ;;  %8321 = vmatpush.bf16.msra.mxu2 %v12000_v17  ;;  %v13148_v17 = vld [vmem:[#allocation18 + $0x154] sm:$0xf0] }
 0xc7a   : > { %v7423_v4 = vadd.f32 %v7422_v1, %v7176_v50  ;;  %v12063_v50 = vld [vmem:[#allocation18 + $0x1f0] sm:$0xf]  ;;  %v13149_v1 = vld [vmem:[#allocation18 + $0x164] sm:$0xf] }
 0xc7b   : > { %v16899_v23 = vpop.f32.mrf.mxu0  ;;  %v12064_v21 = vor.u32 %v13168_v30, %v12063_v50  ;;  %v11983_v50 = vld [vmem:[#allocation18 + $0x150] sm:$0xf] }
 0xc7c   : > { %v16901_v56 = vadd.f32 %v7451_v38, %v7423_v4  ;;  %v11993_v4 = vld [vmem:[#allocation18 + $0x168] sm:$0xf0]  ;;  %v12047_v30 = vld [vmem:[#allocation18 + $0x1d0] sm:$0xf] }
 0xc7d   : > { %v16903_v59 = vpop.f32.mrf.mxu3  ;;  %8350 = vmatpush.bf16.msrb.mxu3 %v12064_v21  ;;  %8322 = vmatpush.bf16.msra.mxu2 %v11992_v32  ;;  %v11976_v32 = vor.u32 %v13146_v9, %v11975_v57  ;;  %v12033_v9 = vld [vmem:[#allocation18 + $0x1b8] sm:$0xf0] }
 0xc7f   : > { %v7398_v11 = vpop.f32.mrf.mxu1 }
 0xc81   : > { %v16905_v15 = vpop.f32.mrf.mxu2 }
 0xc82   : > { %7913 = vmatmul.bf16.gmra.mxu1 %v16462_v22 }
 0xc83   : > { %v7369_v49 = vpop.f32.mrf.mxu0 }
 0xc84   : > { %v7370_v47 = vadd.f32 %v7369_v49, %v7123_v12  ;;  %v11996_v49 = vor.u32 %v13149_v1, %v11993_v4  ;;  %v13145_v1 = vld [vmem:[#allocation18 + $0x144] sm:$0xf]  ;;  %v11977_v4 = vld [vmem:[#allocation18 + $0x148] sm:$0xf0] }
 0xc85   : > { %v7456_v44 = vpop.f32.mrf.mxu3 }
 0xc86   : > { %v16908_v19 = vadd.f32 %v7398_v11, %v7370_v47  ;;  %7884 = vmatmul.bf16.gmra.mxu0 %v16462_v22  ;;  %v13167_v22 = vld [vmem:[#allocation18 + $0x1f4] sm:$0xf]  ;;  %v13165_v11 = vld [vmem:[#allocation18 + $0x1e4] sm:$0xf]  ;;  %v12057_v47 = vld [vmem:[#allocation18 + $0x1e8] sm:$0xf0] }
 0xc87   : > { %v16911_v3 = vpop.f32.mrf.mxu1  ;;  %v12068_v33 = vor.u32 %v13167_v22, %v12065_v48  ;;  %v12060_v29 = vor.u32 %v13165_v11, %v12057_v47  ;;  %8380 = vmatpush.bf16.msra.mxu0 %v11996_v49  ;;  %v11985_v22 = vld [vmem:[#allocation18 + $0x158] sm:$0xf0]  ;;  %v13161_v11 = vld [vmem:[#allocation18 + $0x1c4] sm:$0xf]  ;;  %v11980_v49 = vor.u32 %v13145_v1, %v11977_v4  ;;  %v12041_v47 = vld [vmem:[#allocation18 + $0x1c8] sm:$0xf0] }
 0xc88   : > { %17740 = vst [vmem:[#allocation65_spill] sm:$0xff] %v16911_v3  ;;  %v12049_v48 = vld [vmem:[#allocation18 + $0x1d8] sm:$0xf0]  ;;  %v13158_v1 = vld [vmem:[#allocation18 + $0x1a4] sm:$0xf0] }
 0xc89   : > { %v7427_v54 = vpop.f32.mrf.mxu2  ;;  %8408 = vmatpush.bf16.msra.mxu1 %v12068_v33  ;;  %v12052_v33 = vor.u32 %v13163_v20, %v12049_v48  ;;  %v13143_v48 = vld [vmem:[#allocation18 + $0x134] sm:$0xf]  ;;  %v6396_v3 = vld [vmem:[%s17743_s13] sm:$0x3]  ;;  %s10240_s13 = sshll.u32 %s10236_s22, 4  ;;  %s10241_s13 = int_to_ptr.hbm [resolvable:$true] %s10240_s13 }
 0xc8a   : > { %v7428_v8 = vadd.f32 %v7427_v54, %v7181_v45  ;;  %v12056_v45 = vor.u32 %v13166_v43, %v12055_v36  ;;  %v11984_v54 = vor.u32 %v13148_v17, %v11983_v50  ;;  %v12039_v36 = vld [vmem:[#allocation18 + $0x1c0] sm:$0xf]  ;;  %v13162_v43 = vld [vmem:[#allocation18 + $0x1c4] sm:$0xf0]  ;;  %v12044_v50 = vor.u32 %v13161_v11, %v12041_v47  ;;  %v11967_v17 = vld [vmem:[#allocation18 + $0x130] sm:$0xf] }
 0xc8b   : > { %v16913_v0 = vpop.f32.mrf.mxu0  ;;  %v12025_v47 = vld [vmem:[#allocation18 + $0x1a8] sm:$0xf0] }
 0xc8c   : > { %v16915_v12 = vadd.f32 %v7456_v44, %v7428_v8  ;;  %8351 = vmatpush.bf16.msrb.mxu3 %v12056_v45  ;;  %v13164_v8 = vld [vmem:[#allocation18 + $0x1d4] sm:$0xf0]  ;;  %8323 = vmatpush.bf16.msra.mxu2 %v11984_v54  ;;  %v12040_v45 = vor.u32 %v13162_v43, %v12039_v36  ;;  %v12031_v54 = vld [vmem:[#allocation18 + $0x1b0] sm:$0xf]  ;;  %v13142_v43 = vld [vmem:[#allocation18 + $0x124] sm:$0xf0] }
 0xc8d   : > { %8409 = vmatpush.bf16.msra.mxu1 %v12060_v29  ;;  %v12048_v44 = vor.u32 %v13164_v8, %v12047_v30  ;;  %v13144_v30 = vld [vmem:[#allocation18 + $0x134] sm:$0xf0]  ;;  %v16933_v36 = vpop.f32.mrf.mxu3 }
 0xc8f   : > { %v7661_v46 = vpop.f32.mrf.mxu1 }
 0xc90   : > { %8352 = vmatpush.bf16.msrb.mxu3 %v12048_v44  ;;  %8324 = vmatpush.bf16.msra.mxu2 %v11976_v32  ;;  %v11968_v44 = vor.u32 %v13144_v30, %v11967_v17  ;;  %v11959_v32 = vld [vmem:[#allocation18 + $0x120] sm:$0xf] }
 0xc91   : > { %8410 = vmatpush.bf16.msra.mxu1 %v12052_v33  ;;  %v13159_v33 = vld [vmem:[#allocation18 + $0x1b4] sm:$0xf] }
 0xc93   : > { %v7632_v40 = vpop.f32.mrf.mxu0 }
 0xc94   : > { %v7662_v38 = vadd.f32 %v7661_v46, %v7632_v40  ;;  %8353 = vmatpush.bf16.msrb.mxu3 %v12040_v45  ;;  %8325 = vmatpush.bf16.msra.mxu2 %v11968_v44  ;;  %v12023_v45 = vld [vmem:[#allocation18 + $0x1a0] sm:$0xf]  ;;  %v13141_v44 = vld [vmem:[#allocation18 + $0x124] sm:$0xf] }
 0xc95   : > { %8411 = vmatpush.bf16.msra.mxu1 %v12044_v50  ;;  %v12024_v4 = vor.u32 %v13158_v1, %v12023_v45  ;;  %v11951_v45 = vld [vmem:[#allocation18 + $0x110] sm:$0xf]  ;;  %v13139_v1 = vld [vmem:[#allocation18 + $0x114] sm:$0xf] }
 0xc96   : > { %v16918_v14 = vadd.f32 %v7662_v38, %v16863_v53  ;;  %v11988_v53 = vor.u32 %v13147_v41, %v11985_v22  ;;  %v13160_v41 = vld [vmem:[#allocation18 + $0x1b4] sm:$0xf0] }
 0xc97   : > { %v16920_v21 = vpop.f32.mrf.mxu1  ;;  %v12032_v22 = vor.u32 %v13160_v41, %v12031_v54  ;;  %v11961_v41 = vld [vmem:[#allocation18 + $0x128] sm:$0xf0] }
 0xc98   : > { %8381 = vmatpush.bf16.msra.mxu0 %v11988_v53  ;;  %v16931_v53 = vpop.f32.mrf.mxu2 }
 0xc99   : > { %8354 = vmatpush.bf16.msrb.mxu3 %v12032_v22 }
 0xc9b   : > { %v16922_v58 = vpop.f32.mrf.mxu0 }
 0xc9c   : > { %8382 = vmatpush.bf16.msra.mxu0 %v11980_v49  ;;  %v13157_v49 = vld [vmem:[#allocation18 + $0x1a4] sm:$0xf] }
 0xc9d   : > { %8355 = vmatpush.bf16.msrb.mxu3 %v12024_v4  ;;  %v12028_v17 = vor.u32 %v13157_v49, %v12025_v47  ;;  %v11953_v4 = vld [vmem:[#allocation18 + $0x118] sm:$0xf0]  ;;  %v13154_v47 = vld [vmem:[#allocation18 + $0x184] sm:$0xf0] }
 0xc9e   : > { %v11956_v49 = vor.u32 %v13139_v1, %v11953_v4 }
 0xc9f   : > { %v7666_v46 = vpop.f32.mrf.mxu1 }
 0xca0   : > { %v16935_v30 = vpop.f32.mrf.mxu2 }
 0xca3   : > { %v7637_v40 = vpop.f32.mrf.mxu0 }
 0xca4   : > { %v7667_v38 = vadd.f32 %v7666_v46, %v7637_v40  ;;  %v12036_v46 = vor.u32 %v13159_v33, %v12033_v9  ;;  %v13156_v33 = vld [vmem:[#allocation18 + $0x194] sm:$0xf0]  ;;  %v7719_v9 = vpop.f32.mrf.mxu3 }
 0xca6   : > { %v16925_v29 = vadd.f32 %v7667_v38, %v16879_v10  ;;  %v11969_v10 = vld [vmem:[#allocation18 + $0x138] sm:$0xf0]  ;;  %v11960_v38 = vor.u32 %v13142_v43, %v11959_v32  ;;  %8412 = vmatpush.bf16.msra.mxu1 %v12036_v46 }
 0xca7   : > { %v16927_v8 = vpop.f32.mrf.mxu1  ;;  %v11972_v57 = vor.u32 %v13143_v48, %v11969_v10  ;;  %v11964_v48 = vor.u32 %v13141_v44, %v11961_v41  ;;  %v12015_v10 = vld [vmem:[#allocation18 + $0x190] sm:$0xf]  ;;  %v12017_v32 = vld [vmem:[#allocation18 + $0x198] sm:$0xf0] }
 0xca8   : > { %8326 = vmatpush.bf16.msra.mxu2 %v11960_v38  ;;  %v12016_v46 = vor.u32 %v13156_v33, %v12015_v10  ;;  %v11943_v10 = vld [vmem:[#allocation18 + $0x100] sm:$0xf]  ;;  %v13138_v33 = vld [vmem:[#allocation18 + $0x104] sm:$0xf0] }
 0xca9   : > { %8383 = vmatpush.bf16.msra.mxu0 %v11972_v57  ;;  %v13155_v57 = vld [vmem:[#allocation18 + $0x194] sm:$0xf] }
 0xcaa   : > { %8413 = vmatpush.bf16.msra.mxu1 %v12028_v17  ;;  %v12020_v43 = vor.u32 %v13155_v57, %v12017_v32  ;;  %8356 = vmatpush.bf16.msrb.mxu3 %v12016_v46  ;;  %v12009_v17 = vld [vmem:[#allocation18 + $0x188] sm:$0xf0]  ;;  %v13137_v57 = vld [vmem:[#allocation18 + $0x104] sm:$0xf]  ;;  %v7692_v46 = vpop.f32.mrf.mxu2  ;;  %v11944_v32 = vor.u32 %v13138_v33, %v11943_v10 }
 0xcab   : > { %v16929_v20 = vpop.f32.mrf.mxu0 }
 0xcad   : > { %8384 = vmatpush.bf16.msra.mxu0 %v11964_v48 }
 0xcae   : > { %8414 = vmatpush.bf16.msra.mxu1 %v12020_v43  ;;  %v11945_v43 = vld [vmem:[#allocation18 + $0x108] sm:$0xf0] }
 0xcaf   : > { %v7671_v40 = vpop.f32.mrf.mxu1 }
 0xcb1   : > { %8385 = vmatpush.bf16.msra.mxu0 %v11956_v49  ;;  %v12127_v49 = vld [vmem:[#allocation18 + $0x70] sm:$0xf] }
 0xcb3   : > { %v7642_v11 = vpop.f32.mrf.mxu0 }
 0xcb4   : > { %v7672_v50 = vadd.f32 %v7671_v40, %v7642_v11  ;;  %v13140_v40 = vld [vmem:[#allocation18 + $0x114] sm:$0xf0]  ;;  %v12007_v11 = vld [vmem:[#allocation18 + $0x180] sm:$0xf] }
 0xcb5   : > { %v12008_v44 = vor.u32 %v13154_v47, %v12007_v11  ;;  %v13120_v47 = vld [vmem:[#allocation18 + $0x74] sm:$0xf0] }
 0xcb6   : > { %v16938_v54 = vadd.f32 %v7672_v50, %v16894_v31  ;;  %v11952_v31 = vor.u32 %v13140_v40, %v11951_v45  ;;  %v13153_v50 = vld [vmem:[#allocation18 + $0x184] sm:$0xf]  ;;  %v11948_v45 = vor.u32 %v13137_v57, %v11945_v43  ;;  %v7721_v40 = vpop.f32.mrf.mxu3  ;;  %v6413_v57 = vld [vmem:[%s17741_s0] sm:$0x3]  ;;  %v12129_v43 = vld [vmem:[#allocation18 + $0x78] sm:$0xf0] }
 0xcb7   : > { %v16940_v22 = vpop.f32.mrf.mxu1  ;;  %v12012_v41 = vor.u32 %v13153_v50, %v12009_v17  ;;  %8357 = vmatpush.bf16.msrb.mxu3 %v12008_v44  ;;  %v12191_v50 = vld [vmem:[#allocation18 + $0xf0] sm:$0xf]  ;;  %v12128_v17 = vor.u32 %v13120_v47, %v12127_v49  ;;  %v13136_v44 = vld [vmem:[#allocation18 + $0xf4] sm:$0xf0]  ;;  %v7720_v47 = vadd.f32 %v7719_v9, %v16935_v30  ;;  %v7722_v62 = vadd.f32 %v7721_v40, %v7692_v46  ;;  %s10238_s0 = sshll.u32 %s1570_s10, 4  ;;  %s10239_s0 = int_to_ptr.vmem [resolvable:$true] %s10238_s0 }
 0xcb8   : > { %8327 = vmatpush.bf16.msra.mxu2 %v11952_v31  ;;  %8386 = vmatpush.bf16.msra.mxu0 %v11948_v45  ;;  %v12192_v10 = vor.u32 %v13136_v44, %v12191_v50  ;;  %v13135_v45 = vld [vmem:[#allocation18 + $0xf4] sm:$0xf]  ;;  %v16960_v44 = vperm.slane %v6413_v57, 1  ;;  %v16967_v9 = vperm.slane %v6396_v3, 1  ;;  %v7664_v46 = vadd.f32 %v16920_v21, %v16922_v58 }
 0xcb9   : > { %8415 = vmatpush.bf16.msra.mxu1 %v12012_v41  ;;  %v16949_v41 = vpop.f32.mrf.mxu2  ;;  %v7740_v30 = vadd.f32 %v7720_v47, %v16871_v55  ;;  %v12185_v47 = vld [vmem:[#allocation18 + $0xe8] sm:$0xf0]  ;;  %v16976_v21 = vperm.slane %v6396_v3, 0 }
 0xcbb   : > { %v16942_v38 = vpop.f32.mrf.mxu0  ;;  %8626 = vmatpush.bf16.msra.mxu3 %v12192_v10  ;;  %v12183_v10 = vld [vmem:[#allocation18 + $0xe0] sm:$0xf]  ;;  %v7760_v3 = vadd.f32 %v16976_v21, %v16918_v14 }
 0xcbc   : > { %8328 = vmatpush.bf16.msra.mxu2 %v11944_v32 }
 0xcbe   : > { %v16956_v32 = vpop.f32.mrf.mxu3 }
 0xcbf   : > { %v7676_v48 = vpop.f32.mrf.mxu1 }
 0xcc0   : > { %8597 = vmatpush.bf16.msrb.mxu2 %v12128_v17 }
 0xcc3   : > { %v7647_v1 = vpop.f32.mrf.mxu0 }
 0xcc4   : > { %v7677_v4 = vadd.f32 %v7676_v48, %v7647_v1  ;;  %v7168_v48 = vadd.f32 %v16823_v2, %v16825_v42  ;;  %v12119_v2 = vld [vmem:[#allocation18 + $0x60] sm:$0xf]  ;;  %v13118_v42 = vld [vmem:[#allocation18 + $0x64] sm:$0xf0] }
 0xcc6   : > { %v16945_v31 = vadd.f32 %v7677_v4, %v16908_v19  ;;  %v13119_v19 = vld [vmem:[#allocation18 + $0x74] sm:$0xf]  ;;  %v12193_v4 = vld [vmem:[#allocation18 + $0xf8] sm:$0xf0]  ;;  %v7415_v49 = vadd.f32 %v16875_v5, %v7168_v48 }
 0xcc7   : > { %v16947_v11 = vpop.f32.mrf.mxu1  ;;  %v12132_v1 = vor.u32 %v13119_v19, %v12129_v43  ;;  %v12196_v50 = vor.u32 %v13135_v45, %v12193_v4  ;;  %v12120_v19 = vor.u32 %v13118_v42, %v12119_v2  ;;  %v13134_v43 = vld [vmem:[#allocation18 + $0xe4] sm:$0xf0]  ;;  %v7726_v2 = vpop.f32.mrf.mxu3  ;;  %v7761_v42 = vadd.f32 %v16967_v9, %v7740_v30 }
 0xcc8   : > { %17742 = vst [vmem:[#allocation66_spill] sm:$0xff] %v16945_v31  ;;  %v7357_v31 = vadd.f32 %v16869_v7, %v16821_v61  ;;  %v7444_v5 = vadd.f32 %v16873_v63, %v7415_v49  ;;  %v12184_v48 = vor.u32 %v13134_v43, %v12183_v10  ;;  %v16972_v61 = vperm.slane %v6413_v57, 0  ;;  %v13117_v7 = vld [vmem:[#allocation18 + $0x64] sm:$0xf] }
 0xcc9   : > { %8655 = vmatpush.bf16.msrb.mxu0 %v12132_v1  ;;  %8684 = vmatpush.bf16.msrb.mxu1 %v12196_v50  ;;  %v7697_v1 = vpop.f32.mrf.mxu2  ;;  %v12121_v50 = vld [vmem:[#allocation18 + $0x68] sm:$0xf0]  ;;  %v13133_v49 = vld [vmem:[#allocation18 + $0xe4] sm:$0xf] }
 0xcca   : > { %8598 = vmatpush.bf16.msrb.mxu2 %v12120_v19  ;;  %v7742_v45 = vadd.f32 %v7722_v62, %v7444_v5  ;;  %8627 = vmatpush.bf16.msra.mxu3 %v12184_v48  ;;  %v7386_v63 = vadd.f32 %v16866_v35, %v7357_v31  ;;  %v12124_v55 = vor.u32 %v13117_v7, %v12121_v50  ;;  %v12111_v35 = vld [vmem:[#allocation18 + $0x50] sm:$0xf]  ;;  %v13116_v31 = vld [vmem:[#allocation18 + $0x54] sm:$0xf0] }
 0xccb   : > { %v16951_v33 = vpop.f32.mrf.mxu0  ;;  %v12188_v58 = vor.u32 %v13133_v49, %v12185_v47  ;;  %v12112_v5 = vor.u32 %v13116_v31, %v12111_v35  ;;  %v12175_v48 = vld [vmem:[#allocation18 + $0xd0] sm:$0xf]  ;;  %v13132_v7 = vld [vmem:[#allocation18 + $0xd4] sm:$0xf0]  ;;  %v13115_v47 = vld [vmem:[#allocation18 + $0x54] sm:$0xf]  ;;  %v7727_v35 = vadd.f32 %v7726_v2, %v7697_v1 }
 0xccc   : > { %v7741_v62 = vadd.f32 %v7664_v46, %v7386_v63  ;;  %v7763_v19 = vadd.f32 %v16967_v9, %v7742_v45  ;;  %v12176_v46 = vor.u32 %v13132_v7, %v12175_v48  ;;  %v12103_v48 = vld [vmem:[#allocation18 + $0x40] sm:$0xf] }
 0xccd   : > { %8656 = vmatpush.bf16.msrb.mxu0 %v12124_v55  ;;  %8685 = vmatpush.bf16.msrb.mxu1 %v12188_v58 }
 0xcce   : > { %8599 = vmatpush.bf16.msrb.mxu2 %v12112_v5  ;;  %8628 = vmatpush.bf16.msra.mxu3 %v12176_v46 }
 0xccf   : > { %v7899_v17 = vpop.f32.mrf.mxu1  ;;  %v16998_v31 = vpop.f32.mrf.mxu3 }
 0xcd0   : > { %v7900_v4 = vadd.f32 %v7899_v17, %v16960_v44 }
 0xcd2   : > { %v7920_v17 = vadd.f32 %v7900_v4, %v7761_v42  ;;  %v7173_v4 = vadd.f32 %v16837_v13, %v16839_v51  ;;  %v12113_v42 = vld [vmem:[#allocation18 + $0x58] sm:$0xf0]  ;;  %v7725_v13 = vadd.f32 %v16956_v32, %v16949_v41  ;;  %v16994_v51 = vpop.f32.mrf.mxu2  ;;  %v13114_v41 = vld [vmem:[#allocation18 + $0x44] sm:$0xf0]  ;;  %v7362_v32 = vadd.f32 %v16885_v52, %v16835_v27  ;;  %v13113_v52 = vld [vmem:[#allocation18 + $0x44] sm:$0xf] }
 0xcd3   : > { %v7870_v40 = vpop.f32.mrf.mxu0  ;;  %v12116_v58 = vor.u32 %v13115_v47, %v12113_v42  ;;  %v12104_v7 = vor.u32 %v13114_v41, %v12103_v48  ;;  %v13129_v47 = vld [vmem:[#allocation18 + $0xc4] sm:$0xf]  ;;  %v12169_v42 = vld [vmem:[#allocation18 + $0xc8] sm:$0xf0]  ;;  %v13128_v48 = vld [vmem:[#allocation18 + $0xb4] sm:$0xf0] }
 0xcd4   : > { %v7871_v57 = vadd.f32 %v7870_v40, %v16972_v61  ;;  %v7762_v40 = vadd.f32 %v16976_v21, %v7741_v62  ;;  %v16986_v45 = vmax.f32 %v7920_v17, 0.0  ;;  %v7420_v14 = vadd.f32 %v16891_v24, %v7173_v4 }
 0xcd5   : > { %8657 = vmatpush.bf16.msrb.mxu0 %v12116_v58  ;;  %v7744_v1 = vadd.f32 %v7725_v13, %v16887_v34  ;;  %8600 = vmatpush.bf16.msrb.mxu2 %v12104_v7  ;;  %v12172_v58 = vor.u32 %v13129_v47, %v12169_v42 }
 0xcd6   : > { %v7919_v63 = vadd.f32 %v7871_v57, %v7760_v3  ;;  %v12167_v3 = vld [vmem:[#allocation18 + $0xc0] sm:$0xf]  ;;  %v7449_v46 = vadd.f32 %v16889_v18, %v7420_v14  ;;  %v7391_v18 = vadd.f32 %v16882_v60, %v7362_v32  ;;  %v12095_v60 = vld [vmem:[#allocation18 + $0x30] sm:$0xf]  ;;  %v7764_v32 = vadd.f32 %v16976_v21, %v16925_v29 }
 0xcd7   : > { %v7901_v10 = vpop.f32.mrf.mxu1  ;;  %v7765_v14 = vadd.f32 %v16967_v9, %v7744_v1  ;;  %v7731_v41 = vpop.f32.mrf.mxu3 }
 0xcd8   : > { %v7902_v43 = vadd.f32 %v7901_v10, %v16960_v44  ;;  %v13131_v10 = vld [vmem:[#allocation18 + $0xd4] sm:$0xf]  ;;  %v17000_v5 = vmax.f32 %v7919_v63, 0.0  ;;  %v7746_v63 = vadd.f32 %v7727_v35, %v7449_v46  ;;  %v12159_v35 = vld [vmem:[#allocation18 + $0xb0] sm:$0xf] }
 0xcda   : > { %v7922_v30 = vadd.f32 %v7902_v43, %v7763_v19  ;;  %v12177_v19 = vld [vmem:[#allocation18 + $0xd8] sm:$0xf0]  ;;  %17745 = vst [vmem:[#allocation68_spill] sm:$0xff] %v17000_v5 }
 0xcdb   : > { %v7872_v50 = vpop.f32.mrf.mxu0  ;;  %v12180_v57 = vor.u32 %v13131_v10, %v12177_v19 }
 0xcdc   : > { %v16988_v55 = vmax.f32 %v7922_v30, 0.0  ;;  %v7873_v49 = vadd.f32 %v7872_v50, %v16972_v61  ;;  %v13130_v30 = vld [vmem:[#allocation18 + $0xc4] sm:$0xf0] }
 0xcdd   : > { %8686 = vmatpush.bf16.msrb.mxu1 %v12180_v57  ;;  %v12168_v4 = vor.u32 %v13130_v30, %v12167_v3  ;;  %v13112_v57 = vld [vmem:[#allocation18 + $0x34] sm:$0xf0]  ;;  %v12160_v3 = vor.u32 %v13128_v48, %v12159_v35  ;;  %v7178_v30 = vadd.f32 %v16847_v26, %v16851_v28  ;;  %v7730_v26 = vadd.f32 %v16998_v31, %v16994_v51  ;;  %v12089_v35 = vld [vmem:[#allocation18 + $0x28] sm:$0xf0]  ;;  %v13125_v48 = vld [vmem:[#allocation18 + $0xa4] sm:$0xf] }
 0xcde   : > { %17744 = vst [vmem:[#allocation67_spill] sm:$0xff] %v16988_v55  ;;  %v8154_v62 = vpack.c.bf16 %v16988_v55, %v16986_v45  ;;  %v7921_v17 = vadd.f32 %v7873_v49, %v7762_v40  ;;  %v7669_v40 = vadd.f32 %v16927_v8, %v16929_v20  ;;  %v12105_v49 = vld [vmem:[#allocation18 + $0x48] sm:$0xf0]  ;;  %v7702_v20 = vpop.f32.mrf.mxu2 }
 0xcdf   : > { %v7904_v43 = vpop.f32.mrf.mxu1  ;;  %8629 = vmatpush.bf16.msra.mxu3 %v12168_v4  ;;  %v12108_v34 = vor.u32 %v13113_v52, %v12105_v49  ;;  %v7425_v29 = vadd.f32 %v16905_v15, %v7178_v30  ;;  %v13127_v49 = vld [vmem:[#allocation18 + $0xb4] sm:$0xf]  ;;  %v7732_v42 = vadd.f32 %v7731_v41, %v7702_v20  ;;  %v12087_v15 = vld [vmem:[#allocation18 + $0x20] sm:$0xf]  ;;  %v13109_v20 = vld [vmem:[#allocation18 + $0x24] sm:$0xf] }
 0xce0   : > { %v17002_v24 = vmax.f32 %v7921_v17, 0.0  ;;  %8358 = vmatmul.bf16.vlgmr.msrb.gmra.mxu3 %v8154_v62  ;;  %8416 = vmatmul.bf16.vlgmr.msra.gmra.mxu1 %v8154_v62  ;;  %v7905_v27 = vadd.f32 %v7904_v43, %v16960_v44  ;;  %v7745_v10 = vadd.f32 %v7669_v40, %v7391_v18  ;;  %v7767_v62 = vadd.f32 %v16967_v9, %v7746_v63  ;;  %v13111_v63 = vld [vmem:[#allocation18 + $0x34] sm:$0xf]  ;;  %v12161_v18 = vld [vmem:[#allocation18 + $0xb8] sm:$0xf0] }
 0xce1   : > { %8658 = vmatpush.bf16.msrb.mxu0 %v12108_v34  ;;  %8687 = vmatpush.bf16.msrb.mxu1 %v12172_v58  ;;  %v12096_v43 = vor.u32 %v13112_v57, %v12095_v60  ;;  %v12164_v47 = vor.u32 %v13127_v49, %v12161_v18  ;;  %v7454_v51 = vadd.f32 %v16903_v59, %v7425_v29  ;;  %v12153_v41 = vld [vmem:[#allocation18 + $0xa8] sm:$0xf0]  ;;  %v12079_v30 = vld [vmem:[#allocation18 + $0x10] sm:$0xf]  ;;  %v12145_v29 = vld [vmem:[#allocation18 + $0x98] sm:$0xf0] }
 0xce2   : > { %17746 = vst [vmem:[#allocation69_spill] sm:$0xff] %v17002_v24  ;;  %v8153_v2 = vpack.c.bf16 %v17002_v24, %v17000_v5  ;;  %v7924_v19 = vadd.f32 %v7905_v27, %v7765_v14  ;;  %v7766_v46 = vadd.f32 %v16976_v21, %v7745_v10  ;;  %v12097_v27 = vld [vmem:[#allocation18 + $0x38] sm:$0xf0] }
 0xce3   : > { %v7875_v50 = vpop.f32.mrf.mxu0  ;;  %8601 = vmatpush.bf16.msrb.mxu2 %v12096_v43  ;;  %8630 = vmatpush.bf16.msra.mxu3 %v12160_v3  ;;  %v12100_v52 = vor.u32 %v13111_v63, %v12097_v27  ;;  %v7734_v3 = vpop.f32.mrf.mxu3  ;;  %v13124_v63 = vld [vmem:[#allocation18 + $0x94] sm:$0xf0]  ;;  %v12081_v49 = vld [vmem:[#allocation18 + $0x18] sm:$0xf0] }
 0xce4   : > { %8329 = vmatmul.bf16.vlgmr.msra.gmra.mxu2 %v8153_v2  ;;  %8387 = vmatmul.bf16.vlgmr.msra.gmra.mxu0 %v8153_v2  ;;  %v7876_v13 = vadd.f32 %v7875_v50, %v16972_v61  ;;  %v17023_v2 = vmax.f32 %v7924_v19, 0.0  ;;  %v7367_v19 = vadd.f32 %v16899_v23, %v16845_v16  ;;  %v7674_v16 = vadd.f32 %v16940_v22, %v16942_v38  ;;  %v13123_v22 = vld [vmem:[#allocation18 + $0x94] sm:$0xf] }
 0xce5   : > { %8659 = vmatpush.bf16.msrb.mxu0 %v12100_v52  ;;  %8688 = vmatpush.bf16.msrb.mxu1 %v12164_v47  ;;  %v7750_v23 = vadd.f32 %v7732_v42, %v7454_v51  ;;  %v13107_v52 = vld [vmem:[#allocation18 + $0x14] sm:$0xf]  ;;  %v12071_v47 = vld [vmem:[#allocation18] sm:$0xf]  ;;  %v13106_v42 = vld [vmem:[#allocation18 + $0x4] sm:$0xf0] }
 0xce6   : > { %17747 = vst [vmem:[#allocation70_spill] sm:$0xff] %v17023_v2  ;;  %v7923_v4 = vadd.f32 %v7876_v13, %v7764_v32  ;;  %v12151_v13 = vld [vmem:[#allocation18 + $0xa0] sm:$0xf]  ;;  %v17041_v60 = vpop.f32.mrf.mxu2  ;;  %v12092_v32 = vor.u32 %v13109_v20, %v12089_v35  ;;  %v12072_v51 = vor.u32 %v13106_v42, %v12071_v47  ;;  %v12137_v20 = vld [vmem:[#allocation18 + $0x88] sm:$0xf0]  ;;  %v7183_v35 = vadd.f32 %v16857_v6, %v16859_v37 }
 0xce7   : > { %v7906_v8 = vpop.f32.mrf.mxu1 }
 0xce8   : > { %v7907_v17 = vadd.f32 %v7906_v8, %v16960_v44  ;;  %v17033_v58 = vmax.f32 %v7923_v4, 0.0  ;;  %v13110_v8 = vld [vmem:[#allocation18 + $0x24] sm:$0xf0] }
 0xce9   : > { %v12088_v31 = vor.u32 %v13110_v8, %v12087_v15  ;;  %8660 = vmatpush.bf16.msrb.mxu0 %v12092_v32 }
 0xcea   : > { %v7926_v7 = vadd.f32 %v7907_v17, %v7767_v62  ;;  %17749 = vst [vmem:[#allocation72_spill] sm:$0xff] %v17033_v58  ;;  %v13126_v62 = vld [vmem:[#allocation18 + $0xa4] sm:$0xf0]  ;;  %v7748_v17 = vadd.f32 %v7730_v26, %v16901_v56  ;;  %v7771_v26 = vadd.f32 %v16967_v9, %v7750_v23 }
 0xceb   : > { %v7877_v1 = vpop.f32.mrf.mxu0  ;;  %v12152_v43 = vor.u32 %v13126_v62, %v12151_v13  ;;  %8602 = vmatpush.bf16.msrb.mxu2 %v12088_v31  ;;  %v13122_v31 = vld [vmem:[#allocation18 + $0x84] sm:$0xf0]  ;;  %v13121_v13 = vld [vmem:[#allocation18 + $0x84] sm:$0xf] }
 0xcec   : > { %v17025_v40 = vmax.f32 %v7926_v7, 0.0  ;;  %v7878_v50 = vadd.f32 %v7877_v1, %v16972_v61  ;;  %v12156_v7 = vor.u32 %v13125_v48, %v12153_v41  ;;  %v7396_v1 = vadd.f32 %v16897_v25, %v7367_v19 }
 0xced   : > { %8631 = vmatpush.bf16.msra.mxu3 %v12152_v43  ;;  %v7769_v38 = vadd.f32 %v16967_v9, %v7748_v17  ;;  %v12084_v25 = vor.u32 %v13107_v52, %v12081_v49  ;;  %v7768_v17 = vadd.f32 %v16976_v21, %v16938_v54  ;;  %v12140_v43 = vor.u32 %v13121_v13, %v12137_v20  ;;  %v12247_v13 = vld [vmem:[#allocation18 + $0x260] sm:$0xf] }
 0xcee   : > { %17748 = vst [vmem:[#allocation71_spill] sm:$0xff] %v17025_v40  ;;  %v7925_v28 = vadd.f32 %v7878_v50, %v7766_v46  ;;  %v8156_v34 = vpack.c.bf16 %v17025_v40, %v17023_v2  ;;  %v13108_v46 = vld [vmem:[#allocation18 + $0x14] sm:$0xf0]  ;;  %v12143_v50 = vld [vmem:[#allocation18 + $0x90] sm:$0xf]  ;;  %8689 = vmatpush.bf16.msrb.mxu1 %v12156_v7  ;;  %v7749_v18 = vadd.f32 %v7674_v16, %v7396_v1  ;;  %v7707_v16 = vpop.f32.mrf.mxu2 }
 0xcef   : > { %v7909_v14 = vpop.f32.mrf.mxu1  ;;  %v12080_v4 = vor.u32 %v13108_v46, %v12079_v30  ;;  %v12144_v27 = vor.u32 %v13124_v63, %v12143_v50  ;;  %8661 = vmatpush.bf16.msrb.mxu0 %v12084_v25  ;;  %v7430_v54 = vadd.f32 %v16931_v53, %v7183_v35  ;;  %v7736_v30 = vpop.f32.mrf.mxu3  ;;  %v12073_v50 = vld [vmem:[#allocation18 + $0x8] sm:$0xf0]  ;;  %v13183_v25 = vld [vmem:[#allocation18 + $0x274] sm:$0xf]  ;;  %v12311_v20 = vld [vmem:[#allocation18 + $0x2e0] sm:$0xf] }
 0xcf0   : > { %v17035_v10 = vmax.f32 %v7925_v28, 0.0  ;;  %8363 = vmatmul.bf16.gmra.mxu3 %v8156_v34  ;;  %8421 = vmatmul.bf16.gmra.mxu1 %v8156_v34  ;;  %v7910_v56 = vadd.f32 %v7909_v14, %v16960_v44  ;;  %v12148_v34 = vor.u32 %v13123_v22, %v12145_v29  ;;  %v12135_v14 = vld [vmem:[#allocation18 + $0x80] sm:$0xf]  ;;  %v7770_v48 = vadd.f32 %v16976_v21, %v7749_v18 }
 0xcf1   : > { %8603 = vmatpush.bf16.msrb.mxu2 %v12080_v4  ;;  %8632 = vmatpush.bf16.msra.mxu3 %v12144_v27  ;;  %v12136_v62 = vor.u32 %v13122_v31, %v12135_v14  ;;  %v7737_v37 = vadd.f32 %v7736_v30, %v7707_v16  ;;  %v13105_v4 = vld [vmem:[#allocation18 + $0x4] sm:$0xf]  ;;  %v7679_v29 = vadd.f32 %v16947_v11, %v16951_v33  ;;  %v12257_v14 = vld [vmem:[#allocation18 + $0x278] sm:$0xf0] }
 0xcf2   : > { %17750 = vst [vmem:[#allocation73_spill] sm:$0xff] %v17035_v10  ;;  %v8155_v57 = vpack.c.bf16 %v17035_v10, %v17033_v58  ;;  %v7928_v15 = vadd.f32 %v7910_v56, %v7769_v38  ;;  %8690 = vmatpush.bf16.msrb.mxu1 %v12148_v34  ;;  %v7735_v56 = vadd.f32 %v7734_v3, %v17041_v60  ;;  %v12319_v34 = vld [vmem:[#allocation18 + $0x2f0] sm:$0xf]  ;;  %v12321_v11 = vld [vmem:[#allocation18 + $0x2f8] sm:$0xf0]  ;;  %v17756_v16 = vld [vmem:[#allocation66_spill] sm:$0xff] }
 0xcf3   : > { %v7880_v59 = vpop.f32.mrf.mxu0  ;;  %v12076_v53 = vor.u32 %v13105_v4, %v12073_v50  ;;  %v7372_v60 = vadd.f32 %v16913_v0, %v16855_v39  ;;  %v7459_v3 = vadd.f32 %v16933_v36, %v7430_v54  ;;  %v17755_v39 = vld [vmem:[#allocation65_spill] sm:$0xff]  ;;  %v12249_v50 = vld [vmem:[#allocation18 + $0x268] sm:$0xf0] }
 0xcf4   : > { %8334 = vmatmul.bf16.gmra.mxu2 %v8155_v57  ;;  %8392 = vmatmul.bf16.gmra.mxu0 %v8155_v57  ;;  %v7881_v8 = vadd.f32 %v7880_v59, %v16972_v61  ;;  %v17058_v23 = vmax.f32 %v7928_v15, 0.0  ;;  %v7752_v38 = vadd.f32 %v7735_v56, %v16915_v12  ;;  %v13200_v12 = vld [vmem:[#allocation18 + $0x2f4] sm:$0xf0]  ;;  %v13199_v15 = vld [vmem:[#allocation18 + $0x2f4] sm:$0xf] }
 0xcf5   : > { %8604 = vmatpush.bf16.msrb.mxu2 %v12072_v51  ;;  %8633 = vmatpush.bf16.msra.mxu3 %v12136_v62  ;;  %v7754_v52 = vadd.f32 %v7737_v37, %v7459_v3  ;;  %v7401_v0 = vadd.f32 %v17755_v39, %v7372_v60  ;;  %v12320_v42 = vor.u32 %v13200_v12, %v12319_v34  ;;  %v13182_v62 = vld [vmem:[#allocation18 + $0x264] sm:$0xf0]  ;;  %v13197_v60 = vld [vmem:[#allocation18 + $0x2e4] sm:$0xf]  ;;  %v12313_v3 = vld [vmem:[#allocation18 + $0x2e8] sm:$0xf0] }
 0xcf6   : > { %17751 = vst [vmem:[#allocation74_spill] sm:$0xff] %v17058_v23  ;;  %v7927_v59 = vadd.f32 %v7881_v8, %v7768_v17  ;;  %8691 = vmatpush.bf16.msrb.mxu1 %v12140_v43  ;;  %8662 = vmatpush.bf16.msrb.mxu0 %v12076_v53  ;;  %v7773_v47 = vadd.f32 %v16967_v9, %v7752_v38  ;;  %v12305_v34 = vld [vmem:[#allocation18 + $0x2d8] sm:$0xf0]  ;;  %v12231_v12 = vld [vmem:[#allocation18 + $0x240] sm:$0xf] }
 0xcf7   : > { %v7911_v28 = vpop.f32.mrf.mxu1  ;;  %v7753_v33 = vadd.f32 %v7679_v29, %v7401_v0  ;;  %v7775_v8 = vadd.f32 %v16967_v9, %v7754_v52  ;;  %v12260_v51 = vor.u32 %v13183_v25, %v12257_v14  ;;  %v12324_v31 = vor.u32 %v13199_v15, %v12321_v11  ;;  %v13180_v29 = vld [vmem:[#allocation18 + $0x254] sm:$0xf0]  ;;  %v12303_v52 = vld [vmem:[#allocation18 + $0x2d0] sm:$0xf]  ;;  %v13194_v14 = vld [vmem:[#allocation18 + $0x2c4] sm:$0xf0] }
 0xcf8   : > { %v7912_v19 = vadd.f32 %v7911_v28, %v16960_v44  ;;  %v17067_v63 = vmax.f32 %v7927_v59, 0.0  ;;  %v13184_v28 = vld [vmem:[#allocation18 + $0x274] sm:$0xf0]  ;;  %v12248_v35 = vor.u32 %v13182_v62, %v12247_v13  ;;  %v7772_v9 = vadd.f32 %v16976_v21, %v17756_v16  ;;  %v12297_v62 = vld [vmem:[#allocation18 + $0x2c8] sm:$0xf0] }
 0xcf9   : > { %8904 = vmatpush.bf16.msrb.mxu3 %v12320_v42  ;;  %v12295_v42 = vld [vmem:[#allocation18 + $0x2c0] sm:$0xf]  ;;  %v13175_v16 = vld [vmem:[#allocation18 + $0x234] sm:$0xf] }
 0xcfa   : > { %v7930_v57 = vadd.f32 %v7912_v19, %v7771_v26  ;;  %17753 = vst [vmem:[#allocation76_spill] sm:$0xff] %v17067_v63  ;;  %v12255_v26 = vld [vmem:[#allocation18 + $0x270] sm:$0xf]  ;;  %8933 = vmatpush.bf16.msra.mxu0 %v12260_v51  ;;  %8962 = vmatpush.bf16.msra.mxu1 %v12324_v31  ;;  %v12296_v11 = vor.u32 %v13194_v14, %v12295_v42  ;;  %v12233_v51 = vld [vmem:[#allocation18 + $0x248] sm:$0xf0] }
 0xcfb   : > { %v7882_v41 = vpop.f32.mrf.mxu0  ;;  %v12256_v36 = vor.u32 %v13184_v28, %v12255_v26  ;;  %v13179_v26 = vld [vmem:[#allocation18 + $0x254] sm:$0xf]  ;;  %v12241_v28 = vld [vmem:[#allocation18 + $0x258] sm:$0xf0]  ;;  %v13193_v31 = vld [vmem:[#allocation18 + $0x2c4] sm:$0xf] }
 0xcfc   : > { %v17060_v32 = vmax.f32 %v7930_v57, 0.0  ;;  %v7883_v7 = vadd.f32 %v7882_v41, %v16972_v61  ;;  %v12244_v0 = vor.u32 %v13179_v26, %v12241_v28  ;;  %v12207_v26 = vld [vmem:[#allocation18 + $0x210] sm:$0xf]  ;;  %v13172_v28 = vld [vmem:[#allocation18 + $0x214] sm:$0xf0] }
 0xcfd   : > { %8875 = vmatpush.bf16.msra.mxu2 %v12256_v36  ;;  %v13195_v36 = vld [vmem:[#allocation18 + $0x2d4] sm:$0xf]  ;;  %v12209_v14 = vld [vmem:[#allocation18 + $0x218] sm:$0xf0] }
 0xcfe   : > { %17752 = vst [vmem:[#allocation75_spill] sm:$0xff] %v17060_v32  ;;  %v7929_v46 = vadd.f32 %v7883_v7, %v7770_v48  ;;  %v8158_v6 = vpack.c.bf16 %v17060_v32, %v17058_v23  ;;  %v13198_v48 = vld [vmem:[#allocation18 + $0x2e4] sm:$0xf0]  ;;  %v7774_v7 = vadd.f32 %v16976_v21, %v7753_v33  ;;  %v13181_v21 = vld [vmem:[#allocation18 + $0x264] sm:$0xf]  ;;  %v12308_v25 = vor.u32 %v13195_v36, %v12305_v34 }
 0xcff   : > { %v7914_v1 = vpop.f32.mrf.mxu1  ;;  %v12312_v41 = vor.u32 %v13198_v48, %v12311_v20  ;;  %v12252_v53 = vor.u32 %v13181_v21, %v12249_v50  ;;  %v17761_v33 = vmov 0.0   ;;  %v12279_v21 = vld [vmem:[#allocation18 + $0x2a0] sm:$0xf]  ;;  %v13190_v50 = vld [vmem:[#allocation18 + $0x2a4] sm:$0xf0] }
 0xd00   : > { %v17069_v22 = vmax.f32 %v7929_v46, 0.0  ;;  %8368 = vmatmul.bf16.gmra.mxu3 %v8158_v6  ;;  %8426 = vmatmul.bf16.gmra.mxu1 %v8158_v6  ;;  %v7915_v18 = vadd.f32 %v7914_v1, %v16960_v44  ;;  %v8145_v20 = vpack.c.bf16 %v17000_v5, %v17761_v33  ;;  %v13188_v36 = vld [vmem:[#allocation18 + $0x294] sm:$0xf0]  ;;  %v13187_v34 = vld [vmem:[#allocation18 + $0x294] sm:$0xf] }
 0xd01   : > { %8876 = vmatpush.bf16.msra.mxu2 %v12248_v35  ;;  %8905 = vmatpush.bf16.msrb.mxu3 %v12312_v41  ;;  %v12287_v35 = vld [vmem:[#allocation18 + $0x2b0] sm:$0xf]  ;;  %v13192_v41 = vld [vmem:[#allocation18 + $0x2b4] sm:$0xf0]  ;;  %v13171_v42 = vld [vmem:[#allocation18 + $0x214] sm:$0xf] }
 0xd02   : > { %17754 = vst [vmem:[#allocation77_spill] sm:$0xff] %v17069_v22  ;;  %v8157_v27 = vpack.c.bf16 %v17069_v22, %v17067_v63  ;;  %v7932_v17 = vadd.f32 %v7915_v18, %v7773_v47  ;;  %8934 = vmatpush.bf16.msra.mxu0 %v12252_v53  ;;  %v13196_v18 = vld [vmem:[#allocation18 + $0x2d4] sm:$0xf0]  ;;  %v13178_v47 = vld [vmem:[#allocation18 + $0x244] sm:$0xf0] }
 0xd03   : > { %v7885_v49 = vpop.f32.mrf.mxu0  ;;  %v12304_v39 = vor.u32 %v13196_v18, %v12303_v52  ;;  %v12232_v15 = vor.u32 %v13178_v47, %v12231_v12  ;;  %v12281_v52 = vld [vmem:[#allocation18 + $0x2a8] sm:$0xf0]  ;;  %v12273_v12 = vld [vmem:[#allocation18 + $0x298] sm:$0xf0] }
 0xd04   : > { %8339 = vmatmul.bf16.gmra.mxu2 %v8157_v27  ;;  %8397 = vmatmul.bf16.gmra.mxu0 %v8157_v27  ;;  %v7886_v57 = vadd.f32 %v7885_v49, %v16972_v61  ;;  %v17088_v56 = vmax.f32 %v7932_v17, 0.0  ;;  %v12239_v27 = vld [vmem:[#allocation18 + $0x250] sm:$0xf]  ;;  %v12300_v17 = vor.u32 %v13193_v31, %v12297_v62  ;;  %v12276_v47 = vor.u32 %v13187_v34, %v12273_v12  ;;  %v13185_v62 = vld [vmem:[#allocation18 + $0x284] sm:$0xf] }
 0xd05   : > { %v12240_v49 = vor.u32 %v13180_v29, %v12239_v27  ;;  %8906 = vmatpush.bf16.msrb.mxu3 %v12304_v39  ;;  %v13189_v27 = vld [vmem:[#allocation18 + $0x2a4] sm:$0xf]  ;;  %v12271_v39 = vld [vmem:[#allocation18 + $0x290] sm:$0xf] }
 0xd06   : > { %17757 = vst [vmem:[#allocation78_spill] sm:$0xff] %v17088_v56  ;;  %v7931_v30 = vadd.f32 %v7886_v57, %v7772_v9  ;;  %8935 = vmatpush.bf16.msra.mxu0 %v12244_v0  ;;  %v12223_v57 = vld [vmem:[#allocation18 + $0x230] sm:$0xf]  ;;  %v12225_v9 = vld [vmem:[#allocation18 + $0x238] sm:$0xf0]  ;;  %v12284_v18 = vor.u32 %v13189_v27, %v12281_v52  ;;  %v12208_v0 = vor.u32 %v13172_v28, %v12207_v26 }
 0xd07   : > { %v7916_v19 = vpop.f32.mrf.mxu1  ;;  %8877 = vmatpush.bf16.msra.mxu2 %v12240_v49  ;;  %v8147_v49 = vpack.c.bf16 %v17033_v58, %v17002_v24  ;;  %v12503_v58 = vld [vmem:[#allocation20 + $0x60] sm:$0xf] }
 0xd08   : > { %v7917_v43 = vadd.f32 %v7916_v19, %v16960_v44  ;;  %v17095_v1 = vmax.f32 %v7931_v30, 0.0  ;;  %v13177_v19 = vld [vmem:[#allocation18 + $0x244] sm:$0xf]  ;;  %v12289_v30 = vld [vmem:[#allocation18 + $0x2b8] sm:$0xf0] }
 0xd09   : > { %8907 = vmatpush.bf16.msrb.mxu3 %v12296_v11  ;;  %v12236_v13 = vor.u32 %v13177_v19, %v12233_v51  ;;  %v12212_v11 = vor.u32 %v13171_v42, %v12209_v14  ;;  %v12263_v19 = vld [vmem:[#allocation18 + $0x280] sm:$0xf]  ;;  %v13186_v51 = vld [vmem:[#allocation18 + $0x284] sm:$0xf0] }
 0xd0a   : > { %v7934_v59 = vadd.f32 %v7917_v43, %v7775_v8  ;;  %17759 = vst [vmem:[#allocation80_spill] sm:$0xff] %v17095_v1  ;;  %v8146_v8 = vpack.c.bf16 %v16986_v45, %v17761_v33  ;;  %v13176_v43 = vld [vmem:[#allocation18 + $0x234] sm:$0xf0] }
 0xd0b   : > { %v7887_v54 = vpop.f32.mrf.mxu0  ;;  %8878 = vmatpush.bf16.msra.mxu2 %v12232_v15  ;;  %8936 = vmatpush.bf16.msra.mxu0 %v12236_v13  ;;  %v12224_v48 = vor.u32 %v13176_v43, %v12223_v57  ;;  %v12199_v15 = vld [vmem:[#allocation18 + $0x200] sm:$0xf]  ;;  %v12264_v13 = vor.u32 %v13186_v51, %v12263_v19  ;;  %v8150_v57 = vpack.c.bf16 %v17058_v23, %v17025_v40  ;;  %v13169_v43 = vld [vmem:[#allocation18 + $0x204] sm:$0xf]  ;;  %v13235_v23 = vld [vmem:[#allocation20 + $0x114] sm:$0xf] }
 0xd0c   : > { %v17090_v46 = vmax.f32 %v7934_v59, 0.0  ;;  %v7888_v44 = vadd.f32 %v7887_v54, %v16972_v61  ;;  %v12316_v61 = vor.u32 %v13197_v60, %v12313_v3  ;;  %v12288_v59 = vor.u32 %v13192_v41, %v12287_v35  ;;  %v13191_v54 = vld [vmem:[#allocation18 + $0x2b4] sm:$0xf]  ;;  %v12201_v35 = vld [vmem:[#allocation18 + $0x208] sm:$0xf0] }
 0xd0d   : > { %v12280_v60 = vor.u32 %v13190_v50, %v12279_v21  ;;  %v8148_v3 = vpack.c.bf16 %v17023_v2, %v16988_v55  ;;  %v8149_v41 = vpack.c.bf16 %v17067_v63, %v17035_v10  ;;  %v13237_v63 = vld [vmem:[#allocation20 + $0x124] sm:$0xf]  ;;  %v13231_v2 = vld [vmem:[#allocation20 + $0xf4] sm:$0xf] }
 0xd0e   : > { %17758 = vst [vmem:[#allocation79_spill] sm:$0xff] %v17090_v46  ;;  %v7933_v6 = vadd.f32 %v7888_v44, %v7774_v7  ;;  %v8160_v37 = vpack.c.bf16 %v17090_v46, %v17088_v56  ;;  %8963 = vmatpush.bf16.msra.mxu1 %v12316_v61  ;;  %v12228_v7 = vor.u32 %v13175_v16, %v12225_v9  ;;  %v12215_v44 = vld [vmem:[#allocation18 + $0x220] sm:$0xf]  ;;  %v12217_v61 = vld [vmem:[#allocation18 + $0x228] sm:$0xf0] }
 0xd0f   : > { %8879 = vmatpush.bf16.msra.mxu2 %v12224_v48  ;;  %8908 = vmatpush.bf16.msrb.mxu3 %v12288_v59  ;;  %v12204_v48 = vor.u32 %v13169_v43, %v12201_v35  ;;  %v8152_v16 = vpack.c.bf16 %v17088_v56, %v17060_v32  ;;  %v8151_v9 = vpack.c.bf16 %v17095_v1, %v17069_v22  ;;  %v12383_v43 = vld [vmem:[#allocation20 + $0x170] sm:$0xf]  ;;  %v13248_v35 = vld [vmem:[#allocation20 + $0x174] sm:$0xf0] }
 0xd10   : > { %v17097_v4 = vmax.f32 %v7933_v6, 0.0  ;;  %8373 = vmatmul.bf16.gmra.mxu3 %v8160_v37  ;;  %8431 = vmatmul.bf16.gmra.mxu1 %v8160_v37  ;;  %v12292_v6 = vor.u32 %v13191_v54, %v12289_v30  ;;  %v13174_v37 = vld [vmem:[#allocation18 + $0x224] sm:$0xf0]  ;;  %v12399_v22 = vld [vmem:[#allocation20 + $0x190] sm:$0xf] }
 0xd11   : > { %8937 = vmatpush.bf16.msra.mxu0 %v12228_v7  ;;  %v12216_v53 = vor.u32 %v13174_v37, %v12215_v44  ;;  %v13252_v32 = vld [vmem:[#allocation20 + $0x194] sm:$0xf0] }
 0xd12   : > { %17760 = vst [vmem:[#allocation81_spill] sm:$0xff] %v17097_v4  ;;  %v8159_v38 = vpack.c.bf16 %v17097_v4, %v17095_v1  ;;  %8964 = vmatpush.bf16.msra.mxu1 %v12308_v25  ;;  %v12272_v25 = vor.u32 %v13188_v36, %v12271_v39  ;;  %v8713_v51 = vpack.c.bf16 0.0, %v17097_v4  ;;  %v13241_v4 = vld [vmem:[#allocation20 + $0x144] sm:$0xf] }
 0xd13   : > { %8880 = vmatpush.bf16.msra.mxu2 %v12216_v53  ;;  %8909 = vmatpush.bf16.msrb.mxu3 %v12280_v60 }
 0xd14   : > { %8344 = vmatmul.bf16.gmra.mxu2 %v8159_v38  ;;  %8402 = vmatmul.bf16.gmra.mxu0 %v8159_v38  ;;  %v13173_v38 = vld [vmem:[#allocation18 + $0x224] sm:$0xf] }
 0xd15   : > { %v12220_v29 = vor.u32 %v13173_v38, %v12217_v61 }
 0xd16   : > { %8965 = vmatpush.bf16.msra.mxu1 %v12300_v17 }
 0xd17   : > { %8938 = vmatpush.bf16.msra.mxu0 %v12220_v29  ;;  %8881 = vmatpush.bf16.msra.mxu2 %v12208_v0 }
 0xd18   : > { %8910 = vmatpush.bf16.msrb.mxu3 %v12272_v25 }
 0xd1a   : > { %8966 = vmatpush.bf16.msra.mxu1 %v12292_v6 }
 0xd1b   : > { %8939 = vmatpush.bf16.msra.mxu0 %v12212_v11 }
 0xd1c   : > { %8911 = vmatpush.bf16.msrb.mxu3 %v12264_v13 }
 0xd1e   : > { %8967 = vmatpush.bf16.msra.mxu1 %v12284_v18 }
 0xd1f   : > { %8940 = vmatpush.bf16.msra.mxu0 %v12204_v48  ;;  %v12447_v48 = vld [vmem:[#allocation20 + $0x1f0] sm:$0xf] }
 0xd20   : > { %8634 = vmatmul.bf16.vlgmr.msra.gmra.mxu3 %v8146_v8  ;;  %8692 = vmatmul.bf16.vlgmr.msrb.gmra.mxu1 %v8146_v8  ;;  %v13170_v8 = vld [vmem:[#allocation18 + $0x204] sm:$0xf0] }
 0xd21   : > { %v12200_v31 = vor.u32 %v13170_v8, %v12199_v15  ;;  %v8714_v15 = vpack.c.bf16 0.0, %v17090_v46  ;;  %v13255_v46 = vld [vmem:[#allocation20 + $0x1b4] sm:$0xf] }
 0xd22   : > { %8968 = vmatpush.bf16.msra.mxu1 %v12276_v47 }
 0xd23   : > { %8882 = vmatpush.bf16.msra.mxu2 %v12200_v31 }
 0xd24   : > { %8605 = vmatmul.bf16.vlgmr.msrb.gmra.mxu2 %v8145_v20  ;;  %8663 = vmatmul.bf16.vlgmr.msrb.gmra.mxu0 %v8145_v20  ;;  %v12265_v20 = vld [vmem:[#allocation18 + $0x288] sm:$0xf0] }
 0xd25   : > { %v12268_v17 = vor.u32 %v13185_v62, %v12265_v20 }
 0xd27   : > { %8969 = vmatpush.bf16.msra.mxu1 %v12268_v17 }
 0xd30   : > { %8639 = vmatmul.bf16.gmra.mxu3 %v8148_v3  ;;  %8697 = vmatmul.bf16.gmra.mxu1 %v8148_v3 }
 0xd34   : > { %8610 = vmatmul.bf16.gmra.mxu2 %v8147_v49  ;;  %8668 = vmatmul.bf16.gmra.mxu0 %v8147_v49 }
 0xd40   : > { %8644 = vmatmul.bf16.gmra.mxu3 %v8150_v57  ;;  %8702 = vmatmul.bf16.gmra.mxu1 %v8150_v57 }
 0xd44   : > { %8615 = vmatmul.bf16.gmra.mxu2 %v8149_v41  ;;  %8673 = vmatmul.bf16.gmra.mxu0 %v8149_v41 }
 0xd50   : > { %8649 = vmatmul.bf16.gmra.mxu3 %v8152_v16  ;;  %8707 = vmatmul.bf16.gmra.mxu1 %v8152_v16 }
 0xd54   : > { %8620 = vmatmul.bf16.gmra.mxu2 %v8151_v9  ;;  %8678 = vmatmul.bf16.gmra.mxu0 %v8151_v9 }
 0xd5d   : > { %v8417_v59 = vpop.f32.mrf.mxu1 }
 0xd60   : > { %8912 = vmatmul.bf16.vlgmr.msrb.gmra.mxu3 %v8148_v3  ;;  %8970 = vmatmul.bf16.vlgmr.msra.gmra.mxu1 %v8148_v3 }
 0xd61   : > { %v8388_v7 = vpop.f32.mrf.mxu0 }
 0xd62   : > { %v17117_v54 = vadd.f32 %v8417_v59, %v8388_v7 }
 0xd63   : > { %v8359_v30 = vpop.f32.mrf.mxu3 }
 0xd64   : > { %8883 = vmatmul.bf16.vlgmr.msra.gmra.mxu2 %v8147_v49  ;;  %8941 = vmatmul.bf16.vlgmr.msra.gmra.mxu0 %v8147_v49 }
 0xd65   : > { %v17119_v44 = vpop.f32.mrf.mxu1 }
 0xd67   : > { %v8330_v6 = vpop.f32.mrf.mxu2 }
 0xd68   : > { %v17121_v37 = vadd.f32 %v8359_v30, %v8330_v6 }
 0xd69   : > { %v17123_v21 = vpop.f32.mrf.mxu0 }
 0xd6b   : > { %v17125_v50 = vpop.f32.mrf.mxu3 }
 0xd6d   : > { %v8422_v53 = vpop.f32.mrf.mxu1 }
 0xd6f   : > { %v17127_v60 = vpop.f32.mrf.mxu2 }
 0xd70   : > { %8917 = vmatmul.bf16.gmra.mxu3 %v8150_v57  ;;  %8975 = vmatmul.bf16.gmra.mxu1 %v8150_v57 }
 0xd71   : > { %v8393_v3 = vpop.f32.mrf.mxu0 }
 0xd72   : > { %v17129_v38 = vadd.f32 %v8422_v53, %v8393_v3 }
 0xd73   : > { %v8364_v61 = vpop.f32.mrf.mxu3 }
 0xd74   : > { %8888 = vmatmul.bf16.gmra.mxu2 %v8149_v41  ;;  %8946 = vmatmul.bf16.gmra.mxu0 %v8149_v41 }
 0xd75   : > { %v17131_v27 = vpop.f32.mrf.mxu1 }
 0xd77   : > { %v8335_v29 = vpop.f32.mrf.mxu2 }
 0xd78   : > { %v17133_v52 = vadd.f32 %v8364_v61, %v8335_v29  ;;  %v12375_v61 = vld [vmem:[#allocation20 + $0x160] sm:$0xf]  ;;  %v13246_v29 = vld [vmem:[#allocation20 + $0x164] sm:$0xf0] }
 0xd79   : > { %v17135_v49 = vpop.f32.mrf.mxu0 }
 0xd7b   : > { %v17137_v18 = vpop.f32.mrf.mxu3 }
 0xd7d   : > { %v8427_v26 = vpop.f32.mrf.mxu1 }
 0xd7f   : > { %v17139_v28 = vpop.f32.mrf.mxu2 }
 0xd80   : > { %8922 = vmatmul.bf16.gmra.mxu3 %v8152_v16  ;;  %8980 = vmatmul.bf16.gmra.mxu1 %v8152_v16  ;;  %v12384_v16 = vor.u32 %v13248_v35, %v12383_v43 }
 0xd81   : > { %v8398_v39 = vpop.f32.mrf.mxu0 }
 0xd82   : > { %v17141_v0 = vadd.f32 %v8427_v26, %v8398_v39  ;;  %9220 = vmatpush.bf16.msrb.mxu2 %v12384_v16  ;;  %v12439_v26 = vld [vmem:[#allocation20 + $0x1e0] sm:$0xf] }
 0xd83   : > { %v8369_v36 = vpop.f32.mrf.mxu3 }
 0xd84   : > { %8893 = vmatmul.bf16.gmra.mxu2 %v8151_v9  ;;  %8951 = vmatmul.bf16.gmra.mxu0 %v8151_v9  ;;  %v13264_v9 = vld [vmem:[#allocation20 + $0x1f4] sm:$0xf0] }
 0xd85   : > { %v17143_v34 = vpop.f32.mrf.mxu1  ;;  %v12448_v59 = vor.u32 %v13264_v9, %v12447_v48  ;;  %v12367_v9 = vld [vmem:[#allocation20 + $0x150] sm:$0xf] }
 0xd87   : > { %v8340_v12 = vpop.f32.mrf.mxu2  ;;  %9249 = vmatpush.bf16.msra.mxu3 %v12448_v59  ;;  %v13244_v59 = vld [vmem:[#allocation20 + $0x154] sm:$0xf0] }
 0xd88   : > { %v17145_v25 = vadd.f32 %v8369_v36, %v8340_v12  ;;  %v12376_v36 = vor.u32 %v13246_v29, %v12375_v61  ;;  %v13262_v12 = vld [vmem:[#allocation20 + $0x1e4] sm:$0xf0]  ;;  %v12368_v61 = vor.u32 %v13244_v59, %v12367_v9  ;;  %v13260_v29 = vld [vmem:[#allocation20 + $0x1d4] sm:$0xf0]  ;;  %v12423_v9 = vld [vmem:[#allocation20 + $0x1c0] sm:$0xf] }
 0xd89   : > { %v17147_v47 = vpop.f32.mrf.mxu0 }
 0xd8a   : > { %9221 = vmatpush.bf16.msrb.mxu2 %v12376_v36  ;;  %v12377_v36 = vld [vmem:[#allocation20 + $0x168] sm:$0xf0] }
 0xd8b   : > { %v17149_v42 = vpop.f32.mrf.mxu3 }
 0xd8d   : > { %v8432_v14 = vpop.f32.mrf.mxu1 }
 0xd8e   : > { %9222 = vmatpush.bf16.msrb.mxu2 %v12368_v61 }
 0xd8f   : > { %v17152_v11 = vpop.f32.mrf.mxu2 }
 0xd90   : > { %8927 = vmatmul.bf16.gmra.mxu3 %v8714_v15  ;;  %8985 = vmatmul.bf16.gmra.mxu1 %v8714_v15  ;;  %v12385_v15 = vld [vmem:[#allocation20 + $0x178] sm:$0xf0] }
 0xd91   : > { %v8403_v8 = vpop.f32.mrf.mxu0 }
 0xd92   : > { %v17154_v19 = vadd.f32 %v8432_v14, %v8403_v8  ;;  %v13247_v14 = vld [vmem:[#allocation20 + $0x174] sm:$0xf]  ;;  %v12440_v8 = vor.u32 %v13262_v12, %v12439_v26  ;;  %v13245_v26 = vld [vmem:[#allocation20 + $0x164] sm:$0xf] }
 0xd93   : > { %v8374_v31 = vpop.f32.mrf.mxu3 }
 0xd94   : > { %8898 = vmatmul.bf16.gmra.mxu2 %v8713_v51  ;;  %8956 = vmatmul.bf16.gmra.mxu0 %v8713_v51  ;;  %v12388_v51 = vor.u32 %v13247_v14, %v12385_v15  ;;  %v12380_v14 = vor.u32 %v13245_v26, %v12377_v36  ;;  %v12441_v15 = vld [vmem:[#allocation20 + $0x1e8] sm:$0xf0]  ;;  %v13243_v26 = vld [vmem:[#allocation20 + $0x154] sm:$0xf]  ;;  %v12369_v36 = vld [vmem:[#allocation20 + $0x158] sm:$0xf0] }
 0xd95   : > { %v17157_v13 = vpop.f32.mrf.mxu1  ;;  %9250 = vmatpush.bf16.msra.mxu3 %v12440_v8 }
 0xd96   : > { %9278 = vmatpush.bf16.msrb.mxu0 %v12388_v51 }
 0xd97   : > { %v8345_v62 = vpop.f32.mrf.mxu2 }
 0xd98   : > { %v17159_v20 = vadd.f32 %v8374_v31, %v8345_v62  ;;  %v13263_v31 = vld [vmem:[#allocation20 + $0x1f4] sm:$0xf]  ;;  %v12449_v62 = vld [vmem:[#allocation20 + $0x1f8] sm:$0xf0] }
 0xd99   : > { %v17161_v17 = vpop.f32.mrf.mxu0  ;;  %v12452_v35 = vor.u32 %v13263_v31, %v12449_v62 }
 0xd9a   : > { %9279 = vmatpush.bf16.msrb.mxu0 %v12380_v14  ;;  %v12433_v14 = vld [vmem:[#allocation20 + $0x1d8] sm:$0xf0] }
 0xd9b   : > { %v17163_v57 = vpop.f32.mrf.mxu3  ;;  %9307 = vmatpush.bf16.msrb.mxu1 %v12452_v35  ;;  %v12359_v35 = vld [vmem:[#allocation20 + $0x140] sm:$0xf] }
 0xd9d   : > { %v8693_v41 = vpop.f32.mrf.mxu1 }
 0xd9f   : > { %v17165_v7 = vpop.f32.mrf.mxu2 }
 0xda1   : > { %v8664_v30 = vpop.f32.mrf.mxu0 }
 0xda2   : > { %v8665_v6 = vadd.f32 %v8664_v30, %v17117_v54  ;;  %v12431_v30 = vld [vmem:[#allocation20 + $0x1d0] sm:$0xf] }
 0xda3   : > { %v8635_v53 = vpop.f32.mrf.mxu3  ;;  %v12432_v12 = vor.u32 %v13260_v29, %v12431_v30  ;;  %v13258_v29 = vld [vmem:[#allocation20 + $0x1c4] sm:$0xf0] }
 0xda4   : > { %v17168_v3 = vadd.f32 %v8693_v41, %v8665_v6  ;;  %v12424_v61 = vor.u32 %v13258_v29, %v12423_v9  ;;  %v12415_v9 = vld [vmem:[#allocation20 + $0x1b0] sm:$0xf] }
 0xda5   : > { %v17170_v39 = vpop.f32.mrf.mxu1  ;;  %9251 = vmatpush.bf16.msra.mxu3 %v12432_v12  ;;  %v13259_v12 = vld [vmem:[#allocation20 + $0x1d4] sm:$0xf] }
 0xda7   : > { %v8606_v43 = vpop.f32.mrf.mxu2 }
 0xda8   : > { %v8607_v54 = vadd.f32 %v8606_v43, %v17121_v37  ;;  %v13261_v37 = vld [vmem:[#allocation20 + $0x1e4] sm:$0xf] }
 0xda9   : > { %v17173_v48 = vpop.f32.mrf.mxu0  ;;  %v12444_v51 = vor.u32 %v13261_v37, %v12441_v15  ;;  %v12372_v37 = vor.u32 %v13243_v26, %v12369_v36  ;;  %9252 = vmatpush.bf16.msra.mxu3 %v12424_v61  ;;  %v13256_v36 = vld [vmem:[#allocation20 + $0x1b4] sm:$0xf0]  ;;  %v12425_v61 = vld [vmem:[#allocation20 + $0x1c8] sm:$0xf0] }
 0xdaa   : > { %v17175_v41 = vadd.f32 %v8635_v53, %v8607_v54  ;;  %v13242_v54 = vld [vmem:[#allocation20 + $0x144] sm:$0xf0] }
 0xdab   : > { %v17177_v16 = vpop.f32.mrf.mxu3  ;;  %9308 = vmatpush.bf16.msrb.mxu1 %v12444_v51  ;;  %v12360_v30 = vor.u32 %v13242_v54, %v12359_v35  ;;  %v12436_v51 = vor.u32 %v13259_v12, %v12433_v14  ;;  %9280 = vmatpush.bf16.msrb.mxu0 %v12372_v37  ;;  %v12351_v35 = vld [vmem:[#allocation20 + $0x130] sm:$0xf]  ;;  %v13240_v54 = vld [vmem:[#allocation20 + $0x134] sm:$0xf0]  ;;  %v12416_v12 = vor.u32 %v13256_v36, %v12415_v9  ;;  %v12407_v36 = vld [vmem:[#allocation20 + $0x1a0] sm:$0xf] }
 0xdac   : > { %v12352_v26 = vor.u32 %v13240_v54, %v12351_v35  ;;  %v12417_v35 = vld [vmem:[#allocation20 + $0x1b8] sm:$0xf0] }
 0xdad   : > { %v8698_v6 = vpop.f32.mrf.mxu1  ;;  %9223 = vmatpush.bf16.msrb.mxu2 %v12360_v30  ;;  %v12361_v30 = vld [vmem:[#allocation20 + $0x148] sm:$0xf0]  ;;  %9253 = vmatpush.bf16.msra.mxu3 %v12416_v12  ;;  %v12420_v1 = vor.u32 %v13255_v46, %v12417_v35  ;;  %v13238_v46 = vld [vmem:[#allocation20 + $0x124] sm:$0xf0] }
 0xdae   : > { %v12364_v14 = vor.u32 %v13241_v4, %v12361_v30  ;;  %v13254_v30 = vld [vmem:[#allocation20 + $0x1a4] sm:$0xf0] }
 0xdaf   : > { %v17179_v8 = vpop.f32.mrf.mxu2  ;;  %9309 = vmatpush.bf16.msrb.mxu1 %v12436_v51 }
 0xdb0   : > { %9281 = vmatpush.bf16.msrb.mxu0 %v12364_v14  ;;  %v12408_v14 = vor.u32 %v13254_v30, %v12407_v36  ;;  %v12401_v36 = vld [vmem:[#allocation20 + $0x198] sm:$0xf0] }
 0xdb1   : > { %v8669_v53 = vpop.f32.mrf.mxu0  ;;  %9224 = vmatpush.bf16.msrb.mxu2 %v12352_v26  ;;  %v13253_v26 = vld [vmem:[#allocation20 + $0x1a4] sm:$0xf] }
 0xdb2   : > { %v8670_v31 = vadd.f32 %v8669_v53, %v17129_v38  ;;  %9254 = vmatpush.bf16.msra.mxu3 %v12408_v14  ;;  %v12391_v14 = vld [vmem:[#allocation20 + $0x180] sm:$0xf] }
 0xdb3   : > { %v8640_v62 = vpop.f32.mrf.mxu3 }
 0xdb4   : > { %v17182_v43 = vadd.f32 %v8698_v6, %v8670_v31 }
 0xdb5   : > { %v17184_v59 = vpop.f32.mrf.mxu1 }
 0xdb7   : > { %v8611_v15 = vpop.f32.mrf.mxu2 }
 0xdb8   : > { %v8612_v38 = vadd.f32 %v8611_v15, %v17133_v52  ;;  %v13257_v52 = vld [vmem:[#allocation20 + $0x1c4] sm:$0xf] }
 0xdb9   : > { %v17187_v6 = vpop.f32.mrf.mxu0  ;;  %v12428_v15 = vor.u32 %v13257_v52, %v12425_v61  ;;  %v12409_v52 = vld [vmem:[#allocation20 + $0x1a8] sm:$0xf0] }
 0xdba   : > { %v17189_v53 = vadd.f32 %v8640_v62, %v8612_v38 }
 0xdbb   : > { %v17191_v31 = vpop.f32.mrf.mxu3  ;;  %9310 = vmatpush.bf16.msrb.mxu1 %v12428_v15  ;;  %v12353_v15 = vld [vmem:[#allocation20 + $0x138] sm:$0xf0] }
 0xdbd   : > { %v8703_v29 = vpop.f32.mrf.mxu1 }
 0xdbf   : > { %v17193_v37 = vpop.f32.mrf.mxu2  ;;  %9311 = vmatpush.bf16.msrb.mxu1 %v12420_v1 }
 0xdc1   : > { %v8674_v62 = vpop.f32.mrf.mxu0 }
 0xdc2   : > { %v8675_v51 = vadd.f32 %v8674_v62, %v17141_v0  ;;  %v13239_v0 = vld [vmem:[#allocation20 + $0x134] sm:$0xf]  ;;  %v12412_v62 = vor.u32 %v13253_v26, %v12409_v52  ;;  %v12345_v26 = vld [vmem:[#allocation20 + $0x128] sm:$0xf0] }
 0xdc3   : > { %v8645_v38 = vpop.f32.mrf.mxu3 }
 0xdc4   : > { %v17196_v54 = vadd.f32 %v8703_v29, %v8675_v51  ;;  %v12343_v29 = vld [vmem:[#allocation20 + $0x120] sm:$0xf]  ;;  %v12356_v51 = vor.u32 %v13239_v0, %v12353_v15  ;;  %9312 = vmatpush.bf16.msrb.mxu1 %v12412_v62  ;;  %v13250_v0 = vld [vmem:[#allocation20 + $0x184] sm:$0xf0]  ;;  %v13249_v15 = vld [vmem:[#allocation20 + $0x184] sm:$0xf] }
 0xdc5   : > { %v17198_v9 = vpop.f32.mrf.mxu1  ;;  %v12344_v35 = vor.u32 %v13238_v46, %v12343_v29  ;;  %v12392_v62 = vor.u32 %v13250_v0, %v12391_v14  ;;  %v12393_v29 = vld [vmem:[#allocation20 + $0x188] sm:$0xf0]  ;;  %v13233_v14 = vld [vmem:[#allocation20 + $0x104] sm:$0xf] }
 0xdc6   : > { %9282 = vmatpush.bf16.msrb.mxu0 %v12356_v51  ;;  %v12335_v51 = vld [vmem:[#allocation20 + $0x110] sm:$0xf] }
 0xdc7   : > { %v8616_v4 = vpop.f32.mrf.mxu2  ;;  %9225 = vmatpush.bf16.msrb.mxu2 %v12344_v35 }
 0xdc8   : > { %v8617_v12 = vadd.f32 %v8616_v4, %v17145_v25  ;;  %v13251_v25 = vld [vmem:[#allocation20 + $0x194] sm:$0xf]  ;;  %v12400_v4 = vor.u32 %v13252_v32, %v12399_v22  ;;  %v13236_v32 = vld [vmem:[#allocation20 + $0x114] sm:$0xf0]  ;;  %v12396_v22 = vor.u32 %v13249_v15, %v12393_v29  ;;  %v12329_v15 = vld [vmem:[#allocation20 + $0x108] sm:$0xf0] }
 0xdc9   : > { %v17201_v61 = vpop.f32.mrf.mxu0  ;;  %v12336_v10 = vor.u32 %v13236_v32, %v12335_v51  ;;  %v12332_v40 = vor.u32 %v13233_v14, %v12329_v15  ;;  %v12511_v51 = vld [vmem:[#allocation20 + $0x70] sm:$0xf]  ;;  %v13216_v32 = vld [vmem:[#allocation20 + $0x74] sm:$0xf0] }
 0xdca   : > { %v17203_v56 = vadd.f32 %v8645_v38, %v8617_v12  ;;  %v12404_v38 = vor.u32 %v13251_v25, %v12401_v36  ;;  %9255 = vmatpush.bf16.msra.mxu3 %v12400_v4  ;;  %v12348_v12 = vor.u32 %v13237_v63, %v12345_v26  ;;  %v12337_v25 = vld [vmem:[#allocation20 + $0x118] sm:$0xf0] }
 0xdcb   : > { %v17205_v1 = vpop.f32.mrf.mxu3  ;;  %v12340_v4 = vor.u32 %v13235_v23, %v12337_v25  ;;  %9226 = vmatpush.bf16.msrb.mxu2 %v12336_v10  ;;  %v12512_v25 = vor.u32 %v13216_v32, %v12511_v51  ;;  %v13214_v51 = vld [vmem:[#allocation20 + $0x64] sm:$0xf0]  ;;  %v8362_v32 = vadd.f32 %v17125_v50, %v17127_v60 }
 0xdcc   : > { %9313 = vmatpush.bf16.msrb.mxu1 %v12404_v38  ;;  %9283 = vmatpush.bf16.msrb.mxu0 %v12348_v12  ;;  %v12327_v38 = vld [vmem:[#allocation20 + $0x100] sm:$0xf]  ;;  %v13234_v12 = vld [vmem:[#allocation20 + $0x104] sm:$0xf0] }
 0xdcd   : > { %v8708_v30 = vpop.f32.mrf.mxu1  ;;  %v12328_v0 = vor.u32 %v13234_v12, %v12327_v38  ;;  %v8047_v12 = vld [vmem:[%s17762_s18] sm:$0x3]  ;;  %s10226_s18 = scalar_lea.sflag [#allocation5], %s14654_s1 }
 0xdce   : > { %9256 = vmatpush.bf16.msra.mxu3 %v12392_v62 }
 0xdcf   : > { %v17207_v52 = vpop.f32.mrf.mxu2  ;;  %9227 = vmatpush.bf16.msrb.mxu2 %v12328_v0 }
 0xdd0   : > { %9314 = vmatpush.bf16.msrb.mxu1 %v12396_v22  ;;  %9284 = vmatpush.bf16.msrb.mxu0 %v12340_v4  ;;  %v12575_v22 = vld [vmem:[#allocation20 + $0xf0] sm:$0xf]  ;;  %v13232_v4 = vld [vmem:[#allocation20 + $0xf4] sm:$0xf0] }
 0xdd1   : > { %v8679_v46 = vpop.f32.mrf.mxu0  ;;  %v12576_v38 = vor.u32 %v13232_v4, %v12575_v22  ;;  %v12504_v4 = vor.u32 %v13214_v51, %v12503_v58 }
 0xdd2   : > { %v8680_v35 = vadd.f32 %v8679_v46, %v17154_v19 }
 0xdd3   : > { %v8650_v63 = vpop.f32.mrf.mxu3  ;;  %9496 = vmatpush.bf16.msra.mxu2 %v12512_v25  ;;  %9525 = vmatpush.bf16.msrb.mxu3 %v12576_v38 }
 0xdd4   : > { %v17210_v36 = vadd.f32 %v8708_v30, %v8680_v35  ;;  %9285 = vmatpush.bf16.msrb.mxu0 %v12332_v40  ;;  %v8420_v40 = vadd.f32 %v17119_v44, %v17123_v21  ;;  %v12567_v44 = vld [vmem:[#allocation20 + $0xe0] sm:$0xf]  ;;  %v13230_v21 = vld [vmem:[#allocation20 + $0xe4] sm:$0xf0] }
 0xdd5   : > { %v17212_v26 = vpop.f32.mrf.mxu1 }
 0xdd6   : > { %v8667_v0 = vadd.f32 %v17173_v48, %v8420_v40  ;;  %v12568_v48 = vor.u32 %v13230_v21, %v12567_v44  ;;  %v12513_v40 = vld [vmem:[#allocation20 + $0x78] sm:$0xf0]  ;;  %v13229_v21 = vld [vmem:[#allocation20 + $0xe4] sm:$0xf] }
 0xdd7   : > { %v8621_v29 = vpop.f32.mrf.mxu2  ;;  %9497 = vmatpush.bf16.msra.mxu2 %v12504_v4 }
 0xdd8   : > { %v8622_v19 = vadd.f32 %v8621_v29, %v17159_v20  ;;  %9526 = vmatpush.bf16.msrb.mxu3 %v12568_v48 }
 0xdd9   : > { %v17215_v62 = vpop.f32.mrf.mxu0 }
 0xdda   : > { %v17217_v23 = vadd.f32 %v8650_v63, %v8622_v19  ;;  %v17228_v19 = vperm.slane %v8047_v12, 1 }
 0xddb   : > { %v17219_v10 = vpop.f32.mrf.mxu3 }
 0xddd   : > { %v8971_v30 = vpop.f32.mrf.mxu1 }
 0xddf   : > { %v17221_v46 = vpop.f32.mrf.mxu2 }
 0xde1   : > { %v8942_v35 = vpop.f32.mrf.mxu0 }
 0xde2   : > { %v8972_v63 = vadd.f32 %v8971_v30, %v8942_v35  ;;  %v13215_v30 = vld [vmem:[#allocation20 + $0x74] sm:$0xf]  ;;  %v8696_v35 = vadd.f32 %v17170_v39, %v8667_v0  ;;  %v12495_v0 = vld [vmem:[#allocation20 + $0x50] sm:$0xf] }
 0xde3   : > { %v8913_v20 = vpop.f32.mrf.mxu3  ;;  %v12516_v5 = vor.u32 %v13215_v30, %v12513_v40 }
 0xde4   : > { %v8992_v29 = vadd.f32 %v8972_v63, %v17168_v3  ;;  %v12577_v3 = vld [vmem:[#allocation20 + $0xf8] sm:$0xf0]  ;;  %v8609_v63 = vadd.f32 %v17179_v8, %v8362_v32  ;;  %v13212_v8 = vld [vmem:[#allocation20 + $0x54] sm:$0xf0]  ;;  %v12559_v32 = vld [vmem:[#allocation20 + $0xd0] sm:$0xf] }
 0xde5   : > { %v8973_v14 = vpop.f32.mrf.mxu1  ;;  %v12580_v55 = vor.u32 %v13231_v2, %v12577_v3  ;;  %9554 = vmatpush.bf16.msra.mxu0 %v12516_v5  ;;  %v12496_v2 = vor.u32 %v13212_v8, %v12495_v0 }
 0xde6   : > { %v17235_v50 = vadd.f32 %v17228_v19, %v8992_v29  ;;  %v13228_v29 = vld [vmem:[#allocation20 + $0xd4] sm:$0xf0] }
 0xde7   : > { %v8884_v15 = vpop.f32.mrf.mxu2  ;;  %9583 = vmatpush.bf16.msra.mxu1 %v12580_v55  ;;  %9498 = vmatpush.bf16.msra.mxu2 %v12496_v2  ;;  %v12487_v2 = vld [vmem:[#allocation20 + $0x40] sm:$0xf] }
 0xde8   : > { %v8914_v22 = vadd.f32 %v8913_v20, %v8884_v15  ;;  %v17238_v20 = vperm.slane %v8047_v12, 0  ;;  %v8638_v15 = vadd.f32 %v17177_v16, %v8609_v63  ;;  %v9029_v4 = vmax.f32 %v17235_v50, 0.0 }
 0xde9   : > { %v8944_v25 = vpop.f32.mrf.mxu0  ;;  %v12560_v12 = vor.u32 %v13228_v29, %v12559_v32  ;;  %v13210_v32 = vld [vmem:[#allocation20 + $0x44] sm:$0xf0] }
 0xdea   : > { %v8974_v38 = vadd.f32 %v8973_v14, %v8944_v25  ;;  %v8991_v60 = vadd.f32 %v8914_v22, %v17175_v41  ;;  %v13213_v25 = vld [vmem:[#allocation20 + $0x64] sm:$0xf]  ;;  %v12505_v22 = vld [vmem:[#allocation20 + $0x68] sm:$0xf0] }
 0xdeb   : > { %v8915_v24 = vpop.f32.mrf.mxu3  ;;  %v12508_v30 = vor.u32 %v13213_v25, %v12505_v22  ;;  %9527 = vmatpush.bf16.msrb.mxu3 %v12560_v12  ;;  %v12488_v25 = vor.u32 %v13210_v32, %v12487_v2  ;;  %v13226_v12 = vld [vmem:[#allocation20 + $0xc4] sm:$0xf0]  ;;  %v13211_v22 = vld [vmem:[#allocation20 + $0x54] sm:$0xf] }
 0xdec   : > { %v8994_v58 = vadd.f32 %v8974_v38, %v8696_v35  ;;  %v17244_v55 = vadd.f32 %v17238_v20, %v8991_v60  ;;  %v12569_v35 = vld [vmem:[#allocation20 + $0xe8] sm:$0xf0] }
 0xded   : > { %v8976_v39 = vpop.f32.mrf.mxu1  ;;  %v12572_v40 = vor.u32 %v13229_v21, %v12569_v35  ;;  %9555 = vmatpush.bf16.msra.mxu0 %v12508_v30  ;;  %v12497_v35 = vld [vmem:[#allocation20 + $0x58] sm:$0xf0]  ;;  %9499 = vmatpush.bf16.msra.mxu2 %v12488_v25  ;;  %v13225_v25 = vld [vmem:[#allocation20 + $0xc4] sm:$0xf] }
 0xdee   : > { %v9015_v14 = vadd.f32 %v17228_v19, %v8994_v58  ;;  %v9028_v0 = vmax.f32 %v17244_v55, 0.0  ;;  %v13286_v55 = vld [vmem:[#allocation20 + $0x2a4] sm:$0xf0] }
 0xdef   : > { %v8886_v51 = vpop.f32.mrf.mxu2  ;;  %9584 = vmatpush.bf16.msra.mxu1 %v12572_v40 }
 0xdf0   : > { %v9031_v44 = vmax.f32 %v9015_v14, 0.0  ;;  %v8916_v41 = vadd.f32 %v8915_v24, %v8886_v51  ;;  %v8425_v24 = vadd.f32 %v17131_v27, %v17135_v49 }
 0xdf1   : > { %v8947_v5 = vpop.f32.mrf.mxu0 }
 0xdf2   : > { %v9053_v16 = vpack.c.bf16 %v9031_v44, %v9029_v4  ;;  %v8993_v38 = vadd.f32 %v8916_v41, %v8638_v15  ;;  %v8977_v48 = vadd.f32 %v8976_v39, %v8947_v5  ;;  %v8672_v60 = vadd.f32 %v17187_v6, %v8425_v24  ;;  %v12551_v41 = vld [vmem:[#allocation20 + $0xc0] sm:$0xf] }
 0xdf3   : > { %v8918_v3 = vpop.f32.mrf.mxu3 }
 0xdf4   : > { %v9014_v63 = vadd.f32 %v17238_v20, %v8993_v38  ;;  %v8996_v58 = vadd.f32 %v8977_v48, %v17182_v43  ;;  %9257 = vmatmul.bf16.vlgmr.msra.gmra.mxu3 %v9053_v16  ;;  %9315 = vmatmul.bf16.vlgmr.msrb.gmra.mxu1 %v9053_v16  ;;  %v8367_v43 = vadd.f32 %v17137_v18, %v17139_v28  ;;  %v13227_v16 = vld [vmem:[#allocation20 + $0xd4] sm:$0xf]  ;;  %v12561_v38 = vld [vmem:[#allocation20 + $0xd8] sm:$0xf0] }
 0xdf5   : > { %v8978_v14 = vpop.f32.mrf.mxu1  ;;  %v8701_v6 = vadd.f32 %v17184_v59, %v8672_v60  ;;  %v12552_v28 = vor.u32 %v13226_v12, %v12551_v41  ;;  %v12500_v59 = vor.u32 %v13211_v22, %v12497_v35  ;;  %v12564_v40 = vor.u32 %v13227_v16, %v12561_v38  ;;  %v13208_v60 = vld [vmem:[#allocation20 + $0x34] sm:$0xf0]  ;;  %v12553_v22 = vld [vmem:[#allocation20 + $0xc8] sm:$0xf0]  ;;  %v13223_v38 = vld [vmem:[#allocation20 + $0xb4] sm:$0xf] }
 0xdf6   : > { %v9030_v39 = vmax.f32 %v9014_v63, 0.0  ;;  %v9017_v8 = vadd.f32 %v17228_v19, %v8996_v58  ;;  %v8614_v48 = vadd.f32 %v17193_v37, %v8367_v43  ;;  %v12479_v58 = vld [vmem:[#allocation20 + $0x30] sm:$0xf]  ;;  %v12556_v35 = vor.u32 %v13225_v25, %v12553_v22 }
 0xdf7   : > { %v8889_v15 = vpop.f32.mrf.mxu2  ;;  %9528 = vmatpush.bf16.msrb.mxu3 %v12552_v28  ;;  %9556 = vmatpush.bf16.msra.mxu0 %v12500_v59  ;;  %v8430_v16 = vadd.f32 %v17143_v34, %v17147_v47  ;;  %v12471_v59 = vld [vmem:[#allocation20 + $0x20] sm:$0xf]  ;;  %v13222_v34 = vld [vmem:[#allocation20 + $0xa4] sm:$0xf0]  ;;  %v13207_v47 = vld [vmem:[#allocation20 + $0x34] sm:$0xf] }
 0xdf8   : > { %v9052_v27 = vpack.c.bf16 %v9030_v39, %v9028_v0  ;;  %v9033_v49 = vmax.f32 %v9017_v8, 0.0  ;;  %v8919_v51 = vadd.f32 %v8918_v3, %v8889_v15  ;;  %9585 = vmatpush.bf16.msra.mxu1 %v12564_v40  ;;  %v8643_v37 = vadd.f32 %v17191_v31, %v8614_v48  ;;  %v12543_v15 = vld [vmem:[#allocation20 + $0xb0] sm:$0xf]  ;;  %v12545_v48 = vld [vmem:[#allocation20 + $0xb8] sm:$0xf0] }
 0xdf9   : > { %v8949_v29 = vpop.f32.mrf.mxu0  ;;  %v12480_v8 = vor.u32 %v13208_v60, %v12479_v58  ;;  %v13206_v40 = vld [vmem:[#allocation20 + $0x24] sm:$0xf0]  ;;  %v12548_v58 = vor.u32 %v13223_v38, %v12545_v48 }
 0xdfa   : > { %v17260_v21 = vpack.c.bf16 %v9033_v49, %v9031_v44  ;;  %v8995_v5 = vadd.f32 %v8919_v51, %v17189_v53  ;;  %v8979_v30 = vadd.f32 %v8978_v14, %v8949_v29  ;;  %9228 = vmatmul.bf16.vlgmr.msrb.gmra.mxu2 %v9052_v27  ;;  %9286 = vmatmul.bf16.vlgmr.msrb.gmra.mxu0 %v9052_v27  ;;  %v13224_v27 = vld [vmem:[#allocation20 + $0xb4] sm:$0xf0]  ;;  %v13209_v51 = vld [vmem:[#allocation20 + $0x44] sm:$0xf]  ;;  %v12489_v29 = vld [vmem:[#allocation20 + $0x48] sm:$0xf0] }
 0xdfb   : > { %v8920_v18 = vpop.f32.mrf.mxu3  ;;  %9500 = vmatpush.bf16.msra.mxu2 %v12480_v8  ;;  %v12492_v12 = vor.u32 %v13209_v51, %v12489_v29  ;;  %v13221_v8 = vld [vmem:[#allocation20 + $0xa4] sm:$0xf] }
 0xdfc   : > { %v9016_v24 = vadd.f32 %v17238_v20, %v8995_v5  ;;  %v8998_v3 = vadd.f32 %v8979_v30, %v8701_v6  ;;  %v12544_v6 = vor.u32 %v13224_v27, %v12543_v15  ;;  %9586 = vmatpush.bf16.msra.mxu1 %v12556_v35  ;;  %v12537_v15 = vld [vmem:[#allocation20 + $0xa8] sm:$0xf0] }
 0xdfd   : > { %v8981_v44 = vpop.f32.mrf.mxu1  ;;  %9557 = vmatpush.bf16.msra.mxu0 %v12492_v12 }
 0xdfe   : > { %v9032_v53 = vmax.f32 %v9016_v24, 0.0  ;;  %v17266_v63 = vadd.f32 %v17228_v19, %v8998_v3  ;;  %9529 = vmatpush.bf16.msrb.mxu3 %v12544_v6  ;;  %v12535_v24 = vld [vmem:[#allocation20 + $0xa0] sm:$0xf]  ;;  %v8372_v6 = vadd.f32 %v17149_v42, %v17152_v11  ;;  %v13220_v42 = vld [vmem:[#allocation20 + $0x94] sm:$0xf0] }
 0xdff   : > { %v8891_v14 = vpop.f32.mrf.mxu2  ;;  %v13205_v11 = vld [vmem:[#allocation20 + $0x24] sm:$0xf] }
 0xe00   : > { %v17269_v2 = vpack.c.bf16 %v9032_v53, %v9030_v39  ;;  %v8921_v32 = vadd.f32 %v8920_v18, %v8891_v14  ;;  %v9035_v43 = vmax.f32 %v17266_v63, 0.0  ;;  %v12481_v63 = vld [vmem:[#allocation20 + $0x38] sm:$0xf0]  ;;  %9587 = vmatpush.bf16.msra.mxu1 %v12548_v58 }
 0xe01   : > { %v8952_v41 = vpop.f32.mrf.mxu0  ;;  %v12484_v14 = vor.u32 %v13207_v47, %v12481_v63  ;;  %v12455_v47 = vld [vmem:[#allocation20] sm:$0xf]  ;;  %v13202_v63 = vld [vmem:[#allocation20 + $0x4] sm:$0xf0] }
 0xe02   : > { %v8997_v5 = vadd.f32 %v8921_v32, %v8643_v37  ;;  %v8982_v30 = vadd.f32 %v8981_v44, %v8952_v41  ;;  %v9055_v31 = vpack.c.bf16 %v9035_v43, %v9033_v49  ;;  %v8677_v49 = vadd.f32 %v17201_v61, %v8430_v16 }
 0xe03   : > { %v8923_v39 = vpop.f32.mrf.mxu3  ;;  %v12472_v44 = vor.u32 %v13206_v40, %v12471_v59  ;;  %9558 = vmatpush.bf16.msra.mxu0 %v12484_v14  ;;  %v12540_v41 = vor.u32 %v13221_v8, %v12537_v15  ;;  %v12529_v59 = vld [vmem:[#allocation20 + $0x98] sm:$0xf0]  ;;  %v12519_v40 = vld [vmem:[#allocation20 + $0x80] sm:$0xf]  ;;  %v12456_v14 = vor.u32 %v13202_v63, %v12455_v47  ;;  %v13203_v8 = vld [vmem:[#allocation20 + $0x14] sm:$0xf] }
 0xe04   : > { %v17275_v18 = vadd.f32 %v17238_v20, %v8997_v5  ;;  %v9000_v28 = vadd.f32 %v8982_v30, %v17196_v54  ;;  %9262 = vmatmul.bf16.gmra.mxu3 %v9055_v31  ;;  %9320 = vmatmul.bf16.gmra.mxu1 %v9055_v31  ;;  %v12536_v54 = vor.u32 %v13222_v34, %v12535_v24  ;;  %v12463_v5 = vld [vmem:[#allocation20 + $0x10] sm:$0xf]  ;;  %v13204_v30 = vld [vmem:[#allocation20 + $0x14] sm:$0xf0]  ;;  %v12465_v15 = vld [vmem:[#allocation20 + $0x18] sm:$0xf0] }
 0xe05   : > { %v8983_v3 = vpop.f32.mrf.mxu1  ;;  %9501 = vmatpush.bf16.msra.mxu2 %v12472_v44  ;;  %v8706_v29 = vadd.f32 %v17198_v9, %v8677_v49  ;;  %v12527_v31 = vld [vmem:[#allocation20 + $0x90] sm:$0xf]  ;;  %v12473_v9 = vld [vmem:[#allocation20 + $0x28] sm:$0xf0]  ;;  %9588 = vmatpush.bf16.msra.mxu1 %v12540_v41  ;;  %v13217_v49 = vld [vmem:[#allocation20 + $0x84] sm:$0xf] }
 0xe06   : > { %v17280_v60 = vadd.f32 %v17228_v19, %v9000_v28  ;;  %v9034_v37 = vmax.f32 %v17275_v18, 0.0  ;;  %9530 = vmatpush.bf16.msrb.mxu3 %v12536_v54  ;;  %v12528_v18 = vor.u32 %v13220_v42, %v12527_v31  ;;  %v13219_v28 = vld [vmem:[#allocation20 + $0x94] sm:$0xf]  ;;  %v12457_v31 = vld [vmem:[#allocation20 + $0x8] sm:$0xf0] }
 0xe07   : > { %v8894_v27 = vpop.f32.mrf.mxu2  ;;  %v12532_v24 = vor.u32 %v13219_v28, %v12529_v59  ;;  %v12639_v28 = vld [vmem:[#allocation20 + $0x270] sm:$0xf]  ;;  %v13280_v59 = vld [vmem:[#allocation20 + $0x274] sm:$0xf0]  ;;  %v13279_v47 = vld [vmem:[#allocation20 + $0x274] sm:$0xf] }
 0xe08   : > { %v9037_v61 = vmax.f32 %v17280_v60, 0.0  ;;  %v8924_v51 = vadd.f32 %v8923_v39, %v8894_v27  ;;  %v9054_v32 = vpack.c.bf16 %v9034_v37, %v9032_v53  ;;  %v8619_v53 = vadd.f32 %v17207_v52, %v8372_v6 }
 0xe09   : > { %v8954_v25 = vpop.f32.mrf.mxu0  ;;  %v12464_v39 = vor.u32 %v13204_v30, %v12463_v5  ;;  %9589 = vmatpush.bf16.msra.mxu1 %v12532_v24 }
 0xe0a   : > { %v8999_v12 = vadd.f32 %v8924_v51, %v17203_v56  ;;  %v8984_v22 = vadd.f32 %v8983_v3, %v8954_v25  ;;  %9233 = vmatmul.bf16.gmra.mxu2 %v9054_v32  ;;  %9291 = vmatmul.bf16.gmra.mxu0 %v9054_v32  ;;  %v17288_v35 = vpack.c.bf16 %v9037_v61, %v9035_v43  ;;  %v13218_v43 = vld [vmem:[#allocation20 + $0x84] sm:$0xf0]  ;;  %v12521_v3 = vld [vmem:[#allocation20 + $0x88] sm:$0xf0] }
 0xe0b   : > { %v8925_v16 = vpop.f32.mrf.mxu3  ;;  %v12476_v56 = vor.u32 %v13205_v11, %v12473_v9  ;;  %9502 = vmatpush.bf16.msra.mxu2 %v12464_v39  ;;  %9531 = vmatpush.bf16.msrb.mxu3 %v12528_v18  ;;  %v12520_v34 = vor.u32 %v13218_v43, %v12519_v40  ;;  %v8648_v58 = vadd.f32 %v17205_v1, %v8619_v53  ;;  %v12703_v40 = vld [vmem:[#allocation20 + $0x2f0] sm:$0xf] }
 0xe0c   : > { %v9020_v38 = vadd.f32 %v17238_v20, %v8999_v12  ;;  %v9002_v48 = vadd.f32 %v8984_v22, %v8706_v29  ;;  %v12468_v32 = vor.u32 %v13203_v8, %v12465_v15  ;;  %v12524_v25 = vor.u32 %v13217_v49, %v12521_v3  ;;  %v13296_v49 = vld [vmem:[#allocation20 + $0x2f4] sm:$0xf0]  ;;  %v12631_v3 = vld [vmem:[#allocation20 + $0x260] sm:$0xf] }
 0xe0d   : > { %9559 = vmatpush.bf16.msra.mxu0 %v12476_v56  ;;  %v8986_v60 = vpop.f32.mrf.mxu1  ;;  %v8435_v1 = vadd.f32 %v17157_v13, %v17161_v17  ;;  %v12640_v43 = vor.u32 %v13280_v59, %v12639_v28  ;;  %v12625_v28 = vld [vmem:[#allocation20 + $0x258] sm:$0xf0]  ;;  %v13291_v59 = vld [vmem:[#allocation20 + $0x2d4] sm:$0xf] }
 0xe0e   : > { %v9036_v52 = vmax.f32 %v9020_v38, 0.0  ;;  %v9023_v44 = vadd.f32 %v17228_v19, %v9002_v48  ;;  %9590 = vmatpush.bf16.msra.mxu1 %v12524_v25 }
 0xe0f   : > { %v8896_v54 = vpop.f32.mrf.mxu2  ;;  %9503 = vmatpush.bf16.msra.mxu2 %v12456_v14  ;;  %9532 = vmatpush.bf16.msrb.mxu3 %v12520_v34  ;;  %v8682_v53 = vadd.f32 %v17215_v62, %v8435_v1  ;;  %v12695_v34 = vld [vmem:[#allocation20 + $0x2e0] sm:$0xf]  ;;  %v12705_v14 = vld [vmem:[#allocation20 + $0x2f8] sm:$0xf0] }
 0xe10   : > { %v8926_v27 = vadd.f32 %v8925_v16, %v8896_v54  ;;  %v9039_v51 = vmax.f32 %v9023_v44, 0.0  ;;  %v17294_v6 = vpack.c.bf16 %v9036_v52, %v9034_v37  ;;  %v13201_v37 = vld [vmem:[#allocation20 + $0x4] sm:$0xf]  ;;  %v12704_v44 = vor.u32 %v13296_v49, %v12703_v40  ;;  %v13295_v54 = vld [vmem:[#allocation20 + $0x2f4] sm:$0xf] }
 0xe11   : > { %v8957_v29 = vpop.f32.mrf.mxu0  ;;  %9560 = vmatpush.bf16.msra.mxu0 %v12468_v32  ;;  %v12460_v39 = vor.u32 %v13201_v37, %v12457_v31  ;;  %v8711_v38 = vadd.f32 %v17212_v26, %v8682_v53  ;;  %v13276_v37 = vld [vmem:[#allocation20 + $0x254] sm:$0xf0]  ;;  %v12687_v31 = vld [vmem:[#allocation20 + $0x2d0] sm:$0xf] }
 0xe12   : > { %v9001_v41 = vadd.f32 %v8926_v27, %v8648_v58  ;;  %v8987_v12 = vadd.f32 %v8986_v60, %v8957_v29  ;;  %v9057_v22 = vpack.c.bf16 %v9039_v51, %v9037_v61  ;;  %v12641_v60 = vld [vmem:[#allocation20 + $0x278] sm:$0xf0] }
 0xe13   : > { %v8928_v16 = vpop.f32.mrf.mxu3  ;;  %9774 = vmatpush.bf16.msrb.mxu2 %v12640_v43  ;;  %9803 = vmatpush.bf16.msra.mxu3 %v12704_v44  ;;  %v12644_v27 = vor.u32 %v13279_v47, %v12641_v60  ;;  %v12689_v43 = vld [vmem:[#allocation20 + $0x2d8] sm:$0xf0]  ;;  %v12617_v47 = vld [vmem:[#allocation20 + $0x248] sm:$0xf0]  ;;  %v12599_v60 = vld [vmem:[#allocation20 + $0x220] sm:$0xf] }
 0xe14   : > { %v9022_v5 = vadd.f32 %v17238_v20, %v9001_v41  ;;  %v9004_v30 = vadd.f32 %v8987_v12, %v17210_v36  ;;  %9267 = vmatmul.bf16.gmra.mxu3 %v9057_v22  ;;  %9325 = vmatmul.bf16.gmra.mxu1 %v9057_v22  ;;  %v8377_v36 = vadd.f32 %v17163_v57, %v17165_v7 }
 0xe15   : > { %9561 = vmatpush.bf16.msra.mxu0 %v12460_v39  ;;  %v8988_v48 = vpop.f32.mrf.mxu1  ;;  %v13277_v39 = vld [vmem:[#allocation20 + $0x264] sm:$0xf]  ;;  %v12692_v49 = vor.u32 %v13291_v59, %v12689_v43  ;;  %v13267_v59 = vld [vmem:[#allocation20 + $0x214] sm:$0xf]  ;;  %v12593_v43 = vld [vmem:[#allocation20 + $0x218] sm:$0xf0] }
 0xe16   : > { %v9025_v61 = vadd.f32 %v17228_v19, %v9004_v30  ;;  %v9038_v42 = vmax.f32 %v9022_v5, 0.0  ;;  %v8624_v57 = vadd.f32 %v17221_v46, %v8377_v36  ;;  %v12708_v46 = vor.u32 %v13295_v54, %v12705_v14  ;;  %v12623_v30 = vld [vmem:[#allocation20 + $0x250] sm:$0xf]  ;;  %v13274_v36 = vld [vmem:[#allocation20 + $0x244] sm:$0xf0] }
 0xe17   : > { %v8899_v11 = vpop.f32.mrf.mxu2  ;;  %v12624_v53 = vor.u32 %v13276_v37, %v12623_v30  ;;  %v13270_v14 = vld [vmem:[#allocation20 + $0x224] sm:$0xf0]  ;;  %v12591_v30 = vld [vmem:[#allocation20 + $0x210] sm:$0xf]  ;;  %v13268_v37 = vld [vmem:[#allocation20 + $0x214] sm:$0xf0] }
 0xe18   : > { %v9041_v9 = vmax.f32 %v9025_v61, 0.0  ;;  %v8929_v13 = vadd.f32 %v8928_v16, %v8899_v11  ;;  %v9056_v17 = vpack.c.bf16 %v9038_v42, %v9036_v52  ;;  %v13278_v52 = vld [vmem:[#allocation20 + $0x264] sm:$0xf0]  ;;  %v8653_v29 = vadd.f32 %v17219_v10, %v8624_v57  ;;  %9861 = vmatpush.bf16.msrb.mxu1 %v12708_v46  ;;  %v13292_v16 = vld [vmem:[#allocation20 + $0x2d4] sm:$0xf0] }
 0xe19   : > { %v8959_v18 = vpop.f32.mrf.mxu0  ;;  %v12632_v63 = vor.u32 %v13278_v52, %v12631_v3  ;;  %9832 = vmatpush.bf16.msrb.mxu0 %v12644_v27  ;;  %v12633_v61 = vld [vmem:[#allocation20 + $0x268] sm:$0xf0]  ;;  %v9045_v3 = vpack.c.bf16 %v9029_v4, %v17761_v33  ;;  %v9044_v52 = vpack.c.bf16 %v9028_v0, %v17761_v33  ;;  %v12607_v57 = vld [vmem:[#allocation20 + $0x230] sm:$0xf]  ;;  %v12600_v33 = vor.u32 %v13270_v14, %v12599_v60  ;;  %v13271_v27 = vld [vmem:[#allocation20 + $0x234] sm:$0xf] }
 0xe1a   : > { %v9003_v62 = vadd.f32 %v8929_v13, %v17217_v23  ;;  %v8989_v56 = vadd.f32 %v8988_v48, %v8959_v18  ;;  %9238 = vmatmul.bf16.gmra.mxu2 %v9056_v17  ;;  %9296 = vmatmul.bf16.gmra.mxu0 %v9056_v17  ;;  %v17306_v24 = vpack.c.bf16 %v9041_v9, %v9039_v51  ;;  %v13294_v23 = vld [vmem:[#allocation20 + $0x2e4] sm:$0xf0]  ;;  %v12615_v13 = vld [vmem:[#allocation20 + $0x240] sm:$0xf]  ;;  %v12609_v46 = vld [vmem:[#allocation20 + $0x238] sm:$0xf0] }
 0xe1b   : > { %v12696_v58 = vor.u32 %v13294_v23, %v12695_v34  ;;  %v8930_v51 = vpop.f32.mrf.mxu3  ;;  %9775 = vmatpush.bf16.msrb.mxu2 %v12632_v63  ;;  %v12636_v11 = vor.u32 %v13277_v39, %v12633_v61  ;;  %v13290_v48 = vld [vmem:[#allocation20 + $0x2c4] sm:$0xf0]  ;;  %v12616_v18 = vor.u32 %v13274_v36, %v12615_v13  ;;  %v13288_v34 = vld [vmem:[#allocation20 + $0x2b4] sm:$0xf0]  ;;  %v13273_v23 = vld [vmem:[#allocation20 + $0x244] sm:$0xf] }
 0xe1c   : > { %v9024_v7 = vadd.f32 %v17238_v20, %v9003_v62  ;;  %v9006_v26 = vadd.f32 %v8989_v56, %v8711_v38  ;;  %v12679_v38 = vld [vmem:[#allocation20 + $0x2c0] sm:$0xf]  ;;  %v13275_v56 = vld [vmem:[#allocation20 + $0x254] sm:$0xf]  ;;  %v12620_v4 = vor.u32 %v13273_v23, %v12617_v47  ;;  %v13289_v63 = vld [vmem:[#allocation20 + $0x2c4] sm:$0xf] }
 0xe1d   : > { %9804 = vmatpush.bf16.msra.mxu3 %v12696_v58  ;;  %9833 = vmatpush.bf16.msrb.mxu0 %v12636_v11  ;;  %v12680_v62 = vor.u32 %v13290_v48, %v12679_v38  ;;  %v12628_v40 = vor.u32 %v13275_v56, %v12625_v28  ;;  %v12681_v58 = vld [vmem:[#allocation20 + $0x2c8] sm:$0xf0]  ;;  %v13269_v39 = vld [vmem:[#allocation20 + $0x224] sm:$0xf]  ;;  %v13282_v36 = vld [vmem:[#allocation20 + $0x284] sm:$0xf0] }
 0xe1e   : > { %v9040_v8 = vmax.f32 %v9024_v7, 0.0  ;;  %v17311_v15 = vadd.f32 %v17228_v19, %v9006_v26  ;;  %v13272_v7 = vld [vmem:[#allocation20 + $0x234] sm:$0xf0]  ;;  %v12671_v26 = vld [vmem:[#allocation20 + $0x2b0] sm:$0xf]  ;;  %v12684_v54 = vor.u32 %v13289_v63, %v12681_v58 }
 0xe1f   : > { %v8901_v32 = vpop.f32.mrf.mxu2  ;;  %9776 = vmatpush.bf16.msrb.mxu2 %v12624_v53  ;;  %v12608_v44 = vor.u32 %v13272_v7, %v12607_v57  ;;  %v12672_v50 = vor.u32 %v13288_v34, %v12671_v26  ;;  %v12592_v53 = vor.u32 %v13268_v37, %v12591_v30  ;;  %v12601_v61 = vld [vmem:[#allocation20 + $0x228] sm:$0xf0]  ;;  %v13281_v38 = vld [vmem:[#allocation20 + $0x284] sm:$0xf]  ;;  %v12583_v56 = vld [vmem:[#allocation20 + $0x200] sm:$0xf] }
 0xe20   : > { %v8931_v25 = vadd.f32 %v8930_v51, %v8901_v32  ;;  %v9043_v41 = vmax.f32 %v17311_v15, 0.0  ;;  %v17315_v12 = vpack.c.bf16 %v9040_v8, %v9038_v42  ;;  %v12688_v42 = vor.u32 %v13292_v16, %v12687_v31  ;;  %v13287_v51 = vld [vmem:[#allocation20 + $0x2b4] sm:$0xf]  ;;  %v12655_v31 = vld [vmem:[#allocation20 + $0x290] sm:$0xf] }
 0xe21   : > { %9834 = vmatpush.bf16.msrb.mxu0 %v12628_v40  ;;  %v12612_v32 = vor.u32 %v13271_v27, %v12609_v46  ;;  %v13284_v16 = vld [vmem:[#allocation20 + $0x294] sm:$0xf0]  ;;  %v12604_v11 = vor.u32 %v13269_v39, %v12601_v61  ;;  %v13266_v28 = vld [vmem:[#allocation20 + $0x204] sm:$0xf0] }
 0xe22   : > { %v9005_v22 = vadd.f32 %v8931_v25, %v8653_v29  ;;  %v9059_v19 = vpack.c.bf16 %v9043_v41, %v9041_v9  ;;  %v12697_v9 = vld [vmem:[#allocation20 + $0x2e8] sm:$0xf0]  ;;  %9805 = vmatpush.bf16.msra.mxu3 %v12688_v42  ;;  %v12673_v29 = vld [vmem:[#allocation20 + $0x2b8] sm:$0xf0]  ;;  %v12656_v42 = vor.u32 %v13284_v16, %v12655_v31  ;;  %v12584_v40 = vor.u32 %v13266_v28, %v12583_v56 }
 0xe23   : > { %9777 = vmatpush.bf16.msrb.mxu2 %v12616_v18  ;;  %v12676_v25 = vor.u32 %v13287_v51, %v12673_v29  ;;  %v12649_v18 = vld [vmem:[#allocation20 + $0x288] sm:$0xf0] }
 0xe24   : > { %v17320_v1 = vadd.f32 %v17238_v20, %v9005_v22  ;;  %9272 = vmatmul.bf16.gmra.mxu3 %v9059_v19  ;;  %9330 = vmatmul.bf16.gmra.mxu1 %v9059_v19  ;;  %v13293_v20 = vld [vmem:[#allocation20 + $0x2e4] sm:$0xf]  ;;  %v12665_v19 = vld [vmem:[#allocation20 + $0x2a8] sm:$0xf0] }
 0xe25   : > { %v12700_v17 = vor.u32 %v13293_v20, %v12697_v9  ;;  %9835 = vmatpush.bf16.msrb.mxu0 %v12620_v4  ;;  %v13285_v22 = vld [vmem:[#allocation20 + $0x2a4] sm:$0xf]  ;;  %v13283_v20 = vld [vmem:[#allocation20 + $0x294] sm:$0xf]  ;;  %v12657_v9 = vld [vmem:[#allocation20 + $0x298] sm:$0xf0] }
 0xe26   : > { %v9042_v10 = vmax.f32 %v17320_v1, 0.0  ;;  %9806 = vmatpush.bf16.msra.mxu3 %v12680_v62  ;;  %v12660_v13 = vor.u32 %v13283_v20, %v12657_v9  ;;  %v12652_v62 = vor.u32 %v13281_v38, %v12649_v18 }
 0xe27   : > { %9862 = vmatpush.bf16.msrb.mxu1 %v12700_v17  ;;  %9778 = vmatpush.bf16.msrb.mxu2 %v12608_v44  ;;  %v12647_v17 = vld [vmem:[#allocation20 + $0x280] sm:$0xf] }
 0xe28   : > { %v9058_v5 = vpack.c.bf16 %v9042_v10, %v9040_v8  ;;  %v12663_v8 = vld [vmem:[#allocation20 + $0x2a0] sm:$0xf]  ;;  %v12648_v48 = vor.u32 %v13282_v36, %v12647_v17 }
 0xe29   : > { %v12664_v0 = vor.u32 %v13286_v55, %v12663_v8  ;;  %9836 = vmatpush.bf16.msrb.mxu0 %v12612_v32 }
 0xe2a   : > { %9243 = vmatmul.bf16.gmra.mxu2 %v9058_v5  ;;  %9301 = vmatmul.bf16.gmra.mxu0 %v9058_v5  ;;  %v12668_v5 = vor.u32 %v13285_v22, %v12665_v19 }
 0xe2b   : > { %9863 = vmatpush.bf16.msrb.mxu1 %v12692_v49  ;;  %9807 = vmatpush.bf16.msra.mxu3 %v12672_v50  ;;  %v12596_v49 = vor.u32 %v13267_v59, %v12593_v43 }
 0xe2c   : > { %9779 = vmatpush.bf16.msrb.mxu2 %v12600_v33 }
 0xe2d   : > { %9837 = vmatpush.bf16.msrb.mxu0 %v12604_v11 }
 0xe2f   : > { %9864 = vmatpush.bf16.msrb.mxu1 %v12684_v54  ;;  %9808 = vmatpush.bf16.msra.mxu3 %v12664_v0 }
 0xe30   : > { %9780 = vmatpush.bf16.msrb.mxu2 %v12592_v53 }
 0xe31   : > { %9838 = vmatpush.bf16.msrb.mxu0 %v12596_v49 }
 0xe33   : > { %9865 = vmatpush.bf16.msrb.mxu1 %v12676_v25  ;;  %9809 = vmatpush.bf16.msra.mxu3 %v12656_v42 }
 0xe34   : > { %9533 = vmatmul.bf16.vlgmr.msrb.gmra.mxu3 %v9045_v3  ;;  %9591 = vmatmul.bf16.vlgmr.msra.gmra.mxu1 %v9045_v3  ;;  %v13265_v3 = vld [vmem:[#allocation20 + $0x204] sm:$0xf] }
 0xe35   : > { %9781 = vmatpush.bf16.msrb.mxu2 %v12584_v40 }
 0xe37   : > { %9866 = vmatpush.bf16.msrb.mxu1 %v12668_v5  ;;  %9810 = vmatpush.bf16.msra.mxu3 %v12648_v48 }
 0xe3a   : > { %9504 = vmatmul.bf16.vlgmr.msra.gmra.mxu2 %v9044_v52  ;;  %9562 = vmatmul.bf16.vlgmr.msra.gmra.mxu0 %v9044_v52  ;;  %v12585_v52 = vld [vmem:[#allocation20 + $0x208] sm:$0xf0] }
 0xe3b   : > { %9867 = vmatpush.bf16.msrb.mxu1 %v12660_v13  ;;  %v12588_v57 = vor.u32 %v13265_v3, %v12585_v52 }
 0xe3d   : > { %9839 = vmatpush.bf16.msrb.mxu0 %v12588_v57 }
 0xe3f   : > { %9868 = vmatpush.bf16.msrb.mxu1 %v12652_v62 }
 0xe44   : > { %9538 = vmatmul.bf16.gmra.mxu3 %v17260_v21  ;;  %9596 = vmatmul.bf16.gmra.mxu1 %v17260_v21 }
 0xe4a   : > { %9509 = vmatmul.bf16.gmra.mxu2 %v17269_v2  ;;  %9567 = vmatmul.bf16.gmra.mxu0 %v17269_v2 }
 0xe54   : > { %9543 = vmatmul.bf16.gmra.mxu3 %v17288_v35  ;;  %9601 = vmatmul.bf16.gmra.mxu1 %v17288_v35 }
 0xe5a   : > { %9514 = vmatmul.bf16.gmra.mxu2 %v17294_v6  ;;  %9572 = vmatmul.bf16.gmra.mxu0 %v17294_v6 }
 0xe64   : > { %9548 = vmatmul.bf16.gmra.mxu3 %v17306_v24  ;;  %9606 = vmatmul.bf16.gmra.mxu1 %v17306_v24 }
 0xe6a   : > { %9519 = vmatmul.bf16.gmra.mxu2 %v17315_v12  ;;  %9577 = vmatmul.bf16.gmra.mxu0 %v17315_v12 }
 0xe71   : > { %v9316_v7 = vpop.f32.mrf.mxu1 }
 0xe74   : > { %9811 = vmatmul.bf16.vlgmr.msra.gmra.mxu3 %v17260_v21  ;;  %9869 = vmatmul.bf16.vlgmr.msrb.gmra.mxu1 %v17260_v21 }
 0xe77   : > { %v9258_v26 = vpop.f32.mrf.mxu3  ;;  %v9287_v44 = vpop.f32.mrf.mxu0 }
 0xe78   : > { %v9317_v34 = vadd.f32 %v9316_v7, %v9287_v44 }
 0xe79   : > { %v9318_v23 = vpop.f32.mrf.mxu1 }
 0xe7a   : > { %9782 = vmatmul.bf16.vlgmr.msrb.gmra.mxu2 %v17269_v2  ;;  %9840 = vmatmul.bf16.vlgmr.msrb.gmra.mxu0 %v17269_v2 }
 0xe7d   : > { %v9229_v47 = vpop.f32.mrf.mxu2 }
 0xe7e   : > { %v9259_v50 = vadd.f32 %v9258_v26, %v9229_v47 }
 0xe7f   : > { %v17347_v4 = vpop.f32.mrf.mxu3  ;;  %v9289_v63 = vpop.f32.mrf.mxu0 }
 0xe80   : > { %v9319_v58 = vadd.f32 %v9318_v23, %v9289_v63 }
 0xe81   : > { %v9321_v60 = vpop.f32.mrf.mxu1 }
 0xe84   : > { %9816 = vmatmul.bf16.gmra.mxu3 %v17288_v35  ;;  %9874 = vmatmul.bf16.gmra.mxu1 %v17288_v35 }
 0xe85   : > { %v9231_v21 = vpop.f32.mrf.mxu2 }
 0xe86   : > { %v9261_v57 = vadd.f32 %v17347_v4, %v9231_v21 }
 0xe87   : > { %v9263_v54 = vpop.f32.mrf.mxu3  ;;  %v9292_v14 = vpop.f32.mrf.mxu0 }
 0xe88   : > { %v17351_v8 = vadd.f32 %v9321_v60, %v9292_v14 }
 0xe89   : > { %v9323_v55 = vpop.f32.mrf.mxu1 }
 0xe8a   : > { %9787 = vmatmul.bf16.gmra.mxu2 %v17294_v6  ;;  %9845 = vmatmul.bf16.gmra.mxu0 %v17294_v6 }
 0xe8d   : > { %v9234_v2 = vpop.f32.mrf.mxu2 }
 0xe8e   : > { %v17355_v33 = vadd.f32 %v9263_v54, %v9234_v2 }
 0xe8f   : > { %v17357_v0 = vpop.f32.mrf.mxu3  ;;  %v9294_v27 = vpop.f32.mrf.mxu0 }
 0xe90   : > { %v17359_v46 = vadd.f32 %v9323_v55, %v9294_v27 }
 0xe91   : > { %v9326_v51 = vpop.f32.mrf.mxu1 }
 0xe94   : > { %9821 = vmatmul.bf16.gmra.mxu3 %v17306_v24  ;;  %9879 = vmatmul.bf16.gmra.mxu1 %v17306_v24  ;;  %v9613_v24 = vpack.c.bf16 0.0, %v9043_v41 }
 0xe95   : > { %v17363_v35 = vpop.f32.mrf.mxu2 }
 0xe96   : > { %v9266_v27 = vadd.f32 %v17357_v0, %v17363_v35 }
 0xe97   : > { %v9268_v32 = vpop.f32.mrf.mxu3  ;;  %v9297_v29 = vpop.f32.mrf.mxu0 }
 0xe98   : > { %v17365_v25 = vadd.f32 %v9326_v51, %v9297_v29 }
 0xe99   : > { %v9328_v6 = vpop.f32.mrf.mxu1 }
 0xe9a   : > { %9792 = vmatmul.bf16.gmra.mxu2 %v17315_v12  ;;  %9850 = vmatmul.bf16.gmra.mxu0 %v17315_v12  ;;  %v9612_v12 = vpack.c.bf16 0.0, %v9042_v10 }
 0xe9d   : > { %v9239_v22 = vpop.f32.mrf.mxu2 }
 0xe9e   : > { %v17369_v19 = vadd.f32 %v9268_v32, %v9239_v22 }
 0xe9f   : > { %v9270_v5 = vpop.f32.mrf.mxu3  ;;  %v9299_v30 = vpop.f32.mrf.mxu0 }
 0xea0   : > { %v17371_v37 = vadd.f32 %v9328_v6, %v9299_v30 }
 0xea1   : > { %v9331_v31 = vpop.f32.mrf.mxu1 }
 0xea4   : > { %9826 = vmatmul.bf16.gmra.mxu3 %v9613_v24  ;;  %9884 = vmatmul.bf16.gmra.mxu1 %v9613_v24 }
 0xea5   : > { %v9241_v53 = vpop.f32.mrf.mxu2 }
 0xea6   : > { %v17375_v16 = vadd.f32 %v9270_v5, %v9241_v53 }
 0xea7   : > { %v9273_v39 = vpop.f32.mrf.mxu3  ;;  %v9302_v61 = vpop.f32.mrf.mxu0 }
 0xea8   : > { %v17377_v42 = vadd.f32 %v9331_v31, %v9302_v61 }
 0xea9   : > { %v9333_v11 = vpop.f32.mrf.mxu1 }
 0xeaa   : > { %9797 = vmatmul.bf16.gmra.mxu2 %v9612_v12  ;;  %9855 = vmatmul.bf16.gmra.mxu0 %v9612_v12 }
 0xead   : > { %v9244_v20 = vpop.f32.mrf.mxu2 }
 0xeae   : > { %v17381_v9 = vadd.f32 %v9273_v39, %v9244_v20 }
 0xeaf   : > { %v9275_v15 = vpop.f32.mrf.mxu3  ;;  %v9304_v41 = vpop.f32.mrf.mxu0 }
 0xeb0   : > { %v17383_v13 = vadd.f32 %v9333_v11, %v9304_v41 }
 0xeb1   : > { %v9592_v17 = vpop.f32.mrf.mxu1 }
 0xeb5   : > { %v9246_v36 = vpop.f32.mrf.mxu2 }
 0xeb6   : > { %v17385_v38 = vadd.f32 %v9275_v15, %v9246_v36 }
 0xeb7   : > { %v9534_v48 = vpop.f32.mrf.mxu3  ;;  %v9563_v18 = vpop.f32.mrf.mxu0 }
 0xeb8   : > { %v9564_v62 = vadd.f32 %v9563_v18, %v9317_v34 }
 0xeb9   : > { %v9594_v56 = vpop.f32.mrf.mxu1 }
 0xeba   : > { %v17387_v1 = vadd.f32 %v9592_v17, %v9564_v62 }
 0xebd   : > { %v9505_v10 = vpop.f32.mrf.mxu2 }
 0xebe   : > { %v9506_v28 = vadd.f32 %v9505_v10, %v9259_v50 }
 0xebf   : > { %v9536_v59 = vpop.f32.mrf.mxu3  ;;  %v9565_v40 = vpop.f32.mrf.mxu0 }
 0xec0   : > { %v17389_v43 = vadd.f32 %v9534_v48, %v9506_v28  ;;  %v9566_v49 = vadd.f32 %v9565_v40, %v9319_v58  ;;  %v13312_v28 = vld [vmem:[#allocation21 + $0x78] sm:$0xff] }
 0xec1   : > { %v9597_v3 = vpop.f32.mrf.mxu1  ;;  %10146 = vmatpush.bf16.msrb.mxu3 %v13312_v28 }
 0xec2   : > { %v17391_v52 = vadd.f32 %v9594_v56, %v9566_v49 }
 0xec5   : > { %v9507_v7 = vpop.f32.mrf.mxu2 }
 0xec6   : > { %v9508_v26 = vadd.f32 %v9507_v7, %v9261_v57  ;;  %v13303_v57 = vld [vmem:[#allocation21 + $0x30] sm:$0xff]  ;;  %v8144_v7 = vld [vmem:[%s17763_s7] sm:$0x3]  ;;  %s13955_s7 = sshra.s32 %s10241_s13, 4  ;;  %s13956_s7 = int_to_ptr.hbm [resolvable:$true] %s13955_s7 }
 0xec7   : > { %v9539_v44 = vpop.f32.mrf.mxu3  ;;  %v9568_v23 = vpop.f32.mrf.mxu0  ;;  %p13962_p4 = scmp.lt.s32.totalorder %s13956_s7, %s17780_s25 }
 0xec8   : > { %v17394_v34 = vadd.f32 %v9536_v59, %v9508_v26  ;;  %v9569_v47 = vadd.f32 %v9568_v23, %v17351_v8  ;;  %v17435_v23 = vperm.slane %v8144_v7, 1 }
 0xec9   : > { %v9599_v63 = vpop.f32.mrf.mxu1 }
 0xeca   : > { %v17397_v50 = vadd.f32 %v9597_v3, %v9569_v47 }
 0xecd   : > { %v9510_v60 = vpop.f32.mrf.mxu2 }
 0xece   : > { %v9511_v54 = vadd.f32 %v9510_v60, %v17355_v33 }
 0xecf   : > { %v9541_v58 = vpop.f32.mrf.mxu3  ;;  %v9570_v14 = vpop.f32.mrf.mxu0 }
 0xed0   : > { %v17400_v55 = vadd.f32 %v9539_v44, %v9511_v54  ;;  %v9571_v4 = vadd.f32 %v9570_v14, %v17359_v46  ;;  %v13302_v14 = vld [vmem:[#allocation21 + $0x28] sm:$0xff] }
 0xed1   : > { %v9602_v21 = vpop.f32.mrf.mxu1 }
 0xed2   : > { %v17403_v2 = vadd.f32 %v9599_v63, %v9571_v4 }
 0xed5   : > { %v9512_v51 = vpop.f32.mrf.mxu2 }
 0xed6   : > { %v9513_v8 = vadd.f32 %v9512_v51, %v9266_v27  ;;  %v17439_v27 = vperm.slane %v8144_v7, 0  ;;  %v13300_v7 = vld [vmem:[#allocation21 + $0x18] sm:$0xff] }
 0xed7   : > { %v9544_v32 = vpop.f32.mrf.mxu3  ;;  %v9573_v29 = vpop.f32.mrf.mxu0 }
 0xed8   : > { %v17407_v6 = vadd.f32 %v9541_v58, %v9513_v8  ;;  %v9574_v33 = vadd.f32 %v9573_v29, %v17365_v25 }
 0xed9   : > { %v9604_v22 = vpop.f32.mrf.mxu1 }
 0xeda   : > { %v17410_v5 = vadd.f32 %v9602_v21, %v9574_v33 }
 0xedd   : > { %v9515_v30 = vpop.f32.mrf.mxu2 }
 0xede   : > { %v9516_v46 = vadd.f32 %v9515_v30, %v17369_v19 }
 0xedf   : > { %v9546_v31 = vpop.f32.mrf.mxu3  ;;  %v9575_v24 = vpop.f32.mrf.mxu0 }
 0xee0   : > { %v17413_v53 = vadd.f32 %v9544_v32, %v9516_v46  ;;  %v9576_v0 = vadd.f32 %v9575_v24, %v17371_v37 }
 0xee1   : > { %v9607_v35 = vpop.f32.mrf.mxu1 }
 0xee2   : > { %v17416_v39 = vadd.f32 %v9604_v22, %v9576_v0  ;;  %v17764_v22 = vld [vmem:[#allocation67_spill] sm:$0xff] }
 0xee5   : > { %v9517_v61 = vpop.f32.mrf.mxu2 }
 0xee6   : > { %v9518_v12 = vadd.f32 %v9517_v61, %v17375_v16  ;;  %v13304_v16 = vld [vmem:[#allocation21 + $0x38] sm:$0xff]  ;;  %v13301_v61 = vld [vmem:[#allocation21 + $0x20] sm:$0xff] }
 0xee7   : > { %v9549_v11 = vpop.f32.mrf.mxu3  ;;  %v9578_v25 = vpop.f32.mrf.mxu0  ;;  %10133 = vmatpush.bf16.msra.mxu2 %v13304_v16 }
 0xee8   : > { %v17419_v20 = vadd.f32 %v9546_v31, %v9518_v12  ;;  %v9579_v15 = vadd.f32 %v9578_v25, %v17377_v42 }
 0xee9   : > { %v9609_v41 = vpop.f32.mrf.mxu1 }
 0xeea   : > { %v17422_v19 = vadd.f32 %v9607_v35, %v9579_v15 }
 0xeeb   : > { %10134 = vmatpush.bf16.msra.mxu2 %v13303_v57 }
 0xeed   : > { %v9520_v17 = vpop.f32.mrf.mxu2 }
 0xeee   : > { %v9521_v36 = vadd.f32 %v9520_v17, %v17381_v9  ;;  %v13309_v17 = vld [vmem:[#allocation21 + $0x60] sm:$0xff] }
 0xeef   : > { %v9551_v48 = vpop.f32.mrf.mxu3  ;;  %v9580_v37 = vpop.f32.mrf.mxu0  ;;  %10135 = vmatpush.bf16.msra.mxu2 %v13302_v14 }
 0xef0   : > { %v17425_v18 = vadd.f32 %v9549_v11, %v9521_v36  ;;  %v9581_v62 = vadd.f32 %v9580_v37, %v17383_v13  ;;  %v13311_v13 = vld [vmem:[#allocation21 + $0x70] sm:$0xff]  ;;  %v17766_v36 = vld [vmem:[#allocation69_spill] sm:$0xff] }
 0xef1   : > { %v9870_v56 = vpop.f32.mrf.mxu1  ;;  %10147 = vmatpush.bf16.msrb.mxu3 %v13311_v13  ;;  %v17765_v11 = vld [vmem:[#allocation68_spill] sm:$0xff] }
 0xef2   : > { %v17428_v10 = vadd.f32 %v9609_v41, %v9581_v62 }
 0xef3   : > { %10136 = vmatpush.bf16.msra.mxu2 %v13301_v61  ;;  %v13305_v61 = vld [vmem:[#allocation21 + $0x40] sm:$0xff] }
 0xef5   : > { %v9522_v42 = vpop.f32.mrf.mxu2 }
 0xef6   : > { %v9523_v59 = vadd.f32 %v9522_v42, %v17385_v38 }
 0xef7   : > { %v9812_v40 = vpop.f32.mrf.mxu3  ;;  %v9841_v49 = vpop.f32.mrf.mxu0  ;;  %10137 = vmatpush.bf16.msra.mxu2 %v13300_v7  ;;  %v17773_v7 = vld [vmem:[#allocation75_spill] sm:$0xff] }
 0xef8   : > { %v17431_v9 = vadd.f32 %v9551_v48, %v9523_v59  ;;  %v9871_v3 = vadd.f32 %v9870_v56, %v9841_v49  ;;  %v17767_v56 = vld [vmem:[#allocation70_spill] sm:$0xff] }
 0xef9   : > { %v9872_v26 = vpop.f32.mrf.mxu1 }
 0xefa   : > { %v9891_v44 = vadd.f32 %v9871_v3, %v17387_v1  ;;  %v13310_v1 = vld [vmem:[#allocation21 + $0x68] sm:$0xff] }
 0xefb   : > { %10148 = vmatpush.bf16.msrb.mxu3 %v13310_v1 }
 0xefc   : > { %v9912_v38 = vadd.f32 %v17435_v23, %v9891_v44 }
 0xefd   : > { %v9783_v47 = vpop.f32.mrf.mxu2 }
 0xefe   : > { %v9813_v63 = vadd.f32 %v9812_v40, %v9783_v47  ;;  %v9928_v8 = vadd.f32 %v9912_v38, %v16986_v45 }
 0xeff   : > { %v9814_v60 = vpop.f32.mrf.mxu3  ;;  %v9843_v54 = vpop.f32.mrf.mxu0  ;;  %10149 = vmatpush.bf16.msrb.mxu3 %v13309_v17  ;;  %v14087_v17 = vmov 8.0  }
 0xf00   : > { %v9873_v58 = vadd.f32 %v9872_v26, %v9843_v54  ;;  %v9890_v21 = vadd.f32 %v9813_v63, %v17389_v43  ;;  %v9944_v43 = vmax.f32 %v9928_v8, 0.0  ;;  %v13308_v26 = vld [vmem:[#allocation21 + $0x58] sm:$0xff]  ;;  %13549 = vrcp.f32 %v14087_v17 }
 0xf01   : > { %v9875_v4 = vpop.f32.mrf.mxu1 }
 0xf02   : > { %v9893_v51 = vadd.f32 %v9873_v58, %v17391_v52  ;;  %v9911_v33 = vadd.f32 %v17439_v27, %v9890_v21  ;;  %v13307_v58 = vld [vmem:[#allocation21 + $0x50] sm:$0xff]  ;;  %v17769_v21 = vld [vmem:[#allocation71_spill] sm:$0xff] }
 0xf03   : > { %10150 = vmatpush.bf16.msrb.mxu3 %v13308_v26 }
 0xf04   : > { %v9914_v32 = vadd.f32 %v17435_v23, %v9893_v51  ;;  %v9927_v45 = vadd.f32 %v9911_v33, %v17765_v11 }
 0xf05   : > { %v9785_v29 = vpop.f32.mrf.mxu2 }
 0xf06   : > { %v9930_v30 = vadd.f32 %v9914_v32, %v17764_v22  ;;  %v9815_v46 = vadd.f32 %v9814_v60, %v9785_v29  ;;  %v9943_v16 = vmax.f32 %v9927_v45, 0.0  ;;  %v17768_v60 = vld [vmem:[#allocation72_spill] sm:$0xff]  ;;  %v17771_v45 = vld [vmem:[#allocation74_spill] sm:$0xff] }
 0xf07   : > { %v9817_v31 = vpop.f32.mrf.mxu3  ;;  %v9846_v24 = vpop.f32.mrf.mxu0  ;;  %10151 = vmatpush.bf16.msrb.mxu3 %v13307_v58  ;;  %v13299_v22 = vld [vmem:[#allocation21 + $0x10] sm:$0xff] }
 0xf08   : > { %v9946_v0 = vmax.f32 %v9930_v30, 0.0  ;;  %v9892_v35 = vadd.f32 %v9815_v46, %v17394_v34  ;;  %v9876_v52 = vadd.f32 %v9875_v4, %v9846_v24  ;;  %v13306_v30 = vld [vmem:[#allocation21 + $0x48] sm:$0xff]  ;;  %10138 = vmatpush.bf16.msra.mxu2 %v13299_v22 }
 0xf09   : > { %v9877_v12 = vpop.f32.mrf.mxu1 }
 0xf0a   : > { %v10016_v25 = vadd.f32 %v9946_v0, %v9944_v43  ;;  %v9913_v15 = vadd.f32 %v17439_v27, %v9892_v35  ;;  %v9895_v41 = vadd.f32 %v9876_v52, %v17397_v50  ;;  %v17770_v0 = vld [vmem:[#allocation73_spill] sm:$0xff] }
 0xf0b   : > { %10152 = vmatpush.bf16.msrb.mxu3 %v13306_v30 }
 0xf0c   : > { %v9929_v48 = vadd.f32 %v9913_v15, %v17766_v36  ;;  %v9916_v37 = vadd.f32 %v17435_v23, %v9895_v41  ;;  %v13298_v15 = vld [vmem:[#allocation21 + $0x8] sm:$0xff] }
 0xf0d   : > { %v9788_v62 = vpop.f32.mrf.mxu2  ;;  %10139 = vmatpush.bf16.msra.mxu2 %v13298_v15 }
 0xf0e   : > { %v9945_v34 = vmax.f32 %v9929_v48, 0.0  ;;  %v9932_v28 = vadd.f32 %v9916_v37, %v17767_v56  ;;  %v9818_v42 = vadd.f32 %v9817_v31, %v9788_v62 }
 0xf0f   : > { %v9819_v59 = vpop.f32.mrf.mxu3  ;;  %v9848_v40 = vpop.f32.mrf.mxu0  ;;  %10153 = vmatpush.bf16.msrb.mxu3 %v13305_v61 }
 0xf10   : > { %v10009_v49 = vadd.f32 %v9945_v34, %v9943_v16  ;;  %v9948_v3 = vmax.f32 %v9932_v28, 0.0  ;;  %v9894_v57 = vadd.f32 %v9818_v42, %v17400_v55  ;;  %v9878_v50 = vadd.f32 %v9877_v12, %v9848_v40  ;;  %v13297_v28 = vld [vmem:[#allocation21] sm:$0xff]  ;;  %v17772_v42 = vld [vmem:[#allocation76_spill] sm:$0xff] }
 0xf11   : > { %v9880_v13 = vpop.f32.mrf.mxu1  ;;  %10140 = vmatpush.bf16.msra.mxu2 %v13297_v28  ;;  %v17778_v28 = vld [vmem:[#allocation81_spill] sm:$0xff] }
 0xf12   : > { %v10017_v44 = vadd.f32 %v10016_v25, %v9948_v3  ;;  %v9915_v47 = vadd.f32 %v17439_v27, %v9894_v57  ;;  %v9897_v63 = vadd.f32 %v9878_v50, %v17403_v2 }
 0xf14   : > { %v9931_v54 = vadd.f32 %v9915_v47, %v17768_v60  ;;  %v9918_v38 = vadd.f32 %v17435_v23, %v9897_v63 }
 0xf15   : > { %v9790_v14 = vpop.f32.mrf.mxu2 }
 0xf16   : > { %v9947_v4 = vmax.f32 %v9931_v54, 0.0  ;;  %v9934_v55 = vadd.f32 %v9918_v38, %v17769_v21  ;;  %v9820_v51 = vadd.f32 %v9819_v59, %v9790_v14  ;;  %v13319_v54 = vld [vmem:[#allocation23 + $0x30] sm:$0xff] }
 0xf17   : > { %v9822_v1 = vpop.f32.mrf.mxu3  ;;  %v9851_v8 = vpop.f32.mrf.mxu0 }
 0xf18   : > { %v10010_v32 = vadd.f32 %v10009_v49, %v9947_v4  ;;  %v9950_v29 = vmax.f32 %v9934_v55, 0.0  ;;  %v9896_v33 = vadd.f32 %v9820_v51, %v17407_v6  ;;  %v9881_v2 = vadd.f32 %v9880_v13, %v9851_v8  ;;  %v13550_v49 = vpop.eup %13549  ;;  %v13320_v13 = vld [vmem:[#allocation23 + $0x38] sm:$0xff]  ;;  %v13318_v8 = vld [vmem:[#allocation23 + $0x28] sm:$0xff] }
 0xf19   : > { %v9882_v43 = vpop.f32.mrf.mxu1  ;;  %10211 = vmatpush.bf16.msrb.mxu2 %v13320_v13  ;;  %v10024_v38 = vmul.f32 8.0, %v13550_v49  ;;  %v17774_v55 = vld [vmem:[#allocation77_spill] sm:$0xff]  ;;  %vm10028_vm4 = vweird.f32 %v13550_v49 }
 0xf1a   : > { %v10018_v46 = vadd.f32 %v10017_v44, %v9950_v29  ;;  %v9917_v31 = vadd.f32 %v17439_v27, %v9896_v33  ;;  %v9899_v24 = vadd.f32 %v9881_v2, %v17410_v5 }
 0xf1b   : > { %v10025_v29 = vsub.f32 1.0, %v10024_v38 }
 0xf1c   : > { %v9933_v35 = vadd.f32 %v9917_v31, %v17770_v0  ;;  %v9920_v52 = vadd.f32 %v17435_v23, %v9899_v24  ;;  %v13317_v0 = vld [vmem:[#allocation23 + $0x20] sm:$0xff] }
 0xf1d   : > { %v9793_v12 = vpop.f32.mrf.mxu2  ;;  %10212 = vmatpush.bf16.msrb.mxu2 %v13319_v54 }
 0xf1e   : > { %v9949_v11 = vmax.f32 %v9933_v35, 0.0  ;;  %v9936_v6 = vadd.f32 %v9920_v52, %v17771_v45  ;;  %v9823_v25 = vadd.f32 %v9822_v1, %v9793_v12  ;;  %v10026_v35 = vmul.f32 %v13550_v49, %v10025_v29 }
 0xf1f   : > { %v9853_v41 = vpop.f32.mrf.mxu0  ;;  %v9824_v62 = vpop.f32.mrf.mxu3 }
 0xf20   : > { %v10011_v36 = vadd.f32 %v10010_v32, %v9949_v11  ;;  %v9952_v5 = vmax.f32 %v9936_v6, 0.0  ;;  %v9898_v48 = vadd.f32 %v9823_v25, %v17413_v53  ;;  %v9883_v37 = vadd.f32 %v9882_v43, %v9853_v41  ;;  %v17776_v11 = vld [vmem:[#allocation80_spill] sm:$0xff]  ;;  %v13316_v25 = vld [vmem:[#allocation23 + $0x18] sm:$0xff] }
 0xf21   : > { %v9885_v3 = vpop.f32.mrf.mxu1  ;;  %10213 = vmatpush.bf16.msrb.mxu2 %v13318_v8  ;;  %v10027_v41 = vadd.f32 %v13550_v49, %v10026_v35 }
 0xf22   : > { %v10019_v16 = vadd.f32 %v10018_v46, %v9952_v5  ;;  %v9919_v34 = vadd.f32 %v17439_v27, %v9898_v48  ;;  %v9901_v56 = vadd.f32 %v9883_v37, %v17416_v39 }
 0xf24   : > { %v9935_v59 = vadd.f32 %v9919_v34, %v17772_v42  ;;  %v9922_v40 = vadd.f32 %v17435_v23, %v9901_v56 }
 0xf25   : > { %v9795_v57 = vpop.f32.mrf.mxu2  ;;  %10214 = vmatpush.bf16.msrb.mxu2 %v13317_v0 }
 0xf26   : > { %v9951_v50 = vmax.f32 %v9935_v59, 0.0  ;;  %v9938_v53 = vadd.f32 %v9922_v40, %v17773_v7  ;;  %v9825_v26 = vadd.f32 %v9824_v62, %v9795_v57  ;;  %v13315_v7 = vld [vmem:[#allocation23 + $0x10] sm:$0xff] }
 0xf27   : > { %v9856_v44 = vpop.f32.mrf.mxu0  ;;  %v9827_v21 = vpop.f32.mrf.mxu3 }
 0xf28   : > { %v10012_v47 = vadd.f32 %v10011_v36, %v9951_v50  ;;  %v9954_v63 = vmax.f32 %v9938_v53, 0.0  ;;  %v9900_v60 = vadd.f32 %v9825_v26, %v17419_v20  ;;  %v9886_v39 = vadd.f32 %v9885_v3, %v9856_v44  ;;  %v17775_v20 = vld [vmem:[#allocation78_spill] sm:$0xff] }
 0xf29   : > { %v9887_v30 = vpop.f32.mrf.mxu1  ;;  %10215 = vmatpush.bf16.msrb.mxu2 %v13316_v25  ;;  %v13547_v53 = vld [vmem:[%s17779_s2] ss:$0 sm:$0xff]  ;;  %s13957_s2 = scalar_lea.hbm %s13956_s7, 8 }
 0xf2a   : > { %v10020_v58 = vadd.f32 %v10019_v16, %v9954_v63  ;;  %v9921_v14 = vadd.f32 %v17439_v27, %v9900_v60  ;;  %v9903_v4 = vadd.f32 %v9886_v39, %v17422_v19  ;;  %v13548_v39 = vld [vmem:[%s17781_s3] ss:$0 sm:$0xff]  ;;  %p13958_p1 = scmp.ne.s32.totalorder %s13956_s7, %s13957_s2  ;;  %p13963_p7 = scmp.lt.s32.totalorder %s13961_s15, %s13957_s2 }
 0xf2c   : > { %v9937_v51 = vadd.f32 %v9921_v14, %v17774_v55  ;;  %v9924_v1 = vadd.f32 %v17435_v23, %v9903_v4  ;;  %p13959_p12 = pnand %p13958_p1, %p14316_p6  ;;  %p13964_p8 = por %p13963_p7, %p13962_p4 }
 0xf2d   : > { %v9798_v32 = vpop.f32.mrf.mxu2  ;;  %10216 = vmatpush.bf16.msrb.mxu2 %v13315_v7 }
 0xf2e   : > { %v9953_v33 = vmax.f32 %v9937_v51, 0.0  ;;  %v9940_v2 = vadd.f32 %v9924_v1, %v17775_v20  ;;  %v9828_v22 = vadd.f32 %v9827_v21, %v9798_v32  ;;  %p13960_p3 = pneg %p13959_p12 }
 0xf2f   : > { %v9858_v46 = vpop.f32.mrf.mxu0  ;;  %v9829_v15 = vpop.f32.mrf.mxu3 }
 0xf30   : > { %v10013_v31 = vadd.f32 %v10012_v47, %v9953_v33  ;;  %v9956_v24 = vmax.f32 %v9940_v2, 0.0  ;;  %v9902_v43 = vadd.f32 %v9828_v22, %v17425_v18  ;;  %v9888_v19 = vadd.f32 %v9887_v30, %v9858_v46  ;;  %v17777_v18 = vld [vmem:[#allocation79_spill] sm:$0xff]  ;;  %p13965_p9 = pnand %p13964_p8, %p13960_p3 }
 0xf32   : > { %v10021_v52 = vadd.f32 %v10020_v58, %v9956_v24  ;;  %v9923_v61 = vadd.f32 %v17439_v27, %v9902_v43  ;;  %v9905_v12 = vadd.f32 %v9888_v19, %v17428_v10  ;;  %v10029_v10 = vsel %vm10028_vm4, %v13550_v49, %v10027_v41 }
 0xf34   : > { %v9939_v45 = vadd.f32 %v9923_v61, %v17776_v11  ;;  %v9926_v6 = vadd.f32 %v17435_v23, %v9905_v12 }
 0xf35   : > { %v9800_v17 = vpop.f32.mrf.mxu2 }
 0xf36   : > { %v9955_v36 = vmax.f32 %v9939_v45, 0.0  ;;  %v9942_v5 = vadd.f32 %v9926_v6, %v17777_v18  ;;  %v9830_v48 = vadd.f32 %v9829_v15, %v9800_v17 }
 0xf38   : > { %v10014_v37 = vadd.f32 %v10013_v31, %v9955_v36  ;;  %v9958_v62 = vmax.f32 %v9942_v5, 0.0  ;;  %v9904_v16 = vadd.f32 %v9830_v48, %v17431_v9  ;;  %v13314_v9 = vld [vmem:[#allocation23 + $0x8] sm:$0xff] }
 0xf39   : > { %10217 = vmatpush.bf16.msrb.mxu2 %v13314_v9 }
 0xf3a   : > { %v10022_v34 = vadd.f32 %v10021_v52, %v9958_v62  ;;  %v9925_v56 = vadd.f32 %v17439_v27, %v9904_v16  ;;  %v13313_v27 = vld [vmem:[#allocation23] sm:$0xff] }
 0xf3c   : > { %v10031_v23 = vmul.f32 %v10029_v10, %v10022_v34  ;;  %v9941_v42 = vadd.f32 %v9925_v56, %v17778_v28 }
 0xf3d   : > { %10218 = vmatpush.bf16.msrb.mxu2 %v13313_v27 }
 0xf3e   : > { %v10033_v59 = vpack.c.bf16 %v10031_v23, %v10031_v23  ;;  %v9957_v40 = vmax.f32 %v9941_v42, 0.0 }
 0xf40   : > { %v10015_v3 = vadd.f32 %v10014_v37, %v9957_v40  ;;  %10154 = vmatmul.bf16.vlgmr.msrb.gmra.mxu3 %v10033_v59 }
 0xf42   : > { %v10030_v57 = vmul.f32 %v10029_v10, %v10015_v3 }
 0xf44   : > { %v10032_v50 = vpack.c.bf16 %v10030_v57, %v10030_v57 }
 0xf46   : > { %10141 = vmatmul.bf16.vlgmr.msra.gmra.mxu2 %v10032_v50 }
 0xfc3   : > { %v10155_v49 = vpop.f32.mrf.mxu3 }
 0xfc9   : > { %v10142_v26 = vpop.f32.mrf.mxu2 }
 0xfca   : > { %v10143_v13 = vadd.f32 %v13547_v53, %v10142_v26 }
 0xfcb   : > { %v10157_v44 = vpop.f32.mrf.mxu3 }
 0xfcc   : > { %v10156_v47 = vadd.f32 %v10155_v49, %v10143_v13 }
 0xfce   : > { %v10159_v63 = vpack.c.bf16 %v10156_v47, %v10156_v47 }
 0xfd0   : > { %10219 = vmatmul.bf16.vlgmr.msrb.gmra.mxu2 %v10159_v63 }
 0xfd1   : > { %v10144_v60 = vpop.f32.mrf.mxu2 }
0x1053   : > { %v10220_v54 = vpop.f32.mrf.mxu2 }
0x1054   : > { %v10221_v38 = vadd.f32 %v13548_v39, %v10220_v54 }
0x1056   : > { %10224 = vst [vmem:[%s1570_s10] sm:$0xff] %v10221_v38 }
0x1057   : > { %13968 = shalt.err (!%p13965_p9)
}
0x1058   : > { %13377 = dma.vmem_to_hbm [thread:$0]  (%p14316_p6), %s10239_s0, 128, %s10241_s13, %s10226_s18  }
0x105b   : > { %v10222_v58 = vpop.f32.mrf.mxu2 }
0x105c PF: > { %s17783_s3 = sld [smem:[#allocation58_spill]]  ;;  %p13420_p13 = pnand %p10482_p11, %p14322_p10 }
0x105e   : > { %p13421_p5 = pneg %p13420_p13 }
0x1062   : > { %s10252_s12 = sand.u32 1, %s17783_s3  }
0x1063   : > { %s10253_s9 = scalar_lea.sflag [#allocation5], %s10252_s12 }
0x1064   : > { %14014 = dma.done.wait (%p13421_p5), %s10253_s9, 128  }
0x1065   : > { %14016 = vsyncadd (%p13421_p5), %s10253_s9, 4294967168  ;;  %s17785_s28 = sld [smem:[#allocation60_spill]]  ;;  %s17787_s22 = smov %s14023_s23 }
0x1066   : > { %s17786_s10 = sld [smem:[#allocation61_spill]]  ;;  %s17788_s23 = smov %s14027_s26 }
0x106b   : > { %p88_p0 = scmp.ge.s32.totalorder %s17785_s28, 4  }
0x106c   : > { %s17789_s26 = smov %s17786_s10 }
0x106d   :  { %90 = sbr.rel (!%p88_p0) target bundleno = 77 (0x4d), region = 326 }
0x1072   :  { %10259 = vsyncpa [#allocation4], 1 }
0x1073   :  { %10261 = vsyncpa [#allocation4 + $0x1], 1 }
0x1074   :  { %10262 = vsyncpa [#allocation7], 1 }
0x1075   :  { %10263 = vsyncpa [#allocation10], 1 }
0x1076   :  { %10264 = vsyncpa [#allocation13], 1 }
0x1077   :  { %10265 = vsyncpa [#allocation16], 1 }
0x1078   :  { %10266 = vsyncpa [#allocation19], 1 }
0x1079   :  { %10267 = vsyncpa [#allocation22], 1 }
0x107a   :  { %10268 = vsyncpa [#allocation5], 1 }
0x107b   :  { %10270 = vsyncpa [#allocation5 + $0x1], 1 }

</bundles_post_ra>
